<compile_context>
chip_gen: v5e
topology: v5e:2x2
jax: 0.10.0
libtpu: 0.0.40
codegen_flags: <defaults>
</compile_context>

<pallas_src>
import math
import numpy as np
import jax
import jax.numpy as jnp
from jax.experimental import pallas as pl
from jax.experimental.pallas import tpu as pltpu

# ----------------------------- model configuration -----------------------------
EMBED_DIM = 32                      # embed_dim
NDIM = 2                            # ndim
N_SSM = 8                           # args.n_ssm
DIRECTIONS = 4                      # args.directions_amount
SEQ_LEN = 64                        # L (must be a perfect square)
SIDE = int(math.isqrt(SEQ_LEN))     # one_side_length = 8
KERNEL_DIM = DIRECTIONS * N_SSM     # 32
REPEAT = EMBED_DIM // N_SSM         # 4
SCALE = math.sqrt(1.0 / NDIM)
BATCH = 2

F_LANES = DIRECTIONS * EMBED_DIM    # 128 -- folded (direction, channel) lane axis
# NHWC flip axes per direction, matching torch flip_dims [[], [-2], [-1], [-2, -1]]
FLIP_AXES = ((), (1,), (2,), (1, 2))


# ----------------------------- parameter init (deterministic) ------------------
def init_params(key):
    ks = jax.random.split(key, 10)
    p = {}
    # nn.init.normal_(std=0.2) for A_*, B_*; std=1.0 for C_*, omega
    p["A_1"] = 0.2 * jax.random.normal(ks[0], (KERNEL_DIM, NDIM), jnp.float32)
    p["A_2"] = 0.2 * jax.random.normal(ks[1], (KERNEL_DIM, NDIM), jnp.float32)
    p["A_3"] = 0.2 * jax.random.normal(ks[2], (KERNEL_DIM, NDIM), jnp.float32)
    p["A_4"] = 0.2 * jax.random.normal(ks[3], (KERNEL_DIM, NDIM), jnp.float32)
    p["B_1"] = 0.2 * jax.random.normal(ks[4], (KERNEL_DIM, NDIM), jnp.float32)
    p["B_2"] = 0.2 * jax.random.normal(ks[5], (KERNEL_DIM, NDIM), jnp.float32)
    p["C_1"] = jax.random.normal(ks[6], (KERNEL_DIM, NDIM), jnp.float32)
    p["C_2"] = jax.random.normal(ks[7], (KERNEL_DIM, NDIM), jnp.float32)
    p["omega"] = jax.random.normal(ks[8], (EMBED_DIM,), jnp.float32)
    return p


# ----------------------------- SSM impulse-response kernel (glue, vectorised) ----
def compute_ssm_kernel(params, L):
    """2-D SSM impulse response, shape (L, L, KERNEL_DIM), real case.

    # TODO(synk): the original module builds this via CoeffCalculator's precomputed
    # coefficient matrices (code not provided); the mathematically equivalent
    # Roesser-style 2-D recursion is evaluated here, vectorised as a lax.scan over rows
    # with a closed-form in-row (column) sweep, so the glue is a handful of XLA ops
    # instead of a 64-step Python double loop.
    """
    A1 = jax.nn.sigmoid(params["A_1"])
    A2 = jax.nn.sigmoid(params["A_2"])
    A3 = jax.nn.sigmoid(params["A_3"])
    A4 = jax.nn.sigmoid(params["A_4"])
    B1 = jax.nn.sigmoid(params["B_1"])
    B2 = jax.nn.sigmoid(params["B_2"])
    C1s = params["C_1"] * SCALE
    C2s = params["C_2"] * SCALE

    H, N = A1.shape
    t = jnp.arange(L, dtype=jnp.float32)
    # P[j] = A1**j  (A1 = sigmoid(.) > 0, so powers are safe)
    P = A1[None, :, :] ** t[:, None, None]                                # (L, H, N)
    # E[j, m] = A1**(j-1-m) for m <= j-1 else 0 : in-row propagation weights
    jj = t[:, None]
    mm = t[None, :]
    valid = (mm <= jj - 1.0)
    # clamp the exponent before ** so the masked branch never produces inf/NaN
    expo = jnp.maximum(jj - 1.0 - mm, 0.0)
    E = jnp.where(valid[:, :, None, None],
                  A1[None, None] ** expo[:, :, None, None],
                  0.0)                                                    # (L, L, H, N)

    # row 0 (impulse injected at (0, 0)):
    #   h[0][j] = A1**j * B1 + A1**(j-1) * A2 * B2   (2nd term only for j >= 1)
    #   v[0][j] = B2 * [j == 0]
    P_shift = jnp.concatenate([jnp.zeros((1, H, N), jnp.float32), P[:-1]], axis=0)
    h_row = P * B1[None] + P_shift * (A2 * B2)[None]                      # (L, H, N)
    v_row = jnp.zeros((L, H, N), jnp.float32).at[0].set(B2)

    def row_step(carry, _):
        h_prev, v_prev = carry
        # v[i][j] = A3*h[i-1][j] + A4*v[i-1][j]   (elementwise over j)
        v_new = A3[None] * h_prev + A4[None] * v_prev
        # h[i][j] = sum_{m<j} A1**(j-1-m) * A2 * v[i][m]
        h_new = A2[None] * jnp.einsum('jmhn,mhn->jhn', E, v_new)
        k_row = jnp.sum(h_new * C1s[None] + v_new * C2s[None], axis=-1)   # (L, H)
        return (h_new, v_new), k_row

    k_row0 = jnp.sum(h_row * C1s[None] + v_row * C2s[None], axis=-1)
    _, k_rest = jax.lax.scan(row_step, (h_row, v_row), xs=None, length=L - 1)
    k = jnp.concatenate([k_row0[None], k_rest], axis=0)                   # (L, L, H)

    # boundary corrections from _compute_kernel
    k = k.at[0, :, :].multiply(2.0)
    k = k.at[:, 0, :].multiply(2.0)
    k = k.at[0, 0, :].divide(4.0)
    return k


def fold_direction_kernels(k_ssm):
    """(L, L, KERNEL_DIM) -> (L, L, DIRECTIONS*EMBED_DIM), returned q-major ([q, p, f]).

    Lane f = d*EMBED_DIM + c holds direction d's kernel for embedding channel c.
    The fairseq module expands with einops '(h n)' where the source has no 'h' axis,
    i.e. channel c -> chunk[c % n_ssm]; jnp.tile reproduces exactly that ordering.
    """
    chunks = [jnp.tile(k_ssm[:, :, d * N_SSM:(d + 1) * N_SSM], (1, 1, REPEAT))
              for d in range(DIRECTIONS)]
    k4 = jnp.concatenate(chunks, axis=-1)           # (L, L, F), indexed [p, q, f]
    return jnp.transpose(k4, (1, 0, 2))             # [q, p, f] for per-q tap hoisting


# ----------------------------- Pallas kernel (hot path) ------------------------
def _ssm_conv_kernel(x4_ref, ktab_ref, out_ref, xpad_ref, pscr_ref):
    """4-direction depthwise causal 2-D conv; directions folded into the 128-lane axis.

    x4_ref  : (BB, L, L, F)     per-direction pre-flipped image copies, F = 4*embed = 128
    ktab_ref: (L, L, L, F)      taps indexed [q, p, j, f]; replicated over j (sublanes)
                                so the in-kernel tap is a plain 1-vreg load
    out_ref : (BB, L, L, F)     per-direction causal-conv outputs (still in flipped frame)
    xpad_ref: (BB, 2L, L, F)    VMEM scratch: row-zero-padded image (rows [0,L) = 0)
    pscr_ref: (2, L, 2L, F)     VMEM bounce buffers; left halves stay zero and provide
                                the causal column mask for the per-q sublane shift
    """
    L = SIDE
    BB = x4_ref.shape[0]

    # --- prologue: zero only the L pad rows; image rows fully overwritten below -----
    xpad_ref[:, 0:L, :, :] = jnp.zeros((BB, L, L, F_LANES), jnp.float32)
    xpad_ref[:, L:2 * L, :, :] = x4_ref[...]
    # zero left halves of the bounce buffers once; columns [0, L) are never written
    pscr_ref[:, :, 0:L, :] = jnp.zeros((2, L, L, F_LANES), jnp.float32)

    for b in range(BB):                              # BB = 2 merged (v5e/v6e) or 1 (v7x)
        acc = jnp.zeros((L, L, F_LANES), jnp.float32)        # 8 vregs, 128-lane dense
        for q in range(L):
            # narrow partial: part[i, j'] = sum_p k[p, q] * x[i - p, j']
            part = jnp.zeros((L, L, F_LANES), jnp.float32)   # 8 vregs
            for p in range(L):
                # tile-aligned row window: row shift = outer-dim address selection
                slab = xpad_ref[b, L - p:2 * L - p, :, :]    # (L, L, F)
                # sublane-pre-broadcast tap: one vreg load, no broadcast_in_dim
                tap = ktab_ref[q, p]                         # (L, F)
                part = part + tap * slab
            # realise the column shift by q: store the partial at the aligned right
            # half, read back at sublane offset L - q; the zero left half supplies
            # the causal mask (output column j gets part[:, j - q] or 0).
            s = q & 1                                        # ping-pong: breaks WAR chain
            pscr_ref[s, :, L:2 * L, :] = part
            acc = acc + pscr_ref[s, :, L - q:2 * L - q, :]
        # unmasked, 128-lane-dense store
        out_ref[b, :, :, :] = acc.astype(out_ref.dtype)


# ----------------------------- wrapper ------------------------------------------
def _multi_tensorcore():
    """True on parts with >1 TensorCore per chip (v7x): split the batch over TCs."""
    try:
        kind = jax.devices()[0].device_kind.lower()
    except Exception:
        return False
    return "v7" in kind


def two_d_ssm_forward(x, params):
    """x: (seq_len, batch, embed_dim) float32  ->  (seq_len, batch, embed_dim)"""
    seq, B, D = x.shape
    L = SIDE

    k_ssm = compute_ssm_kernel(params, L)            # (L, L, kernel_dim)
    k4q = fold_direction_kernels(k_ssm)              # (L, L, F), [q, p, f]
    # sublane-pre-broadcast tap table (256 KiB): ktab[q, p, j, f] = k4q[q, p, f] for all j
    ktab = jnp.broadcast_to(k4q[:, :, None, :], (L, L, L, F_LANES))

    # (seq, B, D) -> NHWC (B, L, L, D); t = i*L + j
    x_nhwc = x.reshape(L, L, B, D).transpose(2, 0, 1, 3)

    # Pre-flip one image copy per direction and fold the copies into the lane axis;
    # all 4 directional "causal" convs then share a single (p, q) read pattern.
    x4 = jnp.concatenate(
        [jnp.flip(x_nhwc, axis=ax) if ax else x_nhwc for ax in FLIP_AXES], axis=-1)

    # v7x: one batch per grid step -> the two batches land on the two TensorCores.
    # v5e/v6e: single TC -> merge both batches into one grid step (no per-step overhead).
    nb = B if (_multi_tensorcore() and B > 1 and B % 2 == 0) else 1
    bb = B // nb

    out4 = pl.pallas_call(
        _ssm_conv_kernel,
        out_shape=jax.ShapeDtypeStruct((B, L, L, F_LANES), jnp.float32),
        grid_spec=pltpu.PrefetchScalarGridSpec(
            num_scalar_prefetch=0,
            grid=(nb,),
            in_specs=[
                pl.BlockSpec((bb, L, L, F_LANES), lambda i: (i, 0, 0, 0)),
                pl.BlockSpec((L, L, L, F_LANES), lambda i: (0, 0, 0, 0)),
            ],
            out_specs=pl.BlockSpec((bb, L, L, F_LANES), lambda i: (i, 0, 0, 0)),
            scratch_shapes=[
                pltpu.VMEM((bb, 2 * L, L, F_LANES), jnp.float32),   # row-padded image
                pltpu.VMEM((2, L, 2 * L, F_LANES), jnp.float32),    # column-shift bounce
            ],
        ),
        compiler_params=pltpu.CompilerParams(dimension_semantics=("parallel",)),
    )(x4, ktab)

    # tiny XLA epilogue: un-flip each direction, sum, residual, SiLU
    # TODO(synk): stretch optimisation (fuse this + the x4 prologue into the kernel)
    conv = jnp.zeros_like(x_nhwc)
    for d, ax in enumerate(FLIP_AXES):
        g = out4[..., d * D:(d + 1) * D]
        conv = conv + (jnp.flip(g, axis=ax) if ax else g)
    y = jax.nn.silu(conv + x_nhwc * params["omega"])
    return y.transpose(1, 2, 0, 3).reshape(seq, B, D)


# ----------------------------- pure-JAX reference (mirrors the torch FFT path) ---
def reference_forward(x, params):
    seq, B, D = x.shape
    L = SIDE
    k_ssm = compute_ssm_kernel(params, L)                 # (L, L, kernel_dim)
    k = jnp.transpose(k_ssm, (2, 0, 1))                   # (kernel_dim, L, L)
    residual = x * params["omega"]
    xb = jnp.transpose(x, (1, 2, 0)).reshape(B, D, L, L)  # NCHW
    kernels = [jnp.tile(k[d * N_SSM:(d + 1) * N_SSM], (REPEAT, 1, 1))
               for d in range(DIRECTIONS)]
    flips = [(), (-2,), (-1,), (-2, -1)]
    out = jnp.zeros((B, D, L, L), jnp.float32)
    for kd, fl in zip(kernels, flips):
        cx = jnp.flip(xb, axis=fl) if fl else xb
        kf = jnp.fft.rfft2(kd.astype(jnp.float32), s=(2 * L, 2 * L))
        xf = jnp.fft.rfft2(cx.astype(jnp.float32), s=(2 * L, 2 * L))
        curr = jnp.fft.irfft2(xf * kf, s=(2 * L, 2 * L))[..., :L, :L]
        curr = jnp.flip(curr, axis=fl) if fl else curr
        out = out + curr
    out = out.reshape(B, D, seq)
    out = jnp.transpose(out, (2, 0, 1)) + residual
    return jax.nn.silu(out)


# ----------------------------- main ----------------------------------------------
if __name__ == "__main__":
    key = jax.random.PRNGKey(0)
    pkey, xkey = jax.random.split(key)
    params = init_params(pkey)
    x = jax.random.normal(xkey, (SEQ_LEN, BATCH, EMBED_DIM), jnp.float32)

    out = jax.jit(two_d_ssm_forward)(x, params)
    out = jax.block_until_ready(out)

    ref = reference_forward(x, params)
    np.testing.assert_allclose(np.asarray(out), np.asarray(ref), rtol=5e-3, atol=5e-3)
    print("KERNEL_OK")
</pallas_src>

<mosaic_0001>
module attributes {stable_mosaic.version = 11 : i64} {
  func.func @_ssm_conv_kernel(%arg0: i32, %arg1: memref<2x8x8x128xf32, #tpu.memory_space<vmem>>, %arg2: memref<8x8x8x128xf32, #tpu.memory_space<vmem>>, %arg3: memref<2x8x8x128xf32, #tpu.memory_space<vmem>>, %arg4: memref<2x16x8x128xf32, #tpu.memory_space<vmem>>, %arg5: memref<2x8x16x128xf32, #tpu.memory_space<vmem>>) attributes {dimension_semantics = [#tpu.dimension_semantics<parallel>], iteration_bounds = array<i64: 1>, scalar_prefetch = 0 : i64, scratch_operands = 2 : i64, tpu.core_type = #tpu.core_type<tc>, window_params = [{transform_indices = @transform_0, window_bounds = array<i64: 2, 8, 8, 128>}, {pipeline_mode = #tpu.pipeline_mode<synchronous>, transform_indices = @transform_1, window_bounds = array<i64: 8, 8, 8, 128>}, {transform_indices = @transform_2, window_bounds = array<i64: 2, 8, 8, 128>}]} {
    %cst = arith.constant 0.000000e+00 : f32
    %0 = vector.broadcast %cst : f32 to vector<2x8x8x128xf32>
    %c0 = arith.constant 0 : index
    %c0_0 = arith.constant 0 : index
    %c0_1 = arith.constant 0 : index
    %c0_2 = arith.constant 0 : index
    %1 = vector.load %arg4[%c0, %c0_0, %c0_1, %c0_2] : memref<2x16x8x128xf32, #tpu.memory_space<vmem>>, vector<2x8x8x128xf32>
    tpu.vector_store %arg4[%c0, %c0_0, %c0_1, %c0_2], %0 {strides = array<i32>} : memref<2x16x8x128xf32, #tpu.memory_space<vmem>>, vector<2x8x8x128xf32>,
    %c0_3 = arith.constant 0 : index
    %c0_4 = arith.constant 0 : index
    %c0_5 = arith.constant 0 : index
    %c0_6 = arith.constant 0 : index
    %2 = vector.load %arg1[%c0_3, %c0_4, %c0_5, %c0_6] : memref<2x8x8x128xf32, #tpu.memory_space<vmem>>, vector<2x8x8x128xf32>
    %c0_7 = arith.constant 0 : index
    %c8 = arith.constant 8 : index
    %c0_8 = arith.constant 0 : index
    %c0_9 = arith.constant 0 : index
    %3 = vector.load %arg4[%c0_7, %c8, %c0_8, %c0_9] : memref<2x16x8x128xf32, #tpu.memory_space<vmem>>, vector<2x8x8x128xf32>
    tpu.vector_store %arg4[%c0_7, %c8, %c0_8, %c0_9], %2 {strides = array<i32>} : memref<2x16x8x128xf32, #tpu.memory_space<vmem>>, vector<2x8x8x128xf32>,
    %cst_10 = arith.constant 0.000000e+00 : f32
    %4 = vector.broadcast %cst_10 : f32 to vector<2x8x8x128xf32>
    %c0_11 = arith.constant 0 : index
    %c0_12 = arith.constant 0 : index
    %c0_13 = arith.constant 0 : index
    %c0_14 = arith.constant 0 : index
    %5 = vector.load %arg5[%c0_11, %c0_12, %c0_13, %c0_14] : memref<2x8x16x128xf32, #tpu.memory_space<vmem>>, vector<2x8x8x128xf32>
    tpu.vector_store %arg5[%c0_11, %c0_12, %c0_13, %c0_14], %4 {strides = array<i32>} : memref<2x8x16x128xf32, #tpu.memory_space<vmem>>, vector<2x8x8x128xf32>,
    %cst_15 = arith.constant 0.000000e+00 : f32
    %6 = vector.broadcast %cst_15 : f32 to vector<8x8x128xf32>
    %cst_16 = arith.constant 0.000000e+00 : f32
    %7 = vector.broadcast %cst_16 : f32 to vector<8x8x128xf32>
    %c0_17 = arith.constant 0 : index
    %c8_18 = arith.constant 8 : index
    %c0_19 = arith.constant 0 : index
    %c0_20 = arith.constant 0 : index
    %8 = vector.load %arg4[%c0_17, %c8_18, %c0_19, %c0_20] : memref<2x16x8x128xf32, #tpu.memory_space<vmem>>, vector<1x8x8x128xf32>
    %9 = vector.shape_cast %8 : vector<1x8x8x128xf32> to vector<8x8x128xf32>
    %c0_21 = arith.constant 0 : index
    %c0_22 = arith.constant 0 : index
    %c0_23 = arith.constant 0 : index
    %c0_24 = arith.constant 0 : index
    %10 = vector.load %arg2[%c0_21, %c0_22, %c0_23, %c0_24] : memref<8x8x8x128xf32, #tpu.memory_space<vmem>>, vector<1x1x8x128xf32>
    %11 = vector.shape_cast %10 : vector<1x1x8x128xf32> to vector<8x128xf32>
    %12 = vector.shape_cast %11 : vector<8x128xf32> to vector<1x8x128xf32>
    %13 = vector.broadcast %12 : vector<1x8x128xf32> to vector<8x8x128xf32>
    %14 = arith.mulf %13, %9 : vector<8x8x128xf32>
    %15 = arith.addf %7, %14 : vector<8x8x128xf32>
    %c0_25 = arith.constant 0 : index
    %c7 = arith.constant 7 : index
    %c0_26 = arith.constant 0 : index
    %c0_27 = arith.constant 0 : index
    %16 = vector.load %arg4[%c0_25, %c7, %c0_26, %c0_27] : memref<2x16x8x128xf32, #tpu.memory_space<vmem>>, vector<1x8x8x128xf32>
    %17 = vector.shape_cast %16 : vector<1x8x8x128xf32> to vector<8x8x128xf32>
    %c0_28 = arith.constant 0 : index
    %c1 = arith.constant 1 : index
    %c0_29 = arith.constant 0 : index
    %c0_30 = arith.constant 0 : index
    %18 = vector.load %arg2[%c0_28, %c1, %c0_29, %c0_30] : memref<8x8x8x128xf32, #tpu.memory_space<vmem>>, vector<1x1x8x128xf32>
    %19 = vector.shape_cast %18 : vector<1x1x8x128xf32> to vector<8x128xf32>
    %20 = vector.shape_cast %19 : vector<8x128xf32> to vector<1x8x128xf32>
    %21 = vector.broadcast %20 : vector<1x8x128xf32> to vector<8x8x128xf32>
    %22 = arith.mulf %21, %17 : vector<8x8x128xf32>
    %23 = arith.addf %15, %22 : vector<8x8x128xf32>
    %c0_31 = arith.constant 0 : index
    %c6 = arith.constant 6 : index
    %c0_32 = arith.constant 0 : index
    %c0_33 = arith.constant 0 : index
    %24 = vector.load %arg4[%c0_31, %c6, %c0_32, %c0_33] : memref<2x16x8x128xf32, #tpu.memory_space<vmem>>, vector<1x8x8x128xf32>
    %25 = vector.shape_cast %24 : vector<1x8x8x128xf32> to vector<8x8x128xf32>
    %c0_34 = arith.constant 0 : index
    %c2 = arith.constant 2 : index
    %c0_35 = arith.constant 0 : index
    %c0_36 = arith.constant 0 : index
    %26 = vector.load %arg2[%c0_34, %c2, %c0_35, %c0_36] : memref<8x8x8x128xf32, #tpu.memory_space<vmem>>, vector<1x1x8x128xf32>
    %27 = vector.shape_cast %26 : vector<1x1x8x128xf32> to vector<8x128xf32>
    %28 = vector.shape_cast %27 : vector<8x128xf32> to vector<1x8x128xf32>
    %29 = vector.broadcast %28 : vector<1x8x128xf32> to vector<8x8x128xf32>
    %30 = arith.mulf %29, %25 : vector<8x8x128xf32>
    %31 = arith.addf %23, %30 : vector<8x8x128xf32>
    %c0_37 = arith.constant 0 : index
    %c5 = arith.constant 5 : index
    %c0_38 = arith.constant 0 : index
    %c0_39 = arith.constant 0 : index
    %32 = vector.load %arg4[%c0_37, %c5, %c0_38, %c0_39] : memref<2x16x8x128xf32, #tpu.memory_space<vmem>>, vector<1x8x8x128xf32>
    %33 = vector.shape_cast %32 : vector<1x8x8x128xf32> to vector<8x8x128xf32>
    %c0_40 = arith.constant 0 : index
    %c3 = arith.constant 3 : index
    %c0_41 = arith.constant 0 : index
    %c0_42 = arith.constant 0 : index
    %34 = vector.load %arg2[%c0_40, %c3, %c0_41, %c0_42] : memref<8x8x8x128xf32, #tpu.memory_space<vmem>>, vector<1x1x8x128xf32>
    %35 = vector.shape_cast %34 : vector<1x1x8x128xf32> to vector<8x128xf32>
    %36 = vector.shape_cast %35 : vector<8x128xf32> to vector<1x8x128xf32>
    %37 = vector.broadcast %36 : vector<1x8x128xf32> to vector<8x8x128xf32>
    %38 = arith.mulf %37, %33 : vector<8x8x128xf32>
    %39 = arith.addf %31, %38 : vector<8x8x128xf32>
    %c0_43 = arith.constant 0 : index
    %c4 = arith.constant 4 : index
    %c0_44 = arith.constant 0 : index
    %c0_45 = arith.constant 0 : index
    %40 = vector.load %arg4[%c0_43, %c4, %c0_44, %c0_45] : memref<2x16x8x128xf32, #tpu.memory_space<vmem>>, vector<1x8x8x128xf32>
    %41 = vector.shape_cast %40 : vector<1x8x8x128xf32> to vector<8x8x128xf32>
    %c0_46 = arith.constant 0 : index
    %c4_47 = arith.constant 4 : index
    %c0_48 = arith.constant 0 : index
    %c0_49 = arith.constant 0 : index
    %42 = vector.load %arg2[%c0_46, %c4_47, %c0_48, %c0_49] : memref<8x8x8x128xf32, #tpu.memory_space<vmem>>, vector<1x1x8x128xf32>
    %43 = vector.shape_cast %42 : vector<1x1x8x128xf32> to vector<8x128xf32>
    %44 = vector.shape_cast %43 : vector<8x128xf32> to vector<1x8x128xf32>
    %45 = vector.broadcast %44 : vector<1x8x128xf32> to vector<8x8x128xf32>
    %46 = arith.mulf %45, %41 : vector<8x8x128xf32>
    %47 = arith.addf %39, %46 : vector<8x8x128xf32>
    %c0_50 = arith.constant 0 : index
    %c3_51 = arith.constant 3 : index
    %c0_52 = arith.constant 0 : index
    %c0_53 = arith.constant 0 : index
    %48 = vector.load %arg4[%c0_50, %c3_51, %c0_52, %c0_53] : memref<2x16x8x128xf32, #tpu.memory_space<vmem>>, vector<1x8x8x128xf32>
    %49 = vector.shape_cast %48 : vector<1x8x8x128xf32> to vector<8x8x128xf32>
    %c0_54 = arith.constant 0 : index
    %c5_55 = arith.constant 5 : index
    %c0_56 = arith.constant 0 : index
    %c0_57 = arith.constant 0 : index
    %50 = vector.load %arg2[%c0_54, %c5_55, %c0_56, %c0_57] : memref<8x8x8x128xf32, #tpu.memory_space<vmem>>, vector<1x1x8x128xf32>
    %51 = vector.shape_cast %50 : vector<1x1x8x128xf32> to vector<8x128xf32>
    %52 = vector.shape_cast %51 : vector<8x128xf32> to vector<1x8x128xf32>
    %53 = vector.broadcast %52 : vector<1x8x128xf32> to vector<8x8x128xf32>
    %54 = arith.mulf %53, %49 : vector<8x8x128xf32>
    %55 = arith.addf %47, %54 : vector<8x8x128xf32>
    %c0_58 = arith.constant 0 : index
    %c2_59 = arith.constant 2 : index
    %c0_60 = arith.constant 0 : index
    %c0_61 = arith.constant 0 : index
    %56 = vector.load %arg4[%c0_58, %c2_59, %c0_60, %c0_61] : memref<2x16x8x128xf32, #tpu.memory_space<vmem>>, vector<1x8x8x128xf32>
    %57 = vector.shape_cast %56 : vector<1x8x8x128xf32> to vector<8x8x128xf32>
    %c0_62 = arith.constant 0 : index
    %c6_63 = arith.constant 6 : index
    %c0_64 = arith.constant 0 : index
    %c0_65 = arith.constant 0 : index
    %58 = vector.load %arg2[%c0_62, %c6_63, %c0_64, %c0_65] : memref<8x8x8x128xf32, #tpu.memory_space<vmem>>, vector<1x1x8x128xf32>
    %59 = vector.shape_cast %58 : vector<1x1x8x128xf32> to vector<8x128xf32>
    %60 = vector.shape_cast %59 : vector<8x128xf32> to vector<1x8x128xf32>
    %61 = vector.broadcast %60 : vector<1x8x128xf32> to vector<8x8x128xf32>
    %62 = arith.mulf %61, %57 : vector<8x8x128xf32>
    %63 = arith.addf %55, %62 : vector<8x8x128xf32>
    %c0_66 = arith.constant 0 : index
    %c1_67 = arith.constant 1 : index
    %c0_68 = arith.constant 0 : index
    %c0_69 = arith.constant 0 : index
    %64 = vector.load %arg4[%c0_66, %c1_67, %c0_68, %c0_69] : memref<2x16x8x128xf32, #tpu.memory_space<vmem>>, vector<1x8x8x128xf32>
    %65 = vector.shape_cast %64 : vector<1x8x8x128xf32> to vector<8x8x128xf32>
    %c0_70 = arith.constant 0 : index
    %c7_71 = arith.constant 7 : index
    %c0_72 = arith.constant 0 : index
    %c0_73 = arith.constant 0 : index
    %66 = vector.load %arg2[%c0_70, %c7_71, %c0_72, %c0_73] : memref<8x8x8x128xf32, #tpu.memory_space<vmem>>, vector<1x1x8x128xf32>
    %67 = vector.shape_cast %66 : vector<1x1x8x128xf32> to vector<8x128xf32>
    %68 = vector.shape_cast %67 : vector<8x128xf32> to vector<1x8x128xf32>
    %69 = vector.broadcast %68 : vector<1x8x128xf32> to vector<8x8x128xf32>
    %70 = arith.mulf %69, %65 : vector<8x8x128xf32>
    %71 = arith.addf %63, %70 : vector<8x8x128xf32>
    %c0_74 = arith.constant 0 : index
    %c0_75 = arith.constant 0 : index
    %c8_76 = arith.constant 8 : index
    %c0_77 = arith.constant 0 : index
    %72 = vector.load %arg5[%c0_74, %c0_75, %c8_76, %c0_77] : memref<2x8x16x128xf32, #tpu.memory_space<vmem>>, vector<1x8x8x128xf32>
    %73 = vector.shape_cast %72 : vector<1x8x8x128xf32> to vector<8x8x128xf32>
    %74 = vector.shape_cast %71 : vector<8x8x128xf32> to vector<1x8x8x128xf32>
    tpu.vector_store %arg5[%c0_74, %c0_75, %c8_76, %c0_77], %74 {strides = array<i32>} : memref<2x8x16x128xf32, #tpu.memory_space<vmem>>, vector<1x8x8x128xf32>,
    %c0_78 = arith.constant 0 : index
    %c0_79 = arith.constant 0 : index
    %c8_80 = arith.constant 8 : index
    %c0_81 = arith.constant 0 : index
    %75 = vector.load %arg5[%c0_78, %c0_79, %c8_80, %c0_81] : memref<2x8x16x128xf32, #tpu.memory_space<vmem>>, vector<1x8x8x128xf32>
    %76 = vector.shape_cast %75 : vector<1x8x8x128xf32> to vector<8x8x128xf32>
    %77 = arith.addf %6, %76 : vector<8x8x128xf32>
    %cst_82 = arith.constant 0.000000e+00 : f32
    %78 = vector.broadcast %cst_82 : f32 to vector<8x8x128xf32>
    %c0_83 = arith.constant 0 : index
    %c8_84 = arith.constant 8 : index
    %c0_85 = arith.constant 0 : index
    %c0_86 = arith.constant 0 : index
    %79 = vector.load %arg4[%c0_83, %c8_84, %c0_85, %c0_86] : memref<2x16x8x128xf32, #tpu.memory_space<vmem>>, vector<1x8x8x128xf32>
    %80 = vector.shape_cast %79 : vector<1x8x8x128xf32> to vector<8x8x128xf32>
    %c1_87 = arith.constant 1 : index
    %c0_88 = arith.constant 0 : index
    %c0_89 = arith.constant 0 : index
    %c0_90 = arith.constant 0 : index
    %81 = vector.load %arg2[%c1_87, %c0_88, %c0_89, %c0_90] : memref<8x8x8x128xf32, #tpu.memory_space<vmem>>, vector<1x1x8x128xf32>
    %82 = vector.shape_cast %81 : vector<1x1x8x128xf32> to vector<8x128xf32>
    %83 = vector.shape_cast %82 : vector<8x128xf32> to vector<1x8x128xf32>
    %84 = vector.broadcast %83 : vector<1x8x128xf32> to vector<8x8x128xf32>
    %85 = arith.mulf %84, %80 : vector<8x8x128xf32>
    %86 = arith.addf %78, %85 : vector<8x8x128xf32>
    %c0_91 = arith.constant 0 : index
    %c7_92 = arith.constant 7 : index
    %c0_93 = arith.constant 0 : index
    %c0_94 = arith.constant 0 : index
    %87 = vector.load %arg4[%c0_91, %c7_92, %c0_93, %c0_94] : memref<2x16x8x128xf32, #tpu.memory_space<vmem>>, vector<1x8x8x128xf32>
    %88 = vector.shape_cast %87 : vector<1x8x8x128xf32> to vector<8x8x128xf32>
    %c1_95 = arith.constant 1 : index
    %c1_96 = arith.constant 1 : index
    %c0_97 = arith.constant 0 : index
    %c0_98 = arith.constant 0 : index
    %89 = vector.load %arg2[%c1_95, %c1_96, %c0_97, %c0_98] : memref<8x8x8x128xf32, #tpu.memory_space<vmem>>, vector<1x1x8x128xf32>
    %90 = vector.shape_cast %89 : vector<1x1x8x128xf32> to vector<8x128xf32>
    %91 = vector.shape_cast %90 : vector<8x128xf32> to vector<1x8x128xf32>
    %92 = vector.broadcast %91 : vector<1x8x128xf32> to vector<8x8x128xf32>
    %93 = arith.mulf %92, %88 : vector<8x8x128xf32>
    %94 = arith.addf %86, %93 : vector<8x8x128xf32>
    %c0_99 = arith.constant 0 : index
    %c6_100 = arith.constant 6 : index
    %c0_101 = arith.constant 0 : index
    %c0_102 = arith.constant 0 : index
    %95 = vector.load %arg4[%c0_99, %c6_100, %c0_101, %c0_102] : memref<2x16x8x128xf32, #tpu.memory_space<vmem>>, vector<1x8x8x128xf32>
    %96 = vector.shape_cast %95 : vector<1x8x8x128xf32> to vector<8x8x128xf32>
    %c1_103 = arith.constant 1 : index
    %c2_104 = arith.constant 2 : index
    %c0_105 = arith.constant 0 : index
    %c0_106 = arith.constant 0 : index
    %97 = vector.load %arg2[%c1_103, %c2_104, %c0_105, %c0_106] : memref<8x8x8x128xf32, #tpu.memory_space<vmem>>, vector<1x1x8x128xf32>
    %98 = vector.shape_cast %97 : vector<1x1x8x128xf32> to vector<8x128xf32>
    %99 = vector.shape_cast %98 : vector<8x128xf32> to vector<1x8x128xf32>
    %100 = vector.broadcast %99 : vector<1x8x128xf32> to vector<8x8x128xf32>
    %101 = arith.mulf %100, %96 : vector<8x8x128xf32>
    %102 = arith.addf %94, %101 : vector<8x8x128xf32>
    %c0_107 = arith.constant 0 : index
    %c5_108 = arith.constant 5 : index
    %c0_109 = arith.constant 0 : index
    %c0_110 = arith.constant 0 : index
    %103 = vector.load %arg4[%c0_107, %c5_108, %c0_109, %c0_110] : memref<2x16x8x128xf32, #tpu.memory_space<vmem>>, vector<1x8x8x128xf32>
    %104 = vector.shape_cast %103 : vector<1x8x8x128xf32> to vector<8x8x128xf32>
    %c1_111 = arith.constant 1 : index
    %c3_112 = arith.constant 3 : index
    %c0_113 = arith.constant 0 : index
    %c0_114 = arith.constant 0 : index
    %105 = vector.load %arg2[%c1_111, %c3_112, %c0_113, %c0_114] : memref<8x8x8x128xf32, #tpu.memory_space<vmem>>, vector<1x1x8x128xf32>
    %106 = vector.shape_cast %105 : vector<1x1x8x128xf32> to vector<8x128xf32>
    %107 = vector.shape_cast %106 : vector<8x128xf32> to vector<1x8x128xf32>
    %108 = vector.broadcast %107 : vector<1x8x128xf32> to vector<8x8x128xf32>
    %109 = arith.mulf %108, %104 : vector<8x8x128xf32>
    %110 = arith.addf %102, %109 : vector<8x8x128xf32>
    %c0_115 = arith.constant 0 : index
    %c4_116 = arith.constant 4 : index
    %c0_117 = arith.constant 0 : index
    %c0_118 = arith.constant 0 : index
    %111 = vector.load %arg4[%c0_115, %c4_116, %c0_117, %c0_118] : memref<2x16x8x128xf32, #tpu.memory_space<vmem>>, vector<1x8x8x128xf32>
    %112 = vector.shape_cast %111 : vector<1x8x8x128xf32> to vector<8x8x128xf32>
    %c1_119 = arith.constant 1 : index
    %c4_120 = arith.constant 4 : index
    %c0_121 = arith.constant 0 : index
    %c0_122 = arith.constant 0 : index
    %113 = vector.load %arg2[%c1_119, %c4_120, %c0_121, %c0_122] : memref<8x8x8x128xf32, #tpu.memory_space<vmem>>, vector<1x1x8x128xf32>
    %114 = vector.shape_cast %113 : vector<1x1x8x128xf32> to vector<8x128xf32>
    %115 = vector.shape_cast %114 : vector<8x128xf32> to vector<1x8x128xf32>
    %116 = vector.broadcast %115 : vector<1x8x128xf32> to vector<8x8x128xf32>
    %117 = arith.mulf %116, %112 : vector<8x8x128xf32>
    %118 = arith.addf %110, %117 : vector<8x8x128xf32>
    %c0_123 = arith.constant 0 : index
    %c3_124 = arith.constant 3 : index
    %c0_125 = arith.constant 0 : index
    %c0_126 = arith.constant 0 : index
    %119 = vector.load %arg4[%c0_123, %c3_124, %c0_125, %c0_126] : memref<2x16x8x128xf32, #tpu.memory_space<vmem>>, vector<1x8x8x128xf32>
    %120 = vector.shape_cast %119 : vector<1x8x8x128xf32> to vector<8x8x128xf32>
    %c1_127 = arith.constant 1 : index
    %c5_128 = arith.constant 5 : index
    %c0_129 = arith.constant 0 : index
    %c0_130 = arith.constant 0 : index
    %121 = vector.load %arg2[%c1_127, %c5_128, %c0_129, %c0_130] : memref<8x8x8x128xf32, #tpu.memory_space<vmem>>, vector<1x1x8x128xf32>
    %122 = vector.shape_cast %121 : vector<1x1x8x128xf32> to vector<8x128xf32>
    %123 = vector.shape_cast %122 : vector<8x128xf32> to vector<1x8x128xf32>
    %124 = vector.broadcast %123 : vector<1x8x128xf32> to vector<8x8x128xf32>
    %125 = arith.mulf %124, %120 : vector<8x8x128xf32>
    %126 = arith.addf %118, %125 : vector<8x8x128xf32>
    %c0_131 = arith.constant 0 : index
    %c2_132 = arith.constant 2 : index
    %c0_133 = arith.constant 0 : index
    %c0_134 = arith.constant 0 : index
    %127 = vector.load %arg4[%c0_131, %c2_132, %c0_133, %c0_134] : memref<2x16x8x128xf32, #tpu.memory_space<vmem>>, vector<1x8x8x128xf32>
    %128 = vector.shape_cast %127 : vector<1x8x8x128xf32> to vector<8x8x128xf32>
    %c1_135 = arith.constant 1 : index
    %c6_136 = arith.constant 6 : index
    %c0_137 = arith.constant 0 : index
    %c0_138 = arith.constant 0 : index
    %129 = vector.load %arg2[%c1_135, %c6_136, %c0_137, %c0_138] : memref<8x8x8x128xf32, #tpu.memory_space<vmem>>, vector<1x1x8x128xf32>
    %130 = vector.shape_cast %129 : vector<1x1x8x128xf32> to vector<8x128xf32>
    %131 = vector.shape_cast %130 : vector<8x128xf32> to vector<1x8x128xf32>
    %132 = vector.broadcast %131 : vector<1x8x128xf32> to vector<8x8x128xf32>
    %133 = arith.mulf %132, %128 : vector<8x8x128xf32>
    %134 = arith.addf %126, %133 : vector<8x8x128xf32>
    %c0_139 = arith.constant 0 : index
    %c1_140 = arith.constant 1 : index
    %c0_141 = arith.constant 0 : index
    %c0_142 = arith.constant 0 : index
    %135 = vector.load %arg4[%c0_139, %c1_140, %c0_141, %c0_142] : memref<2x16x8x128xf32, #tpu.memory_space<vmem>>, vector<1x8x8x128xf32>
    %136 = vector.shape_cast %135 : vector<1x8x8x128xf32> to vector<8x8x128xf32>
    %c1_143 = arith.constant 1 : index
    %c7_144 = arith.constant 7 : index
    %c0_145 = arith.constant 0 : index
    %c0_146 = arith.constant 0 : index
    %137 = vector.load %arg2[%c1_143, %c7_144, %c0_145, %c0_146] : memref<8x8x8x128xf32, #tpu.memory_space<vmem>>, vector<1x1x8x128xf32>
    %138 = vector.shape_cast %137 : vector<1x1x8x128xf32> to vector<8x128xf32>
    %139 = vector.shape_cast %138 : vector<8x128xf32> to vector<1x8x128xf32>
    %140 = vector.broadcast %139 : vector<1x8x128xf32> to vector<8x8x128xf32>
    %141 = arith.mulf %140, %136 : vector<8x8x128xf32>
    %142 = arith.addf %134, %141 : vector<8x8x128xf32>
    %c1_147 = arith.constant 1 : index
    %c0_148 = arith.constant 0 : index
    %c8_149 = arith.constant 8 : index
    %c0_150 = arith.constant 0 : index
    %143 = vector.load %arg5[%c1_147, %c0_148, %c8_149, %c0_150] : memref<2x8x16x128xf32, #tpu.memory_space<vmem>>, vector<1x8x8x128xf32>
    %144 = vector.shape_cast %143 : vector<1x8x8x128xf32> to vector<8x8x128xf32>
    %145 = vector.shape_cast %142 : vector<8x8x128xf32> to vector<1x8x8x128xf32>
    tpu.vector_store %arg5[%c1_147, %c0_148, %c8_149, %c0_150], %145 {strides = array<i32>} : memref<2x8x16x128xf32, #tpu.memory_space<vmem>>, vector<1x8x8x128xf32>,
    %c1_151 = arith.constant 1 : index
    %c0_152 = arith.constant 0 : index
    %c7_153 = arith.constant 7 : index
    %c0_154 = arith.constant 0 : index
    %146 = vector.load %arg5[%c1_151, %c0_152, %c7_153, %c0_154] : memref<2x8x16x128xf32, #tpu.memory_space<vmem>>, vector<1x8x8x128xf32>
    %147 = vector.shape_cast %146 : vector<1x8x8x128xf32> to vector<8x8x128xf32>
    %148 = arith.addf %77, %147 : vector<8x8x128xf32>
    %cst_155 = arith.constant 0.000000e+00 : f32
    %149 = vector.broadcast %cst_155 : f32 to vector<8x8x128xf32>
    %c0_156 = arith.constant 0 : index
    %c8_157 = arith.constant 8 : index
    %c0_158 = arith.constant 0 : index
    %c0_159 = arith.constant 0 : index
    %150 = vector.load %arg4[%c0_156, %c8_157, %c0_158, %c0_159] : memref<2x16x8x128xf32, #tpu.memory_space<vmem>>, vector<1x8x8x128xf32>
    %151 = vector.shape_cast %150 : vector<1x8x8x128xf32> to vector<8x8x128xf32>
    %c2_160 = arith.constant 2 : index
    %c0_161 = arith.constant 0 : index
    %c0_162 = arith.constant 0 : index
    %c0_163 = arith.constant 0 : index
    %152 = vector.load %arg2[%c2_160, %c0_161, %c0_162, %c0_163] : memref<8x8x8x128xf32, #tpu.memory_space<vmem>>, vector<1x1x8x128xf32>
    %153 = vector.shape_cast %152 : vector<1x1x8x128xf32> to vector<8x128xf32>
    %154 = vector.shape_cast %153 : vector<8x128xf32> to vector<1x8x128xf32>
    %155 = vector.broadcast %154 : vector<1x8x128xf32> to vector<8x8x128xf32>
    %156 = arith.mulf %155, %151 : vector<8x8x128xf32>
    %157 = arith.addf %149, %156 : vector<8x8x128xf32>
    %c0_164 = arith.constant 0 : index
    %c7_165 = arith.constant 7 : index
    %c0_166 = arith.constant 0 : index
    %c0_167 = arith.constant 0 : index
    %158 = vector.load %arg4[%c0_164, %c7_165, %c0_166, %c0_167] : memref<2x16x8x128xf32, #tpu.memory_space<vmem>>, vector<1x8x8x128xf32>
    %159 = vector.shape_cast %158 : vector<1x8x8x128xf32> to vector<8x8x128xf32>
    %c2_168 = arith.constant 2 : index
    %c1_169 = arith.constant 1 : index
    %c0_170 = arith.constant 0 : index
    %c0_171 = arith.constant 0 : index
    %160 = vector.load %arg2[%c2_168, %c1_169, %c0_170, %c0_171] : memref<8x8x8x128xf32, #tpu.memory_space<vmem>>, vector<1x1x8x128xf32>
    %161 = vector.shape_cast %160 : vector<1x1x8x128xf32> to vector<8x128xf32>
    %162 = vector.shape_cast %161 : vector<8x128xf32> to vector<1x8x128xf32>
    %163 = vector.broadcast %162 : vector<1x8x128xf32> to vector<8x8x128xf32>
    %164 = arith.mulf %163, %159 : vector<8x8x128xf32>
    %165 = arith.addf %157, %164 : vector<8x8x128xf32>
    %c0_172 = arith.constant 0 : index
    %c6_173 = arith.constant 6 : index
    %c0_174 = arith.constant 0 : index
    %c0_175 = arith.constant 0 : index
    %166 = vector.load %arg4[%c0_172, %c6_173, %c0_174, %c0_175] : memref<2x16x8x128xf32, #tpu.memory_space<vmem>>, vector<1x8x8x128xf32>
    %167 = vector.shape_cast %166 : vector<1x8x8x128xf32> to vector<8x8x128xf32>
    %c2_176 = arith.constant 2 : index
    %c2_177 = arith.constant 2 : index
    %c0_178 = arith.constant 0 : index
    %c0_179 = arith.constant 0 : index
    %168 = vector.load %arg2[%c2_176, %c2_177, %c0_178, %c0_179] : memref<8x8x8x128xf32, #tpu.memory_space<vmem>>, vector<1x1x8x128xf32>
    %169 = vector.shape_cast %168 : vector<1x1x8x128xf32> to vector<8x128xf32>
    %170 = vector.shape_cast %169 : vector<8x128xf32> to vector<1x8x128xf32>
    %171 = vector.broadcast %170 : vector<1x8x128xf32> to vector<8x8x128xf32>
    %172 = arith.mulf %171, %167 : vector<8x8x128xf32>
    %173 = arith.addf %165, %172 : vector<8x8x128xf32>
    %c0_180 = arith.constant 0 : index
    %c5_181 = arith.constant 5 : index
    %c0_182 = arith.constant 0 : index
    %c0_183 = arith.constant 0 : index
    %174 = vector.load %arg4[%c0_180, %c5_181, %c0_182, %c0_183] : memref<2x16x8x128xf32, #tpu.memory_space<vmem>>, vector<1x8x8x128xf32>
    %175 = vector.shape_cast %174 : vector<1x8x8x128xf32> to vector<8x8x128xf32>
    %c2_184 = arith.constant 2 : index
    %c3_185 = arith.constant 3 : index
    %c0_186 = arith.constant 0 : index
    %c0_187 = arith.constant 0 : index
    %176 = vector.load %arg2[%c2_184, %c3_185, %c0_186, %c0_187] : memref<8x8x8x128xf32, #tpu.memory_space<vmem>>, vector<1x1x8x128xf32>
    %177 = vector.shape_cast %176 : vector<1x1x8x128xf32> to vector<8x128xf32>
    %178 = vector.shape_cast %177 : vector<8x128xf32> to vector<1x8x128xf32>
    %179 = vector.broadcast %178 : vector<1x8x128xf32> to vector<8x8x128xf32>
    %180 = arith.mulf %179, %175 : vector<8x8x128xf32>
    %181 = arith.addf %173, %180 : vector<8x8x128xf32>
    %c0_188 = arith.constant 0 : index
    %c4_189 = arith.constant 4 : index
    %c0_190 = arith.constant 0 : index
    %c0_191 = arith.constant 0 : index
    %182 = vector.load %arg4[%c0_188, %c4_189, %c0_190, %c0_191] : memref<2x16x8x128xf32, #tpu.memory_space<vmem>>, vector<1x8x8x128xf32>
    %183 = vector.shape_cast %182 : vector<1x8x8x128xf32> to vector<8x8x128xf32>
    %c2_192 = arith.constant 2 : index
    %c4_193 = arith.constant 4 : index
    %c0_194 = arith.constant 0 : index
    %c0_195 = arith.constant 0 : index
    %184 = vector.load %arg2[%c2_192, %c4_193, %c0_194, %c0_195] : memref<8x8x8x128xf32, #tpu.memory_space<vmem>>, vector<1x1x8x128xf32>
    %185 = vector.shape_cast %184 : vector<1x1x8x128xf32> to vector<8x128xf32>
    %186 = vector.shape_cast %185 : vector<8x128xf32> to vector<1x8x128xf32>
    %187 = vector.broadcast %186 : vector<1x8x128xf32> to vector<8x8x128xf32>
    %188 = arith.mulf %187, %183 : vector<8x8x128xf32>
    %189 = arith.addf %181, %188 : vector<8x8x128xf32>
    %c0_196 = arith.constant 0 : index
    %c3_197 = arith.constant 3 : index
    %c0_198 = arith.constant 0 : index
    %c0_199 = arith.constant 0 : index
    %190 = vector.load %arg4[%c0_196, %c3_197, %c0_198, %c0_199] : memref<2x16x8x128xf32, #tpu.memory_space<vmem>>, vector<1x8x8x128xf32>
    %191 = vector.shape_cast %190 : vector<1x8x8x128xf32> to vector<8x8x128xf32>
    %c2_200 = arith.constant 2 : index
    %c5_201 = arith.constant 5 : index
    %c0_202 = arith.constant 0 : index
    %c0_203 = arith.constant 0 : index
    %192 = vector.load %arg2[%c2_200, %c5_201, %c0_202, %c0_203] : memref<8x8x8x128xf32, #tpu.memory_space<vmem>>, vector<1x1x8x128xf32>
    %193 = vector.shape_cast %192 : vector<1x1x8x128xf32> to vector<8x128xf32>
    %194 = vector.shape_cast %193 : vector<8x128xf32> to vector<1x8x128xf32>
    %195 = vector.broadcast %194 : vector<1x8x128xf32> to vector<8x8x128xf32>
    %196 = arith.mulf %195, %191 : vector<8x8x128xf32>
    %197 = arith.addf %189, %196 : vector<8x8x128xf32>
    %c0_204 = arith.constant 0 : index
    %c2_205 = arith.constant 2 : index
    %c0_206 = arith.constant 0 : index
    %c0_207 = arith.constant 0 : index
    %198 = vector.load %arg4[%c0_204, %c2_205, %c0_206, %c0_207] : memref<2x16x8x128xf32, #tpu.memory_space<vmem>>, vector<1x8x8x128xf32>
    %199 = vector.shape_cast %198 : vector<1x8x8x128xf32> to vector<8x8x128xf32>
    %c2_208 = arith.constant 2 : index
    %c6_209 = arith.constant 6 : index
    %c0_210 = arith.constant 0 : index
    %c0_211 = arith.constant 0 : index
    %200 = vector.load %arg2[%c2_208, %c6_209, %c0_210, %c0_211] : memref<8x8x8x128xf32, #tpu.memory_space<vmem>>, vector<1x1x8x128xf32>
    %201 = vector.shape_cast %200 : vector<1x1x8x128xf32> to vector<8x128xf32>
    %202 = vector.shape_cast %201 : vector<8x128xf32> to vector<1x8x128xf32>
    %203 = vector.broadcast %202 : vector<1x8x128xf32> to vector<8x8x128xf32>
    %204 = arith.mulf %203, %199 : vector<8x8x128xf32>
    %205 = arith.addf %197, %204 : vector<8x8x128xf32>
    %c0_212 = arith.constant 0 : index
    %c1_213 = arith.constant 1 : index
    %c0_214 = arith.constant 0 : index
    %c0_215 = arith.constant 0 : index
    %206 = vector.load %arg4[%c0_212, %c1_213, %c0_214, %c0_215] : memref<2x16x8x128xf32, #tpu.memory_space<vmem>>, vector<1x8x8x128xf32>
    %207 = vector.shape_cast %206 : vector<1x8x8x128xf32> to vector<8x8x128xf32>
    %c2_216 = arith.constant 2 : index
    %c7_217 = arith.constant 7 : index
    %c0_218 = arith.constant 0 : index
    %c0_219 = arith.constant 0 : index
    %208 = vector.load %arg2[%c2_216, %c7_217, %c0_218, %c0_219] : memref<8x8x8x128xf32, #tpu.memory_space<vmem>>, vector<1x1x8x128xf32>
    %209 = vector.shape_cast %208 : vector<1x1x8x128xf32> to vector<8x128xf32>
    %210 = vector.shape_cast %209 : vector<8x128xf32> to vector<1x8x128xf32>
    %211 = vector.broadcast %210 : vector<1x8x128xf32> to vector<8x8x128xf32>
    %212 = arith.mulf %211, %207 : vector<8x8x128xf32>
    %213 = arith.addf %205, %212 : vector<8x8x128xf32>
    %c0_220 = arith.constant 0 : index
    %c0_221 = arith.constant 0 : index
    %c8_222 = arith.constant 8 : index
    %c0_223 = arith.constant 0 : index
    %214 = vector.load %arg5[%c0_220, %c0_221, %c8_222, %c0_223] : memref<2x8x16x128xf32, #tpu.memory_space<vmem>>, vector<1x8x8x128xf32>
    %215 = vector.shape_cast %214 : vector<1x8x8x128xf32> to vector<8x8x128xf32>
    %216 = vector.shape_cast %213 : vector<8x8x128xf32> to vector<1x8x8x128xf32>
    tpu.vector_store %arg5[%c0_220, %c0_221, %c8_222, %c0_223], %216 {strides = array<i32>} : memref<2x8x16x128xf32, #tpu.memory_space<vmem>>, vector<1x8x8x128xf32>,
    %c0_224 = arith.constant 0 : index
    %c0_225 = arith.constant 0 : index
    %c6_226 = arith.constant 6 : index
    %c0_227 = arith.constant 0 : index
    %217 = vector.load %arg5[%c0_224, %c0_225, %c6_226, %c0_227] : memref<2x8x16x128xf32, #tpu.memory_space<vmem>>, vector<1x8x8x128xf32>
    %218 = vector.shape_cast %217 : vector<1x8x8x128xf32> to vector<8x8x128xf32>
    %219 = arith.addf %148, %218 : vector<8x8x128xf32>
    %cst_228 = arith.constant 0.000000e+00 : f32
    %220 = vector.broadcast %cst_228 : f32 to vector<8x8x128xf32>
    %c0_229 = arith.constant 0 : index
    %c8_230 = arith.constant 8 : index
    %c0_231 = arith.constant 0 : index
    %c0_232 = arith.constant 0 : index
    %221 = vector.load %arg4[%c0_229, %c8_230, %c0_231, %c0_232] : memref<2x16x8x128xf32, #tpu.memory_space<vmem>>, vector<1x8x8x128xf32>
    %222 = vector.shape_cast %221 : vector<1x8x8x128xf32> to vector<8x8x128xf32>
    %c3_233 = arith.constant 3 : index
    %c0_234 = arith.constant 0 : index
    %c0_235 = arith.constant 0 : index
    %c0_236 = arith.constant 0 : index
    %223 = vector.load %arg2[%c3_233, %c0_234, %c0_235, %c0_236] : memref<8x8x8x128xf32, #tpu.memory_space<vmem>>, vector<1x1x8x128xf32>
    %224 = vector.shape_cast %223 : vector<1x1x8x128xf32> to vector<8x128xf32>
    %225 = vector.shape_cast %224 : vector<8x128xf32> to vector<1x8x128xf32>
    %226 = vector.broadcast %225 : vector<1x8x128xf32> to vector<8x8x128xf32>
    %227 = arith.mulf %226, %222 : vector<8x8x128xf32>
    %228 = arith.addf %220, %227 : vector<8x8x128xf32>
    %c0_237 = arith.constant 0 : index
    %c7_238 = arith.constant 7 : index
    %c0_239 = arith.constant 0 : index
    %c0_240 = arith.constant 0 : index
    %229 = vector.load %arg4[%c0_237, %c7_238, %c0_239, %c0_240] : memref<2x16x8x128xf32, #tpu.memory_space<vmem>>, vector<1x8x8x128xf32>
    %230 = vector.shape_cast %229 : vector<1x8x8x128xf32> to vector<8x8x128xf32>
    %c3_241 = arith.constant 3 : index
    %c1_242 = arith.constant 1 : index
    %c0_243 = arith.constant 0 : index
    %c0_244 = arith.constant 0 : index
    %231 = vector.load %arg2[%c3_241, %c1_242, %c0_243, %c0_244] : memref<8x8x8x128xf32, #tpu.memory_space<vmem>>, vector<1x1x8x128xf32>
    %232 = vector.shape_cast %231 : vector<1x1x8x128xf32> to vector<8x128xf32>
    %233 = vector.shape_cast %232 : vector<8x128xf32> to vector<1x8x128xf32>
    %234 = vector.broadcast %233 : vector<1x8x128xf32> to vector<8x8x128xf32>
    %235 = arith.mulf %234, %230 : vector<8x8x128xf32>
    %236 = arith.addf %228, %235 : vector<8x8x128xf32>
    %c0_245 = arith.constant 0 : index
    %c6_246 = arith.constant 6 : index
    %c0_247 = arith.constant 0 : index
    %c0_248 = arith.constant 0 : index
    %237 = vector.load %arg4[%c0_245, %c6_246, %c0_247, %c0_248] : memref<2x16x8x128xf32, #tpu.memory_space<vmem>>, vector<1x8x8x128xf32>
    %238 = vector.shape_cast %237 : vector<1x8x8x128xf32> to vector<8x8x128xf32>
    %c3_249 = arith.constant 3 : index
    %c2_250 = arith.constant 2 : index
    %c0_251 = arith.constant 0 : index
    %c0_252 = arith.constant 0 : index
    %239 = vector.load %arg2[%c3_249, %c2_250, %c0_251, %c0_252] : memref<8x8x8x128xf32, #tpu.memory_space<vmem>>, vector<1x1x8x128xf32>
    %240 = vector.shape_cast %239 : vector<1x1x8x128xf32> to vector<8x128xf32>
    %241 = vector.shape_cast %240 : vector<8x128xf32> to vector<1x8x128xf32>
    %242 = vector.broadcast %241 : vector<1x8x128xf32> to vector<8x8x128xf32>
    %243 = arith.mulf %242, %238 : vector<8x8x128xf32>
    %244 = arith.addf %236, %243 : vector<8x8x128xf32>
    %c0_253 = arith.constant 0 : index
    %c5_254 = arith.constant 5 : index
    %c0_255 = arith.constant 0 : index
    %c0_256 = arith.constant 0 : index
    %245 = vector.load %arg4[%c0_253, %c5_254, %c0_255, %c0_256] : memref<2x16x8x128xf32, #tpu.memory_space<vmem>>, vector<1x8x8x128xf32>
    %246 = vector.shape_cast %245 : vector<1x8x8x128xf32> to vector<8x8x128xf32>
    %c3_257 = arith.constant 3 : index
    %c3_258 = arith.constant 3 : index
    %c0_259 = arith.constant 0 : index
    %c0_260 = arith.constant 0 : index
    %247 = vector.load %arg2[%c3_257, %c3_258, %c0_259, %c0_260] : memref<8x8x8x128xf32, #tpu.memory_space<vmem>>, vector<1x1x8x128xf32>
    %248 = vector.shape_cast %247 : vector<1x1x8x128xf32> to vector<8x128xf32>
    %249 = vector.shape_cast %248 : vector<8x128xf32> to vector<1x8x128xf32>
    %250 = vector.broadcast %249 : vector<1x8x128xf32> to vector<8x8x128xf32>
    %251 = arith.mulf %250, %246 : vector<8x8x128xf32>
    %252 = arith.addf %244, %251 : vector<8x8x128xf32>
    %c0_261 = arith.constant 0 : index
    %c4_262 = arith.constant 4 : index
    %c0_263 = arith.constant 0 : index
    %c0_264 = arith.constant 0 : index
    %253 = vector.load %arg4[%c0_261, %c4_262, %c0_263, %c0_264] : memref<2x16x8x128xf32, #tpu.memory_space<vmem>>, vector<1x8x8x128xf32>
    %254 = vector.shape_cast %253 : vector<1x8x8x128xf32> to vector<8x8x128xf32>
    %c3_265 = arith.constant 3 : index
    %c4_266 = arith.constant 4 : index
    %c0_267 = arith.constant 0 : index
    %c0_268 = arith.constant 0 : index
    %255 = vector.load %arg2[%c3_265, %c4_266, %c0_267, %c0_268] : memref<8x8x8x128xf32, #tpu.memory_space<vmem>>, vector<1x1x8x128xf32>
    %256 = vector.shape_cast %255 : vector<1x1x8x128xf32> to vector<8x128xf32>
    %257 = vector.shape_cast %256 : vector<8x128xf32> to vector<1x8x128xf32>
    %258 = vector.broadcast %257 : vector<1x8x128xf32> to vector<8x8x128xf32>
    %259 = arith.mulf %258, %254 : vector<8x8x128xf32>
    %260 = arith.addf %252, %259 : vector<8x8x128xf32>
    %c0_269 = arith.constant 0 : index
    %c3_270 = arith.constant 3 : index
    %c0_271 = arith.constant 0 : index
    %c0_272 = arith.constant 0 : index
    %261 = vector.load %arg4[%c0_269, %c3_270, %c0_271, %c0_272] : memref<2x16x8x128xf32, #tpu.memory_space<vmem>>, vector<1x8x8x128xf32>
    %262 = vector.shape_cast %261 : vector<1x8x8x128xf32> to vector<8x8x128xf32>
    %c3_273 = arith.constant 3 : index
    %c5_274 = arith.constant 5 : index
    %c0_275 = arith.constant 0 : index
    %c0_276 = arith.constant 0 : index
    %263 = vector.load %arg2[%c3_273, %c5_274, %c0_275, %c0_276] : memref<8x8x8x128xf32, #tpu.memory_space<vmem>>, vector<1x1x8x128xf32>
    %264 = vector.shape_cast %263 : vector<1x1x8x128xf32> to vector<8x128xf32>
    %265 = vector.shape_cast %264 : vector<8x128xf32> to vector<1x8x128xf32>
    %266 = vector.broadcast %265 : vector<1x8x128xf32> to vector<8x8x128xf32>
    %267 = arith.mulf %266, %262 : vector<8x8x128xf32>
    %268 = arith.addf %260, %267 : vector<8x8x128xf32>
    %c0_277 = arith.constant 0 : index
    %c2_278 = arith.constant 2 : index
    %c0_279 = arith.constant 0 : index
    %c0_280 = arith.constant 0 : index
    %269 = vector.load %arg4[%c0_277, %c2_278, %c0_279, %c0_280] : memref<2x16x8x128xf32, #tpu.memory_space<vmem>>, vector<1x8x8x128xf32>
    %270 = vector.shape_cast %269 : vector<1x8x8x128xf32> to vector<8x8x128xf32>
    %c3_281 = arith.constant 3 : index
    %c6_282 = arith.constant 6 : index
    %c0_283 = arith.constant 0 : index
    %c0_284 = arith.constant 0 : index
    %271 = vector.load %arg2[%c3_281, %c6_282, %c0_283, %c0_284] : memref<8x8x8x128xf32, #tpu.memory_space<vmem>>, vector<1x1x8x128xf32>
    %272 = vector.shape_cast %271 : vector<1x1x8x128xf32> to vector<8x128xf32>
    %273 = vector.shape_cast %272 : vector<8x128xf32> to vector<1x8x128xf32>
    %274 = vector.broadcast %273 : vector<1x8x128xf32> to vector<8x8x128xf32>
    %275 = arith.mulf %274, %270 : vector<8x8x128xf32>
    %276 = arith.addf %268, %275 : vector<8x8x128xf32>
    %c0_285 = arith.constant 0 : index
    %c1_286 = arith.constant 1 : index
    %c0_287 = arith.constant 0 : index
    %c0_288 = arith.constant 0 : index
    %277 = vector.load %arg4[%c0_285, %c1_286, %c0_287, %c0_288] : memref<2x16x8x128xf32, #tpu.memory_space<vmem>>, vector<1x8x8x128xf32>
    %278 = vector.shape_cast %277 : vector<1x8x8x128xf32> to vector<8x8x128xf32>
    %c3_289 = arith.constant 3 : index
    %c7_290 = arith.constant 7 : index
    %c0_291 = arith.constant 0 : index
    %c0_292 = arith.constant 0 : index
    %279 = vector.load %arg2[%c3_289, %c7_290, %c0_291, %c0_292] : memref<8x8x8x128xf32, #tpu.memory_space<vmem>>, vector<1x1x8x128xf32>
    %280 = vector.shape_cast %279 : vector<1x1x8x128xf32> to vector<8x128xf32>
    %281 = vector.shape_cast %280 : vector<8x128xf32> to vector<1x8x128xf32>
    %282 = vector.broadcast %281 : vector<1x8x128xf32> to vector<8x8x128xf32>
    %283 = arith.mulf %282, %278 : vector<8x8x128xf32>
    %284 = arith.addf %276, %283 : vector<8x8x128xf32>
    %c1_293 = arith.constant 1 : index
    %c0_294 = arith.constant 0 : index
    %c8_295 = arith.constant 8 : index
    %c0_296 = arith.constant 0 : index
    %285 = vector.load %arg5[%c1_293, %c0_294, %c8_295, %c0_296] : memref<2x8x16x128xf32, #tpu.memory_space<vmem>>, vector<1x8x8x128xf32>
    %286 = vector.shape_cast %285 : vector<1x8x8x128xf32> to vector<8x8x128xf32>
    %287 = vector.shape_cast %284 : vector<8x8x128xf32> to vector<1x8x8x128xf32>
    tpu.vector_store %arg5[%c1_293, %c0_294, %c8_295, %c0_296], %287 {strides = array<i32>} : memref<2x8x16x128xf32, #tpu.memory_space<vmem>>, vector<1x8x8x128xf32>,
    %c1_297 = arith.constant 1 : index
    %c0_298 = arith.constant 0 : index
    %c5_299 = arith.constant 5 : index
    %c0_300 = arith.constant 0 : index
    %288 = vector.load %arg5[%c1_297, %c0_298, %c5_299, %c0_300] : memref<2x8x16x128xf32, #tpu.memory_space<vmem>>, vector<1x8x8x128xf32>
    %289 = vector.shape_cast %288 : vector<1x8x8x128xf32> to vector<8x8x128xf32>
    %290 = arith.addf %219, %289 : vector<8x8x128xf32>
    %cst_301 = arith.constant 0.000000e+00 : f32
    %291 = vector.broadcast %cst_301 : f32 to vector<8x8x128xf32>
    %c0_302 = arith.constant 0 : index
    %c8_303 = arith.constant 8 : index
    %c0_304 = arith.constant 0 : index
    %c0_305 = arith.constant 0 : index
    %292 = vector.load %arg4[%c0_302, %c8_303, %c0_304, %c0_305] : memref<2x16x8x128xf32, #tpu.memory_space<vmem>>, vector<1x8x8x128xf32>
    %293 = vector.shape_cast %292 : vector<1x8x8x128xf32> to vector<8x8x128xf32>
    %c4_306 = arith.constant 4 : index
    %c0_307 = arith.constant 0 : index
    %c0_308 = arith.constant 0 : index
    %c0_309 = arith.constant 0 : index
    %294 = vector.load %arg2[%c4_306, %c0_307, %c0_308, %c0_309] : memref<8x8x8x128xf32, #tpu.memory_space<vmem>>, vector<1x1x8x128xf32>
    %295 = vector.shape_cast %294 : vector<1x1x8x128xf32> to vector<8x128xf32>
    %296 = vector.shape_cast %295 : vector<8x128xf32> to vector<1x8x128xf32>
    %297 = vector.broadcast %296 : vector<1x8x128xf32> to vector<8x8x128xf32>
    %298 = arith.mulf %297, %293 : vector<8x8x128xf32>
    %299 = arith.addf %291, %298 : vector<8x8x128xf32>
    %c0_310 = arith.constant 0 : index
    %c7_311 = arith.constant 7 : index
    %c0_312 = arith.constant 0 : index
    %c0_313 = arith.constant 0 : index
    %300 = vector.load %arg4[%c0_310, %c7_311, %c0_312, %c0_313] : memref<2x16x8x128xf32, #tpu.memory_space<vmem>>, vector<1x8x8x128xf32>
    %301 = vector.shape_cast %300 : vector<1x8x8x128xf32> to vector<8x8x128xf32>
    %c4_314 = arith.constant 4 : index
    %c1_315 = arith.constant 1 : index
    %c0_316 = arith.constant 0 : index
    %c0_317 = arith.constant 0 : index
    %302 = vector.load %arg2[%c4_314, %c1_315, %c0_316, %c0_317] : memref<8x8x8x128xf32, #tpu.memory_space<vmem>>, vector<1x1x8x128xf32>
    %303 = vector.shape_cast %302 : vector<1x1x8x128xf32> to vector<8x128xf32>
    %304 = vector.shape_cast %303 : vector<8x128xf32> to vector<1x8x128xf32>
    %305 = vector.broadcast %304 : vector<1x8x128xf32> to vector<8x8x128xf32>
    %306 = arith.mulf %305, %301 : vector<8x8x128xf32>
    %307 = arith.addf %299, %306 : vector<8x8x128xf32>
    %c0_318 = arith.constant 0 : index
    %c6_319 = arith.constant 6 : index
    %c0_320 = arith.constant 0 : index
    %c0_321 = arith.constant 0 : index
    %308 = vector.load %arg4[%c0_318, %c6_319, %c0_320, %c0_321] : memref<2x16x8x128xf32, #tpu.memory_space<vmem>>, vector<1x8x8x128xf32>
    %309 = vector.shape_cast %308 : vector<1x8x8x128xf32> to vector<8x8x128xf32>
    %c4_322 = arith.constant 4 : index
    %c2_323 = arith.constant 2 : index
    %c0_324 = arith.constant 0 : index
    %c0_325 = arith.constant 0 : index
    %310 = vector.load %arg2[%c4_322, %c2_323, %c0_324, %c0_325] : memref<8x8x8x128xf32, #tpu.memory_space<vmem>>, vector<1x1x8x128xf32>
    %311 = vector.shape_cast %310 : vector<1x1x8x128xf32> to vector<8x128xf32>
    %312 = vector.shape_cast %311 : vector<8x128xf32> to vector<1x8x128xf32>
    %313 = vector.broadcast %312 : vector<1x8x128xf32> to vector<8x8x128xf32>
    %314 = arith.mulf %313, %309 : vector<8x8x128xf32>
    %315 = arith.addf %307, %314 : vector<8x8x128xf32>
    %c0_326 = arith.constant 0 : index
    %c5_327 = arith.constant 5 : index
    %c0_328 = arith.constant 0 : index
    %c0_329 = arith.constant 0 : index
    %316 = vector.load %arg4[%c0_326, %c5_327, %c0_328, %c0_329] : memref<2x16x8x128xf32, #tpu.memory_space<vmem>>, vector<1x8x8x128xf32>
    %317 = vector.shape_cast %316 : vector<1x8x8x128xf32> to vector<8x8x128xf32>
    %c4_330 = arith.constant 4 : index
    %c3_331 = arith.constant 3 : index
    %c0_332 = arith.constant 0 : index
    %c0_333 = arith.constant 0 : index
    %318 = vector.load %arg2[%c4_330, %c3_331, %c0_332, %c0_333] : memref<8x8x8x128xf32, #tpu.memory_space<vmem>>, vector<1x1x8x128xf32>
    %319 = vector.shape_cast %318 : vector<1x1x8x128xf32> to vector<8x128xf32>
    %320 = vector.shape_cast %319 : vector<8x128xf32> to vector<1x8x128xf32>
    %321 = vector.broadcast %320 : vector<1x8x128xf32> to vector<8x8x128xf32>
    %322 = arith.mulf %321, %317 : vector<8x8x128xf32>
    %323 = arith.addf %315, %322 : vector<8x8x128xf32>
    %c0_334 = arith.constant 0 : index
    %c4_335 = arith.constant 4 : index
    %c0_336 = arith.constant 0 : index
    %c0_337 = arith.constant 0 : index
    %324 = vector.load %arg4[%c0_334, %c4_335, %c0_336, %c0_337] : memref<2x16x8x128xf32, #tpu.memory_space<vmem>>, vector<1x8x8x128xf32>
    %325 = vector.shape_cast %324 : vector<1x8x8x128xf32> to vector<8x8x128xf32>
    %c4_338 = arith.constant 4 : index
    %c4_339 = arith.constant 4 : index
    %c0_340 = arith.constant 0 : index
    %c0_341 = arith.constant 0 : index
    %326 = vector.load %arg2[%c4_338, %c4_339, %c0_340, %c0_341] : memref<8x8x8x128xf32, #tpu.memory_space<vmem>>, vector<1x1x8x128xf32>
    %327 = vector.shape_cast %326 : vector<1x1x8x128xf32> to vector<8x128xf32>
    %328 = vector.shape_cast %327 : vector<8x128xf32> to vector<1x8x128xf32>
    %329 = vector.broadcast %328 : vector<1x8x128xf32> to vector<8x8x128xf32>
    %330 = arith.mulf %329, %325 : vector<8x8x128xf32>
    %331 = arith.addf %323, %330 : vector<8x8x128xf32>
    %c0_342 = arith.constant 0 : index
    %c3_343 = arith.constant 3 : index
    %c0_344 = arith.constant 0 : index
    %c0_345 = arith.constant 0 : index
    %332 = vector.load %arg4[%c0_342, %c3_343, %c0_344, %c0_345] : memref<2x16x8x128xf32, #tpu.memory_space<vmem>>, vector<1x8x8x128xf32>
    %333 = vector.shape_cast %332 : vector<1x8x8x128xf32> to vector<8x8x128xf32>
    %c4_346 = arith.constant 4 : index
    %c5_347 = arith.constant 5 : index
    %c0_348 = arith.constant 0 : index
    %c0_349 = arith.constant 0 : index
    %334 = vector.load %arg2[%c4_346, %c5_347, %c0_348, %c0_349] : memref<8x8x8x128xf32, #tpu.memory_space<vmem>>, vector<1x1x8x128xf32>
    %335 = vector.shape_cast %334 : vector<1x1x8x128xf32> to vector<8x128xf32>
    %336 = vector.shape_cast %335 : vector<8x128xf32> to vector<1x8x128xf32>
    %337 = vector.broadcast %336 : vector<1x8x128xf32> to vector<8x8x128xf32>
    %338 = arith.mulf %337, %333 : vector<8x8x128xf32>
    %339 = arith.addf %331, %338 : vector<8x8x128xf32>
    %c0_350 = arith.constant 0 : index
    %c2_351 = arith.constant 2 : index
    %c0_352 = arith.constant 0 : index
    %c0_353 = arith.constant 0 : index
    %340 = vector.load %arg4[%c0_350, %c2_351, %c0_352, %c0_353] : memref<2x16x8x128xf32, #tpu.memory_space<vmem>>, vector<1x8x8x128xf32>
    %341 = vector.shape_cast %340 : vector<1x8x8x128xf32> to vector<8x8x128xf32>
    %c4_354 = arith.constant 4 : index
    %c6_355 = arith.constant 6 : index
    %c0_356 = arith.constant 0 : index
    %c0_357 = arith.constant 0 : index
    %342 = vector.load %arg2[%c4_354, %c6_355, %c0_356, %c0_357] : memref<8x8x8x128xf32, #tpu.memory_space<vmem>>, vector<1x1x8x128xf32>
    %343 = vector.shape_cast %342 : vector<1x1x8x128xf32> to vector<8x128xf32>
    %344 = vector.shape_cast %343 : vector<8x128xf32> to vector<1x8x128xf32>
    %345 = vector.broadcast %344 : vector<1x8x128xf32> to vector<8x8x128xf32>
    %346 = arith.mulf %345, %341 : vector<8x8x128xf32>
    %347 = arith.addf %339, %346 : vector<8x8x128xf32>
    %c0_358 = arith.constant 0 : index
    %c1_359 = arith.constant 1 : index
    %c0_360 = arith.constant 0 : index
    %c0_361 = arith.constant 0 : index
    %348 = vector.load %arg4[%c0_358, %c1_359, %c0_360, %c0_361] : memref<2x16x8x128xf32, #tpu.memory_space<vmem>>, vector<1x8x8x128xf32>
    %349 = vector.shape_cast %348 : vector<1x8x8x128xf32> to vector<8x8x128xf32>
    %c4_362 = arith.constant 4 : index
    %c7_363 = arith.constant 7 : index
    %c0_364 = arith.constant 0 : index
    %c0_365 = arith.constant 0 : index
    %350 = vector.load %arg2[%c4_362, %c7_363, %c0_364, %c0_365] : memref<8x8x8x128xf32, #tpu.memory_space<vmem>>, vector<1x1x8x128xf32>
    %351 = vector.shape_cast %350 : vector<1x1x8x128xf32> to vector<8x128xf32>
    %352 = vector.shape_cast %351 : vector<8x128xf32> to vector<1x8x128xf32>
    %353 = vector.broadcast %352 : vector<1x8x128xf32> to vector<8x8x128xf32>
    %354 = arith.mulf %353, %349 : vector<8x8x128xf32>
    %355 = arith.addf %347, %354 : vector<8x8x128xf32>
    %c0_366 = arith.constant 0 : index
    %c0_367 = arith.constant 0 : index
    %c8_368 = arith.constant 8 : index
    %c0_369 = arith.constant 0 : index
    %356 = vector.load %arg5[%c0_366, %c0_367, %c8_368, %c0_369] : memref<2x8x16x128xf32, #tpu.memory_space<vmem>>, vector<1x8x8x128xf32>
    %357 = vector.shape_cast %356 : vector<1x8x8x128xf32> to vector<8x8x128xf32>
    %358 = vector.shape_cast %355 : vector<8x8x128xf32> to vector<1x8x8x128xf32>
    tpu.vector_store %arg5[%c0_366, %c0_367, %c8_368, %c0_369], %358 {strides = array<i32>} : memref<2x8x16x128xf32, #tpu.memory_space<vmem>>, vector<1x8x8x128xf32>,
    %c0_370 = arith.constant 0 : index
    %c0_371 = arith.constant 0 : index
    %c4_372 = arith.constant 4 : index
    %c0_373 = arith.constant 0 : index
    %359 = vector.load %arg5[%c0_370, %c0_371, %c4_372, %c0_373] : memref<2x8x16x128xf32, #tpu.memory_space<vmem>>, vector<1x8x8x128xf32>
    %360 = vector.shape_cast %359 : vector<1x8x8x128xf32> to vector<8x8x128xf32>
    %361 = arith.addf %290, %360 : vector<8x8x128xf32>
    %cst_374 = arith.constant 0.000000e+00 : f32
    %362 = vector.broadcast %cst_374 : f32 to vector<8x8x128xf32>
    %c0_375 = arith.constant 0 : index
    %c8_376 = arith.constant 8 : index
    %c0_377 = arith.constant 0 : index
    %c0_378 = arith.constant 0 : index
    %363 = vector.load %arg4[%c0_375, %c8_376, %c0_377, %c0_378] : memref<2x16x8x128xf32, #tpu.memory_space<vmem>>, vector<1x8x8x128xf32>
    %364 = vector.shape_cast %363 : vector<1x8x8x128xf32> to vector<8x8x128xf32>
    %c5_379 = arith.constant 5 : index
    %c0_380 = arith.constant 0 : index
    %c0_381 = arith.constant 0 : index
    %c0_382 = arith.constant 0 : index
    %365 = vector.load %arg2[%c5_379, %c0_380, %c0_381, %c0_382] : memref<8x8x8x128xf32, #tpu.memory_space<vmem>>, vector<1x1x8x128xf32>
    %366 = vector.shape_cast %365 : vector<1x1x8x128xf32> to vector<8x128xf32>
    %367 = vector.shape_cast %366 : vector<8x128xf32> to vector<1x8x128xf32>
    %368 = vector.broadcast %367 : vector<1x8x128xf32> to vector<8x8x128xf32>
    %369 = arith.mulf %368, %364 : vector<8x8x128xf32>
    %370 = arith.addf %362, %369 : vector<8x8x128xf32>
    %c0_383 = arith.constant 0 : index
    %c7_384 = arith.constant 7 : index
    %c0_385 = arith.constant 0 : index
    %c0_386 = arith.constant 0 : index
    %371 = vector.load %arg4[%c0_383, %c7_384, %c0_385, %c0_386] : memref<2x16x8x128xf32, #tpu.memory_space<vmem>>, vector<1x8x8x128xf32>
    %372 = vector.shape_cast %371 : vector<1x8x8x128xf32> to vector<8x8x128xf32>
    %c5_387 = arith.constant 5 : index
    %c1_388 = arith.constant 1 : index
    %c0_389 = arith.constant 0 : index
    %c0_390 = arith.constant 0 : index
    %373 = vector.load %arg2[%c5_387, %c1_388, %c0_389, %c0_390] : memref<8x8x8x128xf32, #tpu.memory_space<vmem>>, vector<1x1x8x128xf32>
    %374 = vector.shape_cast %373 : vector<1x1x8x128xf32> to vector<8x128xf32>
    %375 = vector.shape_cast %374 : vector<8x128xf32> to vector<1x8x128xf32>
    %376 = vector.broadcast %375 : vector<1x8x128xf32> to vector<8x8x128xf32>
    %377 = arith.mulf %376, %372 : vector<8x8x128xf32>
    %378 = arith.addf %370, %377 : vector<8x8x128xf32>
    %c0_391 = arith.constant 0 : index
    %c6_392 = arith.constant 6 : index
    %c0_393 = arith.constant 0 : index
    %c0_394 = arith.constant 0 : index
    %379 = vector.load %arg4[%c0_391, %c6_392, %c0_393, %c0_394] : memref<2x16x8x128xf32, #tpu.memory_space<vmem>>, vector<1x8x8x128xf32>
    %380 = vector.shape_cast %379 : vector<1x8x8x128xf32> to vector<8x8x128xf32>
    %c5_395 = arith.constant 5 : index
    %c2_396 = arith.constant 2 : index
    %c0_397 = arith.constant 0 : index
    %c0_398 = arith.constant 0 : index
    %381 = vector.load %arg2[%c5_395, %c2_396, %c0_397, %c0_398] : memref<8x8x8x128xf32, #tpu.memory_space<vmem>>, vector<1x1x8x128xf32>
    %382 = vector.shape_cast %381 : vector<1x1x8x128xf32> to vector<8x128xf32>
    %383 = vector.shape_cast %382 : vector<8x128xf32> to vector<1x8x128xf32>
    %384 = vector.broadcast %383 : vector<1x8x128xf32> to vector<8x8x128xf32>
    %385 = arith.mulf %384, %380 : vector<8x8x128xf32>
    %386 = arith.addf %378, %385 : vector<8x8x128xf32>
    %c0_399 = arith.constant 0 : index
    %c5_400 = arith.constant 5 : index
    %c0_401 = arith.constant 0 : index
    %c0_402 = arith.constant 0 : index
    %387 = vector.load %arg4[%c0_399, %c5_400, %c0_401, %c0_402] : memref<2x16x8x128xf32, #tpu.memory_space<vmem>>, vector<1x8x8x128xf32>
    %388 = vector.shape_cast %387 : vector<1x8x8x128xf32> to vector<8x8x128xf32>
    %c5_403 = arith.constant 5 : index
    %c3_404 = arith.constant 3 : index
    %c0_405 = arith.constant 0 : index
    %c0_406 = arith.constant 0 : index
    %389 = vector.load %arg2[%c5_403, %c3_404, %c0_405, %c0_406] : memref<8x8x8x128xf32, #tpu.memory_space<vmem>>, vector<1x1x8x128xf32>
    %390 = vector.shape_cast %389 : vector<1x1x8x128xf32> to vector<8x128xf32>
    %391 = vector.shape_cast %390 : vector<8x128xf32> to vector<1x8x128xf32>
    %392 = vector.broadcast %391 : vector<1x8x128xf32> to vector<8x8x128xf32>
    %393 = arith.mulf %392, %388 : vector<8x8x128xf32>
    %394 = arith.addf %386, %393 : vector<8x8x128xf32>
    %c0_407 = arith.constant 0 : index
    %c4_408 = arith.constant 4 : index
    %c0_409 = arith.constant 0 : index
    %c0_410 = arith.constant 0 : index
    %395 = vector.load %arg4[%c0_407, %c4_408, %c0_409, %c0_410] : memref<2x16x8x128xf32, #tpu.memory_space<vmem>>, vector<1x8x8x128xf32>
    %396 = vector.shape_cast %395 : vector<1x8x8x128xf32> to vector<8x8x128xf32>
    %c5_411 = arith.constant 5 : index
    %c4_412 = arith.constant 4 : index
    %c0_413 = arith.constant 0 : index
    %c0_414 = arith.constant 0 : index
    %397 = vector.load %arg2[%c5_411, %c4_412, %c0_413, %c0_414] : memref<8x8x8x128xf32, #tpu.memory_space<vmem>>, vector<1x1x8x128xf32>
    %398 = vector.shape_cast %397 : vector<1x1x8x128xf32> to vector<8x128xf32>
    %399 = vector.shape_cast %398 : vector<8x128xf32> to vector<1x8x128xf32>
    %400 = vector.broadcast %399 : vector<1x8x128xf32> to vector<8x8x128xf32>
    %401 = arith.mulf %400, %396 : vector<8x8x128xf32>
    %402 = arith.addf %394, %401 : vector<8x8x128xf32>
    %c0_415 = arith.constant 0 : index
    %c3_416 = arith.constant 3 : index
    %c0_417 = arith.constant 0 : index
    %c0_418 = arith.constant 0 : index
    %403 = vector.load %arg4[%c0_415, %c3_416, %c0_417, %c0_418] : memref<2x16x8x128xf32, #tpu.memory_space<vmem>>, vector<1x8x8x128xf32>
    %404 = vector.shape_cast %403 : vector<1x8x8x128xf32> to vector<8x8x128xf32>
    %c5_419 = arith.constant 5 : index
    %c5_420 = arith.constant 5 : index
    %c0_421 = arith.constant 0 : index
    %c0_422 = arith.constant 0 : index
    %405 = vector.load %arg2[%c5_419, %c5_420, %c0_421, %c0_422] : memref<8x8x8x128xf32, #tpu.memory_space<vmem>>, vector<1x1x8x128xf32>
    %406 = vector.shape_cast %405 : vector<1x1x8x128xf32> to vector<8x128xf32>
    %407 = vector.shape_cast %406 : vector<8x128xf32> to vector<1x8x128xf32>
    %408 = vector.broadcast %407 : vector<1x8x128xf32> to vector<8x8x128xf32>
    %409 = arith.mulf %408, %404 : vector<8x8x128xf32>
    %410 = arith.addf %402, %409 : vector<8x8x128xf32>
    %c0_423 = arith.constant 0 : index
    %c2_424 = arith.constant 2 : index
    %c0_425 = arith.constant 0 : index
    %c0_426 = arith.constant 0 : index
    %411 = vector.load %arg4[%c0_423, %c2_424, %c0_425, %c0_426] : memref<2x16x8x128xf32, #tpu.memory_space<vmem>>, vector<1x8x8x128xf32>
    %412 = vector.shape_cast %411 : vector<1x8x8x128xf32> to vector<8x8x128xf32>
    %c5_427 = arith.constant 5 : index
    %c6_428 = arith.constant 6 : index
    %c0_429 = arith.constant 0 : index
    %c0_430 = arith.constant 0 : index
    %413 = vector.load %arg2[%c5_427, %c6_428, %c0_429, %c0_430] : memref<8x8x8x128xf32, #tpu.memory_space<vmem>>, vector<1x1x8x128xf32>
    %414 = vector.shape_cast %413 : vector<1x1x8x128xf32> to vector<8x128xf32>
    %415 = vector.shape_cast %414 : vector<8x128xf32> to vector<1x8x128xf32>
    %416 = vector.broadcast %415 : vector<1x8x128xf32> to vector<8x8x128xf32>
    %417 = arith.mulf %416, %412 : vector<8x8x128xf32>
    %418 = arith.addf %410, %417 : vector<8x8x128xf32>
    %c0_431 = arith.constant 0 : index
    %c1_432 = arith.constant 1 : index
    %c0_433 = arith.constant 0 : index
    %c0_434 = arith.constant 0 : index
    %419 = vector.load %arg4[%c0_431, %c1_432, %c0_433, %c0_434] : memref<2x16x8x128xf32, #tpu.memory_space<vmem>>, vector<1x8x8x128xf32>
    %420 = vector.shape_cast %419 : vector<1x8x8x128xf32> to vector<8x8x128xf32>
    %c5_435 = arith.constant 5 : index
    %c7_436 = arith.constant 7 : index
    %c0_437 = arith.constant 0 : index
    %c0_438 = arith.constant 0 : index
    %421 = vector.load %arg2[%c5_435, %c7_436, %c0_437, %c0_438] : memref<8x8x8x128xf32, #tpu.memory_space<vmem>>, vector<1x1x8x128xf32>
    %422 = vector.shape_cast %421 : vector<1x1x8x128xf32> to vector<8x128xf32>
    %423 = vector.shape_cast %422 : vector<8x128xf32> to vector<1x8x128xf32>
    %424 = vector.broadcast %423 : vector<1x8x128xf32> to vector<8x8x128xf32>
    %425 = arith.mulf %424, %420 : vector<8x8x128xf32>
    %426 = arith.addf %418, %425 : vector<8x8x128xf32>
    %c1_439 = arith.constant 1 : index
    %c0_440 = arith.constant 0 : index
    %c8_441 = arith.constant 8 : index
    %c0_442 = arith.constant 0 : index
    %427 = vector.load %arg5[%c1_439, %c0_440, %c8_441, %c0_442] : memref<2x8x16x128xf32, #tpu.memory_space<vmem>>, vector<1x8x8x128xf32>
    %428 = vector.shape_cast %427 : vector<1x8x8x128xf32> to vector<8x8x128xf32>
    %429 = vector.shape_cast %426 : vector<8x8x128xf32> to vector<1x8x8x128xf32>
    tpu.vector_store %arg5[%c1_439, %c0_440, %c8_441, %c0_442], %429 {strides = array<i32>} : memref<2x8x16x128xf32, #tpu.memory_space<vmem>>, vector<1x8x8x128xf32>,
    %c1_443 = arith.constant 1 : index
    %c0_444 = arith.constant 0 : index
    %c3_445 = arith.constant 3 : index
    %c0_446 = arith.constant 0 : index
    %430 = vector.load %arg5[%c1_443, %c0_444, %c3_445, %c0_446] : memref<2x8x16x128xf32, #tpu.memory_space<vmem>>, vector<1x8x8x128xf32>
    %431 = vector.shape_cast %430 : vector<1x8x8x128xf32> to vector<8x8x128xf32>
    %432 = arith.addf %361, %431 : vector<8x8x128xf32>
    %cst_447 = arith.constant 0.000000e+00 : f32
    %433 = vector.broadcast %cst_447 : f32 to vector<8x8x128xf32>
    %c0_448 = arith.constant 0 : index
    %c8_449 = arith.constant 8 : index
    %c0_450 = arith.constant 0 : index
    %c0_451 = arith.constant 0 : index
    %434 = vector.load %arg4[%c0_448, %c8_449, %c0_450, %c0_451] : memref<2x16x8x128xf32, #tpu.memory_space<vmem>>, vector<1x8x8x128xf32>
    %435 = vector.shape_cast %434 : vector<1x8x8x128xf32> to vector<8x8x128xf32>
    %c6_452 = arith.constant 6 : index
    %c0_453 = arith.constant 0 : index
    %c0_454 = arith.constant 0 : index
    %c0_455 = arith.constant 0 : index
    %436 = vector.load %arg2[%c6_452, %c0_453, %c0_454, %c0_455] : memref<8x8x8x128xf32, #tpu.memory_space<vmem>>, vector<1x1x8x128xf32>
    %437 = vector.shape_cast %436 : vector<1x1x8x128xf32> to vector<8x128xf32>
    %438 = vector.shape_cast %437 : vector<8x128xf32> to vector<1x8x128xf32>
    %439 = vector.broadcast %438 : vector<1x8x128xf32> to vector<8x8x128xf32>
    %440 = arith.mulf %439, %435 : vector<8x8x128xf32>
    %441 = arith.addf %433, %440 : vector<8x8x128xf32>
    %c0_456 = arith.constant 0 : index
    %c7_457 = arith.constant 7 : index
    %c0_458 = arith.constant 0 : index
    %c0_459 = arith.constant 0 : index
    %442 = vector.load %arg4[%c0_456, %c7_457, %c0_458, %c0_459] : memref<2x16x8x128xf32, #tpu.memory_space<vmem>>, vector<1x8x8x128xf32>
    %443 = vector.shape_cast %442 : vector<1x8x8x128xf32> to vector<8x8x128xf32>
    %c6_460 = arith.constant 6 : index
    %c1_461 = arith.constant 1 : index
    %c0_462 = arith.constant 0 : index
    %c0_463 = arith.constant 0 : index
    %444 = vector.load %arg2[%c6_460, %c1_461, %c0_462, %c0_463] : memref<8x8x8x128xf32, #tpu.memory_space<vmem>>, vector<1x1x8x128xf32>
    %445 = vector.shape_cast %444 : vector<1x1x8x128xf32> to vector<8x128xf32>
    %446 = vector.shape_cast %445 : vector<8x128xf32> to vector<1x8x128xf32>
    %447 = vector.broadcast %446 : vector<1x8x128xf32> to vector<8x8x128xf32>
    %448 = arith.mulf %447, %443 : vector<8x8x128xf32>
    %449 = arith.addf %441, %448 : vector<8x8x128xf32>
    %c0_464 = arith.constant 0 : index
    %c6_465 = arith.constant 6 : index
    %c0_466 = arith.constant 0 : index
    %c0_467 = arith.constant 0 : index
    %450 = vector.load %arg4[%c0_464, %c6_465, %c0_466, %c0_467] : memref<2x16x8x128xf32, #tpu.memory_space<vmem>>, vector<1x8x8x128xf32>
    %451 = vector.shape_cast %450 : vector<1x8x8x128xf32> to vector<8x8x128xf32>
    %c6_468 = arith.constant 6 : index
    %c2_469 = arith.constant 2 : index
    %c0_470 = arith.constant 0 : index
    %c0_471 = arith.constant 0 : index
    %452 = vector.load %arg2[%c6_468, %c2_469, %c0_470, %c0_471] : memref<8x8x8x128xf32, #tpu.memory_space<vmem>>, vector<1x1x8x128xf32>
    %453 = vector.shape_cast %452 : vector<1x1x8x128xf32> to vector<8x128xf32>
    %454 = vector.shape_cast %453 : vector<8x128xf32> to vector<1x8x128xf32>
    %455 = vector.broadcast %454 : vector<1x8x128xf32> to vector<8x8x128xf32>
    %456 = arith.mulf %455, %451 : vector<8x8x128xf32>
    %457 = arith.addf %449, %456 : vector<8x8x128xf32>
    %c0_472 = arith.constant 0 : index
    %c5_473 = arith.constant 5 : index
    %c0_474 = arith.constant 0 : index
    %c0_475 = arith.constant 0 : index
    %458 = vector.load %arg4[%c0_472, %c5_473, %c0_474, %c0_475] : memref<2x16x8x128xf32, #tpu.memory_space<vmem>>, vector<1x8x8x128xf32>
    %459 = vector.shape_cast %458 : vector<1x8x8x128xf32> to vector<8x8x128xf32>
    %c6_476 = arith.constant 6 : index
    %c3_477 = arith.constant 3 : index
    %c0_478 = arith.constant 0 : index
    %c0_479 = arith.constant 0 : index
    %460 = vector.load %arg2[%c6_476, %c3_477, %c0_478, %c0_479] : memref<8x8x8x128xf32, #tpu.memory_space<vmem>>, vector<1x1x8x128xf32>
    %461 = vector.shape_cast %460 : vector<1x1x8x128xf32> to vector<8x128xf32>
    %462 = vector.shape_cast %461 : vector<8x128xf32> to vector<1x8x128xf32>
    %463 = vector.broadcast %462 : vector<1x8x128xf32> to vector<8x8x128xf32>
    %464 = arith.mulf %463, %459 : vector<8x8x128xf32>
    %465 = arith.addf %457, %464 : vector<8x8x128xf32>
    %c0_480 = arith.constant 0 : index
    %c4_481 = arith.constant 4 : index
    %c0_482 = arith.constant 0 : index
    %c0_483 = arith.constant 0 : index
    %466 = vector.load %arg4[%c0_480, %c4_481, %c0_482, %c0_483] : memref<2x16x8x128xf32, #tpu.memory_space<vmem>>, vector<1x8x8x128xf32>
    %467 = vector.shape_cast %466 : vector<1x8x8x128xf32> to vector<8x8x128xf32>
    %c6_484 = arith.constant 6 : index
    %c4_485 = arith.constant 4 : index
    %c0_486 = arith.constant 0 : index
    %c0_487 = arith.constant 0 : index
    %468 = vector.load %arg2[%c6_484, %c4_485, %c0_486, %c0_487] : memref<8x8x8x128xf32, #tpu.memory_space<vmem>>, vector<1x1x8x128xf32>
    %469 = vector.shape_cast %468 : vector<1x1x8x128xf32> to vector<8x128xf32>
    %470 = vector.shape_cast %469 : vector<8x128xf32> to vector<1x8x128xf32>
    %471 = vector.broadcast %470 : vector<1x8x128xf32> to vector<8x8x128xf32>
    %472 = arith.mulf %471, %467 : vector<8x8x128xf32>
    %473 = arith.addf %465, %472 : vector<8x8x128xf32>
    %c0_488 = arith.constant 0 : index
    %c3_489 = arith.constant 3 : index
    %c0_490 = arith.constant 0 : index
    %c0_491 = arith.constant 0 : index
    %474 = vector.load %arg4[%c0_488, %c3_489, %c0_490, %c0_491] : memref<2x16x8x128xf32, #tpu.memory_space<vmem>>, vector<1x8x8x128xf32>
    %475 = vector.shape_cast %474 : vector<1x8x8x128xf32> to vector<8x8x128xf32>
    %c6_492 = arith.constant 6 : index
    %c5_493 = arith.constant 5 : index
    %c0_494 = arith.constant 0 : index
    %c0_495 = arith.constant 0 : index
    %476 = vector.load %arg2[%c6_492, %c5_493, %c0_494, %c0_495] : memref<8x8x8x128xf32, #tpu.memory_space<vmem>>, vector<1x1x8x128xf32>
    %477 = vector.shape_cast %476 : vector<1x1x8x128xf32> to vector<8x128xf32>
    %478 = vector.shape_cast %477 : vector<8x128xf32> to vector<1x8x128xf32>
    %479 = vector.broadcast %478 : vector<1x8x128xf32> to vector<8x8x128xf32>
    %480 = arith.mulf %479, %475 : vector<8x8x128xf32>
    %481 = arith.addf %473, %480 : vector<8x8x128xf32>
    %c0_496 = arith.constant 0 : index
    %c2_497 = arith.constant 2 : index
    %c0_498 = arith.constant 0 : index
    %c0_499 = arith.constant 0 : index
    %482 = vector.load %arg4[%c0_496, %c2_497, %c0_498, %c0_499] : memref<2x16x8x128xf32, #tpu.memory_space<vmem>>, vector<1x8x8x128xf32>
    %483 = vector.shape_cast %482 : vector<1x8x8x128xf32> to vector<8x8x128xf32>
    %c6_500 = arith.constant 6 : index
    %c6_501 = arith.constant 6 : index
    %c0_502 = arith.constant 0 : index
    %c0_503 = arith.constant 0 : index
    %484 = vector.load %arg2[%c6_500, %c6_501, %c0_502, %c0_503] : memref<8x8x8x128xf32, #tpu.memory_space<vmem>>, vector<1x1x8x128xf32>
    %485 = vector.shape_cast %484 : vector<1x1x8x128xf32> to vector<8x128xf32>
    %486 = vector.shape_cast %485 : vector<8x128xf32> to vector<1x8x128xf32>
    %487 = vector.broadcast %486 : vector<1x8x128xf32> to vector<8x8x128xf32>
    %488 = arith.mulf %487, %483 : vector<8x8x128xf32>
    %489 = arith.addf %481, %488 : vector<8x8x128xf32>
    %c0_504 = arith.constant 0 : index
    %c1_505 = arith.constant 1 : index
    %c0_506 = arith.constant 0 : index
    %c0_507 = arith.constant 0 : index
    %490 = vector.load %arg4[%c0_504, %c1_505, %c0_506, %c0_507] : memref<2x16x8x128xf32, #tpu.memory_space<vmem>>, vector<1x8x8x128xf32>
    %491 = vector.shape_cast %490 : vector<1x8x8x128xf32> to vector<8x8x128xf32>
    %c6_508 = arith.constant 6 : index
    %c7_509 = arith.constant 7 : index
    %c0_510 = arith.constant 0 : index
    %c0_511 = arith.constant 0 : index
    %492 = vector.load %arg2[%c6_508, %c7_509, %c0_510, %c0_511] : memref<8x8x8x128xf32, #tpu.memory_space<vmem>>, vector<1x1x8x128xf32>
    %493 = vector.shape_cast %492 : vector<1x1x8x128xf32> to vector<8x128xf32>
    %494 = vector.shape_cast %493 : vector<8x128xf32> to vector<1x8x128xf32>
    %495 = vector.broadcast %494 : vector<1x8x128xf32> to vector<8x8x128xf32>
    %496 = arith.mulf %495, %491 : vector<8x8x128xf32>
    %497 = arith.addf %489, %496 : vector<8x8x128xf32>
    %c0_512 = arith.constant 0 : index
    %c0_513 = arith.constant 0 : index
    %c8_514 = arith.constant 8 : index
    %c0_515 = arith.constant 0 : index
    %498 = vector.load %arg5[%c0_512, %c0_513, %c8_514, %c0_515] : memref<2x8x16x128xf32, #tpu.memory_space<vmem>>, vector<1x8x8x128xf32>
    %499 = vector.shape_cast %498 : vector<1x8x8x128xf32> to vector<8x8x128xf32>
    %500 = vector.shape_cast %497 : vector<8x8x128xf32> to vector<1x8x8x128xf32>
    tpu.vector_store %arg5[%c0_512, %c0_513, %c8_514, %c0_515], %500 {strides = array<i32>} : memref<2x8x16x128xf32, #tpu.memory_space<vmem>>, vector<1x8x8x128xf32>,
    %c0_516 = arith.constant 0 : index
    %c0_517 = arith.constant 0 : index
    %c2_518 = arith.constant 2 : index
    %c0_519 = arith.constant 0 : index
    %501 = vector.load %arg5[%c0_516, %c0_517, %c2_518, %c0_519] : memref<2x8x16x128xf32, #tpu.memory_space<vmem>>, vector<1x8x8x128xf32>
    %502 = vector.shape_cast %501 : vector<1x8x8x128xf32> to vector<8x8x128xf32>
    %503 = arith.addf %432, %502 : vector<8x8x128xf32>
    %cst_520 = arith.constant 0.000000e+00 : f32
    %504 = vector.broadcast %cst_520 : f32 to vector<8x8x128xf32>
    %c0_521 = arith.constant 0 : index
    %c8_522 = arith.constant 8 : index
    %c0_523 = arith.constant 0 : index
    %c0_524 = arith.constant 0 : index
    %505 = vector.load %arg4[%c0_521, %c8_522, %c0_523, %c0_524] : memref<2x16x8x128xf32, #tpu.memory_space<vmem>>, vector<1x8x8x128xf32>
    %506 = vector.shape_cast %505 : vector<1x8x8x128xf32> to vector<8x8x128xf32>
    %c7_525 = arith.constant 7 : index
    %c0_526 = arith.constant 0 : index
    %c0_527 = arith.constant 0 : index
    %c0_528 = arith.constant 0 : index
    %507 = vector.load %arg2[%c7_525, %c0_526, %c0_527, %c0_528] : memref<8x8x8x128xf32, #tpu.memory_space<vmem>>, vector<1x1x8x128xf32>
    %508 = vector.shape_cast %507 : vector<1x1x8x128xf32> to vector<8x128xf32>
    %509 = vector.shape_cast %508 : vector<8x128xf32> to vector<1x8x128xf32>
    %510 = vector.broadcast %509 : vector<1x8x128xf32> to vector<8x8x128xf32>
    %511 = arith.mulf %510, %506 : vector<8x8x128xf32>
    %512 = arith.addf %504, %511 : vector<8x8x128xf32>
    %c0_529 = arith.constant 0 : index
    %c7_530 = arith.constant 7 : index
    %c0_531 = arith.constant 0 : index
    %c0_532 = arith.constant 0 : index
    %513 = vector.load %arg4[%c0_529, %c7_530, %c0_531, %c0_532] : memref<2x16x8x128xf32, #tpu.memory_space<vmem>>, vector<1x8x8x128xf32>
    %514 = vector.shape_cast %513 : vector<1x8x8x128xf32> to vector<8x8x128xf32>
    %c7_533 = arith.constant 7 : index
    %c1_534 = arith.constant 1 : index
    %c0_535 = arith.constant 0 : index
    %c0_536 = arith.constant 0 : index
    %515 = vector.load %arg2[%c7_533, %c1_534, %c0_535, %c0_536] : memref<8x8x8x128xf32, #tpu.memory_space<vmem>>, vector<1x1x8x128xf32>
    %516 = vector.shape_cast %515 : vector<1x1x8x128xf32> to vector<8x128xf32>
    %517 = vector.shape_cast %516 : vector<8x128xf32> to vector<1x8x128xf32>
    %518 = vector.broadcast %517 : vector<1x8x128xf32> to vector<8x8x128xf32>
    %519 = arith.mulf %518, %514 : vector<8x8x128xf32>
    %520 = arith.addf %512, %519 : vector<8x8x128xf32>
    %c0_537 = arith.constant 0 : index
    %c6_538 = arith.constant 6 : index
    %c0_539 = arith.constant 0 : index
    %c0_540 = arith.constant 0 : index
    %521 = vector.load %arg4[%c0_537, %c6_538, %c0_539, %c0_540] : memref<2x16x8x128xf32, #tpu.memory_space<vmem>>, vector<1x8x8x128xf32>
    %522 = vector.shape_cast %521 : vector<1x8x8x128xf32> to vector<8x8x128xf32>
    %c7_541 = arith.constant 7 : index
    %c2_542 = arith.constant 2 : index
    %c0_543 = arith.constant 0 : index
    %c0_544 = arith.constant 0 : index
    %523 = vector.load %arg2[%c7_541, %c2_542, %c0_543, %c0_544] : memref<8x8x8x128xf32, #tpu.memory_space<vmem>>, vector<1x1x8x128xf32>
    %524 = vector.shape_cast %523 : vector<1x1x8x128xf32> to vector<8x128xf32>
    %525 = vector.shape_cast %524 : vector<8x128xf32> to vector<1x8x128xf32>
    %526 = vector.broadcast %525 : vector<1x8x128xf32> to vector<8x8x128xf32>
    %527 = arith.mulf %526, %522 : vector<8x8x128xf32>
    %528 = arith.addf %520, %527 : vector<8x8x128xf32>
    %c0_545 = arith.constant 0 : index
    %c5_546 = arith.constant 5 : index
    %c0_547 = arith.constant 0 : index
    %c0_548 = arith.constant 0 : index
    %529 = vector.load %arg4[%c0_545, %c5_546, %c0_547, %c0_548] : memref<2x16x8x128xf32, #tpu.memory_space<vmem>>, vector<1x8x8x128xf32>
    %530 = vector.shape_cast %529 : vector<1x8x8x128xf32> to vector<8x8x128xf32>
    %c7_549 = arith.constant 7 : index
    %c3_550 = arith.constant 3 : index
    %c0_551 = arith.constant 0 : index
    %c0_552 = arith.constant 0 : index
    %531 = vector.load %arg2[%c7_549, %c3_550, %c0_551, %c0_552] : memref<8x8x8x128xf32, #tpu.memory_space<vmem>>, vector<1x1x8x128xf32>
    %532 = vector.shape_cast %531 : vector<1x1x8x128xf32> to vector<8x128xf32>
    %533 = vector.shape_cast %532 : vector<8x128xf32> to vector<1x8x128xf32>
    %534 = vector.broadcast %533 : vector<1x8x128xf32> to vector<8x8x128xf32>
    %535 = arith.mulf %534, %530 : vector<8x8x128xf32>
    %536 = arith.addf %528, %535 : vector<8x8x128xf32>
    %c0_553 = arith.constant 0 : index
    %c4_554 = arith.constant 4 : index
    %c0_555 = arith.constant 0 : index
    %c0_556 = arith.constant 0 : index
    %537 = vector.load %arg4[%c0_553, %c4_554, %c0_555, %c0_556] : memref<2x16x8x128xf32, #tpu.memory_space<vmem>>, vector<1x8x8x128xf32>
    %538 = vector.shape_cast %537 : vector<1x8x8x128xf32> to vector<8x8x128xf32>
    %c7_557 = arith.constant 7 : index
    %c4_558 = arith.constant 4 : index
    %c0_559 = arith.constant 0 : index
    %c0_560 = arith.constant 0 : index
    %539 = vector.load %arg2[%c7_557, %c4_558, %c0_559, %c0_560] : memref<8x8x8x128xf32, #tpu.memory_space<vmem>>, vector<1x1x8x128xf32>
    %540 = vector.shape_cast %539 : vector<1x1x8x128xf32> to vector<8x128xf32>
    %541 = vector.shape_cast %540 : vector<8x128xf32> to vector<1x8x128xf32>
    %542 = vector.broadcast %541 : vector<1x8x128xf32> to vector<8x8x128xf32>
    %543 = arith.mulf %542, %538 : vector<8x8x128xf32>
    %544 = arith.addf %536, %543 : vector<8x8x128xf32>
    %c0_561 = arith.constant 0 : index
    %c3_562 = arith.constant 3 : index
    %c0_563 = arith.constant 0 : index
    %c0_564 = arith.constant 0 : index
    %545 = vector.load %arg4[%c0_561, %c3_562, %c0_563, %c0_564] : memref<2x16x8x128xf32, #tpu.memory_space<vmem>>, vector<1x8x8x128xf32>
    %546 = vector.shape_cast %545 : vector<1x8x8x128xf32> to vector<8x8x128xf32>
    %c7_565 = arith.constant 7 : index
    %c5_566 = arith.constant 5 : index
    %c0_567 = arith.constant 0 : index
    %c0_568 = arith.constant 0 : index
    %547 = vector.load %arg2[%c7_565, %c5_566, %c0_567, %c0_568] : memref<8x8x8x128xf32, #tpu.memory_space<vmem>>, vector<1x1x8x128xf32>
    %548 = vector.shape_cast %547 : vector<1x1x8x128xf32> to vector<8x128xf32>
    %549 = vector.shape_cast %548 : vector<8x128xf32> to vector<1x8x128xf32>
    %550 = vector.broadcast %549 : vector<1x8x128xf32> to vector<8x8x128xf32>
    %551 = arith.mulf %550, %546 : vector<8x8x128xf32>
    %552 = arith.addf %544, %551 : vector<8x8x128xf32>
    %c0_569 = arith.constant 0 : index
    %c2_570 = arith.constant 2 : index
    %c0_571 = arith.constant 0 : index
    %c0_572 = arith.constant 0 : index
    %553 = vector.load %arg4[%c0_569, %c2_570, %c0_571, %c0_572] : memref<2x16x8x128xf32, #tpu.memory_space<vmem>>, vector<1x8x8x128xf32>
    %554 = vector.shape_cast %553 : vector<1x8x8x128xf32> to vector<8x8x128xf32>
    %c7_573 = arith.constant 7 : index
    %c6_574 = arith.constant 6 : index
    %c0_575 = arith.constant 0 : index
    %c0_576 = arith.constant 0 : index
    %555 = vector.load %arg2[%c7_573, %c6_574, %c0_575, %c0_576] : memref<8x8x8x128xf32, #tpu.memory_space<vmem>>, vector<1x1x8x128xf32>
    %556 = vector.shape_cast %555 : vector<1x1x8x128xf32> to vector<8x128xf32>
    %557 = vector.shape_cast %556 : vector<8x128xf32> to vector<1x8x128xf32>
    %558 = vector.broadcast %557 : vector<1x8x128xf32> to vector<8x8x128xf32>
    %559 = arith.mulf %558, %554 : vector<8x8x128xf32>
    %560 = arith.addf %552, %559 : vector<8x8x128xf32>
    %c0_577 = arith.constant 0 : index
    %c1_578 = arith.constant 1 : index
    %c0_579 = arith.constant 0 : index
    %c0_580 = arith.constant 0 : index
    %561 = vector.load %arg4[%c0_577, %c1_578, %c0_579, %c0_580] : memref<2x16x8x128xf32, #tpu.memory_space<vmem>>, vector<1x8x8x128xf32>
    %562 = vector.shape_cast %561 : vector<1x8x8x128xf32> to vector<8x8x128xf32>
    %c7_581 = arith.constant 7 : index
    %c7_582 = arith.constant 7 : index
    %c0_583 = arith.constant 0 : index
    %c0_584 = arith.constant 0 : index
    %563 = vector.load %arg2[%c7_581, %c7_582, %c0_583, %c0_584] : memref<8x8x8x128xf32, #tpu.memory_space<vmem>>, vector<1x1x8x128xf32>
    %564 = vector.shape_cast %563 : vector<1x1x8x128xf32> to vector<8x128xf32>
    %565 = vector.shape_cast %564 : vector<8x128xf32> to vector<1x8x128xf32>
    %566 = vector.broadcast %565 : vector<1x8x128xf32> to vector<8x8x128xf32>
    %567 = arith.mulf %566, %562 : vector<8x8x128xf32>
    %568 = arith.addf %560, %567 : vector<8x8x128xf32>
    %c1_585 = arith.constant 1 : index
    %c0_586 = arith.constant 0 : index
    %c8_587 = arith.constant 8 : index
    %c0_588 = arith.constant 0 : index
    %569 = vector.load %arg5[%c1_585, %c0_586, %c8_587, %c0_588] : memref<2x8x16x128xf32, #tpu.memory_space<vmem>>, vector<1x8x8x128xf32>
    %570 = vector.shape_cast %569 : vector<1x8x8x128xf32> to vector<8x8x128xf32>
    %571 = vector.shape_cast %568 : vector<8x8x128xf32> to vector<1x8x8x128xf32>
    tpu.vector_store %arg5[%c1_585, %c0_586, %c8_587, %c0_588], %571 {strides = array<i32>} : memref<2x8x16x128xf32, #tpu.memory_space<vmem>>, vector<1x8x8x128xf32>,
    %c1_589 = arith.constant 1 : index
    %c0_590 = arith.constant 0 : index
    %c1_591 = arith.constant 1 : index
    %c0_592 = arith.constant 0 : index
    %572 = vector.load %arg5[%c1_589, %c0_590, %c1_591, %c0_592] : memref<2x8x16x128xf32, #tpu.memory_space<vmem>>, vector<1x8x8x128xf32>
    %573 = vector.shape_cast %572 : vector<1x8x8x128xf32> to vector<8x8x128xf32>
    %574 = arith.addf %503, %573 : vector<8x8x128xf32>
    %c0_593 = arith.constant 0 : index
    %c0_594 = arith.constant 0 : index
    %c0_595 = arith.constant 0 : index
    %c0_596 = arith.constant 0 : index
    %575 = vector.load %arg3[%c0_593, %c0_594, %c0_595, %c0_596] : memref<2x8x8x128xf32, #tpu.memory_space<vmem>>, vector<1x8x8x128xf32>
    %576 = vector.shape_cast %575 : vector<1x8x8x128xf32> to vector<8x8x128xf32>
    %577 = vector.shape_cast %574 : vector<8x8x128xf32> to vector<1x8x8x128xf32>
    tpu.vector_store %arg3[%c0_593, %c0_594, %c0_595, %c0_596], %577 {strides = array<i32>} : memref<2x8x8x128xf32, #tpu.memory_space<vmem>>, vector<1x8x8x128xf32>,
    %cst_597 = arith.constant 0.000000e+00 : f32
    %578 = vector.broadcast %cst_597 : f32 to vector<8x8x128xf32>
    %cst_598 = arith.constant 0.000000e+00 : f32
    %579 = vector.broadcast %cst_598 : f32 to vector<8x8x128xf32>
    %c1_599 = arith.constant 1 : index
    %c8_600 = arith.constant 8 : index
    %c0_601 = arith.constant 0 : index
    %c0_602 = arith.constant 0 : index
    %580 = vector.load %arg4[%c1_599, %c8_600, %c0_601, %c0_602] : memref<2x16x8x128xf32, #tpu.memory_space<vmem>>, vector<1x8x8x128xf32>
    %581 = vector.shape_cast %580 : vector<1x8x8x128xf32> to vector<8x8x128xf32>
    %c0_603 = arith.constant 0 : index
    %c0_604 = arith.constant 0 : index
    %c0_605 = arith.constant 0 : index
    %c0_606 = arith.constant 0 : index
    %582 = vector.load %arg2[%c0_603, %c0_604, %c0_605, %c0_606] : memref<8x8x8x128xf32, #tpu.memory_space<vmem>>, vector<1x1x8x128xf32>
    %583 = vector.shape_cast %582 : vector<1x1x8x128xf32> to vector<8x128xf32>
    %584 = vector.shape_cast %583 : vector<8x128xf32> to vector<1x8x128xf32>
    %585 = vector.broadcast %584 : vector<1x8x128xf32> to vector<8x8x128xf32>
    %586 = arith.mulf %585, %581 : vector<8x8x128xf32>
    %587 = arith.addf %579, %586 : vector<8x8x128xf32>
    %c1_607 = arith.constant 1 : index
    %c7_608 = arith.constant 7 : index
    %c0_609 = arith.constant 0 : index
    %c0_610 = arith.constant 0 : index
    %588 = vector.load %arg4[%c1_607, %c7_608, %c0_609, %c0_610] : memref<2x16x8x128xf32, #tpu.memory_space<vmem>>, vector<1x8x8x128xf32>
    %589 = vector.shape_cast %588 : vector<1x8x8x128xf32> to vector<8x8x128xf32>
    %c0_611 = arith.constant 0 : index
    %c1_612 = arith.constant 1 : index
    %c0_613 = arith.constant 0 : index
    %c0_614 = arith.constant 0 : index
    %590 = vector.load %arg2[%c0_611, %c1_612, %c0_613, %c0_614] : memref<8x8x8x128xf32, #tpu.memory_space<vmem>>, vector<1x1x8x128xf32>
    %591 = vector.shape_cast %590 : vector<1x1x8x128xf32> to vector<8x128xf32>
    %592 = vector.shape_cast %591 : vector<8x128xf32> to vector<1x8x128xf32>
    %593 = vector.broadcast %592 : vector<1x8x128xf32> to vector<8x8x128xf32>
    %594 = arith.mulf %593, %589 : vector<8x8x128xf32>
    %595 = arith.addf %587, %594 : vector<8x8x128xf32>
    %c1_615 = arith.constant 1 : index
    %c6_616 = arith.constant 6 : index
    %c0_617 = arith.constant 0 : index
    %c0_618 = arith.constant 0 : index
    %596 = vector.load %arg4[%c1_615, %c6_616, %c0_617, %c0_618] : memref<2x16x8x128xf32, #tpu.memory_space<vmem>>, vector<1x8x8x128xf32>
    %597 = vector.shape_cast %596 : vector<1x8x8x128xf32> to vector<8x8x128xf32>
    %c0_619 = arith.constant 0 : index
    %c2_620 = arith.constant 2 : index
    %c0_621 = arith.constant 0 : index
    %c0_622 = arith.constant 0 : index
    %598 = vector.load %arg2[%c0_619, %c2_620, %c0_621, %c0_622] : memref<8x8x8x128xf32, #tpu.memory_space<vmem>>, vector<1x1x8x128xf32>
    %599 = vector.shape_cast %598 : vector<1x1x8x128xf32> to vector<8x128xf32>
    %600 = vector.shape_cast %599 : vector<8x128xf32> to vector<1x8x128xf32>
    %601 = vector.broadcast %600 : vector<1x8x128xf32> to vector<8x8x128xf32>
    %602 = arith.mulf %601, %597 : vector<8x8x128xf32>
    %603 = arith.addf %595, %602 : vector<8x8x128xf32>
    %c1_623 = arith.constant 1 : index
    %c5_624 = arith.constant 5 : index
    %c0_625 = arith.constant 0 : index
    %c0_626 = arith.constant 0 : index
    %604 = vector.load %arg4[%c1_623, %c5_624, %c0_625, %c0_626] : memref<2x16x8x128xf32, #tpu.memory_space<vmem>>, vector<1x8x8x128xf32>
    %605 = vector.shape_cast %604 : vector<1x8x8x128xf32> to vector<8x8x128xf32>
    %c0_627 = arith.constant 0 : index
    %c3_628 = arith.constant 3 : index
    %c0_629 = arith.constant 0 : index
    %c0_630 = arith.constant 0 : index
    %606 = vector.load %arg2[%c0_627, %c3_628, %c0_629, %c0_630] : memref<8x8x8x128xf32, #tpu.memory_space<vmem>>, vector<1x1x8x128xf32>
    %607 = vector.shape_cast %606 : vector<1x1x8x128xf32> to vector<8x128xf32>
    %608 = vector.shape_cast %607 : vector<8x128xf32> to vector<1x8x128xf32>
    %609 = vector.broadcast %608 : vector<1x8x128xf32> to vector<8x8x128xf32>
    %610 = arith.mulf %609, %605 : vector<8x8x128xf32>
    %611 = arith.addf %603, %610 : vector<8x8x128xf32>
    %c1_631 = arith.constant 1 : index
    %c4_632 = arith.constant 4 : index
    %c0_633 = arith.constant 0 : index
    %c0_634 = arith.constant 0 : index
    %612 = vector.load %arg4[%c1_631, %c4_632, %c0_633, %c0_634] : memref<2x16x8x128xf32, #tpu.memory_space<vmem>>, vector<1x8x8x128xf32>
    %613 = vector.shape_cast %612 : vector<1x8x8x128xf32> to vector<8x8x128xf32>
    %c0_635 = arith.constant 0 : index
    %c4_636 = arith.constant 4 : index
    %c0_637 = arith.constant 0 : index
    %c0_638 = arith.constant 0 : index
    %614 = vector.load %arg2[%c0_635, %c4_636, %c0_637, %c0_638] : memref<8x8x8x128xf32, #tpu.memory_space<vmem>>, vector<1x1x8x128xf32>
    %615 = vector.shape_cast %614 : vector<1x1x8x128xf32> to vector<8x128xf32>
    %616 = vector.shape_cast %615 : vector<8x128xf32> to vector<1x8x128xf32>
    %617 = vector.broadcast %616 : vector<1x8x128xf32> to vector<8x8x128xf32>
    %618 = arith.mulf %617, %613 : vector<8x8x128xf32>
    %619 = arith.addf %611, %618 : vector<8x8x128xf32>
    %c1_639 = arith.constant 1 : index
    %c3_640 = arith.constant 3 : index
    %c0_641 = arith.constant 0 : index
    %c0_642 = arith.constant 0 : index
    %620 = vector.load %arg4[%c1_639, %c3_640, %c0_641, %c0_642] : memref<2x16x8x128xf32, #tpu.memory_space<vmem>>, vector<1x8x8x128xf32>
    %621 = vector.shape_cast %620 : vector<1x8x8x128xf32> to vector<8x8x128xf32>
    %c0_643 = arith.constant 0 : index
    %c5_644 = arith.constant 5 : index
    %c0_645 = arith.constant 0 : index
    %c0_646 = arith.constant 0 : index
    %622 = vector.load %arg2[%c0_643, %c5_644, %c0_645, %c0_646] : memref<8x8x8x128xf32, #tpu.memory_space<vmem>>, vector<1x1x8x128xf32>
    %623 = vector.shape_cast %622 : vector<1x1x8x128xf32> to vector<8x128xf32>
    %624 = vector.shape_cast %623 : vector<8x128xf32> to vector<1x8x128xf32>
    %625 = vector.broadcast %624 : vector<1x8x128xf32> to vector<8x8x128xf32>
    %626 = arith.mulf %625, %621 : vector<8x8x128xf32>
    %627 = arith.addf %619, %626 : vector<8x8x128xf32>
    %c1_647 = arith.constant 1 : index
    %c2_648 = arith.constant 2 : index
    %c0_649 = arith.constant 0 : index
    %c0_650 = arith.constant 0 : index
    %628 = vector.load %arg4[%c1_647, %c2_648, %c0_649, %c0_650] : memref<2x16x8x128xf32, #tpu.memory_space<vmem>>, vector<1x8x8x128xf32>
    %629 = vector.shape_cast %628 : vector<1x8x8x128xf32> to vector<8x8x128xf32>
    %c0_651 = arith.constant 0 : index
    %c6_652 = arith.constant 6 : index
    %c0_653 = arith.constant 0 : index
    %c0_654 = arith.constant 0 : index
    %630 = vector.load %arg2[%c0_651, %c6_652, %c0_653, %c0_654] : memref<8x8x8x128xf32, #tpu.memory_space<vmem>>, vector<1x1x8x128xf32>
    %631 = vector.shape_cast %630 : vector<1x1x8x128xf32> to vector<8x128xf32>
    %632 = vector.shape_cast %631 : vector<8x128xf32> to vector<1x8x128xf32>
    %633 = vector.broadcast %632 : vector<1x8x128xf32> to vector<8x8x128xf32>
    %634 = arith.mulf %633, %629 : vector<8x8x128xf32>
    %635 = arith.addf %627, %634 : vector<8x8x128xf32>
    %c1_655 = arith.constant 1 : index
    %c1_656 = arith.constant 1 : index
    %c0_657 = arith.constant 0 : index
    %c0_658 = arith.constant 0 : index
    %636 = vector.load %arg4[%c1_655, %c1_656, %c0_657, %c0_658] : memref<2x16x8x128xf32, #tpu.memory_space<vmem>>, vector<1x8x8x128xf32>
    %637 = vector.shape_cast %636 : vector<1x8x8x128xf32> to vector<8x8x128xf32>
    %c0_659 = arith.constant 0 : index
    %c7_660 = arith.constant 7 : index
    %c0_661 = arith.constant 0 : index
    %c0_662 = arith.constant 0 : index
    %638 = vector.load %arg2[%c0_659, %c7_660, %c0_661, %c0_662] : memref<8x8x8x128xf32, #tpu.memory_space<vmem>>, vector<1x1x8x128xf32>
    %639 = vector.shape_cast %638 : vector<1x1x8x128xf32> to vector<8x128xf32>
    %640 = vector.shape_cast %639 : vector<8x128xf32> to vector<1x8x128xf32>
    %641 = vector.broadcast %640 : vector<1x8x128xf32> to vector<8x8x128xf32>
    %642 = arith.mulf %641, %637 : vector<8x8x128xf32>
    %643 = arith.addf %635, %642 : vector<8x8x128xf32>
    %c0_663 = arith.constant 0 : index
    %c0_664 = arith.constant 0 : index
    %c8_665 = arith.constant 8 : index
    %c0_666 = arith.constant 0 : index
    %644 = vector.load %arg5[%c0_663, %c0_664, %c8_665, %c0_666] : memref<2x8x16x128xf32, #tpu.memory_space<vmem>>, vector<1x8x8x128xf32>
    %645 = vector.shape_cast %644 : vector<1x8x8x128xf32> to vector<8x8x128xf32>
    %646 = vector.shape_cast %643 : vector<8x8x128xf32> to vector<1x8x8x128xf32>
    tpu.vector_store %arg5[%c0_663, %c0_664, %c8_665, %c0_666], %646 {strides = array<i32>} : memref<2x8x16x128xf32, #tpu.memory_space<vmem>>, vector<1x8x8x128xf32>,
    %c0_667 = arith.constant 0 : index
    %c0_668 = arith.constant 0 : index
    %c8_669 = arith.constant 8 : index
    %c0_670 = arith.constant 0 : index
    %647 = vector.load %arg5[%c0_667, %c0_668, %c8_669, %c0_670] : memref<2x8x16x128xf32, #tpu.memory_space<vmem>>, vector<1x8x8x128xf32>
    %648 = vector.shape_cast %647 : vector<1x8x8x128xf32> to vector<8x8x128xf32>
    %649 = arith.addf %578, %648 : vector<8x8x128xf32>
    %cst_671 = arith.constant 0.000000e+00 : f32
    %650 = vector.broadcast %cst_671 : f32 to vector<8x8x128xf32>
    %c1_672 = arith.constant 1 : index
    %c8_673 = arith.constant 8 : index
    %c0_674 = arith.constant 0 : index
    %c0_675 = arith.constant 0 : index
    %651 = vector.load %arg4[%c1_672, %c8_673, %c0_674, %c0_675] : memref<2x16x8x128xf32, #tpu.memory_space<vmem>>, vector<1x8x8x128xf32>
    %652 = vector.shape_cast %651 : vector<1x8x8x128xf32> to vector<8x8x128xf32>
    %c1_676 = arith.constant 1 : index
    %c0_677 = arith.constant 0 : index
    %c0_678 = arith.constant 0 : index
    %c0_679 = arith.constant 0 : index
    %653 = vector.load %arg2[%c1_676, %c0_677, %c0_678, %c0_679] : memref<8x8x8x128xf32, #tpu.memory_space<vmem>>, vector<1x1x8x128xf32>
    %654 = vector.shape_cast %653 : vector<1x1x8x128xf32> to vector<8x128xf32>
    %655 = vector.shape_cast %654 : vector<8x128xf32> to vector<1x8x128xf32>
    %656 = vector.broadcast %655 : vector<1x8x128xf32> to vector<8x8x128xf32>
    %657 = arith.mulf %656, %652 : vector<8x8x128xf32>
    %658 = arith.addf %650, %657 : vector<8x8x128xf32>
    %c1_680 = arith.constant 1 : index
    %c7_681 = arith.constant 7 : index
    %c0_682 = arith.constant 0 : index
    %c0_683 = arith.constant 0 : index
    %659 = vector.load %arg4[%c1_680, %c7_681, %c0_682, %c0_683] : memref<2x16x8x128xf32, #tpu.memory_space<vmem>>, vector<1x8x8x128xf32>
    %660 = vector.shape_cast %659 : vector<1x8x8x128xf32> to vector<8x8x128xf32>
    %c1_684 = arith.constant 1 : index
    %c1_685 = arith.constant 1 : index
    %c0_686 = arith.constant 0 : index
    %c0_687 = arith.constant 0 : index
    %661 = vector.load %arg2[%c1_684, %c1_685, %c0_686, %c0_687] : memref<8x8x8x128xf32, #tpu.memory_space<vmem>>, vector<1x1x8x128xf32>
    %662 = vector.shape_cast %661 : vector<1x1x8x128xf32> to vector<8x128xf32>
    %663 = vector.shape_cast %662 : vector<8x128xf32> to vector<1x8x128xf32>
    %664 = vector.broadcast %663 : vector<1x8x128xf32> to vector<8x8x128xf32>
    %665 = arith.mulf %664, %660 : vector<8x8x128xf32>
    %666 = arith.addf %658, %665 : vector<8x8x128xf32>
    %c1_688 = arith.constant 1 : index
    %c6_689 = arith.constant 6 : index
    %c0_690 = arith.constant 0 : index
    %c0_691 = arith.constant 0 : index
    %667 = vector.load %arg4[%c1_688, %c6_689, %c0_690, %c0_691] : memref<2x16x8x128xf32, #tpu.memory_space<vmem>>, vector<1x8x8x128xf32>
    %668 = vector.shape_cast %667 : vector<1x8x8x128xf32> to vector<8x8x128xf32>
    %c1_692 = arith.constant 1 : index
    %c2_693 = arith.constant 2 : index
    %c0_694 = arith.constant 0 : index
    %c0_695 = arith.constant 0 : index
    %669 = vector.load %arg2[%c1_692, %c2_693, %c0_694, %c0_695] : memref<8x8x8x128xf32, #tpu.memory_space<vmem>>, vector<1x1x8x128xf32>
    %670 = vector.shape_cast %669 : vector<1x1x8x128xf32> to vector<8x128xf32>
    %671 = vector.shape_cast %670 : vector<8x128xf32> to vector<1x8x128xf32>
    %672 = vector.broadcast %671 : vector<1x8x128xf32> to vector<8x8x128xf32>
    %673 = arith.mulf %672, %668 : vector<8x8x128xf32>
    %674 = arith.addf %666, %673 : vector<8x8x128xf32>
    %c1_696 = arith.constant 1 : index
    %c5_697 = arith.constant 5 : index
    %c0_698 = arith.constant 0 : index
    %c0_699 = arith.constant 0 : index
    %675 = vector.load %arg4[%c1_696, %c5_697, %c0_698, %c0_699] : memref<2x16x8x128xf32, #tpu.memory_space<vmem>>, vector<1x8x8x128xf32>
    %676 = vector.shape_cast %675 : vector<1x8x8x128xf32> to vector<8x8x128xf32>
    %c1_700 = arith.constant 1 : index
    %c3_701 = arith.constant 3 : index
    %c0_702 = arith.constant 0 : index
    %c0_703 = arith.constant 0 : index
    %677 = vector.load %arg2[%c1_700, %c3_701, %c0_702, %c0_703] : memref<8x8x8x128xf32, #tpu.memory_space<vmem>>, vector<1x1x8x128xf32>
    %678 = vector.shape_cast %677 : vector<1x1x8x128xf32> to vector<8x128xf32>
    %679 = vector.shape_cast %678 : vector<8x128xf32> to vector<1x8x128xf32>
    %680 = vector.broadcast %679 : vector<1x8x128xf32> to vector<8x8x128xf32>
    %681 = arith.mulf %680, %676 : vector<8x8x128xf32>
    %682 = arith.addf %674, %681 : vector<8x8x128xf32>
    %c1_704 = arith.constant 1 : index
    %c4_705 = arith.constant 4 : index
    %c0_706 = arith.constant 0 : index
    %c0_707 = arith.constant 0 : index
    %683 = vector.load %arg4[%c1_704, %c4_705, %c0_706, %c0_707] : memref<2x16x8x128xf32, #tpu.memory_space<vmem>>, vector<1x8x8x128xf32>
    %684 = vector.shape_cast %683 : vector<1x8x8x128xf32> to vector<8x8x128xf32>
    %c1_708 = arith.constant 1 : index
    %c4_709 = arith.constant 4 : index
    %c0_710 = arith.constant 0 : index
    %c0_711 = arith.constant 0 : index
    %685 = vector.load %arg2[%c1_708, %c4_709, %c0_710, %c0_711] : memref<8x8x8x128xf32, #tpu.memory_space<vmem>>, vector<1x1x8x128xf32>
    %686 = vector.shape_cast %685 : vector<1x1x8x128xf32> to vector<8x128xf32>
    %687 = vector.shape_cast %686 : vector<8x128xf32> to vector<1x8x128xf32>
    %688 = vector.broadcast %687 : vector<1x8x128xf32> to vector<8x8x128xf32>
    %689 = arith.mulf %688, %684 : vector<8x8x128xf32>
    %690 = arith.addf %682, %689 : vector<8x8x128xf32>
    %c1_712 = arith.constant 1 : index
    %c3_713 = arith.constant 3 : index
    %c0_714 = arith.constant 0 : index
    %c0_715 = arith.constant 0 : index
    %691 = vector.load %arg4[%c1_712, %c3_713, %c0_714, %c0_715] : memref<2x16x8x128xf32, #tpu.memory_space<vmem>>, vector<1x8x8x128xf32>
    %692 = vector.shape_cast %691 : vector<1x8x8x128xf32> to vector<8x8x128xf32>
    %c1_716 = arith.constant 1 : index
    %c5_717 = arith.constant 5 : index
    %c0_718 = arith.constant 0 : index
    %c0_719 = arith.constant 0 : index
    %693 = vector.load %arg2[%c1_716, %c5_717, %c0_718, %c0_719] : memref<8x8x8x128xf32, #tpu.memory_space<vmem>>, vector<1x1x8x128xf32>
    %694 = vector.shape_cast %693 : vector<1x1x8x128xf32> to vector<8x128xf32>
    %695 = vector.shape_cast %694 : vector<8x128xf32> to vector<1x8x128xf32>
    %696 = vector.broadcast %695 : vector<1x8x128xf32> to vector<8x8x128xf32>
    %697 = arith.mulf %696, %692 : vector<8x8x128xf32>
    %698 = arith.addf %690, %697 : vector<8x8x128xf32>
    %c1_720 = arith.constant 1 : index
    %c2_721 = arith.constant 2 : index
    %c0_722 = arith.constant 0 : index
    %c0_723 = arith.constant 0 : index
    %699 = vector.load %arg4[%c1_720, %c2_721, %c0_722, %c0_723] : memref<2x16x8x128xf32, #tpu.memory_space<vmem>>, vector<1x8x8x128xf32>
    %700 = vector.shape_cast %699 : vector<1x8x8x128xf32> to vector<8x8x128xf32>
    %c1_724 = arith.constant 1 : index
    %c6_725 = arith.constant 6 : index
    %c0_726 = arith.constant 0 : index
    %c0_727 = arith.constant 0 : index
    %701 = vector.load %arg2[%c1_724, %c6_725, %c0_726, %c0_727] : memref<8x8x8x128xf32, #tpu.memory_space<vmem>>, vector<1x1x8x128xf32>
    %702 = vector.shape_cast %701 : vector<1x1x8x128xf32> to vector<8x128xf32>
    %703 = vector.shape_cast %702 : vector<8x128xf32> to vector<1x8x128xf32>
    %704 = vector.broadcast %703 : vector<1x8x128xf32> to vector<8x8x128xf32>
    %705 = arith.mulf %704, %700 : vector<8x8x128xf32>
    %706 = arith.addf %698, %705 : vector<8x8x128xf32>
    %c1_728 = arith.constant 1 : index
    %c1_729 = arith.constant 1 : index
    %c0_730 = arith.constant 0 : index
    %c0_731 = arith.constant 0 : index
    %707 = vector.load %arg4[%c1_728, %c1_729, %c0_730, %c0_731] : memref<2x16x8x128xf32, #tpu.memory_space<vmem>>, vector<1x8x8x128xf32>
    %708 = vector.shape_cast %707 : vector<1x8x8x128xf32> to vector<8x8x128xf32>
    %c1_732 = arith.constant 1 : index
    %c7_733 = arith.constant 7 : index
    %c0_734 = arith.constant 0 : index
    %c0_735 = arith.constant 0 : index
    %709 = vector.load %arg2[%c1_732, %c7_733, %c0_734, %c0_735] : memref<8x8x8x128xf32, #tpu.memory_space<vmem>>, vector<1x1x8x128xf32>
    %710 = vector.shape_cast %709 : vector<1x1x8x128xf32> to vector<8x128xf32>
    %711 = vector.shape_cast %710 : vector<8x128xf32> to vector<1x8x128xf32>
    %712 = vector.broadcast %711 : vector<1x8x128xf32> to vector<8x8x128xf32>
    %713 = arith.mulf %712, %708 : vector<8x8x128xf32>
    %714 = arith.addf %706, %713 : vector<8x8x128xf32>
    %c1_736 = arith.constant 1 : index
    %c0_737 = arith.constant 0 : index
    %c8_738 = arith.constant 8 : index
    %c0_739 = arith.constant 0 : index
    %715 = vector.load %arg5[%c1_736, %c0_737, %c8_738, %c0_739] : memref<2x8x16x128xf32, #tpu.memory_space<vmem>>, vector<1x8x8x128xf32>
    %716 = vector.shape_cast %715 : vector<1x8x8x128xf32> to vector<8x8x128xf32>
    %717 = vector.shape_cast %714 : vector<8x8x128xf32> to vector<1x8x8x128xf32>
    tpu.vector_store %arg5[%c1_736, %c0_737, %c8_738, %c0_739], %717 {strides = array<i32>} : memref<2x8x16x128xf32, #tpu.memory_space<vmem>>, vector<1x8x8x128xf32>,
    %c1_740 = arith.constant 1 : index
    %c0_741 = arith.constant 0 : index
    %c7_742 = arith.constant 7 : index
    %c0_743 = arith.constant 0 : index
    %718 = vector.load %arg5[%c1_740, %c0_741, %c7_742, %c0_743] : memref<2x8x16x128xf32, #tpu.memory_space<vmem>>, vector<1x8x8x128xf32>
    %719 = vector.shape_cast %718 : vector<1x8x8x128xf32> to vector<8x8x128xf32>
    %720 = arith.addf %649, %719 : vector<8x8x128xf32>
    %cst_744 = arith.constant 0.000000e+00 : f32
    %721 = vector.broadcast %cst_744 : f32 to vector<8x8x128xf32>
    %c1_745 = arith.constant 1 : index
    %c8_746 = arith.constant 8 : index
    %c0_747 = arith.constant 0 : index
    %c0_748 = arith.constant 0 : index
    %722 = vector.load %arg4[%c1_745, %c8_746, %c0_747, %c0_748] : memref<2x16x8x128xf32, #tpu.memory_space<vmem>>, vector<1x8x8x128xf32>
    %723 = vector.shape_cast %722 : vector<1x8x8x128xf32> to vector<8x8x128xf32>
    %c2_749 = arith.constant 2 : index
    %c0_750 = arith.constant 0 : index
    %c0_751 = arith.constant 0 : index
    %c0_752 = arith.constant 0 : index
    %724 = vector.load %arg2[%c2_749, %c0_750, %c0_751, %c0_752] : memref<8x8x8x128xf32, #tpu.memory_space<vmem>>, vector<1x1x8x128xf32>
    %725 = vector.shape_cast %724 : vector<1x1x8x128xf32> to vector<8x128xf32>
    %726 = vector.shape_cast %725 : vector<8x128xf32> to vector<1x8x128xf32>
    %727 = vector.broadcast %726 : vector<1x8x128xf32> to vector<8x8x128xf32>
    %728 = arith.mulf %727, %723 : vector<8x8x128xf32>
    %729 = arith.addf %721, %728 : vector<8x8x128xf32>
    %c1_753 = arith.constant 1 : index
    %c7_754 = arith.constant 7 : index
    %c0_755 = arith.constant 0 : index
    %c0_756 = arith.constant 0 : index
    %730 = vector.load %arg4[%c1_753, %c7_754, %c0_755, %c0_756] : memref<2x16x8x128xf32, #tpu.memory_space<vmem>>, vector<1x8x8x128xf32>
    %731 = vector.shape_cast %730 : vector<1x8x8x128xf32> to vector<8x8x128xf32>
    %c2_757 = arith.constant 2 : index
    %c1_758 = arith.constant 1 : index
    %c0_759 = arith.constant 0 : index
    %c0_760 = arith.constant 0 : index
    %732 = vector.load %arg2[%c2_757, %c1_758, %c0_759, %c0_760] : memref<8x8x8x128xf32, #tpu.memory_space<vmem>>, vector<1x1x8x128xf32>
    %733 = vector.shape_cast %732 : vector<1x1x8x128xf32> to vector<8x128xf32>
    %734 = vector.shape_cast %733 : vector<8x128xf32> to vector<1x8x128xf32>
    %735 = vector.broadcast %734 : vector<1x8x128xf32> to vector<8x8x128xf32>
    %736 = arith.mulf %735, %731 : vector<8x8x128xf32>
    %737 = arith.addf %729, %736 : vector<8x8x128xf32>
    %c1_761 = arith.constant 1 : index
    %c6_762 = arith.constant 6 : index
    %c0_763 = arith.constant 0 : index
    %c0_764 = arith.constant 0 : index
    %738 = vector.load %arg4[%c1_761, %c6_762, %c0_763, %c0_764] : memref<2x16x8x128xf32, #tpu.memory_space<vmem>>, vector<1x8x8x128xf32>
    %739 = vector.shape_cast %738 : vector<1x8x8x128xf32> to vector<8x8x128xf32>
    %c2_765 = arith.constant 2 : index
    %c2_766 = arith.constant 2 : index
    %c0_767 = arith.constant 0 : index
    %c0_768 = arith.constant 0 : index
    %740 = vector.load %arg2[%c2_765, %c2_766, %c0_767, %c0_768] : memref<8x8x8x128xf32, #tpu.memory_space<vmem>>, vector<1x1x8x128xf32>
    %741 = vector.shape_cast %740 : vector<1x1x8x128xf32> to vector<8x128xf32>
    %742 = vector.shape_cast %741 : vector<8x128xf32> to vector<1x8x128xf32>
    %743 = vector.broadcast %742 : vector<1x8x128xf32> to vector<8x8x128xf32>
    %744 = arith.mulf %743, %739 : vector<8x8x128xf32>
    %745 = arith.addf %737, %744 : vector<8x8x128xf32>
    %c1_769 = arith.constant 1 : index
    %c5_770 = arith.constant 5 : index
    %c0_771 = arith.constant 0 : index
    %c0_772 = arith.constant 0 : index
    %746 = vector.load %arg4[%c1_769, %c5_770, %c0_771, %c0_772] : memref<2x16x8x128xf32, #tpu.memory_space<vmem>>, vector<1x8x8x128xf32>
    %747 = vector.shape_cast %746 : vector<1x8x8x128xf32> to vector<8x8x128xf32>
    %c2_773 = arith.constant 2 : index
    %c3_774 = arith.constant 3 : index
    %c0_775 = arith.constant 0 : index
    %c0_776 = arith.constant 0 : index
    %748 = vector.load %arg2[%c2_773, %c3_774, %c0_775, %c0_776] : memref<8x8x8x128xf32, #tpu.memory_space<vmem>>, vector<1x1x8x128xf32>
    %749 = vector.shape_cast %748 : vector<1x1x8x128xf32> to vector<8x128xf32>
    %750 = vector.shape_cast %749 : vector<8x128xf32> to vector<1x8x128xf32>
    %751 = vector.broadcast %750 : vector<1x8x128xf32> to vector<8x8x128xf32>
    %752 = arith.mulf %751, %747 : vector<8x8x128xf32>
    %753 = arith.addf %745, %752 : vector<8x8x128xf32>
    %c1_777 = arith.constant 1 : index
    %c4_778 = arith.constant 4 : index
    %c0_779 = arith.constant 0 : index
    %c0_780 = arith.constant 0 : index
    %754 = vector.load %arg4[%c1_777, %c4_778, %c0_779, %c0_780] : memref<2x16x8x128xf32, #tpu.memory_space<vmem>>, vector<1x8x8x128xf32>
    %755 = vector.shape_cast %754 : vector<1x8x8x128xf32> to vector<8x8x128xf32>
    %c2_781 = arith.constant 2 : index
    %c4_782 = arith.constant 4 : index
    %c0_783 = arith.constant 0 : index
    %c0_784 = arith.constant 0 : index
    %756 = vector.load %arg2[%c2_781, %c4_782, %c0_783, %c0_784] : memref<8x8x8x128xf32, #tpu.memory_space<vmem>>, vector<1x1x8x128xf32>
    %757 = vector.shape_cast %756 : vector<1x1x8x128xf32> to vector<8x128xf32>
    %758 = vector.shape_cast %757 : vector<8x128xf32> to vector<1x8x128xf32>
    %759 = vector.broadcast %758 : vector<1x8x128xf32> to vector<8x8x128xf32>
    %760 = arith.mulf %759, %755 : vector<8x8x128xf32>
    %761 = arith.addf %753, %760 : vector<8x8x128xf32>
    %c1_785 = arith.constant 1 : index
    %c3_786 = arith.constant 3 : index
    %c0_787 = arith.constant 0 : index
    %c0_788 = arith.constant 0 : index
    %762 = vector.load %arg4[%c1_785, %c3_786, %c0_787, %c0_788] : memref<2x16x8x128xf32, #tpu.memory_space<vmem>>, vector<1x8x8x128xf32>
    %763 = vector.shape_cast %762 : vector<1x8x8x128xf32> to vector<8x8x128xf32>
    %c2_789 = arith.constant 2 : index
    %c5_790 = arith.constant 5 : index
    %c0_791 = arith.constant 0 : index
    %c0_792 = arith.constant 0 : index
    %764 = vector.load %arg2[%c2_789, %c5_790, %c0_791, %c0_792] : memref<8x8x8x128xf32, #tpu.memory_space<vmem>>, vector<1x1x8x128xf32>
    %765 = vector.shape_cast %764 : vector<1x1x8x128xf32> to vector<8x128xf32>
    %766 = vector.shape_cast %765 : vector<8x128xf32> to vector<1x8x128xf32>
    %767 = vector.broadcast %766 : vector<1x8x128xf32> to vector<8x8x128xf32>
    %768 = arith.mulf %767, %763 : vector<8x8x128xf32>
    %769 = arith.addf %761, %768 : vector<8x8x128xf32>
    %c1_793 = arith.constant 1 : index
    %c2_794 = arith.constant 2 : index
    %c0_795 = arith.constant 0 : index
    %c0_796 = arith.constant 0 : index
    %770 = vector.load %arg4[%c1_793, %c2_794, %c0_795, %c0_796] : memref<2x16x8x128xf32, #tpu.memory_space<vmem>>, vector<1x8x8x128xf32>
    %771 = vector.shape_cast %770 : vector<1x8x8x128xf32> to vector<8x8x128xf32>
    %c2_797 = arith.constant 2 : index
    %c6_798 = arith.constant 6 : index
    %c0_799 = arith.constant 0 : index
    %c0_800 = arith.constant 0 : index
    %772 = vector.load %arg2[%c2_797, %c6_798, %c0_799, %c0_800] : memref<8x8x8x128xf32, #tpu.memory_space<vmem>>, vector<1x1x8x128xf32>
    %773 = vector.shape_cast %772 : vector<1x1x8x128xf32> to vector<8x128xf32>
    %774 = vector.shape_cast %773 : vector<8x128xf32> to vector<1x8x128xf32>
    %775 = vector.broadcast %774 : vector<1x8x128xf32> to vector<8x8x128xf32>
    %776 = arith.mulf %775, %771 : vector<8x8x128xf32>
    %777 = arith.addf %769, %776 : vector<8x8x128xf32>
    %c1_801 = arith.constant 1 : index
    %c1_802 = arith.constant 1 : index
    %c0_803 = arith.constant 0 : index
    %c0_804 = arith.constant 0 : index
    %778 = vector.load %arg4[%c1_801, %c1_802, %c0_803, %c0_804] : memref<2x16x8x128xf32, #tpu.memory_space<vmem>>, vector<1x8x8x128xf32>
    %779 = vector.shape_cast %778 : vector<1x8x8x128xf32> to vector<8x8x128xf32>
    %c2_805 = arith.constant 2 : index
    %c7_806 = arith.constant 7 : index
    %c0_807 = arith.constant 0 : index
    %c0_808 = arith.constant 0 : index
    %780 = vector.load %arg2[%c2_805, %c7_806, %c0_807, %c0_808] : memref<8x8x8x128xf32, #tpu.memory_space<vmem>>, vector<1x1x8x128xf32>
    %781 = vector.shape_cast %780 : vector<1x1x8x128xf32> to vector<8x128xf32>
    %782 = vector.shape_cast %781 : vector<8x128xf32> to vector<1x8x128xf32>
    %783 = vector.broadcast %782 : vector<1x8x128xf32> to vector<8x8x128xf32>
    %784 = arith.mulf %783, %779 : vector<8x8x128xf32>
    %785 = arith.addf %777, %784 : vector<8x8x128xf32>
    %c0_809 = arith.constant 0 : index
    %c0_810 = arith.constant 0 : index
    %c8_811 = arith.constant 8 : index
    %c0_812 = arith.constant 0 : index
    %786 = vector.load %arg5[%c0_809, %c0_810, %c8_811, %c0_812] : memref<2x8x16x128xf32, #tpu.memory_space<vmem>>, vector<1x8x8x128xf32>
    %787 = vector.shape_cast %786 : vector<1x8x8x128xf32> to vector<8x8x128xf32>
    %788 = vector.shape_cast %785 : vector<8x8x128xf32> to vector<1x8x8x128xf32>
    tpu.vector_store %arg5[%c0_809, %c0_810, %c8_811, %c0_812], %788 {strides = array<i32>} : memref<2x8x16x128xf32, #tpu.memory_space<vmem>>, vector<1x8x8x128xf32>,
    %c0_813 = arith.constant 0 : index
    %c0_814 = arith.constant 0 : index
    %c6_815 = arith.constant 6 : index
    %c0_816 = arith.constant 0 : index
    %789 = vector.load %arg5[%c0_813, %c0_814, %c6_815, %c0_816] : memref<2x8x16x128xf32, #tpu.memory_space<vmem>>, vector<1x8x8x128xf32>
    %790 = vector.shape_cast %789 : vector<1x8x8x128xf32> to vector<8x8x128xf32>
    %791 = arith.addf %720, %790 : vector<8x8x128xf32>
    %cst_817 = arith.constant 0.000000e+00 : f32
    %792 = vector.broadcast %cst_817 : f32 to vector<8x8x128xf32>
    %c1_818 = arith.constant 1 : index
    %c8_819 = arith.constant 8 : index
    %c0_820 = arith.constant 0 : index
    %c0_821 = arith.constant 0 : index
    %793 = vector.load %arg4[%c1_818, %c8_819, %c0_820, %c0_821] : memref<2x16x8x128xf32, #tpu.memory_space<vmem>>, vector<1x8x8x128xf32>
    %794 = vector.shape_cast %793 : vector<1x8x8x128xf32> to vector<8x8x128xf32>
    %c3_822 = arith.constant 3 : index
    %c0_823 = arith.constant 0 : index
    %c0_824 = arith.constant 0 : index
    %c0_825 = arith.constant 0 : index
    %795 = vector.load %arg2[%c3_822, %c0_823, %c0_824, %c0_825] : memref<8x8x8x128xf32, #tpu.memory_space<vmem>>, vector<1x1x8x128xf32>
    %796 = vector.shape_cast %795 : vector<1x1x8x128xf32> to vector<8x128xf32>
    %797 = vector.shape_cast %796 : vector<8x128xf32> to vector<1x8x128xf32>
    %798 = vector.broadcast %797 : vector<1x8x128xf32> to vector<8x8x128xf32>
    %799 = arith.mulf %798, %794 : vector<8x8x128xf32>
    %800 = arith.addf %792, %799 : vector<8x8x128xf32>
    %c1_826 = arith.constant 1 : index
    %c7_827 = arith.constant 7 : index
    %c0_828 = arith.constant 0 : index
    %c0_829 = arith.constant 0 : index
    %801 = vector.load %arg4[%c1_826, %c7_827, %c0_828, %c0_829] : memref<2x16x8x128xf32, #tpu.memory_space<vmem>>, vector<1x8x8x128xf32>
    %802 = vector.shape_cast %801 : vector<1x8x8x128xf32> to vector<8x8x128xf32>
    %c3_830 = arith.constant 3 : index
    %c1_831 = arith.constant 1 : index
    %c0_832 = arith.constant 0 : index
    %c0_833 = arith.constant 0 : index
    %803 = vector.load %arg2[%c3_830, %c1_831, %c0_832, %c0_833] : memref<8x8x8x128xf32, #tpu.memory_space<vmem>>, vector<1x1x8x128xf32>
    %804 = vector.shape_cast %803 : vector<1x1x8x128xf32> to vector<8x128xf32>
    %805 = vector.shape_cast %804 : vector<8x128xf32> to vector<1x8x128xf32>
    %806 = vector.broadcast %805 : vector<1x8x128xf32> to vector<8x8x128xf32>
    %807 = arith.mulf %806, %802 : vector<8x8x128xf32>
    %808 = arith.addf %800, %807 : vector<8x8x128xf32>
    %c1_834 = arith.constant 1 : index
    %c6_835 = arith.constant 6 : index
    %c0_836 = arith.constant 0 : index
    %c0_837 = arith.constant 0 : index
    %809 = vector.load %arg4[%c1_834, %c6_835, %c0_836, %c0_837] : memref<2x16x8x128xf32, #tpu.memory_space<vmem>>, vector<1x8x8x128xf32>
    %810 = vector.shape_cast %809 : vector<1x8x8x128xf32> to vector<8x8x128xf32>
    %c3_838 = arith.constant 3 : index
    %c2_839 = arith.constant 2 : index
    %c0_840 = arith.constant 0 : index
    %c0_841 = arith.constant 0 : index
    %811 = vector.load %arg2[%c3_838, %c2_839, %c0_840, %c0_841] : memref<8x8x8x128xf32, #tpu.memory_space<vmem>>, vector<1x1x8x128xf32>
    %812 = vector.shape_cast %811 : vector<1x1x8x128xf32> to vector<8x128xf32>
    %813 = vector.shape_cast %812 : vector<8x128xf32> to vector<1x8x128xf32>
    %814 = vector.broadcast %813 : vector<1x8x128xf32> to vector<8x8x128xf32>
    %815 = arith.mulf %814, %810 : vector<8x8x128xf32>
    %816 = arith.addf %808, %815 : vector<8x8x128xf32>
    %c1_842 = arith.constant 1 : index
    %c5_843 = arith.constant 5 : index
    %c0_844 = arith.constant 0 : index
    %c0_845 = arith.constant 0 : index
    %817 = vector.load %arg4[%c1_842, %c5_843, %c0_844, %c0_845] : memref<2x16x8x128xf32, #tpu.memory_space<vmem>>, vector<1x8x8x128xf32>
    %818 = vector.shape_cast %817 : vector<1x8x8x128xf32> to vector<8x8x128xf32>
    %c3_846 = arith.constant 3 : index
    %c3_847 = arith.constant 3 : index
    %c0_848 = arith.constant 0 : index
    %c0_849 = arith.constant 0 : index
    %819 = vector.load %arg2[%c3_846, %c3_847, %c0_848, %c0_849] : memref<8x8x8x128xf32, #tpu.memory_space<vmem>>, vector<1x1x8x128xf32>
    %820 = vector.shape_cast %819 : vector<1x1x8x128xf32> to vector<8x128xf32>
    %821 = vector.shape_cast %820 : vector<8x128xf32> to vector<1x8x128xf32>
    %822 = vector.broadcast %821 : vector<1x8x128xf32> to vector<8x8x128xf32>
    %823 = arith.mulf %822, %818 : vector<8x8x128xf32>
    %824 = arith.addf %816, %823 : vector<8x8x128xf32>
    %c1_850 = arith.constant 1 : index
    %c4_851 = arith.constant 4 : index
    %c0_852 = arith.constant 0 : index
    %c0_853 = arith.constant 0 : index
    %825 = vector.load %arg4[%c1_850, %c4_851, %c0_852, %c0_853] : memref<2x16x8x128xf32, #tpu.memory_space<vmem>>, vector<1x8x8x128xf32>
    %826 = vector.shape_cast %825 : vector<1x8x8x128xf32> to vector<8x8x128xf32>
    %c3_854 = arith.constant 3 : index
    %c4_855 = arith.constant 4 : index
    %c0_856 = arith.constant 0 : index
    %c0_857 = arith.constant 0 : index
    %827 = vector.load %arg2[%c3_854, %c4_855, %c0_856, %c0_857] : memref<8x8x8x128xf32, #tpu.memory_space<vmem>>, vector<1x1x8x128xf32>
    %828 = vector.shape_cast %827 : vector<1x1x8x128xf32> to vector<8x128xf32>
    %829 = vector.shape_cast %828 : vector<8x128xf32> to vector<1x8x128xf32>
    %830 = vector.broadcast %829 : vector<1x8x128xf32> to vector<8x8x128xf32>
    %831 = arith.mulf %830, %826 : vector<8x8x128xf32>
    %832 = arith.addf %824, %831 : vector<8x8x128xf32>
    %c1_858 = arith.constant 1 : index
    %c3_859 = arith.constant 3 : index
    %c0_860 = arith.constant 0 : index
    %c0_861 = arith.constant 0 : index
    %833 = vector.load %arg4[%c1_858, %c3_859, %c0_860, %c0_861] : memref<2x16x8x128xf32, #tpu.memory_space<vmem>>, vector<1x8x8x128xf32>
    %834 = vector.shape_cast %833 : vector<1x8x8x128xf32> to vector<8x8x128xf32>
    %c3_862 = arith.constant 3 : index
    %c5_863 = arith.constant 5 : index
    %c0_864 = arith.constant 0 : index
    %c0_865 = arith.constant 0 : index
    %835 = vector.load %arg2[%c3_862, %c5_863, %c0_864, %c0_865] : memref<8x8x8x128xf32, #tpu.memory_space<vmem>>, vector<1x1x8x128xf32>
    %836 = vector.shape_cast %835 : vector<1x1x8x128xf32> to vector<8x128xf32>
    %837 = vector.shape_cast %836 : vector<8x128xf32> to vector<1x8x128xf32>
    %838 = vector.broadcast %837 : vector<1x8x128xf32> to vector<8x8x128xf32>
    %839 = arith.mulf %838, %834 : vector<8x8x128xf32>
    %840 = arith.addf %832, %839 : vector<8x8x128xf32>
    %c1_866 = arith.constant 1 : index
    %c2_867 = arith.constant 2 : index
    %c0_868 = arith.constant 0 : index
    %c0_869 = arith.constant 0 : index
    %841 = vector.load %arg4[%c1_866, %c2_867, %c0_868, %c0_869] : memref<2x16x8x128xf32, #tpu.memory_space<vmem>>, vector<1x8x8x128xf32>
    %842 = vector.shape_cast %841 : vector<1x8x8x128xf32> to vector<8x8x128xf32>
    %c3_870 = arith.constant 3 : index
    %c6_871 = arith.constant 6 : index
    %c0_872 = arith.constant 0 : index
    %c0_873 = arith.constant 0 : index
    %843 = vector.load %arg2[%c3_870, %c6_871, %c0_872, %c0_873] : memref<8x8x8x128xf32, #tpu.memory_space<vmem>>, vector<1x1x8x128xf32>
    %844 = vector.shape_cast %843 : vector<1x1x8x128xf32> to vector<8x128xf32>
    %845 = vector.shape_cast %844 : vector<8x128xf32> to vector<1x8x128xf32>
    %846 = vector.broadcast %845 : vector<1x8x128xf32> to vector<8x8x128xf32>
    %847 = arith.mulf %846, %842 : vector<8x8x128xf32>
    %848 = arith.addf %840, %847 : vector<8x8x128xf32>
    %c1_874 = arith.constant 1 : index
    %c1_875 = arith.constant 1 : index
    %c0_876 = arith.constant 0 : index
    %c0_877 = arith.constant 0 : index
    %849 = vector.load %arg4[%c1_874, %c1_875, %c0_876, %c0_877] : memref<2x16x8x128xf32, #tpu.memory_space<vmem>>, vector<1x8x8x128xf32>
    %850 = vector.shape_cast %849 : vector<1x8x8x128xf32> to vector<8x8x128xf32>
    %c3_878 = arith.constant 3 : index
    %c7_879 = arith.constant 7 : index
    %c0_880 = arith.constant 0 : index
    %c0_881 = arith.constant 0 : index
    %851 = vector.load %arg2[%c3_878, %c7_879, %c0_880, %c0_881] : memref<8x8x8x128xf32, #tpu.memory_space<vmem>>, vector<1x1x8x128xf32>
    %852 = vector.shape_cast %851 : vector<1x1x8x128xf32> to vector<8x128xf32>
    %853 = vector.shape_cast %852 : vector<8x128xf32> to vector<1x8x128xf32>
    %854 = vector.broadcast %853 : vector<1x8x128xf32> to vector<8x8x128xf32>
    %855 = arith.mulf %854, %850 : vector<8x8x128xf32>
    %856 = arith.addf %848, %855 : vector<8x8x128xf32>
    %c1_882 = arith.constant 1 : index
    %c0_883 = arith.constant 0 : index
    %c8_884 = arith.constant 8 : index
    %c0_885 = arith.constant 0 : index
    %857 = vector.load %arg5[%c1_882, %c0_883, %c8_884, %c0_885] : memref<2x8x16x128xf32, #tpu.memory_space<vmem>>, vector<1x8x8x128xf32>
    %858 = vector.shape_cast %857 : vector<1x8x8x128xf32> to vector<8x8x128xf32>
    %859 = vector.shape_cast %856 : vector<8x8x128xf32> to vector<1x8x8x128xf32>
    tpu.vector_store %arg5[%c1_882, %c0_883, %c8_884, %c0_885], %859 {strides = array<i32>} : memref<2x8x16x128xf32, #tpu.memory_space<vmem>>, vector<1x8x8x128xf32>,
    %c1_886 = arith.constant 1 : index
    %c0_887 = arith.constant 0 : index
    %c5_888 = arith.constant 5 : index
    %c0_889 = arith.constant 0 : index
    %860 = vector.load %arg5[%c1_886, %c0_887, %c5_888, %c0_889] : memref<2x8x16x128xf32, #tpu.memory_space<vmem>>, vector<1x8x8x128xf32>
    %861 = vector.shape_cast %860 : vector<1x8x8x128xf32> to vector<8x8x128xf32>
    %862 = arith.addf %791, %861 : vector<8x8x128xf32>
    %cst_890 = arith.constant 0.000000e+00 : f32
    %863 = vector.broadcast %cst_890 : f32 to vector<8x8x128xf32>
    %c1_891 = arith.constant 1 : index
    %c8_892 = arith.constant 8 : index
    %c0_893 = arith.constant 0 : index
    %c0_894 = arith.constant 0 : index
    %864 = vector.load %arg4[%c1_891, %c8_892, %c0_893, %c0_894] : memref<2x16x8x128xf32, #tpu.memory_space<vmem>>, vector<1x8x8x128xf32>
    %865 = vector.shape_cast %864 : vector<1x8x8x128xf32> to vector<8x8x128xf32>
    %c4_895 = arith.constant 4 : index
    %c0_896 = arith.constant 0 : index
    %c0_897 = arith.constant 0 : index
    %c0_898 = arith.constant 0 : index
    %866 = vector.load %arg2[%c4_895, %c0_896, %c0_897, %c0_898] : memref<8x8x8x128xf32, #tpu.memory_space<vmem>>, vector<1x1x8x128xf32>
    %867 = vector.shape_cast %866 : vector<1x1x8x128xf32> to vector<8x128xf32>
    %868 = vector.shape_cast %867 : vector<8x128xf32> to vector<1x8x128xf32>
    %869 = vector.broadcast %868 : vector<1x8x128xf32> to vector<8x8x128xf32>
    %870 = arith.mulf %869, %865 : vector<8x8x128xf32>
    %871 = arith.addf %863, %870 : vector<8x8x128xf32>
    %c1_899 = arith.constant 1 : index
    %c7_900 = arith.constant 7 : index
    %c0_901 = arith.constant 0 : index
    %c0_902 = arith.constant 0 : index
    %872 = vector.load %arg4[%c1_899, %c7_900, %c0_901, %c0_902] : memref<2x16x8x128xf32, #tpu.memory_space<vmem>>, vector<1x8x8x128xf32>
    %873 = vector.shape_cast %872 : vector<1x8x8x128xf32> to vector<8x8x128xf32>
    %c4_903 = arith.constant 4 : index
    %c1_904 = arith.constant 1 : index
    %c0_905 = arith.constant 0 : index
    %c0_906 = arith.constant 0 : index
    %874 = vector.load %arg2[%c4_903, %c1_904, %c0_905, %c0_906] : memref<8x8x8x128xf32, #tpu.memory_space<vmem>>, vector<1x1x8x128xf32>
    %875 = vector.shape_cast %874 : vector<1x1x8x128xf32> to vector<8x128xf32>
    %876 = vector.shape_cast %875 : vector<8x128xf32> to vector<1x8x128xf32>
    %877 = vector.broadcast %876 : vector<1x8x128xf32> to vector<8x8x128xf32>
    %878 = arith.mulf %877, %873 : vector<8x8x128xf32>
    %879 = arith.addf %871, %878 : vector<8x8x128xf32>
    %c1_907 = arith.constant 1 : index
    %c6_908 = arith.constant 6 : index
    %c0_909 = arith.constant 0 : index
    %c0_910 = arith.constant 0 : index
    %880 = vector.load %arg4[%c1_907, %c6_908, %c0_909, %c0_910] : memref<2x16x8x128xf32, #tpu.memory_space<vmem>>, vector<1x8x8x128xf32>
    %881 = vector.shape_cast %880 : vector<1x8x8x128xf32> to vector<8x8x128xf32>
    %c4_911 = arith.constant 4 : index
    %c2_912 = arith.constant 2 : index
    %c0_913 = arith.constant 0 : index
    %c0_914 = arith.constant 0 : index
    %882 = vector.load %arg2[%c4_911, %c2_912, %c0_913, %c0_914] : memref<8x8x8x128xf32, #tpu.memory_space<vmem>>, vector<1x1x8x128xf32>
    %883 = vector.shape_cast %882 : vector<1x1x8x128xf32> to vector<8x128xf32>
    %884 = vector.shape_cast %883 : vector<8x128xf32> to vector<1x8x128xf32>
    %885 = vector.broadcast %884 : vector<1x8x128xf32> to vector<8x8x128xf32>
    %886 = arith.mulf %885, %881 : vector<8x8x128xf32>
    %887 = arith.addf %879, %886 : vector<8x8x128xf32>
    %c1_915 = arith.constant 1 : index
    %c5_916 = arith.constant 5 : index
    %c0_917 = arith.constant 0 : index
    %c0_918 = arith.constant 0 : index
    %888 = vector.load %arg4[%c1_915, %c5_916, %c0_917, %c0_918] : memref<2x16x8x128xf32, #tpu.memory_space<vmem>>, vector<1x8x8x128xf32>
    %889 = vector.shape_cast %888 : vector<1x8x8x128xf32> to vector<8x8x128xf32>
    %c4_919 = arith.constant 4 : index
    %c3_920 = arith.constant 3 : index
    %c0_921 = arith.constant 0 : index
    %c0_922 = arith.constant 0 : index
    %890 = vector.load %arg2[%c4_919, %c3_920, %c0_921, %c0_922] : memref<8x8x8x128xf32, #tpu.memory_space<vmem>>, vector<1x1x8x128xf32>
    %891 = vector.shape_cast %890 : vector<1x1x8x128xf32> to vector<8x128xf32>
    %892 = vector.shape_cast %891 : vector<8x128xf32> to vector<1x8x128xf32>
    %893 = vector.broadcast %892 : vector<1x8x128xf32> to vector<8x8x128xf32>
    %894 = arith.mulf %893, %889 : vector<8x8x128xf32>
    %895 = arith.addf %887, %894 : vector<8x8x128xf32>
    %c1_923 = arith.constant 1 : index
    %c4_924 = arith.constant 4 : index
    %c0_925 = arith.constant 0 : index
    %c0_926 = arith.constant 0 : index
    %896 = vector.load %arg4[%c1_923, %c4_924, %c0_925, %c0_926] : memref<2x16x8x128xf32, #tpu.memory_space<vmem>>, vector<1x8x8x128xf32>
    %897 = vector.shape_cast %896 : vector<1x8x8x128xf32> to vector<8x8x128xf32>
    %c4_927 = arith.constant 4 : index
    %c4_928 = arith.constant 4 : index
    %c0_929 = arith.constant 0 : index
    %c0_930 = arith.constant 0 : index
    %898 = vector.load %arg2[%c4_927, %c4_928, %c0_929, %c0_930] : memref<8x8x8x128xf32, #tpu.memory_space<vmem>>, vector<1x1x8x128xf32>
    %899 = vector.shape_cast %898 : vector<1x1x8x128xf32> to vector<8x128xf32>
    %900 = vector.shape_cast %899 : vector<8x128xf32> to vector<1x8x128xf32>
    %901 = vector.broadcast %900 : vector<1x8x128xf32> to vector<8x8x128xf32>
    %902 = arith.mulf %901, %897 : vector<8x8x128xf32>
    %903 = arith.addf %895, %902 : vector<8x8x128xf32>
    %c1_931 = arith.constant 1 : index
    %c3_932 = arith.constant 3 : index
    %c0_933 = arith.constant 0 : index
    %c0_934 = arith.constant 0 : index
    %904 = vector.load %arg4[%c1_931, %c3_932, %c0_933, %c0_934] : memref<2x16x8x128xf32, #tpu.memory_space<vmem>>, vector<1x8x8x128xf32>
    %905 = vector.shape_cast %904 : vector<1x8x8x128xf32> to vector<8x8x128xf32>
    %c4_935 = arith.constant 4 : index
    %c5_936 = arith.constant 5 : index
    %c0_937 = arith.constant 0 : index
    %c0_938 = arith.constant 0 : index
    %906 = vector.load %arg2[%c4_935, %c5_936, %c0_937, %c0_938] : memref<8x8x8x128xf32, #tpu.memory_space<vmem>>, vector<1x1x8x128xf32>
    %907 = vector.shape_cast %906 : vector<1x1x8x128xf32> to vector<8x128xf32>
    %908 = vector.shape_cast %907 : vector<8x128xf32> to vector<1x8x128xf32>
    %909 = vector.broadcast %908 : vector<1x8x128xf32> to vector<8x8x128xf32>
    %910 = arith.mulf %909, %905 : vector<8x8x128xf32>
    %911 = arith.addf %903, %910 : vector<8x8x128xf32>
    %c1_939 = arith.constant 1 : index
    %c2_940 = arith.constant 2 : index
    %c0_941 = arith.constant 0 : index
    %c0_942 = arith.constant 0 : index
    %912 = vector.load %arg4[%c1_939, %c2_940, %c0_941, %c0_942] : memref<2x16x8x128xf32, #tpu.memory_space<vmem>>, vector<1x8x8x128xf32>
    %913 = vector.shape_cast %912 : vector<1x8x8x128xf32> to vector<8x8x128xf32>
    %c4_943 = arith.constant 4 : index
    %c6_944 = arith.constant 6 : index
    %c0_945 = arith.constant 0 : index
    %c0_946 = arith.constant 0 : index
    %914 = vector.load %arg2[%c4_943, %c6_944, %c0_945, %c0_946] : memref<8x8x8x128xf32, #tpu.memory_space<vmem>>, vector<1x1x8x128xf32>
    %915 = vector.shape_cast %914 : vector<1x1x8x128xf32> to vector<8x128xf32>
    %916 = vector.shape_cast %915 : vector<8x128xf32> to vector<1x8x128xf32>
    %917 = vector.broadcast %916 : vector<1x8x128xf32> to vector<8x8x128xf32>
    %918 = arith.mulf %917, %913 : vector<8x8x128xf32>
    %919 = arith.addf %911, %918 : vector<8x8x128xf32>
    %c1_947 = arith.constant 1 : index
    %c1_948 = arith.constant 1 : index
    %c0_949 = arith.constant 0 : index
    %c0_950 = arith.constant 0 : index
    %920 = vector.load %arg4[%c1_947, %c1_948, %c0_949, %c0_950] : memref<2x16x8x128xf32, #tpu.memory_space<vmem>>, vector<1x8x8x128xf32>
    %921 = vector.shape_cast %920 : vector<1x8x8x128xf32> to vector<8x8x128xf32>
    %c4_951 = arith.constant 4 : index
    %c7_952 = arith.constant 7 : index
    %c0_953 = arith.constant 0 : index
    %c0_954 = arith.constant 0 : index
    %922 = vector.load %arg2[%c4_951, %c7_952, %c0_953, %c0_954] : memref<8x8x8x128xf32, #tpu.memory_space<vmem>>, vector<1x1x8x128xf32>
    %923 = vector.shape_cast %922 : vector<1x1x8x128xf32> to vector<8x128xf32>
    %924 = vector.shape_cast %923 : vector<8x128xf32> to vector<1x8x128xf32>
    %925 = vector.broadcast %924 : vector<1x8x128xf32> to vector<8x8x128xf32>
    %926 = arith.mulf %925, %921 : vector<8x8x128xf32>
    %927 = arith.addf %919, %926 : vector<8x8x128xf32>
    %c0_955 = arith.constant 0 : index
    %c0_956 = arith.constant 0 : index
    %c8_957 = arith.constant 8 : index
    %c0_958 = arith.constant 0 : index
    %928 = vector.load %arg5[%c0_955, %c0_956, %c8_957, %c0_958] : memref<2x8x16x128xf32, #tpu.memory_space<vmem>>, vector<1x8x8x128xf32>
    %929 = vector.shape_cast %928 : vector<1x8x8x128xf32> to vector<8x8x128xf32>
    %930 = vector.shape_cast %927 : vector<8x8x128xf32> to vector<1x8x8x128xf32>
    tpu.vector_store %arg5[%c0_955, %c0_956, %c8_957, %c0_958], %930 {strides = array<i32>} : memref<2x8x16x128xf32, #tpu.memory_space<vmem>>, vector<1x8x8x128xf32>,
    %c0_959 = arith.constant 0 : index
    %c0_960 = arith.constant 0 : index
    %c4_961 = arith.constant 4 : index
    %c0_962 = arith.constant 0 : index
    %931 = vector.load %arg5[%c0_959, %c0_960, %c4_961, %c0_962] : memref<2x8x16x128xf32, #tpu.memory_space<vmem>>, vector<1x8x8x128xf32>
    %932 = vector.shape_cast %931 : vector<1x8x8x128xf32> to vector<8x8x128xf32>
    %933 = arith.addf %862, %932 : vector<8x8x128xf32>
    %cst_963 = arith.constant 0.000000e+00 : f32
    %934 = vector.broadcast %cst_963 : f32 to vector<8x8x128xf32>
    %c1_964 = arith.constant 1 : index
    %c8_965 = arith.constant 8 : index
    %c0_966 = arith.constant 0 : index
    %c0_967 = arith.constant 0 : index
    %935 = vector.load %arg4[%c1_964, %c8_965, %c0_966, %c0_967] : memref<2x16x8x128xf32, #tpu.memory_space<vmem>>, vector<1x8x8x128xf32>
    %936 = vector.shape_cast %935 : vector<1x8x8x128xf32> to vector<8x8x128xf32>
    %c5_968 = arith.constant 5 : index
    %c0_969 = arith.constant 0 : index
    %c0_970 = arith.constant 0 : index
    %c0_971 = arith.constant 0 : index
    %937 = vector.load %arg2[%c5_968, %c0_969, %c0_970, %c0_971] : memref<8x8x8x128xf32, #tpu.memory_space<vmem>>, vector<1x1x8x128xf32>
    %938 = vector.shape_cast %937 : vector<1x1x8x128xf32> to vector<8x128xf32>
    %939 = vector.shape_cast %938 : vector<8x128xf32> to vector<1x8x128xf32>
    %940 = vector.broadcast %939 : vector<1x8x128xf32> to vector<8x8x128xf32>
    %941 = arith.mulf %940, %936 : vector<8x8x128xf32>
    %942 = arith.addf %934, %941 : vector<8x8x128xf32>
    %c1_972 = arith.constant 1 : index
    %c7_973 = arith.constant 7 : index
    %c0_974 = arith.constant 0 : index
    %c0_975 = arith.constant 0 : index
    %943 = vector.load %arg4[%c1_972, %c7_973, %c0_974, %c0_975] : memref<2x16x8x128xf32, #tpu.memory_space<vmem>>, vector<1x8x8x128xf32>
    %944 = vector.shape_cast %943 : vector<1x8x8x128xf32> to vector<8x8x128xf32>
    %c5_976 = arith.constant 5 : index
    %c1_977 = arith.constant 1 : index
    %c0_978 = arith.constant 0 : index
    %c0_979 = arith.constant 0 : index
    %945 = vector.load %arg2[%c5_976, %c1_977, %c0_978, %c0_979] : memref<8x8x8x128xf32, #tpu.memory_space<vmem>>, vector<1x1x8x128xf32>
    %946 = vector.shape_cast %945 : vector<1x1x8x128xf32> to vector<8x128xf32>
    %947 = vector.shape_cast %946 : vector<8x128xf32> to vector<1x8x128xf32>
    %948 = vector.broadcast %947 : vector<1x8x128xf32> to vector<8x8x128xf32>
    %949 = arith.mulf %948, %944 : vector<8x8x128xf32>
    %950 = arith.addf %942, %949 : vector<8x8x128xf32>
    %c1_980 = arith.constant 1 : index
    %c6_981 = arith.constant 6 : index
    %c0_982 = arith.constant 0 : index
    %c0_983 = arith.constant 0 : index
    %951 = vector.load %arg4[%c1_980, %c6_981, %c0_982, %c0_983] : memref<2x16x8x128xf32, #tpu.memory_space<vmem>>, vector<1x8x8x128xf32>
    %952 = vector.shape_cast %951 : vector<1x8x8x128xf32> to vector<8x8x128xf32>
    %c5_984 = arith.constant 5 : index
    %c2_985 = arith.constant 2 : index
    %c0_986 = arith.constant 0 : index
    %c0_987 = arith.constant 0 : index
    %953 = vector.load %arg2[%c5_984, %c2_985, %c0_986, %c0_987] : memref<8x8x8x128xf32, #tpu.memory_space<vmem>>, vector<1x1x8x128xf32>
    %954 = vector.shape_cast %953 : vector<1x1x8x128xf32> to vector<8x128xf32>
    %955 = vector.shape_cast %954 : vector<8x128xf32> to vector<1x8x128xf32>
    %956 = vector.broadcast %955 : vector<1x8x128xf32> to vector<8x8x128xf32>
    %957 = arith.mulf %956, %952 : vector<8x8x128xf32>
    %958 = arith.addf %950, %957 : vector<8x8x128xf32>
    %c1_988 = arith.constant 1 : index
    %c5_989 = arith.constant 5 : index
    %c0_990 = arith.constant 0 : index
    %c0_991 = arith.constant 0 : index
    %959 = vector.load %arg4[%c1_988, %c5_989, %c0_990, %c0_991] : memref<2x16x8x128xf32, #tpu.memory_space<vmem>>, vector<1x8x8x128xf32>
    %960 = vector.shape_cast %959 : vector<1x8x8x128xf32> to vector<8x8x128xf32>
    %c5_992 = arith.constant 5 : index
    %c3_993 = arith.constant 3 : index
    %c0_994 = arith.constant 0 : index
    %c0_995 = arith.constant 0 : index
    %961 = vector.load %arg2[%c5_992, %c3_993, %c0_994, %c0_995] : memref<8x8x8x128xf32, #tpu.memory_space<vmem>>, vector<1x1x8x128xf32>
    %962 = vector.shape_cast %961 : vector<1x1x8x128xf32> to vector<8x128xf32>
    %963 = vector.shape_cast %962 : vector<8x128xf32> to vector<1x8x128xf32>
    %964 = vector.broadcast %963 : vector<1x8x128xf32> to vector<8x8x128xf32>
    %965 = arith.mulf %964, %960 : vector<8x8x128xf32>
    %966 = arith.addf %958, %965 : vector<8x8x128xf32>
    %c1_996 = arith.constant 1 : index
    %c4_997 = arith.constant 4 : index
    %c0_998 = arith.constant 0 : index
    %c0_999 = arith.constant 0 : index
    %967 = vector.load %arg4[%c1_996, %c4_997, %c0_998, %c0_999] : memref<2x16x8x128xf32, #tpu.memory_space<vmem>>, vector<1x8x8x128xf32>
    %968 = vector.shape_cast %967 : vector<1x8x8x128xf32> to vector<8x8x128xf32>
    %c5_1000 = arith.constant 5 : index
    %c4_1001 = arith.constant 4 : index
    %c0_1002 = arith.constant 0 : index
    %c0_1003 = arith.constant 0 : index
    %969 = vector.load %arg2[%c5_1000, %c4_1001, %c0_1002, %c0_1003] : memref<8x8x8x128xf32, #tpu.memory_space<vmem>>, vector<1x1x8x128xf32>
    %970 = vector.shape_cast %969 : vector<1x1x8x128xf32> to vector<8x128xf32>
    %971 = vector.shape_cast %970 : vector<8x128xf32> to vector<1x8x128xf32>
    %972 = vector.broadcast %971 : vector<1x8x128xf32> to vector<8x8x128xf32>
    %973 = arith.mulf %972, %968 : vector<8x8x128xf32>
    %974 = arith.addf %966, %973 : vector<8x8x128xf32>
    %c1_1004 = arith.constant 1 : index
    %c3_1005 = arith.constant 3 : index
    %c0_1006 = arith.constant 0 : index
    %c0_1007 = arith.constant 0 : index
    %975 = vector.load %arg4[%c1_1004, %c3_1005, %c0_1006, %c0_1007] : memref<2x16x8x128xf32, #tpu.memory_space<vmem>>, vector<1x8x8x128xf32>
    %976 = vector.shape_cast %975 : vector<1x8x8x128xf32> to vector<8x8x128xf32>
    %c5_1008 = arith.constant 5 : index
    %c5_1009 = arith.constant 5 : index
    %c0_1010 = arith.constant 0 : index
    %c0_1011 = arith.constant 0 : index
    %977 = vector.load %arg2[%c5_1008, %c5_1009, %c0_1010, %c0_1011] : memref<8x8x8x128xf32, #tpu.memory_space<vmem>>, vector<1x1x8x128xf32>
    %978 = vector.shape_cast %977 : vector<1x1x8x128xf32> to vector<8x128xf32>
    %979 = vector.shape_cast %978 : vector<8x128xf32> to vector<1x8x128xf32>
    %980 = vector.broadcast %979 : vector<1x8x128xf32> to vector<8x8x128xf32>
    %981 = arith.mulf %980, %976 : vector<8x8x128xf32>
    %982 = arith.addf %974, %981 : vector<8x8x128xf32>
    %c1_1012 = arith.constant 1 : index
    %c2_1013 = arith.constant 2 : index
    %c0_1014 = arith.constant 0 : index
    %c0_1015 = arith.constant 0 : index
    %983 = vector.load %arg4[%c1_1012, %c2_1013, %c0_1014, %c0_1015] : memref<2x16x8x128xf32, #tpu.memory_space<vmem>>, vector<1x8x8x128xf32>
    %984 = vector.shape_cast %983 : vector<1x8x8x128xf32> to vector<8x8x128xf32>
    %c5_1016 = arith.constant 5 : index
    %c6_1017 = arith.constant 6 : index
    %c0_1018 = arith.constant 0 : index
    %c0_1019 = arith.constant 0 : index
    %985 = vector.load %arg2[%c5_1016, %c6_1017, %c0_1018, %c0_1019] : memref<8x8x8x128xf32, #tpu.memory_space<vmem>>, vector<1x1x8x128xf32>
    %986 = vector.shape_cast %985 : vector<1x1x8x128xf32> to vector<8x128xf32>
    %987 = vector.shape_cast %986 : vector<8x128xf32> to vector<1x8x128xf32>
    %988 = vector.broadcast %987 : vector<1x8x128xf32> to vector<8x8x128xf32>
    %989 = arith.mulf %988, %984 : vector<8x8x128xf32>
    %990 = arith.addf %982, %989 : vector<8x8x128xf32>
    %c1_1020 = arith.constant 1 : index
    %c1_1021 = arith.constant 1 : index
    %c0_1022 = arith.constant 0 : index
    %c0_1023 = arith.constant 0 : index
    %991 = vector.load %arg4[%c1_1020, %c1_1021, %c0_1022, %c0_1023] : memref<2x16x8x128xf32, #tpu.memory_space<vmem>>, vector<1x8x8x128xf32>
    %992 = vector.shape_cast %991 : vector<1x8x8x128xf32> to vector<8x8x128xf32>
    %c5_1024 = arith.constant 5 : index
    %c7_1025 = arith.constant 7 : index
    %c0_1026 = arith.constant 0 : index
    %c0_1027 = arith.constant 0 : index
    %993 = vector.load %arg2[%c5_1024, %c7_1025, %c0_1026, %c0_1027] : memref<8x8x8x128xf32, #tpu.memory_space<vmem>>, vector<1x1x8x128xf32>
    %994 = vector.shape_cast %993 : vector<1x1x8x128xf32> to vector<8x128xf32>
    %995 = vector.shape_cast %994 : vector<8x128xf32> to vector<1x8x128xf32>
    %996 = vector.broadcast %995 : vector<1x8x128xf32> to vector<8x8x128xf32>
    %997 = arith.mulf %996, %992 : vector<8x8x128xf32>
    %998 = arith.addf %990, %997 : vector<8x8x128xf32>
    %c1_1028 = arith.constant 1 : index
    %c0_1029 = arith.constant 0 : index
    %c8_1030 = arith.constant 8 : index
    %c0_1031 = arith.constant 0 : index
    %999 = vector.load %arg5[%c1_1028, %c0_1029, %c8_1030, %c0_1031] : memref<2x8x16x128xf32, #tpu.memory_space<vmem>>, vector<1x8x8x128xf32>
    %1000 = vector.shape_cast %999 : vector<1x8x8x128xf32> to vector<8x8x128xf32>
    %1001 = vector.shape_cast %998 : vector<8x8x128xf32> to vector<1x8x8x128xf32>
    tpu.vector_store %arg5[%c1_1028, %c0_1029, %c8_1030, %c0_1031], %1001 {strides = array<i32>} : memref<2x8x16x128xf32, #tpu.memory_space<vmem>>, vector<1x8x8x128xf32>,
    %c1_1032 = arith.constant 1 : index
    %c0_1033 = arith.constant 0 : index
    %c3_1034 = arith.constant 3 : index
    %c0_1035 = arith.constant 0 : index
    %1002 = vector.load %arg5[%c1_1032, %c0_1033, %c3_1034, %c0_1035] : memref<2x8x16x128xf32, #tpu.memory_space<vmem>>, vector<1x8x8x128xf32>
    %1003 = vector.shape_cast %1002 : vector<1x8x8x128xf32> to vector<8x8x128xf32>
    %1004 = arith.addf %933, %1003 : vector<8x8x128xf32>
    %cst_1036 = arith.constant 0.000000e+00 : f32
    %1005 = vector.broadcast %cst_1036 : f32 to vector<8x8x128xf32>
    %c1_1037 = arith.constant 1 : index
    %c8_1038 = arith.constant 8 : index
    %c0_1039 = arith.constant 0 : index
    %c0_1040 = arith.constant 0 : index
    %1006 = vector.load %arg4[%c1_1037, %c8_1038, %c0_1039, %c0_1040] : memref<2x16x8x128xf32, #tpu.memory_space<vmem>>, vector<1x8x8x128xf32>
    %1007 = vector.shape_cast %1006 : vector<1x8x8x128xf32> to vector<8x8x128xf32>
    %c6_1041 = arith.constant 6 : index
    %c0_1042 = arith.constant 0 : index
    %c0_1043 = arith.constant 0 : index
    %c0_1044 = arith.constant 0 : index
    %1008 = vector.load %arg2[%c6_1041, %c0_1042, %c0_1043, %c0_1044] : memref<8x8x8x128xf32, #tpu.memory_space<vmem>>, vector<1x1x8x128xf32>
    %1009 = vector.shape_cast %1008 : vector<1x1x8x128xf32> to vector<8x128xf32>
    %1010 = vector.shape_cast %1009 : vector<8x128xf32> to vector<1x8x128xf32>
    %1011 = vector.broadcast %1010 : vector<1x8x128xf32> to vector<8x8x128xf32>
    %1012 = arith.mulf %1011, %1007 : vector<8x8x128xf32>
    %1013 = arith.addf %1005, %1012 : vector<8x8x128xf32>
    %c1_1045 = arith.constant 1 : index
    %c7_1046 = arith.constant 7 : index
    %c0_1047 = arith.constant 0 : index
    %c0_1048 = arith.constant 0 : index
    %1014 = vector.load %arg4[%c1_1045, %c7_1046, %c0_1047, %c0_1048] : memref<2x16x8x128xf32, #tpu.memory_space<vmem>>, vector<1x8x8x128xf32>
    %1015 = vector.shape_cast %1014 : vector<1x8x8x128xf32> to vector<8x8x128xf32>
    %c6_1049 = arith.constant 6 : index
    %c1_1050 = arith.constant 1 : index
    %c0_1051 = arith.constant 0 : index
    %c0_1052 = arith.constant 0 : index
    %1016 = vector.load %arg2[%c6_1049, %c1_1050, %c0_1051, %c0_1052] : memref<8x8x8x128xf32, #tpu.memory_space<vmem>>, vector<1x1x8x128xf32>
    %1017 = vector.shape_cast %1016 : vector<1x1x8x128xf32> to vector<8x128xf32>
    %1018 = vector.shape_cast %1017 : vector<8x128xf32> to vector<1x8x128xf32>
    %1019 = vector.broadcast %1018 : vector<1x8x128xf32> to vector<8x8x128xf32>
    %1020 = arith.mulf %1019, %1015 : vector<8x8x128xf32>
    %1021 = arith.addf %1013, %1020 : vector<8x8x128xf32>
    %c1_1053 = arith.constant 1 : index
    %c6_1054 = arith.constant 6 : index
    %c0_1055 = arith.constant 0 : index
    %c0_1056 = arith.constant 0 : index
    %1022 = vector.load %arg4[%c1_1053, %c6_1054, %c0_1055, %c0_1056] : memref<2x16x8x128xf32, #tpu.memory_space<vmem>>, vector<1x8x8x128xf32>
    %1023 = vector.shape_cast %1022 : vector<1x8x8x128xf32> to vector<8x8x128xf32>
    %c6_1057 = arith.constant 6 : index
    %c2_1058 = arith.constant 2 : index
    %c0_1059 = arith.constant 0 : index
    %c0_1060 = arith.constant 0 : index
    %1024 = vector.load %arg2[%c6_1057, %c2_1058, %c0_1059, %c0_1060] : memref<8x8x8x128xf32, #tpu.memory_space<vmem>>, vector<1x1x8x128xf32>
    %1025 = vector.shape_cast %1024 : vector<1x1x8x128xf32> to vector<8x128xf32>
    %1026 = vector.shape_cast %1025 : vector<8x128xf32> to vector<1x8x128xf32>
    %1027 = vector.broadcast %1026 : vector<1x8x128xf32> to vector<8x8x128xf32>
    %1028 = arith.mulf %1027, %1023 : vector<8x8x128xf32>
    %1029 = arith.addf %1021, %1028 : vector<8x8x128xf32>
    %c1_1061 = arith.constant 1 : index
    %c5_1062 = arith.constant 5 : index
    %c0_1063 = arith.constant 0 : index
    %c0_1064 = arith.constant 0 : index
    %1030 = vector.load %arg4[%c1_1061, %c5_1062, %c0_1063, %c0_1064] : memref<2x16x8x128xf32, #tpu.memory_space<vmem>>, vector<1x8x8x128xf32>
    %1031 = vector.shape_cast %1030 : vector<1x8x8x128xf32> to vector<8x8x128xf32>
    %c6_1065 = arith.constant 6 : index
    %c3_1066 = arith.constant 3 : index
    %c0_1067 = arith.constant 0 : index
    %c0_1068 = arith.constant 0 : index
    %1032 = vector.load %arg2[%c6_1065, %c3_1066, %c0_1067, %c0_1068] : memref<8x8x8x128xf32, #tpu.memory_space<vmem>>, vector<1x1x8x128xf32>
    %1033 = vector.shape_cast %1032 : vector<1x1x8x128xf32> to vector<8x128xf32>
    %1034 = vector.shape_cast %1033 : vector<8x128xf32> to vector<1x8x128xf32>
    %1035 = vector.broadcast %1034 : vector<1x8x128xf32> to vector<8x8x128xf32>
    %1036 = arith.mulf %1035, %1031 : vector<8x8x128xf32>
    %1037 = arith.addf %1029, %1036 : vector<8x8x128xf32>
    %c1_1069 = arith.constant 1 : index
    %c4_1070 = arith.constant 4 : index
    %c0_1071 = arith.constant 0 : index
    %c0_1072 = arith.constant 0 : index
    %1038 = vector.load %arg4[%c1_1069, %c4_1070, %c0_1071, %c0_1072] : memref<2x16x8x128xf32, #tpu.memory_space<vmem>>, vector<1x8x8x128xf32>
    %1039 = vector.shape_cast %1038 : vector<1x8x8x128xf32> to vector<8x8x128xf32>
    %c6_1073 = arith.constant 6 : index
    %c4_1074 = arith.constant 4 : index
    %c0_1075 = arith.constant 0 : index
    %c0_1076 = arith.constant 0 : index
    %1040 = vector.load %arg2[%c6_1073, %c4_1074, %c0_1075, %c0_1076] : memref<8x8x8x128xf32, #tpu.memory_space<vmem>>, vector<1x1x8x128xf32>
    %1041 = vector.shape_cast %1040 : vector<1x1x8x128xf32> to vector<8x128xf32>
    %1042 = vector.shape_cast %1041 : vector<8x128xf32> to vector<1x8x128xf32>
    %1043 = vector.broadcast %1042 : vector<1x8x128xf32> to vector<8x8x128xf32>
    %1044 = arith.mulf %1043, %1039 : vector<8x8x128xf32>
    %1045 = arith.addf %1037, %1044 : vector<8x8x128xf32>
    %c1_1077 = arith.constant 1 : index
    %c3_1078 = arith.constant 3 : index
    %c0_1079 = arith.constant 0 : index
    %c0_1080 = arith.constant 0 : index
    %1046 = vector.load %arg4[%c1_1077, %c3_1078, %c0_1079, %c0_1080] : memref<2x16x8x128xf32, #tpu.memory_space<vmem>>, vector<1x8x8x128xf32>
    %1047 = vector.shape_cast %1046 : vector<1x8x8x128xf32> to vector<8x8x128xf32>
    %c6_1081 = arith.constant 6 : index
    %c5_1082 = arith.constant 5 : index
    %c0_1083 = arith.constant 0 : index
    %c0_1084 = arith.constant 0 : index
    %1048 = vector.load %arg2[%c6_1081, %c5_1082, %c0_1083, %c0_1084] : memref<8x8x8x128xf32, #tpu.memory_space<vmem>>, vector<1x1x8x128xf32>
    %1049 = vector.shape_cast %1048 : vector<1x1x8x128xf32> to vector<8x128xf32>
    %1050 = vector.shape_cast %1049 : vector<8x128xf32> to vector<1x8x128xf32>
    %1051 = vector.broadcast %1050 : vector<1x8x128xf32> to vector<8x8x128xf32>
    %1052 = arith.mulf %1051, %1047 : vector<8x8x128xf32>
    %1053 = arith.addf %1045, %1052 : vector<8x8x128xf32>
    %c1_1085 = arith.constant 1 : index
    %c2_1086 = arith.constant 2 : index
    %c0_1087 = arith.constant 0 : index
    %c0_1088 = arith.constant 0 : index
    %1054 = vector.load %arg4[%c1_1085, %c2_1086, %c0_1087, %c0_1088] : memref<2x16x8x128xf32, #tpu.memory_space<vmem>>, vector<1x8x8x128xf32>
    %1055 = vector.shape_cast %1054 : vector<1x8x8x128xf32> to vector<8x8x128xf32>
    %c6_1089 = arith.constant 6 : index
    %c6_1090 = arith.constant 6 : index
    %c0_1091 = arith.constant 0 : index
    %c0_1092 = arith.constant 0 : index
    %1056 = vector.load %arg2[%c6_1089, %c6_1090, %c0_1091, %c0_1092] : memref<8x8x8x128xf32, #tpu.memory_space<vmem>>, vector<1x1x8x128xf32>
    %1057 = vector.shape_cast %1056 : vector<1x1x8x128xf32> to vector<8x128xf32>
    %1058 = vector.shape_cast %1057 : vector<8x128xf32> to vector<1x8x128xf32>
    %1059 = vector.broadcast %1058 : vector<1x8x128xf32> to vector<8x8x128xf32>
    %1060 = arith.mulf %1059, %1055 : vector<8x8x128xf32>
    %1061 = arith.addf %1053, %1060 : vector<8x8x128xf32>
    %c1_1093 = arith.constant 1 : index
    %c1_1094 = arith.constant 1 : index
    %c0_1095 = arith.constant 0 : index
    %c0_1096 = arith.constant 0 : index
    %1062 = vector.load %arg4[%c1_1093, %c1_1094, %c0_1095, %c0_1096] : memref<2x16x8x128xf32, #tpu.memory_space<vmem>>, vector<1x8x8x128xf32>
    %1063 = vector.shape_cast %1062 : vector<1x8x8x128xf32> to vector<8x8x128xf32>
    %c6_1097 = arith.constant 6 : index
    %c7_1098 = arith.constant 7 : index
    %c0_1099 = arith.constant 0 : index
    %c0_1100 = arith.constant 0 : index
    %1064 = vector.load %arg2[%c6_1097, %c7_1098, %c0_1099, %c0_1100] : memref<8x8x8x128xf32, #tpu.memory_space<vmem>>, vector<1x1x8x128xf32>
    %1065 = vector.shape_cast %1064 : vector<1x1x8x128xf32> to vector<8x128xf32>
    %1066 = vector.shape_cast %1065 : vector<8x128xf32> to vector<1x8x128xf32>
    %1067 = vector.broadcast %1066 : vector<1x8x128xf32> to vector<8x8x128xf32>
    %1068 = arith.mulf %1067, %1063 : vector<8x8x128xf32>
    %1069 = arith.addf %1061, %1068 : vector<8x8x128xf32>
    %c0_1101 = arith.constant 0 : index
    %c0_1102 = arith.constant 0 : index
    %c8_1103 = arith.constant 8 : index
    %c0_1104 = arith.constant 0 : index
    %1070 = vector.load %arg5[%c0_1101, %c0_1102, %c8_1103, %c0_1104] : memref<2x8x16x128xf32, #tpu.memory_space<vmem>>, vector<1x8x8x128xf32>
    %1071 = vector.shape_cast %1070 : vector<1x8x8x128xf32> to vector<8x8x128xf32>
    %1072 = vector.shape_cast %1069 : vector<8x8x128xf32> to vector<1x8x8x128xf32>
    tpu.vector_store %arg5[%c0_1101, %c0_1102, %c8_1103, %c0_1104], %1072 {strides = array<i32>} : memref<2x8x16x128xf32, #tpu.memory_space<vmem>>, vector<1x8x8x128xf32>,
    %c0_1105 = arith.constant 0 : index
    %c0_1106 = arith.constant 0 : index
    %c2_1107 = arith.constant 2 : index
    %c0_1108 = arith.constant 0 : index
    %1073 = vector.load %arg5[%c0_1105, %c0_1106, %c2_1107, %c0_1108] : memref<2x8x16x128xf32, #tpu.memory_space<vmem>>, vector<1x8x8x128xf32>
    %1074 = vector.shape_cast %1073 : vector<1x8x8x128xf32> to vector<8x8x128xf32>
    %1075 = arith.addf %1004, %1074 : vector<8x8x128xf32>
    %cst_1109 = arith.constant 0.000000e+00 : f32
    %1076 = vector.broadcast %cst_1109 : f32 to vector<8x8x128xf32>
    %c1_1110 = arith.constant 1 : index
    %c8_1111 = arith.constant 8 : index
    %c0_1112 = arith.constant 0 : index
    %c0_1113 = arith.constant 0 : index
    %1077 = vector.load %arg4[%c1_1110, %c8_1111, %c0_1112, %c0_1113] : memref<2x16x8x128xf32, #tpu.memory_space<vmem>>, vector<1x8x8x128xf32>
    %1078 = vector.shape_cast %1077 : vector<1x8x8x128xf32> to vector<8x8x128xf32>
    %c7_1114 = arith.constant 7 : index
    %c0_1115 = arith.constant 0 : index
    %c0_1116 = arith.constant 0 : index
    %c0_1117 = arith.constant 0 : index
    %1079 = vector.load %arg2[%c7_1114, %c0_1115, %c0_1116, %c0_1117] : memref<8x8x8x128xf32, #tpu.memory_space<vmem>>, vector<1x1x8x128xf32>
    %1080 = vector.shape_cast %1079 : vector<1x1x8x128xf32> to vector<8x128xf32>
    %1081 = vector.shape_cast %1080 : vector<8x128xf32> to vector<1x8x128xf32>
    %1082 = vector.broadcast %1081 : vector<1x8x128xf32> to vector<8x8x128xf32>
    %1083 = arith.mulf %1082, %1078 : vector<8x8x128xf32>
    %1084 = arith.addf %1076, %1083 : vector<8x8x128xf32>
    %c1_1118 = arith.constant 1 : index
    %c7_1119 = arith.constant 7 : index
    %c0_1120 = arith.constant 0 : index
    %c0_1121 = arith.constant 0 : index
    %1085 = vector.load %arg4[%c1_1118, %c7_1119, %c0_1120, %c0_1121] : memref<2x16x8x128xf32, #tpu.memory_space<vmem>>, vector<1x8x8x128xf32>
    %1086 = vector.shape_cast %1085 : vector<1x8x8x128xf32> to vector<8x8x128xf32>
    %c7_1122 = arith.constant 7 : index
    %c1_1123 = arith.constant 1 : index
    %c0_1124 = arith.constant 0 : index
    %c0_1125 = arith.constant 0 : index
    %1087 = vector.load %arg2[%c7_1122, %c1_1123, %c0_1124, %c0_1125] : memref<8x8x8x128xf32, #tpu.memory_space<vmem>>, vector<1x1x8x128xf32>
    %1088 = vector.shape_cast %1087 : vector<1x1x8x128xf32> to vector<8x128xf32>
    %1089 = vector.shape_cast %1088 : vector<8x128xf32> to vector<1x8x128xf32>
    %1090 = vector.broadcast %1089 : vector<1x8x128xf32> to vector<8x8x128xf32>
    %1091 = arith.mulf %1090, %1086 : vector<8x8x128xf32>
    %1092 = arith.addf %1084, %1091 : vector<8x8x128xf32>
    %c1_1126 = arith.constant 1 : index
    %c6_1127 = arith.constant 6 : index
    %c0_1128 = arith.constant 0 : index
    %c0_1129 = arith.constant 0 : index
    %1093 = vector.load %arg4[%c1_1126, %c6_1127, %c0_1128, %c0_1129] : memref<2x16x8x128xf32, #tpu.memory_space<vmem>>, vector<1x8x8x128xf32>
    %1094 = vector.shape_cast %1093 : vector<1x8x8x128xf32> to vector<8x8x128xf32>
    %c7_1130 = arith.constant 7 : index
    %c2_1131 = arith.constant 2 : index
    %c0_1132 = arith.constant 0 : index
    %c0_1133 = arith.constant 0 : index
    %1095 = vector.load %arg2[%c7_1130, %c2_1131, %c0_1132, %c0_1133] : memref<8x8x8x128xf32, #tpu.memory_space<vmem>>, vector<1x1x8x128xf32>
    %1096 = vector.shape_cast %1095 : vector<1x1x8x128xf32> to vector<8x128xf32>
    %1097 = vector.shape_cast %1096 : vector<8x128xf32> to vector<1x8x128xf32>
    %1098 = vector.broadcast %1097 : vector<1x8x128xf32> to vector<8x8x128xf32>
    %1099 = arith.mulf %1098, %1094 : vector<8x8x128xf32>
    %1100 = arith.addf %1092, %1099 : vector<8x8x128xf32>
    %c1_1134 = arith.constant 1 : index
    %c5_1135 = arith.constant 5 : index
    %c0_1136 = arith.constant 0 : index
    %c0_1137 = arith.constant 0 : index
    %1101 = vector.load %arg4[%c1_1134, %c5_1135, %c0_1136, %c0_1137] : memref<2x16x8x128xf32, #tpu.memory_space<vmem>>, vector<1x8x8x128xf32>
    %1102 = vector.shape_cast %1101 : vector<1x8x8x128xf32> to vector<8x8x128xf32>
    %c7_1138 = arith.constant 7 : index
    %c3_1139 = arith.constant 3 : index
    %c0_1140 = arith.constant 0 : index
    %c0_1141 = arith.constant 0 : index
    %1103 = vector.load %arg2[%c7_1138, %c3_1139, %c0_1140, %c0_1141] : memref<8x8x8x128xf32, #tpu.memory_space<vmem>>, vector<1x1x8x128xf32>
    %1104 = vector.shape_cast %1103 : vector<1x1x8x128xf32> to vector<8x128xf32>
    %1105 = vector.shape_cast %1104 : vector<8x128xf32> to vector<1x8x128xf32>
    %1106 = vector.broadcast %1105 : vector<1x8x128xf32> to vector<8x8x128xf32>
    %1107 = arith.mulf %1106, %1102 : vector<8x8x128xf32>
    %1108 = arith.addf %1100, %1107 : vector<8x8x128xf32>
    %c1_1142 = arith.constant 1 : index
    %c4_1143 = arith.constant 4 : index
    %c0_1144 = arith.constant 0 : index
    %c0_1145 = arith.constant 0 : index
    %1109 = vector.load %arg4[%c1_1142, %c4_1143, %c0_1144, %c0_1145] : memref<2x16x8x128xf32, #tpu.memory_space<vmem>>, vector<1x8x8x128xf32>
    %1110 = vector.shape_cast %1109 : vector<1x8x8x128xf32> to vector<8x8x128xf32>
    %c7_1146 = arith.constant 7 : index
    %c4_1147 = arith.constant 4 : index
    %c0_1148 = arith.constant 0 : index
    %c0_1149 = arith.constant 0 : index
    %1111 = vector.load %arg2[%c7_1146, %c4_1147, %c0_1148, %c0_1149] : memref<8x8x8x128xf32, #tpu.memory_space<vmem>>, vector<1x1x8x128xf32>
    %1112 = vector.shape_cast %1111 : vector<1x1x8x128xf32> to vector<8x128xf32>
    %1113 = vector.shape_cast %1112 : vector<8x128xf32> to vector<1x8x128xf32>
    %1114 = vector.broadcast %1113 : vector<1x8x128xf32> to vector<8x8x128xf32>
    %1115 = arith.mulf %1114, %1110 : vector<8x8x128xf32>
    %1116 = arith.addf %1108, %1115 : vector<8x8x128xf32>
    %c1_1150 = arith.constant 1 : index
    %c3_1151 = arith.constant 3 : index
    %c0_1152 = arith.constant 0 : index
    %c0_1153 = arith.constant 0 : index
    %1117 = vector.load %arg4[%c1_1150, %c3_1151, %c0_1152, %c0_1153] : memref<2x16x8x128xf32, #tpu.memory_space<vmem>>, vector<1x8x8x128xf32>
    %1118 = vector.shape_cast %1117 : vector<1x8x8x128xf32> to vector<8x8x128xf32>
    %c7_1154 = arith.constant 7 : index
    %c5_1155 = arith.constant 5 : index
    %c0_1156 = arith.constant 0 : index
    %c0_1157 = arith.constant 0 : index
    %1119 = vector.load %arg2[%c7_1154, %c5_1155, %c0_1156, %c0_1157] : memref<8x8x8x128xf32, #tpu.memory_space<vmem>>, vector<1x1x8x128xf32>
    %1120 = vector.shape_cast %1119 : vector<1x1x8x128xf32> to vector<8x128xf32>
    %1121 = vector.shape_cast %1120 : vector<8x128xf32> to vector<1x8x128xf32>
    %1122 = vector.broadcast %1121 : vector<1x8x128xf32> to vector<8x8x128xf32>
    %1123 = arith.mulf %1122, %1118 : vector<8x8x128xf32>
    %1124 = arith.addf %1116, %1123 : vector<8x8x128xf32>
    %c1_1158 = arith.constant 1 : index
    %c2_1159 = arith.constant 2 : index
    %c0_1160 = arith.constant 0 : index
    %c0_1161 = arith.constant 0 : index
    %1125 = vector.load %arg4[%c1_1158, %c2_1159, %c0_1160, %c0_1161] : memref<2x16x8x128xf32, #tpu.memory_space<vmem>>, vector<1x8x8x128xf32>
    %1126 = vector.shape_cast %1125 : vector<1x8x8x128xf32> to vector<8x8x128xf32>
    %c7_1162 = arith.constant 7 : index
    %c6_1163 = arith.constant 6 : index
    %c0_1164 = arith.constant 0 : index
    %c0_1165 = arith.constant 0 : index
    %1127 = vector.load %arg2[%c7_1162, %c6_1163, %c0_1164, %c0_1165] : memref<8x8x8x128xf32, #tpu.memory_space<vmem>>, vector<1x1x8x128xf32>
    %1128 = vector.shape_cast %1127 : vector<1x1x8x128xf32> to vector<8x128xf32>
    %1129 = vector.shape_cast %1128 : vector<8x128xf32> to vector<1x8x128xf32>
    %1130 = vector.broadcast %1129 : vector<1x8x128xf32> to vector<8x8x128xf32>
    %1131 = arith.mulf %1130, %1126 : vector<8x8x128xf32>
    %1132 = arith.addf %1124, %1131 : vector<8x8x128xf32>
    %c1_1166 = arith.constant 1 : index
    %c1_1167 = arith.constant 1 : index
    %c0_1168 = arith.constant 0 : index
    %c0_1169 = arith.constant 0 : index
    %1133 = vector.load %arg4[%c1_1166, %c1_1167, %c0_1168, %c0_1169] : memref<2x16x8x128xf32, #tpu.memory_space<vmem>>, vector<1x8x8x128xf32>
    %1134 = vector.shape_cast %1133 : vector<1x8x8x128xf32> to vector<8x8x128xf32>
    %c7_1170 = arith.constant 7 : index
    %c7_1171 = arith.constant 7 : index
    %c0_1172 = arith.constant 0 : index
    %c0_1173 = arith.constant 0 : index
    %1135 = vector.load %arg2[%c7_1170, %c7_1171, %c0_1172, %c0_1173] : memref<8x8x8x128xf32, #tpu.memory_space<vmem>>, vector<1x1x8x128xf32>
    %1136 = vector.shape_cast %1135 : vector<1x1x8x128xf32> to vector<8x128xf32>
    %1137 = vector.shape_cast %1136 : vector<8x128xf32> to vector<1x8x128xf32>
    %1138 = vector.broadcast %1137 : vector<1x8x128xf32> to vector<8x8x128xf32>
    %1139 = arith.mulf %1138, %1134 : vector<8x8x128xf32>
    %1140 = arith.addf %1132, %1139 : vector<8x8x128xf32>
    %c1_1174 = arith.constant 1 : index
    %c0_1175 = arith.constant 0 : index
    %c8_1176 = arith.constant 8 : index
    %c0_1177 = arith.constant 0 : index
    %1141 = vector.load %arg5[%c1_1174, %c0_1175, %c8_1176, %c0_1177] : memref<2x8x16x128xf32, #tpu.memory_space<vmem>>, vector<1x8x8x128xf32>
    %1142 = vector.shape_cast %1141 : vector<1x8x8x128xf32> to vector<8x8x128xf32>
    %1143 = vector.shape_cast %1140 : vector<8x8x128xf32> to vector<1x8x8x128xf32>
    tpu.vector_store %arg5[%c1_1174, %c0_1175, %c8_1176, %c0_1177], %1143 {strides = array<i32>} : memref<2x8x16x128xf32, #tpu.memory_space<vmem>>, vector<1x8x8x128xf32>,
    %c1_1178 = arith.constant 1 : index
    %c0_1179 = arith.constant 0 : index
    %c1_1180 = arith.constant 1 : index
    %c0_1181 = arith.constant 0 : index
    %1144 = vector.load %arg5[%c1_1178, %c0_1179, %c1_1180, %c0_1181] : memref<2x8x16x128xf32, #tpu.memory_space<vmem>>, vector<1x8x8x128xf32>
    %1145 = vector.shape_cast %1144 : vector<1x8x8x128xf32> to vector<8x8x128xf32>
    %1146 = arith.addf %1075, %1145 : vector<8x8x128xf32>
    %c1_1182 = arith.constant 1 : index
    %c0_1183 = arith.constant 0 : index
    %c0_1184 = arith.constant 0 : index
    %c0_1185 = arith.constant 0 : index
    %1147 = vector.load %arg3[%c1_1182, %c0_1183, %c0_1184, %c0_1185] : memref<2x8x8x128xf32, #tpu.memory_space<vmem>>, vector<1x8x8x128xf32>
    %1148 = vector.shape_cast %1147 : vector<1x8x8x128xf32> to vector<8x8x128xf32>
    %1149 = vector.shape_cast %1146 : vector<8x8x128xf32> to vector<1x8x8x128xf32>
    tpu.vector_store %arg3[%c1_1182, %c0_1183, %c0_1184, %c0_1185], %1149 {strides = array<i32>} : memref<2x8x8x128xf32, #tpu.memory_space<vmem>>, vector<1x8x8x128xf32>,
    return
  }
  func.func @transform_0(%arg0: i32) -> (i32, i32, i32, i32) {
    %c0_i32 = arith.constant 0 : i32
    %c0_i32_0 = arith.constant 0 : i32
    %c0_i32_1 = arith.constant 0 : i32
    %c0_i32_2 = arith.constant 0 : i32
    return %arg0, %c0_i32, %c0_i32_0, %c0_i32_1 : i32, i32, i32, i32
  }
  func.func @transform_1(%arg0: i32) -> (i32, i32, i32, i32) {
    %c0_i32 = arith.constant 0 : i32
    %c0_i32_0 = arith.constant 0 : i32
    %c0_i32_1 = arith.constant 0 : i32
    %c0_i32_2 = arith.constant 0 : i32
    %c0_i32_3 = arith.constant 0 : i32
    return %c0_i32, %c0_i32_0, %c0_i32_1, %c0_i32_2 : i32, i32, i32, i32
  }
  func.func @transform_2(%arg0: i32) -> (i32, i32, i32, i32) {
    %c0_i32 = arith.constant 0 : i32
    %c0_i32_0 = arith.constant 0 : i32
    %c0_i32_1 = arith.constant 0 : i32
    %c0_i32_2 = arith.constant 0 : i32
    return %arg0, %c0_i32, %c0_i32_0, %c0_i32_1 : i32, i32, i32, i32
  }
}

</mosaic_0001>

<bundles_post_ra>
// kernel: custom-call
= control target key start
LH: loop header
LB: loop body
LE: loop exit
PB: predicated region body
PF: predicated region fallthrough
CT: control target
= control target key end

     0   :  { %s6_s0 = inlined_call_operand.vmem [shape: f32[7,8,32], index: 0, kind: output, shape index: {}]  }

// kernel: tile.29
= control target key start
LH: loop header
LB: loop body
LE: loop exit
PB: predicated region body
PF: predicated region fallthrough
CT: control target
= control target key end

     0   :  { %vm260_vm0 = vcmask 1047556   ;;  %s682_s15 = smov 24   ;;  %s683_s9 = smov 16   ;;  %vm262_vm1 = vcmask 64512   ;;  %vm335_vm2 = vcmask 261312   ;;  %vm422_vm3 = vcmask 195712   ;;  %s1071_s0 = inlined_call_operand.vmem [shape: f32[8,8,4,8], index: 0, kind: input, shape index: {}]   ;;  %s1072_s1 = inlined_call_operand.vmem [shape: f32[8,8,32], index: 1, kind: output, shape index: {}]  }
   0x1   :  { %v644_v0 = vld [vmem:[%s1071_s0 + $0x1c] sm:$0xf]  ;;  %v645_v1 = vld [vmem:[%s1071_s0 + $0x18] sm:$0xf]  ;;  %v646_v2 = vld [vmem:[%s1071_s0 + $0x14] sm:$0xf] }
   0x2   :  { %231 = vst [vmem:[#allocation0 + $0x38] sm:$0xf] %v644_v0  ;;  %v647_v3 = vld [vmem:[%s1071_s0 + $0x10] sm:$0xf]  ;;  %v648_v4 = vld [vmem:[%s1071_s0 + $0xc] sm:$0xf] }
   0x3   :  { %235 = vst [vmem:[#allocation0 + $0x30] sm:$0xf] %v645_v1  ;;  %v649_v5 = vld [vmem:[%s1071_s0 + $0x8] sm:$0xf]  ;;  %v650_v6 = vld [vmem:[%s1071_s0 + $0x4] sm:$0xf] }
   0x4   :  { %239 = vst [vmem:[#allocation0 + $0x28] sm:$0xf] %v646_v2  ;;  %v256_v7 = vld [vmem:[%s1071_s0] sm:$0xf]  ;;  %v636_v8 = vld [vmem:[%s1071_s0 + $0x3c] sm:$0xf] }
   0x5   :  { %243 = vst [vmem:[#allocation0 + $0x20] sm:$0xf] %v647_v3  ;;  %v637_v9 = vld [vmem:[%s1071_s0 + $0x38] sm:$0xf]  ;;  %v638_v10 = vld [vmem:[%s1071_s0 + $0x34] sm:$0xf] }
   0x6   :  { %247 = vst [vmem:[#allocation0 + $0x18] sm:$0xf] %v648_v4  ;;  %v639_v11 = vld [vmem:[%s1071_s0 + $0x30] sm:$0xf]  ;;  %v640_v12 = vld [vmem:[%s1071_s0 + $0x2c] sm:$0xf] }
   0x7   :  { %251 = vst [vmem:[#allocation0 + $0x10] sm:$0xf] %v649_v5  ;;  %v641_v13 = vld [vmem:[%s1071_s0 + $0x28] sm:$0xf]  ;;  %v642_v14 = vld [vmem:[%s1071_s0 + $0x24] sm:$0xf] }
   0x8   :  { %255 = vst [vmem:[#allocation0 + $0x8] sm:$0xf] %v650_v6  ;;  %v643_v15 = vld [vmem:[%s1071_s0 + $0x20] sm:$0xf]  ;;  %v612_v17 = vld [vmem:[%s1071_s0 + $0x9c] sm:$0xf] }
   0x9   :  { %257 = vst [vmem:[#allocation0] sm:$0xf] %v256_v7  ;;  %v613_v18 = vld [vmem:[%s1071_s0 + $0x98] sm:$0xf]  ;;  %v614_v21 = vld [vmem:[%s1071_s0 + $0x94] sm:$0xf] }
   0xa   :  { %199 = vst [vmem:[#allocation0 + $0x78] sm:$0xf] %v636_v8  ;;  %v615_v22 = vld [vmem:[%s1071_s0 + $0x90] sm:$0xf]  ;;  %v616_v23 = vld [vmem:[%s1071_s0 + $0x8c] sm:$0xf] }
   0xb   :  { %203 = vst [vmem:[#allocation0 + $0x70] sm:$0xf] %v637_v9  ;;  %v617_v24 = vld [vmem:[%s1071_s0 + $0x88] sm:$0xf]  ;;  %v618_v25 = vld [vmem:[%s1071_s0 + $0x84] sm:$0xf] }
   0xc   :  { %207 = vst [vmem:[#allocation0 + $0x68] sm:$0xf] %v638_v10  ;;  %v330_v16 = vld [vmem:[#allocation0 + $0x3] ss:$8 sm:$0xf0]   ;;  %vm509_vm4 = vcmask 130112  }
   0xd   :  { %211 = vst [vmem:[#allocation0 + $0x60] sm:$0xf] %v639_v11  ;;  %v619_v26 = vld [vmem:[%s1071_s0 + $0x80] sm:$0xf]  ;;  %v604_v28 = vld [vmem:[%s1071_s0 + $0xbc] sm:$0xf] }
   0xe   :  { %215 = vst [vmem:[#allocation0 + $0x58] sm:$0xf] %v640_v12  ;;  %v605_v29 = vld [vmem:[%s1071_s0 + $0xb8] sm:$0xf]  ;;  %v606_v32 = vld [vmem:[%s1071_s0 + $0xb4] sm:$0xf] }
   0xf   :  { %219 = vst [vmem:[#allocation0 + $0x50] sm:$0xf] %v641_v13  ;;  %v607_v33 = vld [vmem:[%s1071_s0 + $0xb0] sm:$0xf]  ;;  %v608_v34 = vld [vmem:[%s1071_s0 + $0xac] sm:$0xf] }
  0x10   :  { %v328_v19 = vld [vmem:[#allocation0 + $0x3] ss:$8 sm:$0xf]   ;;  %223 = vst [vmem:[#allocation0 + $0x48] sm:$0xf] %v642_v14 }
  0x11   :  { %v332_v20 = vsel %vm260_vm0, %v330_v16, %v328_v19  ;;  %227 = vst [vmem:[#allocation0 + $0x40] sm:$0xf] %v643_v15  ;;  %v609_v35 = vld [vmem:[%s1071_s0 + $0xa8] sm:$0xf]  ;;  %v610_v36 = vld [vmem:[%s1071_s0 + $0xa4] sm:$0xf] }
  0x12   :  { %333 = vrot.lane.b32.xlu0 %v332_v20, %s682_s15  ;;  %103 = vst [vmem:[#allocation0 + $0x138] sm:$0xf] %v612_v17  ;;  %v611_v37 = vld [vmem:[%s1071_s0 + $0xa0] sm:$0xf]  ;;  %v620_v39 = vld [vmem:[%s1071_s0 + $0x7c] sm:$0xf] }
  0x13   :  { %107 = vst [vmem:[#allocation0 + $0x130] sm:$0xf] %v613_v18  ;;  %v621_v40 = vld [vmem:[%s1071_s0 + $0x78] sm:$0xf]  ;;  %v622_v43 = vld [vmem:[%s1071_s0 + $0x74] sm:$0xf] }
  0x14   :  { %111 = vst [vmem:[#allocation0 + $0x128] sm:$0xf] %v614_v21  ;;  %v351_v27 = vld [vmem:[#allocation0 + $0x43] ss:$8 sm:$0xf0]  }
  0x15   :  { %115 = vst [vmem:[#allocation0 + $0x120] sm:$0xf] %v615_v22  ;;  %v623_v44 = vld [vmem:[%s1071_s0 + $0x70] sm:$0xf]  ;;  %v624_v45 = vld [vmem:[%s1071_s0 + $0x6c] sm:$0xf] }
  0x16   :  { %119 = vst [vmem:[#allocation0 + $0x118] sm:$0xf] %v616_v23  ;;  %v625_v46 = vld [vmem:[%s1071_s0 + $0x68] sm:$0xf]  ;;  %v626_v47 = vld [vmem:[%s1071_s0 + $0x64] sm:$0xf] }
  0x17   :  { %123 = vst [vmem:[#allocation0 + $0x110] sm:$0xf] %v617_v24  ;;  %v627_v48 = vld [vmem:[%s1071_s0 + $0x60] sm:$0xf]  ;;  %v588_v50 = vld [vmem:[%s1071_s0 + $0xfc] sm:$0xf] }
  0x18   :  { %v349_v30 = vld [vmem:[#allocation0 + $0x43] ss:$8 sm:$0xf]   ;;  %127 = vst [vmem:[#allocation0 + $0x108] sm:$0xf] %v618_v25 }
  0x19   :  { %v353_v31 = vsel %vm260_vm0, %v351_v27, %v349_v30  ;;  %131 = vst [vmem:[#allocation0 + $0x100] sm:$0xf] %v619_v26  ;;  %v589_v51 = vld [vmem:[%s1071_s0 + $0xf8] sm:$0xf]  ;;  %v590_v54 = vld [vmem:[%s1071_s0 + $0xf4] sm:$0xf] }
  0x1a   :  { %354 = vrot.lane.b32.xlu1 %v353_v31, %s682_s15  ;;  %71 = vst [vmem:[#allocation0 + $0x178] sm:$0xf] %v604_v28  ;;  %v591_v55 = vld [vmem:[%s1071_s0 + $0xf0] sm:$0xf]  ;;  %v592_v56 = vld [vmem:[%s1071_s0 + $0xec] sm:$0xf] }
  0x1b   :  { %75 = vst [vmem:[#allocation0 + $0x170] sm:$0xf] %v605_v29  ;;  %v593_v57 = vld [vmem:[%s1071_s0 + $0xe8] sm:$0xf]  ;;  %v594_v58 = vld [vmem:[%s1071_s0 + $0xe4] sm:$0xf] }
  0x1c   :  { %79 = vst [vmem:[#allocation0 + $0x168] sm:$0xf] %v606_v32  ;;  %v340_v38 = vld [vmem:[#allocation0 + $0x103] ss:$8 sm:$0xf0]  }
  0x1d   :  { %83 = vst [vmem:[#allocation0 + $0x160] sm:$0xf] %v607_v33  ;;  %v595_v59 = vld [vmem:[%s1071_s0 + $0xe0] sm:$0xf]  ;;  %v628_v61 = vld [vmem:[%s1071_s0 + $0x5c] sm:$0xf] }
  0x1e   :  { %87 = vst [vmem:[#allocation0 + $0x158] sm:$0xf] %v608_v34  ;;  %v629_v62 = vld [vmem:[%s1071_s0 + $0x58] sm:$0xf]  ;;  %v630_v1 = vld [vmem:[%s1071_s0 + $0x54] sm:$0xf] }
  0x1f   :  { %91 = vst [vmem:[#allocation0 + $0x150] sm:$0xf] %v609_v35  ;;  %v631_v2 = vld [vmem:[%s1071_s0 + $0x50] sm:$0xf]  ;;  %v632_v3 = vld [vmem:[%s1071_s0 + $0x4c] sm:$0xf] }
  0x20   :  { %v338_v41 = vld [vmem:[#allocation0 + $0x103] ss:$8 sm:$0xf]   ;;  %95 = vst [vmem:[#allocation0 + $0x148] sm:$0xf] %v610_v36 }
  0x21   :  { %v342_v42 = vsel %vm260_vm0, %v340_v38, %v338_v41  ;;  %99 = vst [vmem:[#allocation0 + $0x140] sm:$0xf] %v611_v37  ;;  %v633_v4 = vld [vmem:[%s1071_s0 + $0x48] sm:$0xf]  ;;  %v634_v7 = vld [vmem:[%s1071_s0 + $0x44] sm:$0xf] }
  0x22   :  { %343 = vrot.lane.b32.xlu0 %v342_v42, %s682_s15  ;;  %135 = vst [vmem:[#allocation0 + $0xf8] sm:$0xf] %v620_v39  ;;  %v425_v5 = vld [vmem:[#allocation0 + $0x102] ss:$8 sm:$0xf]  }
  0x23   :  { %139 = vst [vmem:[#allocation0 + $0xf0] sm:$0xf] %v621_v40  ;;  %v427_v6 = vld [vmem:[#allocation0 + $0x102] ss:$8 sm:$0xf0]  }
  0x24   :  { %143 = vst [vmem:[#allocation0 + $0xe8] sm:$0xf] %v622_v43  ;;  %v362_v49 = vld [vmem:[#allocation0 + $0x143] ss:$8 sm:$0xf0]   ;;  %v429_v10 = vsel %vm260_vm0, %v427_v6, %v425_v5 }
  0x25   :  { %147 = vst [vmem:[#allocation0 + $0xe0] sm:$0xf] %v623_v44  ;;  %v635_v8 = vld [vmem:[%s1071_s0 + $0x40] sm:$0xf]  ;;  %v596_v11 = vld [vmem:[%s1071_s0 + $0xdc] sm:$0xf] }
  0x26   :  { %151 = vst [vmem:[#allocation0 + $0xd8] sm:$0xf] %v624_v45  ;;  %v597_v12 = vld [vmem:[%s1071_s0 + $0xd8] sm:$0xf]  ;;  %v598_v17 = vld [vmem:[%s1071_s0 + $0xd4] sm:$0xf] }
  0x27   :  { %155 = vst [vmem:[#allocation0 + $0xd0] sm:$0xf] %v625_v46  ;;  %v436_v15 = vld [vmem:[#allocation0 + $0x42] ss:$8 sm:$0xf]  }
  0x28   :  { %v360_v52 = vld [vmem:[#allocation0 + $0x143] ss:$8 sm:$0xf]   ;;  %159 = vst [vmem:[#allocation0 + $0xc8] sm:$0xf] %v626_v47 }
  0x29   :  { %v364_v53 = vsel %vm260_vm0, %v362_v49, %v360_v52  ;;  %163 = vst [vmem:[#allocation0 + $0xc0] sm:$0xf] %v627_v48  ;;  %v438_v16 = vld [vmem:[#allocation0 + $0x42] ss:$8 sm:$0xf0]  }
  0x2a   :  { %365 = vrot.lane.b32.xlu1 %v364_v53, %s682_s15  ;;  %7 = vst [vmem:[#allocation0 + $0x1f8] sm:$0xf] %v588_v50  ;;  %v599_v18 = vld [vmem:[%s1071_s0 + $0xd0] sm:$0xf]  ;;  %v600_v19 = vld [vmem:[%s1071_s0 + $0xcc] sm:$0xf]  ;;  %v440_v23 = vsel %vm260_vm0, %v438_v16, %v436_v15 }
  0x2b   :  { %11 = vst [vmem:[#allocation0 + $0x1f0] sm:$0xf] %v589_v51  ;;  %v601_v20 = vld [vmem:[%s1071_s0 + $0xc8] sm:$0xf]  ;;  %v602_v24 = vld [vmem:[%s1071_s0 + $0xc4] sm:$0xf] }
  0x2c   :  { %15 = vst [vmem:[#allocation0 + $0x1e8] sm:$0xf] %v590_v54  ;;  %v395_v60 = vld [vmem:[#allocation0 + $0xc3] ss:$8 sm:$0xf0]  }
  0x2d   :  { %19 = vst [vmem:[#allocation0 + $0x1e0] sm:$0xf] %v591_v55  ;;  %v603_v25 = vld [vmem:[%s1071_s0 + $0xc0] sm:$0xf]  ;;  %s684_s0 = smov 8  }
  0x2e   :  { %23 = vst [vmem:[#allocation0 + $0x1d8] sm:$0xf] %v592_v56  ;;  %v415_v39 = vld [vmem:[#allocation0 + $0x2] ss:$8 sm:$0xf]  }
  0x2f   :  { %27 = vst [vmem:[#allocation0 + $0x1d0] sm:$0xf] %v593_v57  ;;  %v417_v40 = vld [vmem:[#allocation0 + $0x2] ss:$8 sm:$0xf0]  }
  0x30   :  { %v393_v63 = vld [vmem:[#allocation0 + $0xc3] ss:$8 sm:$0xf]   ;;  %31 = vst [vmem:[#allocation0 + $0x1c8] sm:$0xf] %v594_v58  ;;  %v419_v46 = vsel %vm260_vm0, %v417_v40, %v415_v39 }
  0x31   :  { %v397_v0 = vsel %vm260_vm0, %v395_v60, %v393_v63  ;;  %35 = vst [vmem:[#allocation0 + $0x1c0] sm:$0xf] %v595_v59  ;;  %v523_v41 = vld [vmem:[#allocation0 + $0x41] ss:$8 sm:$0xf]  }
  0x32   :  { %398 = vrot.lane.b32.xlu0 %v397_v0, %s682_s15  ;;  %167 = vst [vmem:[#allocation0 + $0xb8] sm:$0xf] %v628_v61  ;;  %v525_v42 = vld [vmem:[#allocation0 + $0x41] ss:$8 sm:$0xf0]  }
  0x33   :  { %171 = vst [vmem:[#allocation0 + $0xb0] sm:$0xf] %v629_v62  ;;  %v502_v43 = vld [vmem:[#allocation0 + $0x1] ss:$8 sm:$0xf]   ;;  %v527_v45 = vsel %vm260_vm0, %v525_v42, %v523_v41 }
  0x34   :  { %175 = vst [vmem:[#allocation0 + $0xa8] sm:$0xf] %v630_v1  ;;  %v406_v9 = vld [vmem:[#allocation0 + $0x1c3] ss:$8 sm:$0xf0]  }
  0x35   :  { %179 = vst [vmem:[#allocation0 + $0xa0] sm:$0xf] %v631_v2  ;;  %v493_v31 = vld [vmem:[#allocation0 + $0x1c2] ss:$8 sm:$0xf0]  }
  0x36   :  { %183 = vst [vmem:[#allocation0 + $0x98] sm:$0xf] %v632_v3  ;;  %v504_v44 = vld [vmem:[#allocation0 + $0x1] ss:$8 sm:$0xf0]  }
  0x37   :  { %187 = vst [vmem:[#allocation0 + $0x90] sm:$0xf] %v633_v4  ;;  %v506_v47 = vsel %vm260_vm0, %v504_v44, %v502_v43  ;;  %v447_v48 = vld [vmem:[#allocation0 + $0x142] ss:$8 sm:$0xf]  }
  0x38   :  { %v404_v13 = vld [vmem:[#allocation0 + $0x1c3] ss:$8 sm:$0xf]   ;;  %191 = vst [vmem:[#allocation0 + $0x88] sm:$0xf] %v634_v7 }
  0x39   :  { %v408_v14 = vsel %vm260_vm0, %v406_v9, %v404_v13  ;;  %195 = vst [vmem:[#allocation0 + $0x80] sm:$0xf] %v635_v8  ;;  %v491_v30 = vld [vmem:[#allocation0 + $0x1c2] ss:$8 sm:$0xf]  }
  0x3a   :  { %409 = vrot.lane.b32.xlu1 %v408_v14, %s682_s15  ;;  %430 = vrot.lane.b32.xlu0 %v429_v10, %s683_s9  ;;  %39 = vst [vmem:[#allocation0 + $0x1b8] sm:$0xf] %v596_v11  ;;  %v495_v34 = vsel %vm260_vm0, %v493_v31, %v491_v30  ;;  %v449_v49 = vld [vmem:[#allocation0 + $0x142] ss:$8 sm:$0xf0]  }
  0x3b   :  { %43 = vst [vmem:[#allocation0 + $0x1b0] sm:$0xf] %v597_v12  ;;  %v534_v52 = vld [vmem:[#allocation0 + $0x141] ss:$8 sm:$0xf]   ;;  %v451_v55 = vsel %vm260_vm0, %v449_v49, %v447_v48 }
  0x3c   :  { %v373_v21 = vld [vmem:[#allocation0 + $0x83] ss:$8 sm:$0xf0]   ;;  %47 = vst [vmem:[#allocation0 + $0x1a8] sm:$0xf] %v598_v17 }
  0x3d   :  { %v460_v22 = vld [vmem:[#allocation0 + $0x82] ss:$8 sm:$0xf0]   ;;  %51 = vst [vmem:[#allocation0 + $0x1a0] sm:$0xf] %v599_v18 }
  0x3e   :  { %55 = vst [vmem:[#allocation0 + $0x198] sm:$0xf] %v600_v19  ;;  %v536_v53 = vld [vmem:[#allocation0 + $0x141] ss:$8 sm:$0xf0]  }
  0x3f   :  { %59 = vst [vmem:[#allocation0 + $0x190] sm:$0xf] %v601_v20  ;;  %v538_v56 = vsel %vm260_vm0, %v536_v53, %v534_v52  ;;  %v480_v57 = vld [vmem:[#allocation0 + $0xc2] ss:$8 sm:$0xf]  }
  0x40   :  { %v371_v26 = vld [vmem:[#allocation0 + $0x83] ss:$8 sm:$0xf]   ;;  %v458_v27 = vld [vmem:[#allocation0 + $0x82] ss:$8 sm:$0xf]  }
  0x41   :  { %v375_v28 = vsel %vm260_vm0, %v373_v21, %v371_v26  ;;  %v462_v29 = vsel %vm260_vm0, %v460_v22, %v458_v27  ;;  %63 = vst [vmem:[#allocation0 + $0x188] sm:$0xf] %v602_v24  ;;  %v482_v58 = vld [vmem:[#allocation0 + $0xc2] ss:$8 sm:$0xf0]  }
  0x42   :  { %376 = vrot.lane.b32.xlu2 %v375_v28, %s682_s15  ;;  %441 = vrot.lane.b32.xlu1 %v440_v23, %s683_s9  ;;  %67 = vst [vmem:[#allocation0 + $0x180] sm:$0xf] %v603_v25  ;;  %v567_v59 = vld [vmem:[#allocation0 + $0xc1] ss:$8 sm:$0xf]   ;;  %v484_v61 = vsel %vm260_vm0, %v482_v58, %v480_v57 }
  0x43   :  { %463 = vrot.lane.b32.xlu0 %v462_v29, %s683_s9  ;;  %v569_v60 = vld [vmem:[#allocation0 + $0xc1] ss:$8 sm:$0xf0]   ;;  %v258_v63 = vld [vmem:[#allocation0] ss:$8 sm:$0xf]  }
  0x44   :  { %v384_v32 = vld [vmem:[#allocation0 + $0x183] ss:$8 sm:$0xf0]   ;;  %v471_v33 = vld [vmem:[#allocation0 + $0x182] ss:$8 sm:$0xf0]   ;;  %v571_v62 = vsel %vm260_vm0, %v569_v60, %v567_v59 }
  0x45   :  { %v558_v51 = vld [vmem:[#allocation0 + $0x181] ss:$8 sm:$0xf0]   ;;  %v259_v0 = vld [vmem:[#allocation0] ss:$8 sm:$0xf0]  }
  0x46   :  { %v512_v1 = vld [vmem:[#allocation0 + $0x101] ss:$8 sm:$0xf]   ;;  %v261_v2 = vsel %vm260_vm0, %v259_v0, %v258_v63  ;;  %v265_v5 = vld [vmem:[#allocation0 + $0x40] ss:$8 sm:$0xf]  }
  0x47   :  { %v514_v3 = vld [vmem:[#allocation0 + $0x101] ss:$8 sm:$0xf0]   ;;  %263 = vst.msk [vmem:[%s1072_s1] sm:$0xff] %vm262_vm1, %v261_v2  }
  0x48   :  { %v516_v4 = vsel %vm260_vm0, %v514_v3, %v512_v1  ;;  %v267_v6 = vld [vmem:[#allocation0 + $0x40] ss:$8 sm:$0xf0]   ;;  %v545_v7 = vld [vmem:[#allocation0 + $0x81] ss:$8 sm:$0xf]  }
  0x49   :  { %v382_v35 = vld [vmem:[#allocation0 + $0x183] ss:$8 sm:$0xf]   ;;  %v469_v36 = vld [vmem:[#allocation0 + $0x182] ss:$8 sm:$0xf]   ;;  %v269_v8 = vsel %vm260_vm0, %v267_v6, %v265_v5 }
  0x4a   :  { %v386_v37 = vsel %vm260_vm0, %v384_v32, %v382_v35  ;;  %v473_v38 = vsel %vm260_vm0, %v471_v33, %v469_v36  ;;  %v556_v50 = vld [vmem:[#allocation0 + $0x181] ss:$8 sm:$0xf]   ;;  %651 = vst.msk [vmem:[%s1072_s1 + $0x8] sm:$0xff] %vm262_vm1, %v269_v8  }
  0x4b   :  { %496 = vrot.lane.b32.xlu0 %v495_v34, %s683_s9  ;;  %387 = vrot.lane.b32.xlu2 %v386_v37, %s682_s15  ;;  %v560_v54 = vsel %vm260_vm0, %v558_v51, %v556_v50  ;;  %v547_v9 = vld [vmem:[#allocation0 + $0x81] ss:$8 sm:$0xf0]   ;;  %v274_v14 = vld [vmem:[#allocation0 + $0x80] ss:$8 sm:$0xf]  }
  0x4c   :  { %474 = vrot.lane.b32.xlu1 %v473_v38, %s683_s9  ;;  %v549_v10 = vsel %vm260_vm0, %v547_v9, %v545_v7  ;;  %v578_v11 = vld [vmem:[#allocation0 + $0x1c1] ss:$8 sm:$0xf]   ;;  %v276_v15 = vld [vmem:[#allocation0 + $0x80] ss:$8 sm:$0xf0]  }
  0x4d   :  { %v580_v12 = vld [vmem:[#allocation0 + $0x1c1] ss:$8 sm:$0xf0]   ;;  %v278_v16 = vsel %vm260_vm0, %v276_v15, %v274_v14  ;;  %v292_v17 = vld [vmem:[#allocation0 + $0x100] ss:$8 sm:$0xf]  }
  0x4e   :  { %v582_v13 = vsel %vm260_vm0, %v580_v12, %v578_v11  ;;  %v294_v18 = vld [vmem:[#allocation0 + $0x100] ss:$8 sm:$0xf0]   ;;  %652 = vst.msk [vmem:[%s1072_s1 + $0x10] sm:$0xff] %vm262_vm1, %v278_v16  }
  0x4f   :  { %v296_v19 = vsel %vm260_vm0, %v294_v18, %v292_v17  ;;  %v301_v20 = vld [vmem:[#allocation0 + $0x140] ss:$8 sm:$0xf]  }
  0x50   :  { %654 = vst.msk [vmem:[%s1072_s1 + $0x20] sm:$0xff] %vm262_vm1, %v296_v19   ;;  %v303_v21 = vld [vmem:[#allocation0 + $0x140] ss:$8 sm:$0xf0]  }
  0x51   :  { %v305_v22 = vsel %vm260_vm0, %v303_v21, %v301_v20  ;;  %v310_v23 = vld [vmem:[#allocation0 + $0x180] ss:$8 sm:$0xf]  }
  0x52   :  { %655 = vst.msk [vmem:[%s1072_s1 + $0x28] sm:$0xff] %vm262_vm1, %v305_v22   ;;  %v312_v25 = vld [vmem:[#allocation0 + $0x180] ss:$8 sm:$0xf0]  }
  0x53   :  { %528 = vrot.lane.b32.xlu0 %v527_v45, %s684_s0  ;;  %420 = vrot.lane.b32.xlu2 %v419_v46, %s683_s9  ;;  %v314_v26 = vsel %vm260_vm0, %v312_v25, %v310_v23  ;;  %v283_v27 = vld [vmem:[#allocation0 + $0xc0] ss:$8 sm:$0xf]  }
  0x54   :  { %507 = vrot.lane.b32.xlu1 %v506_v47, %s684_s0  ;;  %656 = vst.msk [vmem:[%s1072_s1 + $0x30] sm:$0xff] %vm262_vm1, %v314_v26   ;;  %v285_v28 = vld [vmem:[#allocation0 + $0xc0] ss:$8 sm:$0xf0]  }
  0x55   :  { %v287_v29 = vsel %vm260_vm0, %v285_v28, %v283_v27  ;;  %v319_v31 = vld [vmem:[#allocation0 + $0x1c0] ss:$8 sm:$0xf]  }
  0x56   :  { %653 = vst.msk [vmem:[%s1072_s1 + $0x18] sm:$0xff] %vm262_vm1, %v287_v29   ;;  %v321_v32 = vld [vmem:[#allocation0 + $0x1c0] ss:$8 sm:$0xf0]  }
  0x57   :  { %v323_v33 = vsel %vm260_vm0, %v321_v32, %v319_v31 }
  0x58   :  { %657 = vst.msk [vmem:[%s1072_s1 + $0x38] sm:$0xff] %vm262_vm1, %v323_v33  }
  0x5b   :  { %561 = vrot.lane.b32.xlu0 %v560_v54, %s684_s0  ;;  %452 = vrot.lane.b32.xlu2 %v451_v55, %s683_s9 }
  0x5c   :  { %539 = vrot.lane.b32.xlu1 %v538_v56, %s684_s0 }
  0x63   :  { %485 = vrot.lane.b32.xlu2 %v484_v61, %s683_s9 }
  0x64   :  { %572 = vrot.lane.b32.xlu1 %v571_v62, %s684_s0 }
  0x6b   :  { %517 = vrot.lane.b32.xlu2 %v516_v4, %s684_s0 }
  0x73   :  { %550 = vrot.lane.b32.xlu2 %v549_v10, %s684_s0 }
  0x7b   :  { %583 = vrot.lane.b32.xlu2 %v582_v13, %s684_s0 }
  0x84   :  { %v334_v24 = vpop.permute.xlu0 %333  }
  0x85   :  { %336 = vst.msk [vmem:[%s1072_s1] sm:$0xff] %vm335_vm2, %v334_v24  }
  0x8c   :  { %v355_v30 = vpop.permute.xlu1 %354  }
  0x8d   :  { %659 = vst.msk [vmem:[%s1072_s1 + $0x8] sm:$0xff] %vm335_vm2, %v355_v30  }
  0x94   :  { %v344_v34 = vpop.permute.xlu0 %343  }
  0x95   :  { %658 = vst.msk [vmem:[%s1072_s1 + $0x20] sm:$0xff] %vm335_vm2, %v344_v34  }
  0x9c   :  { %v377_v35 = vpop.permute.xlu2 %376   ;;  %v366_v36 = vpop.permute.xlu1 %365  }
  0x9d   :  { %661 = vst.msk [vmem:[%s1072_s1 + $0x10] sm:$0xff] %vm335_vm2, %v377_v35  }
  0x9e   :  { %660 = vst.msk [vmem:[%s1072_s1 + $0x28] sm:$0xff] %vm335_vm2, %v366_v36  }
  0xa4   :  { %v399_v37 = vpop.permute.xlu0 %398  }
  0xa5   :  { %663 = vst.msk [vmem:[%s1072_s1 + $0x18] sm:$0xff] %vm335_vm2, %v399_v37   ;;  %v388_v38 = vpop.permute.xlu2 %387  }
  0xa6   :  { %662 = vst.msk [vmem:[%s1072_s1 + $0x30] sm:$0xff] %vm335_vm2, %v388_v38  }
  0xac   :  { %v410_v39 = vpop.permute.xlu1 %409   ;;  %v431_v40 = vpop.permute.xlu0 %430  }
  0xad   :  { %664 = vst.msk [vmem:[%s1072_s1 + $0x38] sm:$0xff] %vm335_vm2, %v410_v39   ;;  %v421_v41 = vpop.permute.xlu2 %420  }
  0xae   :  { %665 = vst.msk [vmem:[%s1072_s1 + $0x20] sm:$0xff] %vm422_vm3, %v431_v40  }
  0xaf   :  { %423 = vst.msk [vmem:[%s1072_s1] sm:$0xff] %vm422_vm3, %v421_v41  }
  0xb4   :  { %v442_v42 = vpop.permute.xlu1 %441  }
  0xb5   :  { %666 = vst.msk [vmem:[%s1072_s1 + $0x8] sm:$0xff] %vm422_vm3, %v442_v42   ;;  %v464_v43 = vpop.permute.xlu0 %463   ;;  %v453_v44 = vpop.permute.xlu2 %452  }
  0xb6   :  { %668 = vst.msk [vmem:[%s1072_s1 + $0x10] sm:$0xff] %vm422_vm3, %v464_v43  }
  0xb7   :  { %667 = vst.msk [vmem:[%s1072_s1 + $0x28] sm:$0xff] %vm422_vm3, %v453_v44  }
  0xbd   :  { %v497_v45 = vpop.permute.xlu0 %496   ;;  %v486_v46 = vpop.permute.xlu2 %485  }
  0xbe   :  { %v475_v47 = vpop.permute.xlu1 %474   ;;  %671 = vst.msk [vmem:[%s1072_s1 + $0x38] sm:$0xff] %vm422_vm3, %v497_v45  }
  0xbf   :  { %670 = vst.msk [vmem:[%s1072_s1 + $0x18] sm:$0xff] %vm422_vm3, %v486_v46  }
  0xc0   :  { %669 = vst.msk [vmem:[%s1072_s1 + $0x30] sm:$0xff] %vm422_vm3, %v475_v47  }
  0xc5   :  { %v529_v48 = vpop.permute.xlu0 %528   ;;  %v518_v49 = vpop.permute.xlu2 %517  }
  0xc6   :  { %v508_v50 = vpop.permute.xlu1 %507   ;;  %673 = vst.msk [vmem:[%s1072_s1 + $0x8] sm:$0xff] %vm509_vm4, %v529_v48  }
  0xc7   :  { %672 = vst.msk [vmem:[%s1072_s1 + $0x20] sm:$0xff] %vm509_vm4, %v518_v49  }
  0xc8   :  { %510 = vst.msk [vmem:[%s1072_s1] sm:$0xff] %vm509_vm4, %v508_v50  }
  0xcd   :  { %v562_v51 = vpop.permute.xlu0 %561   ;;  %v551_v52 = vpop.permute.xlu2 %550  }
  0xce   :  { %v540_v53 = vpop.permute.xlu1 %539   ;;  %676 = vst.msk [vmem:[%s1072_s1 + $0x30] sm:$0xff] %vm509_vm4, %v562_v51  }
  0xcf   :  { %675 = vst.msk [vmem:[%s1072_s1 + $0x10] sm:$0xff] %vm509_vm4, %v551_v52  }
  0xd0   :  { %674 = vst.msk [vmem:[%s1072_s1 + $0x28] sm:$0xff] %vm509_vm4, %v540_v53  }
  0xd5   :  { %v584_v54 = vpop.permute.xlu2 %583  }
  0xd6   :  { %v573_v55 = vpop.permute.xlu1 %572   ;;  %678 = vst.msk [vmem:[%s1072_s1 + $0x38] sm:$0xff] %vm509_vm4, %v584_v54  }
  0xd7   :  { %677 = vst.msk [vmem:[%s1072_s1 + $0x18] sm:$0xff] %vm509_vm4, %v573_v55  }

// kernel: two_d_ssm_forward.1
= control target key start
LH: loop header
LB: loop body
LE: loop exit
PB: predicated region body
PF: predicated region fallthrough
CT: control target
= control target key end

     0   :  { %v3912_v0 = vmov 0.0   ;;  %s6762_s0 = inlined_call_operand.vmem [shape: f32[2,8,8,128], index: 0, kind: input, shape index: {}]   ;;  %s6763_s1 = inlined_call_operand.vmem [shape: f32[8,8,8,128], index: 1, kind: input, shape index: {}]   ;;  %s6764_s2 = inlined_call_operand.vmem [shape: f32[2,8,8,128], index: 2, kind: output, shape index: {}]  }
   0x1   :  { %68 = vst [vmem:[#allocation3 + $0x80] sm:$0xff] %v3912_v0  ;;  %v3932_v1 = vld [vmem:[%s6762_s0] sm:$0xff]  ;;  %v3942_v3 = vld [vmem:[%s6763_s1 + $0x8] sm:$0xff]  ;;  %v3951_v6 = vld [vmem:[%s6763_s1 + $0x10] sm:$0xff] }
   0x2   :  { %v3937_v2 = vld [vmem:[%s6763_s1] sm:$0xff]  ;;  %60 = vst [vmem:[#allocation3] sm:$0xff] %v3912_v0  ;;  %v112_v5 = vmul.f32 0.0, %v3942_v3  ;;  %v3956_v7 = vld [vmem:[%s6763_s1 + $0x18] sm:$0xff]  ;;  %v139_v9 = vmul.f32 0.0, %v3951_v6  ;;  %v3970_v12 = vld [vmem:[%s6763_s1 + $0x28] sm:$0xff]  ;;  %v113_v14 = vmul.f32 %v3942_v3, %v3932_v1  ;;  %v141_v20 = vmul.f32 %v3951_v6, %v3932_v1 }
   0x3   :  { %v85_v4 = vmul.f32 %v3937_v2, %v3932_v1  ;;  %v3961_v8 = vld [vmem:[%s6763_s1 + $0x20] sm:$0xff]  ;;  %61 = vst [vmem:[#allocation3 + $0x10] sm:$0xff] %v3912_v0  ;;  %v166_v10 = vmul.f32 0.0, %v3956_v7  ;;  %v3975_v13 = vld [vmem:[%s6763_s1 + $0x30] sm:$0xff]  ;;  %v3981_v16 = vmul.f32 0.0, %v3970_v12  ;;  %v3989_v18 = vld [vmem:[%s6762_s0 + $0x8] sm:$0xff]  ;;  %v169_v25 = vmul.f32 %v3956_v7, %v3932_v1 }
   0x4   :  { %v193_v11 = vmul.f32 0.0, %v3961_v8  ;;  %62 = vst [vmem:[#allocation3 + $0x20] sm:$0xff] %v3912_v0  ;;  %v3984_v17 = vmul.f32 0.0, %v3975_v13  ;;  %v3994_v19 = vld [vmem:[%s6762_s0 + $0x10] sm:$0xff]  ;;  %v86_v21 = vmul.f32 %v3937_v2, %v3989_v18  ;;  %v114_v23 = vmul.f32 %v3942_v3, %v3989_v18  ;;  %v4008_v24 = vld [vmem:[%s6762_s0 + $0x18] sm:$0xff]  ;;  %v4022_v30 = vld [vmem:[%s6762_s0 + $0x20] sm:$0xff] }
   0x5   :  { %v120_v15 = vadd.f32 %v112_v5, %v85_v4  ;;  %63 = vst [vmem:[#allocation3 + $0x30] sm:$0xff] %v3912_v0  ;;  %v87_v22 = vmul.f32 %v3937_v2, %v3994_v19  ;;  %v88_v27 = vmul.f32 %v3937_v2, %v4008_v24  ;;  %v115_v28 = vmul.f32 %v3942_v3, %v3994_v19  ;;  %v4040_v43 = vld [vmem:[%s6762_s0 + $0x28] sm:$0xff]  ;;  %v4046_v45 = vld [vmem:[%s6763_s1 + $0x38] sm:$0xff]  ;;  %v4070_v5 = vld [vmem:[%s6762_s0 + $0x30] sm:$0xff] }
   0x6   :  { %64 = vst [vmem:[#allocation3 + $0x40] sm:$0xff] %v3912_v0  ;;  %v142_v29 = vmul.f32 %v3951_v6, %v3989_v18  ;;  %v121_v31 = vadd.f32 %v113_v14, %v86_v21  ;;  %v89_v33 = vmul.f32 %v3937_v2, %v4022_v30  ;;  %v116_v34 = vmul.f32 %v3942_v3, %v4008_v24 }
   0x7   :  { %v147_v26 = vadd.f32 %v139_v9, %v120_v15  ;;  %65 = vst [vmem:[#allocation3 + $0x50] sm:$0xff] %v3912_v0  ;;  %v122_v32 = vadd.f32 %v114_v23, %v87_v22  ;;  %v123_v36 = vadd.f32 %v115_v28, %v88_v27  ;;  %v143_v37 = vmul.f32 %v3951_v6, %v3994_v19 }
   0x8   :  { %66 = vst [vmem:[#allocation3 + $0x60] sm:$0xff] %v3912_v0  ;;  %v170_v38 = vmul.f32 %v3956_v7, %v3989_v18  ;;  %v148_v39 = vadd.f32 %v139_v9, %v121_v31  ;;  %v124_v41 = vadd.f32 %v116_v34, %v89_v33  ;;  %v197_v42 = vmul.f32 %v3961_v8, %v3932_v1 }
   0x9   :  { %v174_v35 = vadd.f32 %v166_v10, %v147_v26  ;;  %67 = vst [vmem:[#allocation3 + $0x70] sm:$0xff] %v3912_v0  ;;  %v149_v40 = vadd.f32 %v141_v20, %v122_v32  ;;  %v150_v46 = vadd.f32 %v142_v29, %v123_v36  ;;  %v90_v47 = vmul.f32 %v3937_v2, %v4040_v43 }
   0xa   :  { %69 = vst [vmem:[#allocation3 + $0x90] sm:$0xff] %v3912_v0  ;;  %v117_v48 = vmul.f32 %v3942_v3, %v4022_v30  ;;  %v175_v49 = vadd.f32 %v166_v10, %v148_v39  ;;  %v151_v51 = vadd.f32 %v143_v37, %v124_v41  ;;  %v144_v52 = vmul.f32 %v3951_v6, %v4008_v24  ;;  %v4109_v39 = vld [vmem:[%s6762_s0 + $0x38] sm:$0xff] }
   0xb   :  { %v201_v44 = vadd.f32 %v193_v11, %v174_v35  ;;  %70 = vst [vmem:[#allocation3 + $0xa0] sm:$0xff] %v3912_v0  ;;  %v176_v50 = vadd.f32 %v166_v10, %v149_v40  ;;  %v177_v54 = vadd.f32 %v169_v25, %v150_v46  ;;  %v171_v56 = vmul.f32 %v3956_v7, %v3994_v19  ;;  %v4123_v46 = vld [vmem:[%s6763_s1 + $0x40] sm:$0xff] }
   0xc   :  { %71 = vst [vmem:[#allocation3 + $0xb0] sm:$0xff] %v3912_v0  ;;  %v125_v55 = vadd.f32 %v117_v48, %v90_v47  ;;  %v4061_v57 = vmul.f32 0.0, %v4046_v45  ;;  %v202_v58 = vadd.f32 %v193_v11, %v175_v49  ;;  %v178_v60 = vadd.f32 %v170_v38, %v151_v51 }
   0xd   :  { %v228_v53 = vadd.f32 %v3981_v16, %v201_v44  ;;  %72 = vst [vmem:[#allocation3 + $0xc0] sm:$0xff] %v3912_v0  ;;  %v203_v59 = vadd.f32 %v193_v11, %v176_v50  ;;  %v204_v62 = vadd.f32 %v193_v11, %v177_v54  ;;  %v198_v4 = vmul.f32 %v3961_v8, %v3989_v18  ;;  %v4154_v54 = vld [vmem:[%s6763_s1 + $0x60] sm:$0xff] }
   0xe   :  { %73 = vst [vmem:[#allocation3 + $0xd0] sm:$0xff] %v3912_v0  ;;  %v152_v63 = vadd.f32 %v144_v52, %v125_v55  ;;  %v229_v9 = vadd.f32 %v3981_v16, %v202_v58  ;;  %v205_v14 = vadd.f32 %v197_v42, %v178_v60  ;;  %v91_v15 = vmul.f32 %v3937_v2, %v4070_v5  ;;  %v4171_v58 = vld [vmem:[%s6763_s1 + $0x70] sm:$0xff] }
   0xf   :  { %v255_v61 = vadd.f32 %v3984_v17, %v228_v53  ;;  %74 = vst [vmem:[#allocation3 + $0xe0] sm:$0xff] %v3912_v0  ;;  %v230_v10 = vadd.f32 %v3981_v16, %v203_v59  ;;  %v231_v11 = vadd.f32 %v3981_v16, %v204_v62  ;;  %v225_v21 = vmul.f32 %v3970_v12, %v3932_v1  ;;  %v4149_v53 = vld [vmem:[%s6763_s1 + $0x58] sm:$0xff] }
  0x10   :  { %75 = vst [vmem:[#allocation3 + $0xf0] sm:$0xff] %v3912_v0  ;;  %v179_v20 = vadd.f32 %v171_v56, %v152_v63  ;;  %v118_v22 = vmul.f32 %v3942_v3, %v4040_v43  ;;  %v256_v23 = vadd.f32 %v3984_v17, %v229_v9  ;;  %v232_v26 = vadd.f32 %v3981_v16, %v205_v14 }
  0x11   :  { %v257_v25 = vadd.f32 %v3984_v17, %v230_v10  ;;  %v145_v27 = vmul.f32 %v3951_v6, %v4022_v30  ;;  %v258_v0 = vadd.f32 %v3984_v17, %v231_v11  ;;  %v172_v31 = vmul.f32 %v3956_v7, %v4008_v24 }
  0x12   :  { %v206_v28 = vadd.f32 %v198_v4, %v179_v20  ;;  %v126_v29 = vadd.f32 %v118_v22, %v91_v15  ;;  %v4092_v32 = vadd.f32 %v4061_v57, %v255_v61  ;;  %v4095_v33 = vadd.f32 %v4061_v57, %v256_v23 }
  0x13   :  { %v4098_v34 = vadd.f32 %v4061_v57, %v257_v25  ;;  %v259_v16 = vadd.f32 %v3984_v17, %v232_v26  ;;  %v4102_v35 = vadd.f32 %v4061_v57, %v258_v0  ;;  %v199_v38 = vmul.f32 %v3961_v8, %v3994_v19 }
  0x14   :  { %v233_v36 = vadd.f32 %v225_v21, %v206_v28  ;;  %v153_v37 = vadd.f32 %v145_v27, %v126_v29  ;;  %v226_v41 = vmul.f32 %v3970_v12, %v3989_v18  ;;  %v92_v42 = vmul.f32 %v3937_v2, %v4109_v39  ;;  %v4133_v2 = vld [vmem:[%s6763_s1 + $0x48] sm:$0xff] }
  0x15   :  { %v4112_v40 = vadd.f32 %v4061_v57, %v259_v16  ;;  %v119_v44 = vmul.f32 %v3942_v3, %v4070_v5  ;;  %v253_v49 = vmul.f32 %v3975_v13, %v3932_v1  ;;  %v146_v50 = vmul.f32 %v3951_v6, %v4040_v43  ;;  %v4138_v3 = vld [vmem:[%s6763_s1 + $0x50] sm:$0xff] }
  0x16   :  { %v260_v47 = vadd.f32 %v3984_v17, %v233_v36  ;;  %v180_v48 = vadd.f32 %v172_v31, %v153_v37  ;;  %v173_v17 = vmul.f32 %v3956_v7, %v4022_v30  ;;  %v200_v52 = vmul.f32 %v3961_v8, %v4008_v24  ;;  %v4159_v7 = vld [vmem:[%s6763_s1 + $0x68] sm:$0xff] }
  0x17   :  { %v127_v51 = vadd.f32 %v119_v44, %v92_v42  ;;  %v227_v6 = vmul.f32 %v3970_v12, %v3994_v19  ;;  %v254_v12 = vmul.f32 %v3975_v13, %v3989_v18  ;;  %v324_v56 = vmul.f32 %v4123_v46, %v3932_v1 }
  0x18   :  { %v4162_v8 = vadd.f32 %v4061_v57, %v260_v47  ;;  %v207_v55 = vadd.f32 %v199_v38, %v180_v48  ;;  %v4175_v60 = vmul.f32 %v4046_v45, %v3932_v1  ;;  %v350_v61 = vmul.f32 0.0, %v4133_v2  ;;  %v4190_v45 = vld [vmem:[%s6763_s1 + $0x78] sm:$0xff] }
  0x19   :  { %v154_v59 = vadd.f32 %v146_v50, %v127_v51  ;;  %v376_v62 = vmul.f32 0.0, %v4138_v3  ;;  %v402_v13 = vmul.f32 0.0, %v4149_v53  ;;  %v428_v4 = vmul.f32 0.0, %v4154_v54 }
  0x1a   :  { %v234_v63 = vadd.f32 %v226_v41, %v207_v55  ;;  %v4182_v9 = vmul.f32 0.0, %v4159_v7  ;;  %v358_v14 = vadd.f32 %v350_v61, %v324_v56  ;;  %v4185_v15 = vmul.f32 0.0, %v4171_v58 }
  0x1b   :  { %v181_v10 = vadd.f32 %v173_v17, %v154_v59  ;;  %v325_v11 = vmul.f32 %v4123_v46, %v3989_v18  ;;  %v351_v21 = vmul.f32 %v4133_v2, %v3932_v1  ;;  %v326_v22 = vmul.f32 %v4123_v46, %v3994_v19 }
  0x1c   :  { %v261_v20 = vadd.f32 %v253_v49, %v234_v63  ;;  %v352_v23 = vmul.f32 %v4133_v2, %v3989_v18  ;;  %v384_v26 = vadd.f32 %v376_v62, %v358_v14  ;;  %v378_v27 = vmul.f32 %v4138_v3, %v3932_v1 }
  0x1d   :  { %v208_v25 = vadd.f32 %v200_v52, %v181_v10  ;;  %v327_v0 = vmul.f32 %v4123_v46, %v4008_v24  ;;  %v4205_v28 = vmul.f32 0.0, %v4190_v45  ;;  %v359_v29 = vadd.f32 %v351_v21, %v325_v11 }
  0x1e   :  { %v360_v31 = vadd.f32 %v352_v23, %v326_v22  ;;  %v353_v16 = vmul.f32 %v4133_v2, %v3994_v19  ;;  %v410_v37 = vadd.f32 %v402_v13, %v384_v26  ;;  %v379_v38 = vmul.f32 %v4138_v3, %v3989_v18 }
  0x1f   :  { %v235_v36 = vadd.f32 %v227_v6, %v208_v25  ;;  %v405_v41 = vmul.f32 %v4149_v53, %v3932_v1  ;;  %v385_v42 = vadd.f32 %v376_v62, %v359_v29  ;;  %v328_v48 = vmul.f32 %v4123_v46, %v4022_v30 }
  0x20   :  { %v386_v44 = vadd.f32 %v378_v27, %v360_v31  ;;  %v361_v47 = vadd.f32 %v353_v16, %v327_v0  ;;  %v4216_v49 = vadd.f32 %v4061_v57, %v261_v20  ;;  %v436_v50 = vadd.f32 %v428_v4, %v410_v37 }
  0x21   :  { %v354_v51 = vmul.f32 %v4133_v2, %v4008_v24  ;;  %v380_v17 = vmul.f32 %v4138_v3, %v3994_v19  ;;  %v262_v52 = vadd.f32 %v254_v12, %v235_v36  ;;  %v411_v6 = vadd.f32 %v402_v13, %v385_v42 }
  0x22   :  { %v412_v55 = vadd.f32 %v402_v13, %v386_v44  ;;  %v387_v56 = vadd.f32 %v379_v38, %v361_v47  ;;  %v462_v59 = vadd.f32 %v4182_v9, %v436_v50  ;;  %v406_v62 = vmul.f32 %v4149_v53, %v3989_v18 }
  0x23   :  { %v362_v61 = vadd.f32 %v354_v51, %v328_v48  ;;  %v432_v57 = vmul.f32 %v4154_v54, %v3932_v1  ;;  %v437_v63 = vadd.f32 %v428_v4, %v411_v6  ;;  %v329_v11 = vmul.f32 %v4123_v46, %v4040_v43 }
  0x24   :  { %v438_v10 = vadd.f32 %v428_v4, %v412_v55  ;;  %v413_v14 = vadd.f32 %v405_v41, %v387_v56  ;;  %v488_v12 = vadd.f32 %v4185_v15, %v462_v59  ;;  %v355_v13 = vmul.f32 %v4133_v2, %v4022_v30 }
  0x25   :  { %v388_v20 = vadd.f32 %v380_v17, %v362_v61  ;;  %v381_v21 = vmul.f32 %v4138_v3, %v4008_v24  ;;  %v463_v22 = vadd.f32 %v4182_v9, %v437_v63  ;;  %v407_v26 = vmul.f32 %v4149_v53, %v3994_v19 }
  0x26   :  { %v464_v23 = vadd.f32 %v4182_v9, %v438_v10  ;;  %v439_v25 = vadd.f32 %v428_v4, %v413_v14  ;;  %v514_v27 = vadd.f32 %v4205_v28, %v488_v12  ;;  %v363_v29 = vadd.f32 %v355_v13, %v329_v11 }
  0x27   :  { %v414_v0 = vadd.f32 %v406_v62, %v388_v20  ;;  %v433_v31 = vmul.f32 %v4154_v54, %v3989_v18  ;;  %v489_v16 = vadd.f32 %v4185_v15, %v463_v22  ;;  %v459_v38 = vmul.f32 %v4159_v7, %v3932_v1 }
  0x28   :  { %v490_v36 = vadd.f32 %v4185_v15, %v464_v23  ;;  %v465_v37 = vadd.f32 %v4182_v9, %v439_v25  ;;  %523 = vst [vmem:[#allocation3 + $0x88] sm:$0xff] %v514_v27  ;;  %v389_v41 = vadd.f32 %v381_v21, %v363_v29  ;;  %v330_v42 = vmul.f32 %v4123_v46, %v4070_v5 }
  0x29   :  { %v440_v4 = vadd.f32 %v432_v57, %v414_v0  ;;  %v356_v44 = vmul.f32 %v4133_v2, %v4040_v43  ;;  %v515_v47 = vadd.f32 %v4205_v28, %v489_v16  ;;  %v382_v51 = vmul.f32 %v4138_v3, %v4022_v30  ;;  %v4309_v0 = vld [vmem:[%s6763_s1 + $0xa0] sm:$0xff] }
  0x2a   :  { %v516_v48 = vadd.f32 %v4205_v28, %v490_v36  ;;  %v491_v50 = vadd.f32 %v4185_v15, %v465_v37  ;;  %v415_v6 = vadd.f32 %v407_v26, %v389_v41  ;;  %v408_v56 = vmul.f32 %v4149_v53, %v4008_v24  ;;  %v4323_v36 = vld [vmem:[%s6763_s1 + $0xb0] sm:$0xff] }
  0x2b   :  { %v466_v17 = vadd.f32 %v4182_v9, %v440_v4  ;;  %v364_v55 = vadd.f32 %v356_v44, %v330_v42  ;;  %v4259_v59 = vadd.f32 %v4175_v60, %v262_v52  ;;  %524 = vst [vmem:[#allocation3 + $0x98] sm:$0xff] %v515_v47  ;;  %v434_v62 = vmul.f32 %v4154_v54, %v3994_v19  ;;  %v4272_v60 = vld [vmem:[%s6763_s1 + $0x80] sm:$0xff] }
  0x2c   :  { %v517_v61 = vadd.f32 %v4205_v28, %v491_v50  ;;  %v460_v57 = vmul.f32 %v4159_v7, %v3989_v18  ;;  %525 = vst [vmem:[#allocation3 + $0xa8] sm:$0xff] %v516_v48  ;;  %v441_v63 = vadd.f32 %v433_v31, %v415_v6  ;;  %v331_v14 = vmul.f32 %v4123_v46, %v4109_v39  ;;  %v4285_v46 = vld [vmem:[%s6763_s1 + $0x88] sm:$0xff] }
  0x2d   :  { %v492_v9 = vadd.f32 %v4185_v15, %v466_v17  ;;  %v390_v10 = vadd.f32 %v382_v51, %v364_v55  ;;  %v486_v52 = vmul.f32 %v4171_v58, %v3932_v1  ;;  %v357_v11 = vmul.f32 %v4133_v2, %v4070_v5  ;;  %v4293_v2 = vld [vmem:[%s6763_s1 + $0x90] sm:$0xff] }
  0x2e   :  { %526 = vst [vmem:[#allocation3 + $0xb8] sm:$0xff] %v517_v61  ;;  %v383_v12 = vmul.f32 %v4138_v3, %v4040_v43  ;;  %v409_v20 = vmul.f32 %v4149_v53, %v4022_v30  ;;  %v467_v21 = vadd.f32 %v459_v38, %v441_v63  ;;  %v435_v23 = vmul.f32 %v4154_v54, %v4008_v24  ;;  %v4298_v3 = vld [vmem:[%s6763_s1 + $0x98] sm:$0xff] }
  0x2f   :  { %v518_v13 = vadd.f32 %v4205_v28, %v492_v9  ;;  %v416_v22 = vadd.f32 %v408_v56, %v390_v10  ;;  %v365_v53 = vadd.f32 %v357_v11, %v331_v14  ;;  %v461_v25 = vmul.f32 %v4159_v7, %v3994_v19  ;;  %v531_v27 = vld [vmem:[#allocation3 + $0x87] sm:$0xff] }
  0x30   :  { %v487_v26 = vmul.f32 %v4171_v58, %v3989_v18  ;;  %v557_v54 = vmul.f32 %v4272_v60, %v3932_v1  ;;  %v493_v29 = vadd.f32 %v4185_v15, %v467_v21  ;;  %v513_v16 = vmul.f32 %v4190_v45, %v3932_v1  ;;  %v4318_v58 = vld [vmem:[%s6763_s1 + $0xa8] sm:$0xff]  ;;  %v4328_v15 = vld [vmem:[%s6763_s1 + $0xb8] sm:$0xff] }
  0x31   :  { %527 = vst [vmem:[#allocation3 + $0xc8] sm:$0xff] %v518_v13  ;;  %v442_v31 = vadd.f32 %v434_v62, %v416_v22  ;;  %v583_v7 = vmul.f32 0.0, %v4285_v46  ;;  %v391_v37 = vadd.f32 %v383_v12, %v365_v53  ;;  %v4331_v45 = vadd.f32 %v531_v27, %v4092_v32 }
  0x32   :  { %v609_v38 = vmul.f32 0.0, %v4293_v2  ;;  %v635_v4 = vmul.f32 0.0, %v4298_v3  ;;  %v519_v41 = vadd.f32 %v4205_v28, %v493_v29  ;;  %v4337_v47 = vmul.f32 0.0, %v4309_v0  ;;  %v532_v48 = vld [vmem:[#allocation3 + $0x97] sm:$0xff] }
  0x33   :  { %v468_v42 = vadd.f32 %v460_v57, %v442_v31  ;;  %v591_v44 = vadd.f32 %v583_v7, %v557_v54  ;;  %v417_v50 = vadd.f32 %v409_v20, %v391_v37  ;;  %v4340_v51 = vmul.f32 0.0, %v4318_v58  ;;  %v533_v62 = vld [vmem:[#allocation3 + $0xa7] sm:$0xff] }
  0x34   :  { %v4343_v17 = vmul.f32 0.0, %v4323_v36  ;;  %v4346_v32 = vmul.f32 0.0, %v4328_v15  ;;  %528 = vst [vmem:[#allocation3 + $0xd8] sm:$0xff] %v519_v41  ;;  %v558_v56 = vmul.f32 %v4272_v60, %v3989_v18  ;;  %v584_v61 = vmul.f32 %v4285_v46, %v3932_v1 }
  0x35   :  { %v494_v6 = vadd.f32 %v486_v52, %v468_v42  ;;  %v617_v55 = vadd.f32 %v609_v38, %v591_v44  ;;  %v443_v57 = vadd.f32 %v435_v23, %v417_v50  ;;  %v4353_v9 = vadd.f32 %v532_v48, %v4095_v33  ;;  %v534_v20 = vld [vmem:[#allocation3 + $0xb7] sm:$0xff] }
  0x36   :  { %v559_v63 = vmul.f32 %v4272_v60, %v3994_v19  ;;  %v585_v10 = vmul.f32 %v4285_v46, %v3989_v18  ;;  %v592_v11 = vadd.f32 %v584_v61, %v558_v56  ;;  %v611_v12 = vmul.f32 %v4293_v2, %v3932_v1 }
  0x37   :  { %v520_v14 = vadd.f32 %v4205_v28, %v494_v6  ;;  %v643_v52 = vadd.f32 %v635_v4, %v617_v55  ;;  %v469_v13 = vadd.f32 %v461_v25, %v443_v57  ;;  %v4363_v21 = vadd.f32 %v533_v62, %v4098_v34 }
  0x38   :  { %v593_v33 = vadd.f32 %v585_v10, %v559_v63  ;;  %v560_v22 = vmul.f32 %v4272_v60, %v4008_v24  ;;  %v618_v53 = vadd.f32 %v609_v38, %v592_v11  ;;  %v586_v28 = vmul.f32 %v4285_v46, %v3994_v19  ;;  %v535_v31 = vld [vmem:[#allocation3 + $0xc7] sm:$0xff] }
  0x39   :  { %529 = vst [vmem:[#allocation3 + $0xe8] sm:$0xff] %v520_v14  ;;  %v669_v23 = vadd.f32 %v4337_v47, %v643_v52  ;;  %v612_v27 = vmul.f32 %v4293_v2, %v3989_v18  ;;  %v495_v54 = vadd.f32 %v487_v26, %v469_v13  ;;  %v4373_v25 = vadd.f32 %v534_v20, %v4102_v35 }
  0x3a   :  { %v619_v29 = vadd.f32 %v611_v12, %v593_v33  ;;  %v638_v34 = vmul.f32 %v4298_v3, %v3932_v1  ;;  %v644_v37 = vadd.f32 %v635_v4, %v618_v53  ;;  %v594_v41 = vadd.f32 %v586_v28, %v560_v22 }
  0x3b   :  { %v695_v7 = vadd.f32 %v4340_v51, %v669_v23  ;;  %v561_v38 = vmul.f32 %v4272_v60, %v4022_v30  ;;  %v521_v42 = vadd.f32 %v513_v16, %v495_v54  ;;  %v587_v26 = vmul.f32 %v4285_v46, %v4008_v24  ;;  %v536_v62 = vld [vmem:[#allocation3 + $0xd7] sm:$0xff] }
  0x3c   :  { %v645_v44 = vadd.f32 %v635_v4, %v619_v29  ;;  %v613_v35 = vmul.f32 %v4293_v2, %v3994_v19  ;;  %v670_v50 = vadd.f32 %v4337_v47, %v644_v37  ;;  %v620_v6 = vadd.f32 %v612_v27, %v594_v41 }
  0x3d   :  { %v721_v48 = vadd.f32 %v4343_v17, %v695_v7  ;;  %v4387_v55 = vadd.f32 %v535_v31, %v4112_v40  ;;  %530 = vst [vmem:[#allocation3 + $0xf8] sm:$0xff] %v521_v42  ;;  %v595_v61 = vadd.f32 %v587_v26, %v561_v38  ;;  %v639_v16 = vmul.f32 %v4298_v3, %v3989_v18 }
  0x3e   :  { %v671_v56 = vadd.f32 %v4337_v47, %v645_v44  ;;  %v665_v4 = vmul.f32 %v4309_v0, %v3932_v1  ;;  %v696_v63 = vadd.f32 %v4340_v51, %v670_v50  ;;  %v646_v10 = vadd.f32 %v638_v34, %v620_v6 }
  0x3f   :  { %v747_v57 = vadd.f32 %v4346_v32, %v721_v48  ;;  %v562_v40 = vmul.f32 %v4272_v60, %v4040_v43  ;;  %v621_v52 = vadd.f32 %v613_v35, %v595_v61  ;;  %v588_v11 = vmul.f32 %v4285_v46, %v4022_v30 }
  0x40   :  { %v697_v14 = vadd.f32 %v4340_v51, %v671_v56  ;;  %v614_v12 = vmul.f32 %v4293_v2, %v4008_v24  ;;  %v722_v20 = vadd.f32 %v4343_v17, %v696_v63  ;;  %v672_v13 = vadd.f32 %v4337_v47, %v646_v10  ;;  %v537_v54 = vld [vmem:[#allocation3 + $0xe7] sm:$0xff] }
  0x41   :  { %755 = vst [vmem:[#allocation3 + $0x8] sm:$0xff] %v747_v57  ;;  %v4406_v33 = vadd.f32 %v536_v62, %v4162_v8  ;;  %v640_v22 = vmul.f32 %v4298_v3, %v3994_v19  ;;  %v647_v53 = vadd.f32 %v639_v16, %v621_v52  ;;  %v596_v28 = vadd.f32 %v588_v11, %v562_v40  ;;  %v4446_v40 = vld [vmem:[%s6763_s1 + $0xc0] sm:$0xff] }
  0x42   :  { %v723_v23 = vadd.f32 %v4343_v17, %v697_v14  ;;  %v666_v27 = vmul.f32 %v4309_v0, %v3989_v18  ;;  %v748_v29 = vadd.f32 %v4346_v32, %v722_v20  ;;  %v698_v34 = vadd.f32 %v4340_v51, %v672_v13 }
  0x43   :  { %v692_v47 = vmul.f32 %v4318_v58, %v3932_v1  ;;  %v563_v8 = vmul.f32 %v4272_v60, %v4070_v5  ;;  %v673_v7 = vadd.f32 %v665_v4, %v647_v53  ;;  %v622_v37 = vadd.f32 %v614_v12, %v596_v28  ;;  %v4485_v28 = vld [vmem:[%s6763_s1 + $0xe0] sm:$0xff] }
  0x44   :  { %v749_v31 = vadd.f32 %v4346_v32, %v723_v23  ;;  %v589_v41 = vmul.f32 %v4285_v46, %v4040_v43  ;;  %756 = vst [vmem:[#allocation3 + $0x18] sm:$0xff] %v748_v29  ;;  %v724_v38 = vadd.f32 %v4343_v17, %v698_v34  ;;  %v4424_v42 = vadd.f32 %v537_v54, %v4216_v49  ;;  %v538_v56 = vld [vmem:[#allocation3 + $0xf7] sm:$0xff] }
  0x45   :  { %v615_v44 = vmul.f32 %v4293_v2, %v4022_v30  ;;  %v641_v26 = vmul.f32 %v4298_v3, %v4008_v24  ;;  %v699_v35 = vadd.f32 %v4340_v51, %v673_v7  ;;  %v648_v48 = vadd.f32 %v640_v22, %v622_v37 }
  0x46   :  { %757 = vst [vmem:[#allocation3 + $0x28] sm:$0xff] %v749_v31  ;;  %v597_v50 = vadd.f32 %v589_v41, %v563_v8  ;;  %v667_v6 = vmul.f32 %v4309_v0, %v3994_v19  ;;  %v750_v61 = vadd.f32 %v4346_v32, %v724_v38  ;;  %v693_v49 = vmul.f32 %v4318_v58, %v3989_v18 }
  0x47   :  { %v719_v16 = vmul.f32 %v4323_v36, %v3932_v1  ;;  %v564_v4 = vmul.f32 %v4272_v60, %v4109_v39  ;;  %v725_v51 = vadd.f32 %v4343_v17, %v699_v35  ;;  %v674_v57 = vadd.f32 %v666_v27, %v648_v48 }
  0x48   :  { %v763_v62 = vld [vmem:[#allocation3 + $0x6] sm:$0xff]  ;;  %v623_v63 = vadd.f32 %v615_v44, %v597_v50  ;;  %v590_v10 = vmul.f32 %v4285_v46, %v4070_v5  ;;  %758 = vst [vmem:[#allocation3 + $0x38] sm:$0xff] %v750_v61  ;;  %v4452_v52 = vadd.f32 %v538_v56, %v4259_v59  ;;  %v616_v60 = vmul.f32 %v4293_v2, %v4040_v43  ;;  %v4467_v59 = vld [vmem:[%s6763_s1 + $0xd0] sm:$0xff]  ;;  %v4472_v2 = vld [vmem:[%s6763_s1 + $0xd8] sm:$0xff] }
  0x49   :  { %v4449_v14 = vadd.f32 %v763_v62, %v4331_v45  ;;  %v642_v11 = vmul.f32 %v4298_v3, %v4022_v30  ;;  %v4461_v46 = vld [vmem:[%s6763_s1 + $0xc8] sm:$0xff]  ;;  %v751_v12 = vadd.f32 %v4346_v32, %v725_v51  ;;  %v700_v20 = vadd.f32 %v692_v47, %v674_v57 }
  0x4a   :  { %v649_v45 = vadd.f32 %v641_v26, %v623_v63  ;;  %v598_v13 = vadd.f32 %v590_v10, %v564_v4  ;;  %v668_v3 = vmul.f32 %v4309_v0, %v4008_v24  ;;  %v694_v22 = vmul.f32 %v4318_v58, %v3994_v19  ;;  %v4492_v58 = vld [vmem:[%s6763_s1 + $0xe8] sm:$0xff]  ;;  %v4511_v26 = vld [vmem:[%s6763_s1 + $0xf8] sm:$0xff] }
  0x4b   :  { %v720_v23 = vmul.f32 %v4323_v36, %v3989_v18  ;;  %v789_v53 = vmul.f32 %v4446_v40, %v3932_v1  ;;  %v764_v27 = vld [vmem:[#allocation3 + $0x16] sm:$0xff]  ;;  %759 = vst [vmem:[#allocation3 + $0x48] sm:$0xff] %v751_v12  ;;  %v726_v54 = vadd.f32 %v4343_v17, %v700_v20  ;;  %v815_v34 = vmul.f32 0.0, %v4461_v46 }
  0x4c   :  { %v675_v29 = vadd.f32 %v667_v6, %v649_v45  ;;  %v624_v0 = vadd.f32 %v616_v60, %v598_v13  ;;  %v4497_v36 = vld [vmem:[%s6763_s1 + $0xf0] sm:$0xff]  ;;  %v4500_v47 = vadd.f32 %v764_v27, %v4353_v9  ;;  %v746_v17 = vmul.f32 %v4328_v15, %v3932_v1 }
  0x4d   :  { %v841_v8 = vmul.f32 0.0, %v4467_v59  ;;  %v867_v31 = vmul.f32 0.0, %v4472_v2  ;;  %v765_v7 = vld [vmem:[#allocation3 + $0x26] sm:$0xff]  ;;  %v752_v37 = vadd.f32 %v4346_v32, %v726_v54  ;;  %v893_v44 = vmul.f32 0.0, %v4485_v28 }
  0x4e   :  { %v701_v41 = vadd.f32 %v693_v49, %v675_v29  ;;  %v650_v38 = vadd.f32 %v642_v11, %v624_v0  ;;  %v4514_v9 = vadd.f32 %v765_v7, %v4363_v21  ;;  %v823_v15 = vadd.f32 %v815_v34, %v789_v53 }
  0x4f   :  { %v4517_v35 = vmul.f32 0.0, %v4492_v58  ;;  %v4520_v48 = vmul.f32 0.0, %v4497_v36  ;;  %760 = vst [vmem:[#allocation3 + $0x58] sm:$0xff] %v752_v37  ;;  %v790_v56 = vmul.f32 %v4446_v40, %v3989_v18  ;;  %v816_v61 = vmul.f32 %v4461_v46, %v3932_v1  ;;  %v766_v10 = vld [vmem:[#allocation3 + $0x36] sm:$0xff] }
  0x50   :  { %v727_v50 = vadd.f32 %v719_v16, %v701_v41  ;;  %v676_v6 = vadd.f32 %v668_v3, %v650_v38  ;;  %v849_v49 = vadd.f32 %v841_v8, %v823_v15  ;;  %v4527_v21 = vmul.f32 0.0, %v4511_v26 }
  0x51   :  { %v791_v4 = vmul.f32 %v4446_v40, %v3994_v19  ;;  %v817_v62 = vmul.f32 %v4461_v46, %v3989_v18  ;;  %v824_v57 = vadd.f32 %v816_v61, %v790_v56  ;;  %v843_v63 = vmul.f32 %v4467_v59, %v3932_v1 }
  0x52   :  { %v753_v51 = vadd.f32 %v4346_v32, %v727_v50  ;;  %v702_v16 = vadd.f32 %v694_v22, %v676_v6  ;;  %v875_v60 = vadd.f32 %v867_v31, %v849_v49  ;;  %v792_v12 = vmul.f32 %v4446_v40, %v4008_v24  ;;  %v767_v7 = vld [vmem:[#allocation3 + $0x46] sm:$0xff] }
  0x53   :  { %v825_v11 = vadd.f32 %v817_v62, %v791_v4  ;;  %v818_v20 = vmul.f32 %v4461_v46, %v3994_v19  ;;  %v4541_v45 = vadd.f32 %v766_v10, %v4373_v25  ;;  %v850_v32 = vadd.f32 %v841_v8, %v824_v57 }
  0x54   :  { %761 = vst [vmem:[#allocation3 + $0x68] sm:$0xff] %v753_v51  ;;  %v728_v13 = vadd.f32 %v720_v23, %v702_v16  ;;  %v844_v3 = vmul.f32 %v4467_v59, %v3989_v18  ;;  %v901_v22 = vadd.f32 %v893_v44, %v875_v60  ;;  %v870_v54 = vmul.f32 %v4472_v2, %v3932_v1 }
  0x55   :  { %v851_v53 = vadd.f32 %v843_v63, %v825_v11  ;;  %v826_v27 = vadd.f32 %v818_v20, %v792_v12  ;;  %v876_v0 = vadd.f32 %v867_v31, %v850_v32  ;;  %v793_v34 = vmul.f32 %v4446_v40, %v4022_v30 }
  0x56   :  { %v754_v29 = vadd.f32 %v746_v17, %v728_v13  ;;  %v819_v25 = vmul.f32 %v4461_v46, %v4008_v24  ;;  %v927_v23 = vadd.f32 %v4517_v35, %v901_v22  ;;  %v845_v41 = vmul.f32 %v4467_v59, %v3994_v19  ;;  %v768_v51 = vld [vmem:[#allocation3 + $0x56] sm:$0xff] }
  0x57   :  { %v877_v8 = vadd.f32 %v867_v31, %v851_v53  ;;  %v852_v37 = vadd.f32 %v844_v3, %v826_v27  ;;  %v4555_v38 = vadd.f32 %v767_v7, %v4387_v55  ;;  %v902_v17 = vadd.f32 %v893_v44, %v876_v0 }
  0x58   :  { %762 = vst [vmem:[#allocation3 + $0x78] sm:$0xff] %v754_v29  ;;  %v827_v15 = vadd.f32 %v819_v25, %v793_v34  ;;  %v871_v50 = vmul.f32 %v4472_v2, %v3989_v18  ;;  %v953_v6 = vadd.f32 %v4520_v48, %v927_v23  ;;  %v897_v31 = vmul.f32 %v4485_v28, %v3932_v1 }
  0x59   :  { %v903_v56 = vadd.f32 %v893_v44, %v877_v8  ;;  %v878_v61 = vadd.f32 %v870_v54, %v852_v37  ;;  %v928_v49 = vadd.f32 %v4517_v35, %v902_v17  ;;  %v794_v55 = vmul.f32 %v4446_v40, %v4040_v43 }
  0x5a   :  { %v853_v4 = vadd.f32 %v845_v41, %v827_v15  ;;  %v820_v62 = vmul.f32 %v4461_v46, %v4022_v30  ;;  %v979_v16 = vadd.f32 %v4527_v21, %v953_v6  ;;  %v846_v10 = vmul.f32 %v4467_v59, %v4008_v24 }
  0x5b   :  { %v929_v57 = vadd.f32 %v4517_v35, %v903_v56  ;;  %v904_v63 = vadd.f32 %v893_v44, %v878_v61  ;;  %v4572_v60 = vadd.f32 %v768_v51, %v4406_v33  ;;  %v769_v11 = vld [vmem:[#allocation3 + $0x66] sm:$0xff]  ;;  %v954_v12 = vadd.f32 %v4520_v48, %v928_v49 }
  0x5c   :  { %v879_v20 = vadd.f32 %v871_v50, %v853_v4  ;;  %v828_v13 = vadd.f32 %v820_v62, %v794_v55  ;;  %v4576_v32 = vadd.f32 %v769_v11, %v4424_v42  ;;  %987 = vst [vmem:[#allocation3 + $0x88] sm:$0xff] %v979_v16  ;;  %v872_v44 = vmul.f32 %v4472_v2, %v3994_v19  ;;  %v4615_v55 = vld [vmem:[%s6763_s1 + $0x100] sm:$0xff]  ;;  %v4620_v62 = vld [vmem:[%s6763_s1 + $0x108] sm:$0xff] }
  0x5d   :  { %v955_v3 = vadd.f32 %v4520_v48, %v929_v57  ;;  %v930_v22 = vadd.f32 %v4517_v35, %v904_v63  ;;  %v980_v53 = vadd.f32 %v4527_v21, %v954_v12  ;;  %v898_v54 = vmul.f32 %v4485_v28, %v3989_v18  ;;  %v4635_v57 = vld [vmem:[%s6763_s1 + $0x118] sm:$0xff]  ;;  %v4649_v12 = vld [vmem:[%s6763_s1 + $0x128] sm:$0xff] }
  0x5e   :  { %6766 = vst [vmem:[#allocation4_spill] sm:$0xff] %v4576_v32  ;;  %v905_v33 = vadd.f32 %v897_v31, %v879_v20  ;;  %v854_v27 = vadd.f32 %v846_v10, %v828_v13  ;;  %v795_v0 = vmul.f32 %v4446_v40, %v4070_v5  ;;  %v821_v34 = vmul.f32 %v4461_v46, %v4040_v43 }
  0x5f   :  { %v981_v29 = vadd.f32 %v4527_v21, %v955_v3  ;;  %v956_v42 = vadd.f32 %v4520_v48, %v930_v22  ;;  %988 = vst [vmem:[#allocation3 + $0x98] sm:$0xff] %v980_v53  ;;  %v924_v23 = vmul.f32 %v4492_v58, %v3932_v1  ;;  %v847_v8 = vmul.f32 %v4467_v59, %v4022_v30  ;;  %v4660_v3 = vld [vmem:[%s6763_s1 + $0x130] sm:$0xff]  ;;  %v4665_v22 = vld [vmem:[%s6763_s1 + $0x138] sm:$0xff] }
  0x60   :  { %v931_v25 = vadd.f32 %v4517_v35, %v905_v33  ;;  %v880_v7 = vadd.f32 %v872_v44, %v854_v27  ;;  %v829_v41 = vadd.f32 %v821_v34, %v795_v0  ;;  %v873_v17 = vmul.f32 %v4472_v2, %v4008_v24 }
  0x61   :  { %989 = vst [vmem:[#allocation3 + $0xa8] sm:$0xff] %v981_v29  ;;  %v982_v37 = vadd.f32 %v4527_v21, %v956_v42  ;;  %v899_v15 = vmul.f32 %v4485_v28, %v3994_v19  ;;  %v925_v6 = vmul.f32 %v4492_v58, %v3989_v18  ;;  %v951_v56 = vmul.f32 %v4497_v36, %v3932_v1 }
  0x62   :  { %v957_v50 = vadd.f32 %v4520_v48, %v931_v25  ;;  %v906_v35 = vadd.f32 %v898_v54, %v880_v7  ;;  %v855_v61 = vadd.f32 %v847_v8, %v829_v41  ;;  %v796_v31 = vmul.f32 %v4446_v40, %v4109_v39 }
  0x63   :  { %990 = vst [vmem:[#allocation3 + $0xb8] sm:$0xff] %v982_v37  ;;  %v822_v49 = vmul.f32 %v4461_v46, %v4070_v5  ;;  %v848_v4 = vmul.f32 %v4467_v59, %v4040_v43  ;;  %v874_v40 = vmul.f32 %v4472_v2, %v4022_v30  ;;  %v900_v46 = vmul.f32 %v4485_v28, %v4008_v24  ;;  %v4630_v59 = vld [vmem:[%s6763_s1 + $0x110] sm:$0xff]  ;;  %v4644_v28 = vld [vmem:[%s6763_s1 + $0x120] sm:$0xff] }
  0x64   :  { %v983_v51 = vadd.f32 %v4527_v21, %v957_v50  ;;  %v932_v16 = vadd.f32 %v924_v23, %v906_v35  ;;  %v881_v63 = vadd.f32 %v873_v17, %v855_v61  ;;  %v926_v11 = vmul.f32 %v4492_v58, %v3994_v19  ;;  %v4685_v23 = vld [vmem:[%s6762_s0] sm:$0xff] }
  0x65   :  { %v830_v10 = vadd.f32 %v822_v49, %v796_v31  ;;  %v952_v2 = vmul.f32 %v4497_v36, %v3989_v18  ;;  %v978_v13 = vmul.f32 %v4511_v26, %v3932_v1  ;;  %v1021_v58 = vmul.f32 %v4615_v55, %v3932_v1 }
  0x66   :  { %991 = vst [vmem:[#allocation3 + $0xc8] sm:$0xff] %v983_v51  ;;  %v958_v20 = vadd.f32 %v4520_v48, %v932_v16  ;;  %v1047_v36 = vmul.f32 0.0, %v4620_v62  ;;  %v907_v44 = vadd.f32 %v899_v15, %v881_v63  ;;  %v1073_v53 = vmul.f32 0.0, %v4630_v59 }
  0x67   :  { %v856_v48 = vadd.f32 %v848_v4, %v830_v10  ;;  %v1099_v26 = vmul.f32 0.0, %v4635_v57  ;;  %v1125_v27 = vmul.f32 0.0, %v4644_v28  ;;  %v4672_v54 = vmul.f32 0.0, %v4649_v12 }
  0x68   :  { %v984_v1 = vadd.f32 %v4527_v21, %v958_v20  ;;  %v1055_v33 = vadd.f32 %v1047_v36, %v1021_v58  ;;  %v933_v29 = vadd.f32 %v925_v6, %v907_v44  ;;  %v4675_v0 = vmul.f32 0.0, %v4660_v3 }
  0x69   :  { %v882_v42 = vadd.f32 %v874_v40, %v856_v48  ;;  %v4678_v34 = vmul.f32 0.0, %v4665_v22  ;;  %v1022_v7 = vmul.f32 %v4615_v55, %v3989_v18  ;;  %v1048_v8 = vmul.f32 %v4685_v23, %v4620_v62 }
  0x6a   :  { %992 = vst [vmem:[#allocation3 + $0xd8] sm:$0xff] %v984_v1  ;;  %v1081_v25 = vadd.f32 %v1073_v53, %v1055_v33  ;;  %v1023_v37 = vmul.f32 %v4615_v55, %v3994_v19  ;;  %v959_v41 = vadd.f32 %v951_v56, %v933_v29  ;;  %v1049_v15 = vmul.f32 %v4620_v62, %v3989_v18 }
  0x6b   :  { %v908_v17 = vadd.f32 %v900_v46, %v882_v42  ;;  %v1075_v50 = vmul.f32 %v4685_v23, %v4630_v59  ;;  %v1056_v6 = vadd.f32 %v1048_v8, %v1022_v7  ;;  %v1024_v61 = vmul.f32 %v4615_v55, %v4008_v24  ;;  %v4731_v7 = vld [vmem:[%s6762_s0 + $0x20] sm:$0xff] }
  0x6c   :  { %v1107_v35 = vadd.f32 %v1099_v26, %v1081_v25  ;;  %v1050_v31 = vmul.f32 %v4620_v62, %v3994_v19  ;;  %v985_v49 = vadd.f32 %v4527_v21, %v959_v41  ;;  %v1057_v51 = vadd.f32 %v1049_v15, %v1023_v37  ;;  %v4740_v15 = vld [vmem:[%s6762_s0 + $0x18] sm:$0xff] }
  0x6d   :  { %v934_v4 = vadd.f32 %v926_v11, %v908_v17  ;;  %v1076_v56 = vmul.f32 %v4630_v59, %v3989_v18  ;;  %v1082_v40 = vadd.f32 %v1073_v53, %v1056_v6  ;;  %v1102_v63 = vmul.f32 %v4685_v23, %v4635_v57  ;;  %v4712_v18 = vld [vmem:[%s6762_s0 + $0x10] sm:$0xff] }
  0x6e   :  { %v1133_v16 = vadd.f32 %v1125_v27, %v1107_v35  ;;  %v1058_v46 = vadd.f32 %v1050_v31, %v1024_v61  ;;  %993 = vst [vmem:[#allocation3 + $0xe8] sm:$0xff] %v985_v49  ;;  %v1083_v20 = vadd.f32 %v1075_v50, %v1057_v51  ;;  %v1025_v58 = vmul.f32 %v4615_v55, %v4022_v30  ;;  %v4719_v30 = vld [vmem:[%s6762_s0 + $0x8] sm:$0xff] }
  0x6f   :  { %v960_v10 = vadd.f32 %v952_v2, %v934_v4  ;;  %v1051_v19 = vmul.f32 %v4620_v62, %v4008_v24  ;;  %v1108_v11 = vadd.f32 %v1099_v26, %v1082_v40  ;;  %v1077_v44 = vmul.f32 %v4712_v18, %v4630_v59 }
  0x70   :  { %v1159_v21 = vadd.f32 %v4672_v54, %v1133_v16  ;;  %v1084_v36 = vadd.f32 %v1076_v56, %v1058_v46  ;;  %v1109_v48 = vadd.f32 %v1099_v26, %v1083_v20  ;;  %v1103_v24 = vmul.f32 %v4719_v30, %v4635_v57 }
  0x71   :  { %v986_v2 = vadd.f32 %v978_v13, %v960_v10  ;;  %v1059_v53 = vadd.f32 %v1051_v19, %v1025_v58  ;;  %v1134_v33 = vadd.f32 %v1125_v27, %v1108_v11  ;;  %v1129_v42 = vmul.f32 %v4685_v23, %v4644_v28  ;;  %v4761_v10 = vld [vmem:[%s6762_s0 + $0x28] sm:$0xff] }
  0x72   :  { %v1185_v1 = vadd.f32 %v4675_v0, %v1159_v21  ;;  %v1110_v29 = vadd.f32 %v1102_v63, %v1084_v36  ;;  %v1135_v25 = vadd.f32 %v1125_v27, %v1109_v48  ;;  %v1026_v26 = vmul.f32 %v4615_v55, %v4040_v43 }
  0x73   :  { %994 = vst [vmem:[#allocation3 + $0xf8] sm:$0xff] %v986_v2  ;;  %v1085_v13 = vadd.f32 %v1077_v44, %v1059_v53  ;;  %v1052_v8 = vmul.f32 %v4731_v7, %v4620_v62  ;;  %v1160_v41 = vadd.f32 %v4672_v54, %v1134_v33  ;;  %v1078_v43 = vmul.f32 %v4740_v15, %v4630_v59 }
  0x74   :  { %v1211_v37 = vadd.f32 %v4678_v34, %v1185_v1  ;;  %v1136_v17 = vadd.f32 %v1125_v27, %v1110_v29  ;;  %v1161_v50 = vadd.f32 %v4672_v54, %v1135_v25  ;;  %v1104_v61 = vmul.f32 %v4712_v18, %v4635_v57  ;;  %v4784_v29 = vld [vmem:[%s6762_s0 + $0x30] sm:$0xff] }
  0x75   :  { %v1111_v35 = vadd.f32 %v1103_v24, %v1085_v13  ;;  %v1060_v6 = vadd.f32 %v1052_v8, %v1026_v26  ;;  %v1186_v31 = vadd.f32 %v4675_v0, %v1160_v41  ;;  %v1130_v49 = vmul.f32 %v4719_v30, %v4644_v28  ;;  %v4820_v41 = vld [vmem:[%s6763_s1 + $0x160] sm:$0xff] }
  0x76   :  { %1219 = vst [vmem:[#allocation3 + $0x8] sm:$0xff] %v1211_v37  ;;  %v1162_v27 = vadd.f32 %v4672_v54, %v1136_v17  ;;  %v1156_v4 = vmul.f32 %v4685_v23, %v4649_v12  ;;  %v1187_v51 = vadd.f32 %v4675_v0, %v1161_v50  ;;  %v1027_v40 = vmul.f32 %v4615_v55, %v4070_v5  ;;  %v4815_v37 = vld [vmem:[%s6763_s1 + $0x158] sm:$0xff] }
  0x77   :  { %v1137_v56 = vadd.f32 %v1129_v42, %v1111_v35  ;;  %v1086_v16 = vadd.f32 %v1078_v43, %v1060_v6  ;;  %v1212_v46 = vadd.f32 %v4678_v34, %v1186_v31  ;;  %v1053_v20 = vmul.f32 %v4761_v10, %v4620_v62  ;;  %v4834_v35 = vld [vmem:[%s6763_s1 + $0x170] sm:$0xff]  ;;  %v4844_v31 = vld [vmem:[%s6763_s1 + $0x178] sm:$0xff] }
  0x78   :  { %v1188_v63 = vadd.f32 %v4675_v0, %v1162_v27  ;;  %v1079_v58 = vmul.f32 %v4731_v7, %v4630_v59  ;;  %v1213_v19 = vadd.f32 %v4678_v34, %v1187_v51  ;;  %v1105_v11 = vmul.f32 %v4740_v15, %v4635_v57 }
  0x79   :  { %v1163_v21 = vadd.f32 %v4672_v54, %v1137_v56  ;;  %v1112_v5 = vadd.f32 %v1104_v61, %v1086_v16  ;;  %1220 = vst [vmem:[#allocation3 + $0x18] sm:$0xff] %v1212_v46  ;;  %v1061_v44 = vadd.f32 %v1053_v20, %v1027_v40  ;;  %v1131_v2 = vmul.f32 %v4712_v18, %v4644_v28 }
  0x7a   :  { %v1214_v36 = vadd.f32 %v4678_v34, %v1188_v63  ;;  %v1157_v48 = vmul.f32 %v4719_v30, %v4649_v12  ;;  %1221 = vst [vmem:[#allocation3 + $0x28] sm:$0xff] %v1213_v19  ;;  %v1183_v54 = vmul.f32 %v4685_v23, %v4660_v3  ;;  %v1028_v1 = vmul.f32 %v4615_v55, %v4109_v39  ;;  %v4795_v39 = vld [vmem:[%s6763_s1 + $0x140] sm:$0xff]  ;;  %v4800_v55 = vld [vmem:[%s6763_s1 + $0x148] sm:$0xff] }
  0x7b   :  { %v1189_v53 = vadd.f32 %v4675_v0, %v1163_v21  ;;  %v1138_v24 = vadd.f32 %v1130_v49, %v1112_v5  ;;  %v1087_v33 = vadd.f32 %v1079_v58, %v1061_v44  ;;  %v1054_v42 = vmul.f32 %v4784_v29, %v4620_v62  ;;  %v4805_v62 = vld [vmem:[%s6763_s1 + $0x150] sm:$0xff] }
  0x7c   :  { %1222 = vst [vmem:[#allocation3 + $0x38] sm:$0xff] %v1214_v36  ;;  %v1080_v25 = vmul.f32 %v4761_v10, %v4630_v59  ;;  %v1106_v13 = vmul.f32 %v4731_v7, %v4635_v57  ;;  %v1132_v57 = vmul.f32 %v4740_v15, %v4644_v28  ;;  %v1158_v8 = vmul.f32 %v4712_v18, %v4649_v12  ;;  %v4829_v12 = vld [vmem:[%s6763_s1 + $0x168] sm:$0xff] }
  0x7d   :  { %v1215_v59 = vadd.f32 %v4678_v34, %v1189_v53  ;;  %v1164_v26 = vadd.f32 %v1156_v4, %v1138_v24  ;;  %v1113_v17 = vadd.f32 %v1105_v11, %v1087_v33  ;;  %v1062_v43 = vadd.f32 %v1054_v42, %v1028_v1 }
  0x7e   :  { %v1184_v50 = vmul.f32 %v4719_v30, %v4660_v3  ;;  %v1210_v28 = vmul.f32 %v4685_v23, %v4665_v22  ;;  %v1253_v61 = vmul.f32 %v4685_v23, %v4795_v39  ;;  %v1279_v3 = vmul.f32 0.0, %v4800_v55 }
  0x7f   :  { %1223 = vst [vmem:[#allocation3 + $0x48] sm:$0xff] %v1215_v59  ;;  %v1190_v6 = vadd.f32 %v4675_v0, %v1164_v26  ;;  %v1305_v22 = vmul.f32 0.0, %v4805_v62  ;;  %v1139_v27 = vadd.f32 %v1131_v2, %v1113_v17  ;;  %v1088_v49 = vadd.f32 %v1080_v25, %v1062_v43 }
  0x80   :  { %v1331_v4 = vmul.f32 0.0, %v4815_v37  ;;  %v1357_v51 = vmul.f32 0.0, %v4820_v41  ;;  %v1287_v56 = vadd.f32 %v1279_v3, %v1253_v61  ;;  %v4850_v16 = vmul.f32 0.0, %v4829_v12 }
  0x81   :  { %v1216_v0 = vadd.f32 %v4678_v34, %v1190_v6  ;;  %v4853_v40 = vmul.f32 0.0, %v4834_v35  ;;  %v1165_v46 = vadd.f32 %v1157_v48, %v1139_v27  ;;  %v1114_v63 = vadd.f32 %v1106_v13, %v1088_v49 }
  0x82   :  { %v4856_v20 = vmul.f32 0.0, %v4844_v31  ;;  %v1254_v58 = vmul.f32 %v4719_v30, %v4795_v39  ;;  %v1313_v19 = vadd.f32 %v1305_v22, %v1287_v56  ;;  %v1280_v21 = vmul.f32 %v4685_v23, %v4800_v55 }
  0x83   :  { %1224 = vst [vmem:[#allocation3 + $0x58] sm:$0xff] %v1216_v0  ;;  %v1255_v5 = vmul.f32 %v4712_v18, %v4795_v39  ;;  %v1281_v11 = vmul.f32 %v4719_v30, %v4800_v55  ;;  %v1191_v36 = vadd.f32 %v1183_v54, %v1165_v46  ;;  %v1140_v44 = vadd.f32 %v1132_v57, %v1114_v63 }
  0x84   :  { %v1307_v2 = vmul.f32 %v4685_v23, %v4805_v62  ;;  %v1256_v48 = vmul.f32 %v4740_v15, %v4795_v39  ;;  %v1339_v53 = vadd.f32 %v1331_v4, %v1313_v19  ;;  %v1288_v24 = vadd.f32 %v1280_v21, %v1254_v58 }
  0x85   :  { %v1289_v1 = vadd.f32 %v1281_v11, %v1255_v5  ;;  %v1282_v33 = vmul.f32 %v4712_v18, %v4800_v55  ;;  %v1217_v42 = vadd.f32 %v4678_v34, %v1191_v36  ;;  %v1166_v25 = vadd.f32 %v1158_v8, %v1140_v44  ;;  %v4883_v8 = vld [vmem:[#allocation3 + $0x76] sm:$0xff]  ;;  %v4891_v5 = vld [vmem:[#allocation3 + $0x85] sm:$0xff] }
  0x86   :  { %v1308_v13 = vmul.f32 %v4719_v30, %v4805_v62  ;;  %v1334_v54 = vmul.f32 %v4685_v23, %v4815_v37  ;;  %v1365_v59 = vadd.f32 %v1357_v51, %v1339_v53  ;;  %v1314_v26 = vadd.f32 %v1305_v22, %v1288_v24 }
  0x87   :  { %v1315_v57 = vadd.f32 %v1307_v2, %v1289_v1  ;;  %v1290_v17 = vadd.f32 %v1282_v33, %v1256_v48  ;;  %1225 = vst [vmem:[#allocation3 + $0x68] sm:$0xff] %v1217_v42  ;;  %v1192_v43 = vadd.f32 %v1184_v50, %v1166_v25  ;;  %v1257_v6 = vmul.f32 %v4731_v7, %v4795_v39 }
  0x88   :  { %v1283_v61 = vmul.f32 %v4740_v15, %v4800_v55  ;;  %v1309_v34 = vmul.f32 %v4712_v18, %v4805_v62  ;;  %v1391_v3 = vadd.f32 %v4850_v16, %v1365_v59  ;;  %v1340_v27 = vadd.f32 %v1331_v4, %v1314_v26  ;;  %v4911_v26 = vld [vmem:[#allocation3 + $0x95] sm:$0xff] }
  0x89   :  { %v1341_v49 = vadd.f32 %v1331_v4, %v1315_v57  ;;  %v1316_v22 = vadd.f32 %v1308_v13, %v1290_v17  ;;  %v1218_v0 = vadd.f32 %v1210_v28, %v1192_v43  ;;  %v1335_v50 = vmul.f32 %v4719_v30, %v4815_v37 }
  0x8a   :  { %v1291_v56 = vadd.f32 %v1283_v61, %v1257_v6  ;;  %v1361_v46 = vmul.f32 %v4685_v23, %v4820_v41  ;;  %v1417_v63 = vadd.f32 %v4853_v40, %v1391_v3  ;;  %v1366_v58 = vadd.f32 %v1357_v51, %v1340_v27  ;;  %v4918_v61 = vld [vmem:[#allocation3 + $0xa5] sm:$0xff] }
  0x8b   :  { %v1367_v19 = vadd.f32 %v1357_v51, %v1341_v49  ;;  %v1342_v21 = vadd.f32 %v1334_v54, %v1316_v22  ;;  %1226 = vst [vmem:[#allocation3 + $0x78] sm:$0xff] %v1218_v0  ;;  %v1258_v4 = vmul.f32 %v4761_v10, %v4795_v39  ;;  %v1284_v28 = vmul.f32 %v4731_v7, %v4800_v55  ;;  %v4924_v49 = vld [vmem:[#allocation3 + $0xb5] sm:$0xff] }
  0x8c   :  { %v1317_v11 = vadd.f32 %v1309_v34, %v1291_v56  ;;  %v1310_v36 = vmul.f32 %v4740_v15, %v4805_v62  ;;  %v1443_v44 = vadd.f32 %v4856_v20, %v1417_v63  ;;  %v1392_v2 = vadd.f32 %v4850_v16, %v1366_v58 }
  0x8d   :  { %v1393_v48 = vadd.f32 %v4850_v16, %v1367_v19  ;;  %v1368_v53 = vadd.f32 %v1357_v51, %v1342_v21  ;;  %v1292_v1 = vadd.f32 %v1284_v28, %v1258_v4  ;;  %v1336_v33 = vmul.f32 %v4712_v18, %v4815_v37  ;;  %v4940_v4 = vld [vmem:[%s6762_s0 + $0x38] sm:$0xff] }
  0x8e   :  { %v1343_v24 = vadd.f32 %v1335_v50, %v1317_v11  ;;  %v1362_v42 = vmul.f32 %v4719_v30, %v4820_v41  ;;  %1451 = vst [vmem:[#allocation3 + $0x88] sm:$0xff] %v1443_v44  ;;  %v1418_v25 = vadd.f32 %v4853_v40, %v1392_v2  ;;  %v1388_v59 = vmul.f32 %v4685_v23, %v4829_v12  ;;  %v4949_v44 = vld [vmem:[#allocation3 + $0xc5] sm:$0xff] }
  0x8f   :  { %v1419_v13 = vadd.f32 %v4853_v40, %v1393_v48  ;;  %v1394_v54 = vadd.f32 %v4850_v16, %v1368_v53  ;;  %v1318_v57 = vadd.f32 %v1310_v36, %v1292_v1  ;;  %v1259_v17 = vmul.f32 %v4784_v29, %v4795_v39  ;;  %v4947_v36 = vld [vmem:[%s6763_s1 + $0x180] sm:$0xff]  ;;  %v4967_v1 = vld [vmem:[%s6763_s1 + $0x190] sm:$0xff] }
  0x90   :  { %v1369_v51 = vadd.f32 %v1361_v46, %v1343_v24  ;;  %v1285_v43 = vmul.f32 %v4761_v10, %v4800_v55  ;;  %v1444_v6 = vadd.f32 %v4856_v20, %v1418_v25  ;;  %v1311_v27 = vmul.f32 %v4731_v7, %v4805_v62  ;;  %v4962_v24 = vld [vmem:[%s6763_s1 + $0x188] sm:$0xff] }
  0x91   :  { %v1445_v34 = vadd.f32 %v4856_v20, %v1419_v13  ;;  %v1420_v3 = vadd.f32 %v4853_v40, %v1394_v54  ;;  %v1344_v0 = vadd.f32 %v1336_v33, %v1318_v57  ;;  %v1337_v50 = vmul.f32 %v4740_v15, %v4815_v37  ;;  %v4985_v25 = vld [vmem:[%s6763_s1 + $0x1a8] sm:$0xff] }
  0x92   :  { %v1395_v22 = vadd.f32 %v4850_v16, %v1369_v51  ;;  %v1293_v56 = vadd.f32 %v1285_v43, %v1259_v17  ;;  %1452 = vst [vmem:[#allocation3 + $0x98] sm:$0xff] %v1444_v6  ;;  %v1363_v63 = vmul.f32 %v4712_v18, %v4820_v41  ;;  %v1389_v58 = vmul.f32 %v4719_v30, %v4829_v12  ;;  %v4996_v51 = vld [vmem:[%s6763_s1 + $0x1b0] sm:$0xff] }
  0x93   :  { %v1446_v46 = vadd.f32 %v4856_v20, %v1420_v3  ;;  %v1415_v19 = vmul.f32 %v4685_v23, %v4834_v35  ;;  %1453 = vst [vmem:[#allocation3 + $0xa8] sm:$0xff] %v1445_v34  ;;  %v1370_v21 = vadd.f32 %v1362_v42, %v1344_v0  ;;  %v1260_v28 = vmul.f32 %v4940_v4, %v4795_v39  ;;  %v4980_v42 = vld [vmem:[%s6763_s1 + $0x1a0] sm:$0xff] }
  0x94   :  { %v1421_v16 = vadd.f32 %v4853_v40, %v1395_v22  ;;  %v1319_v11 = vadd.f32 %v1311_v27, %v1293_v56  ;;  %v1286_v2 = vmul.f32 %v4784_v29, %v4800_v55  ;;  %v1312_v48 = vmul.f32 %v4761_v10, %v4805_v62 }
  0x95   :  { %1454 = vst [vmem:[#allocation3 + $0xb8] sm:$0xff] %v1446_v46  ;;  %v1338_v53 = vmul.f32 %v4731_v7, %v4815_v37  ;;  %v1364_v39 = vmul.f32 %v4740_v15, %v4820_v41  ;;  %v1396_v33 = vadd.f32 %v1388_v59, %v1370_v21  ;;  %v1390_v37 = vmul.f32 %v4712_v18, %v4829_v12  ;;  %v4975_v41 = vld [vmem:[%s6763_s1 + $0x198] sm:$0xff] }
  0x96   :  { %v1447_v55 = vadd.f32 %v4856_v20, %v1421_v16  ;;  %v1345_v62 = vadd.f32 %v1337_v50, %v1319_v11  ;;  %v1294_v13 = vadd.f32 %v1286_v2, %v1260_v28  ;;  %v1416_v54 = vmul.f32 %v4719_v30, %v4834_v35  ;;  %v5004_v35 = vld [vmem:[%s6763_s1 + $0x1b8] sm:$0xff] }
  0x97   :  { %v1442_v12 = vmul.f32 %v4685_v23, %v4844_v31  ;;  %v1485_v59 = vmul.f32 %v4685_v23, %v4947_v36  ;;  %v1422_v57 = vadd.f32 %v4853_v40, %v1396_v33  ;;  %v1511_v43 = vmul.f32 0.0, %v4962_v24  ;;  %v5006_v31 = vld [vmem:[#allocation3 + $0xd5] sm:$0xff] }
  0x98   :  { %1455 = vst [vmem:[#allocation3 + $0xc8] sm:$0xff] %v1447_v55  ;;  %v1371_v17 = vadd.f32 %v1363_v63, %v1345_v62  ;;  %v1537_v6 = vmul.f32 0.0, %v4967_v1  ;;  %v1320_v34 = vadd.f32 %v1312_v48, %v1294_v13  ;;  %v1563_v3 = vmul.f32 0.0, %v4975_v41  ;;  %v5028_v48 = vld [vmem:[#allocation3 + $0xe5] sm:$0xff] }
  0x99   :  { %6767 = vst [vmem:[#allocation5_spill] sm:$0xff] %v5006_v31  ;;  %v1589_v27 = vmul.f32 0.0, %v4980_v42  ;;  %v5011_v22 = vmul.f32 0.0, %v4985_v25  ;;  %v1448_v40 = vadd.f32 %v4856_v20, %v1422_v57  ;;  %v1519_v56 = vadd.f32 %v1511_v43, %v1485_v59 }
  0x9a   :  { %v1397_v0 = vadd.f32 %v1389_v58, %v1371_v17  ;;  %v5015_v50 = vmul.f32 0.0, %v4996_v51  ;;  %v1346_v46 = vadd.f32 %v1338_v53, %v1320_v34  ;;  %v5018_v63 = vmul.f32 0.0, %v5004_v35  ;;  %6768 = vst [vmem:[#allocation6_spill] sm:$0xff] %v5028_v48 }
  0x9b   :  { %v1486_v16 = vmul.f32 %v4719_v30, %v4947_v36  ;;  %v1512_v21 = vmul.f32 %v4685_v23, %v4962_v24  ;;  %1456 = vst [vmem:[#allocation3 + $0xd8] sm:$0xff] %v1448_v40  ;;  %v1545_v28 = vadd.f32 %v1537_v6, %v1519_v56  ;;  %v1487_v58 = vmul.f32 %v4712_v18, %v4947_v36 }
  0x9c   :  { %v1423_v11 = vadd.f32 %v1415_v19, %v1397_v0  ;;  %v1513_v2 = vmul.f32 %v4719_v30, %v4962_v24  ;;  %v1372_v53 = vadd.f32 %v1364_v39, %v1346_v46  ;;  %v1539_v33 = vmul.f32 %v4685_v23, %v4967_v1 }
  0x9d   :  { %v1520_v55 = vadd.f32 %v1512_v21, %v1486_v16  ;;  %v1488_v62 = vmul.f32 %v4740_v15, %v4947_v36  ;;  %v1571_v19 = vadd.f32 %v1563_v3, %v1545_v28  ;;  %v1514_v57 = vmul.f32 %v4712_v18, %v4962_v24 }
  0x9e   :  { %v1449_v13 = vadd.f32 %v4856_v20, %v1423_v11  ;;  %v1521_v59 = vadd.f32 %v1513_v2, %v1487_v58  ;;  %v1398_v17 = vadd.f32 %v1390_v37, %v1372_v53  ;;  %v1540_v34 = vmul.f32 %v4719_v30, %v4967_v1 }
  0x9f   :  { %v1546_v43 = vadd.f32 %v1537_v6, %v1520_v55  ;;  %v1566_v39 = vmul.f32 %v4685_v23, %v4975_v41  ;;  %v1597_v40 = vadd.f32 %v1589_v27, %v1571_v19  ;;  %v1522_v56 = vadd.f32 %v1514_v57, %v1488_v62  ;;  %v5047_v6 = vld [vmem:[#allocation3 + $0xf5] sm:$0xff]  ;;  %v5057_v57 = vld [vmem:[#allocation3 + $0x4] sm:$0xff] }
  0xa0   :  { %1457 = vst [vmem:[#allocation3 + $0xe8] sm:$0xff] %v1449_v13  ;;  %v1547_v0 = vadd.f32 %v1539_v33, %v1521_v59  ;;  %v1489_v20 = vmul.f32 %v4731_v7, %v4947_v36  ;;  %v1424_v46 = vadd.f32 %v1416_v54, %v1398_v17  ;;  %v1515_v21 = vmul.f32 %v4740_v15, %v4962_v24 }
  0xa1   :  { %v1572_v16 = vadd.f32 %v1563_v3, %v1546_v43  ;;  %v1541_v37 = vmul.f32 %v4712_v18, %v4967_v1  ;;  %6769 = vst [vmem:[#allocation7_spill] sm:$0xff] %v5047_v6  ;;  %v1623_v11 = vadd.f32 %v5011_v22, %v1597_v40  ;;  %v1548_v58 = vadd.f32 %v1540_v34, %v1522_v56 }
  0xa2   :  { %v1573_v28 = vadd.f32 %v1563_v3, %v1547_v0  ;;  %v1567_v2 = vmul.f32 %v4719_v30, %v4975_v41  ;;  %v1450_v53 = vadd.f32 %v1442_v12, %v1424_v46  ;;  %v1523_v33 = vadd.f32 %v1515_v21, %v1489_v20  ;;  %v5071_v21 = vld [vmem:[#allocation3 + $0x14] sm:$0xff] }
  0xa3   :  { %v1598_v55 = vadd.f32 %v1589_v27, %v1572_v16  ;;  %v1593_v54 = vmul.f32 %v4685_v23, %v4980_v42  ;;  %v1649_v62 = vadd.f32 %v5015_v50, %v1623_v11  ;;  %v1574_v19 = vadd.f32 %v1566_v39, %v1548_v58 }
  0xa4   :  { %v1599_v13 = vadd.f32 %v1589_v27, %v1573_v28  ;;  %v1490_v59 = vmul.f32 %v4761_v10, %v4947_v36  ;;  %1458 = vst [vmem:[#allocation3 + $0xf8] sm:$0xff] %v1450_v53  ;;  %v1549_v17 = vadd.f32 %v1541_v37, %v1523_v33  ;;  %v1516_v12 = vmul.f32 %v4731_v7, %v4962_v24 }
  0xa5   :  { %v1624_v3 = vadd.f32 %v5011_v22, %v1598_v55  ;;  %v1542_v43 = vmul.f32 %v4740_v15, %v4967_v1  ;;  %v1675_v34 = vadd.f32 %v5018_v63, %v1649_v62  ;;  %v1600_v39 = vadd.f32 %v1589_v27, %v1574_v19 }
  0xa6   :  { %v1625_v40 = vadd.f32 %v5011_v22, %v1599_v13  ;;  %v1568_v0 = vmul.f32 %v4712_v18, %v4975_v41  ;;  %v1575_v20 = vadd.f32 %v1567_v2, %v1549_v17  ;;  %v1524_v46 = vadd.f32 %v1516_v12, %v1490_v59  ;;  %v5080_v2 = vld [vmem:[#allocation3 + $0x24] sm:$0xff] }
  0xa7   :  { %v1650_v56 = vadd.f32 %v5015_v50, %v1624_v3  ;;  %v1594_v16 = vmul.f32 %v4719_v30, %v4980_v42  ;;  %1683 = vst [vmem:[#allocation3 + $0x8] sm:$0xff] %v1675_v34  ;;  %v1626_v11 = vadd.f32 %v5011_v22, %v1600_v39  ;;  %v1620_v27 = vmul.f32 %v4685_v23, %v4985_v25  ;;  %v5090_v3 = vld [vmem:[#allocation3 + $0x34] sm:$0xff] }
  0xa8   :  { %v1651_v37 = vadd.f32 %v5015_v50, %v1625_v40  ;;  %v1491_v28 = vmul.f32 %v4784_v29, %v4947_v36  ;;  %v1601_v53 = vadd.f32 %v1593_v54, %v1575_v20  ;;  %v1550_v55 = vadd.f32 %v1542_v43, %v1524_v46 }
  0xa9   :  { %v1676_v58 = vadd.f32 %v5018_v63, %v1650_v56  ;;  %v1517_v33 = vmul.f32 %v4761_v10, %v4962_v24  ;;  %v1652_v13 = vadd.f32 %v5015_v50, %v1626_v11  ;;  %v1543_v19 = vmul.f32 %v4731_v7, %v4967_v1  ;;  %v5113_v11 = vld [vmem:[%s6763_s1 + $0x1c8] sm:$0xff] }
  0xaa   :  { %v1677_v62 = vadd.f32 %v5018_v63, %v1651_v37  ;;  %v1569_v59 = vmul.f32 %v4740_v15, %v4975_v41  ;;  %v1627_v17 = vadd.f32 %v5011_v22, %v1601_v53  ;;  %v1576_v54 = vadd.f32 %v1568_v0, %v1550_v55  ;;  %v5108_v37 = vld [vmem:[%s6763_s1 + $0x1c0] sm:$0xff]  ;;  %v5128_v53 = vld [vmem:[%s6763_s1 + $0x1d0] sm:$0xff] }
  0xab   :  { %1684 = vst [vmem:[#allocation3 + $0x18] sm:$0xff] %v1676_v58  ;;  %v1525_v12 = vadd.f32 %v1517_v33, %v1491_v28  ;;  %v1595_v43 = vmul.f32 %v4712_v18, %v4980_v42  ;;  %v1678_v34 = vadd.f32 %v5018_v63, %v1652_v13  ;;  %v1621_v40 = vmul.f32 %v4719_v30, %v4985_v25  ;;  %v5115_v28 = vld [vmem:[#allocation3 + $0x44] sm:$0xff] }
  0xac   :  { %1685 = vst [vmem:[#allocation3 + $0x28] sm:$0xff] %v1677_v62  ;;  %v1647_v39 = vmul.f32 %v4685_v23, %v4996_v51  ;;  %v1492_v56 = vmul.f32 %v4940_v4, %v4947_v36  ;;  %v1653_v20 = vadd.f32 %v5015_v50, %v1627_v17  ;;  %v1602_v22 = vadd.f32 %v1594_v16, %v1576_v54  ;;  %v5156_v17 = vld [vmem:[%s6763_s1 + $0x1f0] sm:$0xff] }
  0xad   :  { %v1551_v0 = vadd.f32 %v1543_v19, %v1525_v12  ;;  %v1518_v46 = vmul.f32 %v4784_v29, %v4962_v24  ;;  %1686 = vst [vmem:[#allocation3 + $0x38] sm:$0xff] %v1678_v34  ;;  %v1544_v36 = vmul.f32 %v4761_v10, %v4967_v1  ;;  %v1570_v16 = vmul.f32 %v4731_v7, %v4975_v41  ;;  %v5134_v1 = vld [vmem:[%s6763_s1 + $0x1d8] sm:$0xff]  ;;  %v5139_v41 = vld [vmem:[%s6763_s1 + $0x1e0] sm:$0xff] }
  0xae   :  { %v1596_v24 = vmul.f32 %v4740_v15, %v4980_v42  ;;  %v1622_v58 = vmul.f32 %v4712_v18, %v4985_v25  ;;  %v1679_v55 = vadd.f32 %v5018_v63, %v1653_v20  ;;  %v1628_v33 = vadd.f32 %v1620_v27, %v1602_v22  ;;  %v5144_v42 = vld [vmem:[%s6763_s1 + $0x1e8] sm:$0xff] }
  0xaf   :  { %v1577_v62 = vadd.f32 %v1569_v59, %v1551_v0  ;;  %v1526_v13 = vadd.f32 %v1518_v46, %v1492_v56  ;;  %v1648_v25 = vmul.f32 %v4719_v30, %v4996_v51  ;;  %v1674_v27 = vmul.f32 %v4685_v23, %v5004_v35  ;;  %v5163_v35 = vld [vmem:[%s6763_s1 + $0x1f8] sm:$0xff] }
  0xb0   :  { %v1717_v19 = vmul.f32 %v4685_v23, %v5108_v37  ;;  %v1743_v59 = vmul.f32 0.0, %v5113_v11  ;;  %1687 = vst [vmem:[#allocation3 + $0x48] sm:$0xff] %v1679_v55  ;;  %v1654_v54 = vadd.f32 %v5015_v50, %v1628_v33  ;;  %v1769_v51 = vmul.f32 0.0, %v5128_v53  ;;  %v5165_v56 = vld [vmem:[#allocation3 + $0x54] sm:$0xff] }
  0xb1   :  { %v1603_v12 = vadd.f32 %v1595_v43, %v1577_v62  ;;  %v1552_v34 = vadd.f32 %v1544_v36, %v1526_v13  ;;  %6770 = vst [vmem:[#allocation8_spill] sm:$0xff] %v5165_v56  ;;  %v1795_v22 = vmul.f32 0.0, %v5134_v1  ;;  %v1821_v0 = vmul.f32 0.0, %v5139_v41 }
  0xb2   :  { %v1751_v20 = vadd.f32 %v1743_v59, %v1717_v19  ;;  %v5170_v46 = vmul.f32 0.0, %v5144_v42  ;;  %v1680_v50 = vadd.f32 %v5018_v63, %v1654_v54  ;;  %v5174_v55 = vmul.f32 0.0, %v5156_v17  ;;  %v5187_v54 = vld [vmem:[#allocation3 + $0x64] sm:$0xff] }
  0xb3   :  { %v1629_v43 = vadd.f32 %v1621_v40, %v1603_v12  ;;  %v1578_v36 = vadd.f32 %v1570_v16, %v1552_v34  ;;  %v5177_v62 = vmul.f32 0.0, %v5163_v35  ;;  %v1718_v13 = vmul.f32 %v4719_v30, %v5108_v37  ;;  %6771 = vst [vmem:[#allocation9_spill] sm:$0xff] %v5187_v54 }
  0xb4   :  { %v1777_v33 = vadd.f32 %v1769_v51, %v1751_v20  ;;  %v1744_v19 = vmul.f32 %v4685_v23, %v5113_v11  ;;  %1688 = vst [vmem:[#allocation3 + $0x58] sm:$0xff] %v1680_v50  ;;  %v1719_v40 = vmul.f32 %v4712_v18, %v5108_v37  ;;  %v1745_v16 = vmul.f32 %v4719_v30, %v5113_v11 }
  0xb5   :  { %v1655_v59 = vadd.f32 %v1647_v39, %v1629_v43  ;;  %v1604_v6 = vadd.f32 %v1596_v24, %v1578_v36  ;;  %v1771_v20 = vmul.f32 %v4685_v23, %v5128_v53  ;;  %v1720_v48 = vmul.f32 %v4740_v15, %v5108_v37 }
  0xb6   :  { %v1803_v12 = vadd.f32 %v1795_v22, %v1777_v33  ;;  %v1752_v34 = vadd.f32 %v1744_v19, %v1718_v13  ;;  %v1753_v24 = vadd.f32 %v1745_v16, %v1719_v40  ;;  %v1746_v43 = vmul.f32 %v4712_v18, %v5113_v11 }
  0xb7   :  { %v1681_v50 = vadd.f32 %v5018_v63, %v1655_v59  ;;  %v1630_v39 = vadd.f32 %v1622_v58, %v1604_v6  ;;  %v1772_v54 = vmul.f32 %v4719_v30, %v5128_v53  ;;  %v1798_v33 = vmul.f32 %v4685_v23, %v5134_v1  ;;  %v5202_v6 = vld [vmem:[#allocation3 + $0x74] sm:$0xff] }
  0xb8   :  { %v1829_v36 = vadd.f32 %v1821_v0, %v1803_v12  ;;  %v1778_v32 = vadd.f32 %v1769_v51, %v1752_v34  ;;  %v1779_v19 = vadd.f32 %v1771_v20, %v1753_v24  ;;  %v1754_v56 = vadd.f32 %v1746_v43, %v1720_v48  ;;  %6772 = vst [vmem:[#allocation10_spill] sm:$0xff] %v5202_v6 }
  0xb9   :  { %1689 = vst [vmem:[#allocation3 + $0x68] sm:$0xff] %v1681_v50  ;;  %v1656_v13 = vadd.f32 %v1648_v25, %v1630_v39  ;;  %v1721_v63 = vmul.f32 %v4731_v7, %v5108_v37  ;;  %v1747_v51 = vmul.f32 %v4740_v15, %v5113_v11  ;;  %v1773_v40 = vmul.f32 %v4712_v18, %v5128_v53 }
  0xba   :  { %v1855_v58 = vadd.f32 %v5170_v46, %v1829_v36  ;;  %v1804_v59 = vadd.f32 %v1795_v22, %v1778_v32  ;;  %v1805_v12 = vadd.f32 %v1795_v22, %v1779_v19  ;;  %v1780_v34 = vadd.f32 %v1772_v54, %v1754_v56  ;;  %v5214_v32 = vld [vmem:[#allocation3 + $0x83] sm:$0xff] }
  0xbb   :  { %v1682_v16 = vadd.f32 %v1674_v27, %v1656_v13  ;;  %v1799_v48 = vmul.f32 %v4719_v30, %v5134_v1  ;;  %v1755_v50 = vadd.f32 %v1747_v51, %v1721_v63  ;;  %v1825_v39 = vmul.f32 %v4685_v23, %v5139_v41 }
  0xbc   :  { %v1881_v25 = vadd.f32 %v5174_v55, %v1855_v58  ;;  %v1830_v20 = vadd.f32 %v1821_v0, %v1804_v59  ;;  %v1831_v24 = vadd.f32 %v1821_v0, %v1805_v12  ;;  %v1806_v43 = vadd.f32 %v1798_v33, %v1780_v34  ;;  %v5232_v12 = vld [vmem:[#allocation3 + $0x93] sm:$0xff] }
  0xbd   :  { %1690 = vst [vmem:[#allocation3 + $0x78] sm:$0xff] %v1682_v16  ;;  %v1722_v27 = vmul.f32 %v4761_v10, %v5108_v37  ;;  %v1748_v56 = vmul.f32 %v4731_v7, %v5113_v11  ;;  %v1781_v36 = vadd.f32 %v1773_v40, %v1755_v50  ;;  %v1774_v13 = vmul.f32 %v4740_v15, %v5128_v53 }
  0xbe   :  { %v1907_v22 = vadd.f32 %v5177_v62, %v1881_v25  ;;  %v1856_v54 = vadd.f32 %v5170_v46, %v1830_v20  ;;  %v1857_v19 = vadd.f32 %v5170_v46, %v1831_v24  ;;  %v1832_v63 = vadd.f32 %v1821_v0, %v1806_v43  ;;  %v5239_v24 = vld [vmem:[#allocation3 + $0xa3] sm:$0xff] }
  0xbf   :  { %v1756_v58 = vadd.f32 %v1748_v56, %v1722_v27  ;;  %v1800_v33 = vmul.f32 %v4712_v18, %v5134_v1  ;;  %v1807_v51 = vadd.f32 %v1799_v48, %v1781_v36  ;;  %v1826_v16 = vmul.f32 %v4719_v30, %v5139_v41 }
  0xc0   :  { %1915 = vst [vmem:[#allocation3 + $0x88] sm:$0xff] %v1907_v22  ;;  %v1882_v59 = vadd.f32 %v5174_v55, %v1856_v54  ;;  %v1852_v40 = vmul.f32 %v4685_v23, %v5144_v42  ;;  %v1883_v34 = vadd.f32 %v5174_v55, %v1857_v19  ;;  %v1858_v0 = vadd.f32 %v5170_v46, %v1832_v63 }
  0xc1   :  { %v1782_v25 = vadd.f32 %v1774_v13, %v1756_v58  ;;  %v1723_v20 = vmul.f32 %v4784_v29, %v5108_v37  ;;  %v1833_v48 = vadd.f32 %v1825_v39, %v1807_v51  ;;  %v1749_v43 = vmul.f32 %v4761_v10, %v5113_v11  ;;  %v5249_v13 = vld [vmem:[#allocation3 + $0xb3] sm:$0xff] }
  0xc2   :  { %v1908_v50 = vadd.f32 %v5177_v62, %v1882_v59  ;;  %v1775_v27 = vmul.f32 %v4731_v7, %v5128_v53  ;;  %v1909_v56 = vadd.f32 %v5177_v62, %v1883_v34  ;;  %v1884_v22 = vadd.f32 %v5174_v55, %v1858_v0  ;;  %6773 = vst [vmem:[#allocation11_spill] sm:$0xff] %v5249_v13 }
  0xc3   :  { %v1808_v54 = vadd.f32 %v1800_v33, %v1782_v25  ;;  %v1801_v36 = vmul.f32 %v4740_v15, %v5134_v1  ;;  %v1859_v19 = vadd.f32 %v5170_v46, %v1833_v48  ;;  %v1757_v39 = vadd.f32 %v1749_v43, %v1723_v20  ;;  %v5292_v48 = vld [vmem:[%s6763_s1 + $0x18] sm:$0xff] }
  0xc4   :  { %1916 = vst [vmem:[#allocation3 + $0x98] sm:$0xff] %v1908_v50  ;;  %v1827_v63 = vmul.f32 %v4712_v18, %v5139_v41  ;;  %v1853_v58 = vmul.f32 %v4719_v30, %v5144_v42  ;;  %v1910_v59 = vadd.f32 %v5177_v62, %v1884_v22  ;;  %v1879_v33 = vmul.f32 %v4685_v23, %v5156_v17  ;;  %v5269_v50 = vld [vmem:[%s6763_s1] sm:$0xff]  ;;  %v5326_v22 = vld [vmem:[%s6763_s1 + $0x38] sm:$0xff] }
  0xc5   :  { %1917 = vst [vmem:[#allocation3 + $0xa8] sm:$0xff] %v1909_v56  ;;  %v1834_v51 = vadd.f32 %v1826_v16, %v1808_v54  ;;  %v1724_v34 = vmul.f32 %v4940_v4, %v5108_v37  ;;  %v1885_v0 = vadd.f32 %v5174_v55, %v1859_v19  ;;  %v1783_v46 = vadd.f32 %v1775_v27, %v1757_v39  ;;  %v5274_v16 = vld [vmem:[%s6763_s1 + $0x8] sm:$0xff]  ;;  %v5321_v56 = vld [vmem:[%s6763_s1 + $0x30] sm:$0xff] }
  0xc6   :  { %v1750_v25 = vmul.f32 %v4784_v29, %v5113_v11  ;;  %v1776_v20 = vmul.f32 %v4761_v10, %v5128_v53  ;;  %1918 = vst [vmem:[#allocation3 + $0xb8] sm:$0xff] %v1910_v59  ;;  %v5276_v4 = vld [vmem:[#allocation3 + $0xc3] sm:$0xff]  ;;  %v1802_v29 = vmul.f32 %v4731_v7, %v5134_v1  ;;  %v1828_v10 = vmul.f32 %v4740_v15, %v5139_v41  ;;  %v5287_v53 = vld [vmem:[%s6763_s1 + $0x10] sm:$0xff] }
  0xc7   :  { %6774 = vst [vmem:[#allocation12_spill] sm:$0xff] %v5276_v4  ;;  %v1860_v37 = vadd.f32 %v1852_v40, %v1834_v51  ;;  %v1854_v11 = vmul.f32 %v4712_v18, %v5144_v42  ;;  %v1911_v40 = vadd.f32 %v5177_v62, %v1885_v0  ;;  %v1809_v43 = vadd.f32 %v1801_v36, %v1783_v46  ;;  %v5300_v18 = vld [vmem:[%s6762_s0 + $0x40] sm:$0xff]  ;;  %v5310_v41 = vld [vmem:[%s6763_s1 + $0x28] sm:$0xff] }
  0xc8   :  { %v1758_v7 = vadd.f32 %v1750_v25, %v1724_v34  ;;  %v1880_v15 = vmul.f32 %v4719_v30, %v5156_v17  ;;  %v5305_v1 = vld [vmem:[%s6763_s1 + $0x20] sm:$0xff]  ;;  %v1906_v30 = vmul.f32 %v4685_v23, %v5163_v35  ;;  %v1957_v17 = vmul.f32 %v5269_v50, %v5300_v18  ;;  %v5346_v25 = vld [vmem:[%s6762_s0 + $0x48] sm:$0xff] }
  0xc9   :  { %v1886_v42 = vadd.f32 %v5174_v55, %v1860_v37  ;;  %v1983_v27 = vmul.f32 0.0, %v5274_v16  ;;  %1919 = vst [vmem:[#allocation3 + $0xc8] sm:$0xff] %v1911_v40  ;;  %v5328_v55 = vld [vmem:[#allocation3 + $0xd3] sm:$0xff]  ;;  %v1835_v54 = vadd.f32 %v1827_v63, %v1809_v43  ;;  %v2009_v35 = vmul.f32 0.0, %v5287_v53 }
  0xca   :  { %6775 = vst [vmem:[#allocation13_spill] sm:$0xff] %v5328_v55  ;;  %v1784_v23 = vadd.f32 %v1776_v20, %v1758_v7  ;;  %v2035_v36 = vmul.f32 0.0, %v5292_v48  ;;  %v2061_v59 = vmul.f32 0.0, %v5305_v1  ;;  %v5335_v51 = vmul.f32 0.0, %v5310_v41  ;;  %v5351_v20 = vld [vmem:[%s6762_s0 + $0x50] sm:$0xff] }
  0xcb   :  { %v1912_v19 = vadd.f32 %v5177_v62, %v1886_v42  ;;  %v1991_v39 = vadd.f32 %v1983_v27, %v1957_v17  ;;  %v1861_v34 = vadd.f32 %v1853_v58, %v1835_v54  ;;  %v5338_v46 = vmul.f32 0.0, %v5321_v56  ;;  %v5366_v27 = vld [vmem:[%s6762_s0 + $0x58] sm:$0xff]  ;;  %v5368_v54 = vld [vmem:[#allocation3 + $0xe3] sm:$0xff] }
  0xcc   :  { %v1810_v0 = vadd.f32 %v1802_v29, %v1784_v23  ;;  %v5341_v63 = vmul.f32 0.0, %v5326_v22  ;;  %v1958_v58 = vmul.f32 %v5269_v50, %v5346_v25  ;;  %v1984_v29 = vmul.f32 %v5274_v16, %v5300_v18  ;;  %6776 = vst [vmem:[#allocation14_spill] sm:$0xff] %v5368_v54 }
  0xcd   :  { %1920 = vst [vmem:[#allocation3 + $0xd8] sm:$0xff] %v1912_v19  ;;  %v2017_v37 = vadd.f32 %v2009_v35, %v1991_v39  ;;  %v1959_v40 = vmul.f32 %v5269_v50, %v5351_v20  ;;  %v1887_v43 = vadd.f32 %v1879_v33, %v1861_v34  ;;  %v1985_v42 = vmul.f32 %v5274_v16, %v5346_v25 }
  0xce   :  { %v1836_v7 = vadd.f32 %v1828_v10, %v1810_v0  ;;  %v2011_v17 = vmul.f32 %v5287_v53, %v5300_v18  ;;  %v1992_v19 = vadd.f32 %v1984_v29, %v1958_v58  ;;  %v1960_v39 = vmul.f32 %v5269_v50, %v5366_v27  ;;  %v5382_v58 = vld [vmem:[%s6762_s0 + $0x60] sm:$0xff] }
  0xcf   :  { %v2043_v23 = vadd.f32 %v2035_v36, %v2017_v37  ;;  %v1986_v33 = vmul.f32 %v5274_v16, %v5351_v20  ;;  %v1913_v10 = vadd.f32 %v5177_v62, %v1887_v43  ;;  %v1993_v0 = vadd.f32 %v1985_v42, %v1959_v40  ;;  %v5388_v40 = vld [vmem:[#allocation3 + $0xf3] sm:$0xff] }
  0xd0   :  { %v1862_v34 = vadd.f32 %v1854_v11, %v1836_v7  ;;  %v2012_v6 = vmul.f32 %v5287_v53, %v5346_v25  ;;  %v2018_v4 = vadd.f32 %v2009_v35, %v1992_v19  ;;  %v2038_v37 = vmul.f32 %v5292_v48, %v5300_v18  ;;  %6777 = vst [vmem:[#allocation15_spill] sm:$0xff] %v5388_v40 }
  0xd1   :  { %v2069_v55 = vadd.f32 %v2061_v59, %v2043_v23  ;;  %v1994_v13 = vadd.f32 %v1986_v33, %v1960_v39  ;;  %1921 = vst [vmem:[#allocation3 + $0xe8] sm:$0xff] %v1913_v10  ;;  %v2019_v54 = vadd.f32 %v2011_v17, %v1993_v0  ;;  %v1961_v62 = vmul.f32 %v5269_v50, %v5382_v58 }
  0xd2   :  { %v1888_v29 = vadd.f32 %v1880_v15, %v1862_v34  ;;  %v1987_v11 = vmul.f32 %v5274_v16, %v5366_v27  ;;  %v2044_v43 = vadd.f32 %v2035_v36, %v2018_v4  ;;  %v2013_v42 = vmul.f32 %v5287_v53, %v5351_v20 }
  0xd3   :  { %v2095_v35 = vadd.f32 %v5335_v51, %v2069_v55  ;;  %v2020_v7 = vadd.f32 %v2012_v6, %v1994_v13  ;;  %v2045_v19 = vadd.f32 %v2035_v36, %v2019_v54  ;;  %v2039_v15 = vmul.f32 %v5292_v48, %v5346_v25  ;;  %v5401_v6 = vld [vmem:[%s6762_s0 + $0x68] sm:$0xff] }
  0xd4   :  { %v1914_v23 = vadd.f32 %v1906_v30, %v1888_v29  ;;  %v1995_v39 = vadd.f32 %v1987_v11, %v1961_v62  ;;  %v2070_v33 = vadd.f32 %v2061_v59, %v2044_v43  ;;  %v2065_v34 = vmul.f32 %v5305_v1, %v5300_v18 }
  0xd5   :  { %v2121_v17 = vadd.f32 %v5338_v46, %v2095_v35  ;;  %v2046_v10 = vadd.f32 %v2038_v37, %v2020_v7  ;;  %v2071_v13 = vadd.f32 %v2061_v59, %v2045_v19  ;;  %v1962_v30 = vmul.f32 %v5269_v50, %v5401_v6 }
  0xd6   :  { %1922 = vst [vmem:[#allocation3 + $0xf8] sm:$0xff] %v1914_v23  ;;  %v2021_v4 = vadd.f32 %v2013_v42, %v1995_v39  ;;  %v1988_v55 = vmul.f32 %v5274_v16, %v5382_v58  ;;  %v5409_v36 = vadd.f32 %v4883_v8, %v4452_v52  ;;  %v2096_v54 = vadd.f32 %v5335_v51, %v2070_v33 }
  0xd7   :  { %v2072_v0 = vadd.f32 %v2061_v59, %v2046_v10  ;;  %v2014_v37 = vmul.f32 %v5287_v53, %v5366_v27  ;;  %v2097_v29 = vadd.f32 %v5335_v51, %v2071_v13  ;;  %v2040_v35 = vmul.f32 %v5292_v48, %v5351_v20  ;;  %v5427_v59 = vld [vmem:[%s6762_s0 + $0x70] sm:$0xff] }
  0xd8   :  { %6778 = vst [vmem:[#allocation16_spill] sm:$0xff] %v5409_v36  ;;  %v2047_v62 = vadd.f32 %v2039_v15, %v2021_v4  ;;  %v1996_v11 = vadd.f32 %v1988_v55, %v1962_v30  ;;  %v5418_v43 = vadd.f32 %v5341_v63, %v2121_v17  ;;  %v2122_v7 = vadd.f32 %v5338_v46, %v2096_v54 }
  0xd9   :  { %v2098_v52 = vadd.f32 %v5335_v51, %v2072_v0  ;;  %v2066_v8 = vmul.f32 %v5305_v1, %v5346_v25  ;;  %v2123_v42 = vadd.f32 %v5338_v46, %v2097_v29  ;;  %v1963_v39 = vmul.f32 %v5269_v50, %v5427_v59  ;;  %v5456_v29 = vld [vmem:[%s6762_s0 + $0x78] sm:$0xff] }
  0xda   :  { %6779 = vst [vmem:[#allocation17_spill] sm:$0xff] %v5418_v43  ;;  %v2073_v23 = vadd.f32 %v2065_v34, %v2047_v62  ;;  %v2022_v19 = vadd.f32 %v2014_v37, %v1996_v11  ;;  %v2092_v17 = vmul.f32 %v5310_v41, %v5300_v18  ;;  %v1989_v33 = vmul.f32 %v5274_v16, %v5401_v6 }
  0xdb   :  { %v2124_v15 = vadd.f32 %v5338_v46, %v2098_v52  ;;  %v2015_v10 = vmul.f32 %v5287_v53, %v5382_v58  ;;  %v5440_v13 = vadd.f32 %v5341_v63, %v2122_v7  ;;  %v5443_v34 = vadd.f32 %v5341_v63, %v2123_v42 }
  0xdc   :  { %v2099_v4 = vadd.f32 %v5335_v51, %v2073_v23  ;;  %v2048_v30 = vadd.f32 %v2040_v35, %v2022_v19  ;;  %v1997_v54 = vadd.f32 %v1989_v33, %v1963_v39  ;;  %v2041_v0 = vmul.f32 %v5292_v48, %v5366_v27  ;;  %v5477_v19 = vld [vmem:[%s6763_s1 + $0x48] sm:$0xff]  ;;  %v5494_v33 = vld [vmem:[%s6763_s1 + $0x58] sm:$0xff] }
  0xdd   :  { %6780 = vst [vmem:[#allocation18_spill] sm:$0xff] %v5440_v13  ;;  %v5447_v55 = vadd.f32 %v5341_v63, %v2124_v15  ;;  %v2067_v37 = vmul.f32 %v5305_v1, %v5351_v20  ;;  %v2093_v51 = vmul.f32 %v5310_v41, %v5346_v25  ;;  %v1964_v35 = vmul.f32 %v5269_v50, %v5456_v29  ;;  %v5482_v50 = vld [vmem:[%s6763_s1 + $0x50] sm:$0xff] }
  0xde   :  { %6781 = vst [vmem:[#allocation19_spill] sm:$0xff] %v5443_v34  ;;  %v2125_v62 = vadd.f32 %v5338_v46, %v2099_v4  ;;  %v2074_v11 = vadd.f32 %v2066_v8, %v2048_v30  ;;  %v2023_v7 = vadd.f32 %v2015_v10, %v1997_v54  ;;  %v2119_v52 = vmul.f32 %v5321_v56, %v5300_v18  ;;  %v5472_v8 = vld [vmem:[%s6763_s1 + $0x40] sm:$0xff] }
  0xdf   :  { %6782 = vst [vmem:[#allocation20_spill] sm:$0xff] %v5447_v55  ;;  %v1990_v42 = vmul.f32 %v5274_v16, %v5427_v59  ;;  %v2016_v23 = vmul.f32 %v5287_v53, %v5401_v6  ;;  %v2042_v53 = vmul.f32 %v5292_v48, %v5382_v58  ;;  %v2068_v15 = vmul.f32 %v5305_v1, %v5366_v27  ;;  %v5503_v48 = vld [vmem:[%s6763_s1 + $0x60] sm:$0xff]  ;;  %v5508_v1 = vld [vmem:[%s6763_s1 + $0x68] sm:$0xff] }
  0xe0   :  { %v5485_v16 = vadd.f32 %v5341_v63, %v2125_v62  ;;  %v2100_v39 = vadd.f32 %v2092_v17, %v2074_v11  ;;  %v2049_v10 = vadd.f32 %v2041_v0, %v2023_v7  ;;  %v2094_v30 = vmul.f32 %v5310_v41, %v5351_v20 }
  0xe1   :  { %v1998_v4 = vadd.f32 %v1990_v42, %v1964_v35  ;;  %v2120_v54 = vmul.f32 %v5321_v56, %v5346_v25  ;;  %v2188_v0 = vmul.f32 %v5472_v8, %v5300_v18  ;;  %v2213_v41 = vmul.f32 0.0, %v5477_v19  ;;  %v5518_v56 = vld [vmem:[%s6763_s1 + $0x70] sm:$0xff] }
  0xe2   :  { %6783 = vst [vmem:[#allocation21_spill] sm:$0xff] %v5485_v16  ;;  %v2126_v17 = vadd.f32 %v5338_v46, %v2100_v39  ;;  %v2238_v62 = vmul.f32 0.0, %v5482_v50  ;;  %v2075_v11 = vadd.f32 %v2067_v37, %v2049_v10  ;;  %v5522_v7 = vmul.f32 %v5326_v22, %v5300_v18  ;;  %v5540_v10 = vld [vmem:[%s6763_s1 + $0x78] sm:$0xff] }
  0xe3   :  { %v2024_v35 = vadd.f32 %v2016_v23, %v1998_v4  ;;  %v2263_v46 = vmul.f32 0.0, %v5494_v33  ;;  %v2221_v39 = vadd.f32 %v2213_v41, %v2188_v0  ;;  %v2288_v16 = vmul.f32 0.0, %v5503_v48 }
  0xe4   :  { %6784 = vst [vmem:[#allocation22_spill] sm:$0xff] %v5522_v7  ;;  %v5526_v42 = vadd.f32 %v5341_v63, %v2126_v17  ;;  %v5530_v55 = vmul.f32 0.0, %v5508_v1  ;;  %v2101_v34 = vadd.f32 %v2093_v51, %v2075_v11  ;;  %v5533_v37 = vmul.f32 0.0, %v5518_v56 }
  0xe5   :  { %v2050_v13 = vadd.f32 %v2042_v53, %v2024_v35  ;;  %v2189_v22 = vmul.f32 %v5472_v8, %v5346_v25  ;;  %v2246_v23 = vadd.f32 %v2238_v62, %v2221_v39  ;;  %v2214_v4 = vmul.f32 %v5477_v19, %v5300_v18 }
  0xe6   :  { %6785 = vst [vmem:[#allocation23_spill] sm:$0xff] %v5526_v42  ;;  %v2190_v17 = vmul.f32 %v5472_v8, %v5351_v20  ;;  %v2215_v51 = vmul.f32 %v5477_v19, %v5346_v25  ;;  %v2127_v53 = vadd.f32 %v2119_v52, %v2101_v34  ;;  %v2240_v41 = vmul.f32 %v5482_v50, %v5300_v18 }
  0xe7   :  { %v2076_v0 = vadd.f32 %v2068_v15, %v2050_v13  ;;  %v2191_v11 = vmul.f32 %v5472_v8, %v5366_v27  ;;  %v2271_v35 = vadd.f32 %v2263_v46, %v2246_v23  ;;  %v2222_v39 = vadd.f32 %v2214_v4, %v2189_v22 }
  0xe8   :  { %v2223_v42 = vadd.f32 %v2215_v51, %v2190_v17  ;;  %v2216_v40 = vmul.f32 %v5477_v19, %v5351_v20  ;;  %v5555_v36 = vmul.f32 0.0, %v5540_v10  ;;  %v2241_v34 = vmul.f32 %v5482_v50, %v5346_v25 }
  0xe9   :  { %v2102_v43 = vadd.f32 %v2094_v30, %v2076_v0  ;;  %v2266_v13 = vmul.f32 %v5494_v33, %v5300_v18  ;;  %v2296_v52 = vadd.f32 %v2288_v16, %v2271_v35  ;;  %v2247_v15 = vadd.f32 %v2238_v62, %v2222_v39 }
  0xea   :  { %v2248_v7 = vadd.f32 %v2240_v41, %v2223_v42  ;;  %v2224_v31 = vadd.f32 %v2216_v40, %v2191_v11  ;;  %v5562_v22 = vadd.f32 %v5341_v63, %v2127_v53  ;;  %v2192_v23 = vmul.f32 %v5472_v8, %v5382_v58 }
  0xeb   :  { %v2217_v30 = vmul.f32 %v5477_v19, %v5366_v27  ;;  %v2242_v4 = vmul.f32 %v5482_v50, %v5351_v20  ;;  %v2321_v17 = vadd.f32 %v5530_v55, %v2296_v52  ;;  %v2272_v51 = vadd.f32 %v2263_v46, %v2247_v15 }
  0xec   :  { %6786 = vst [vmem:[#allocation24_spill] sm:$0xff] %v5562_v22  ;;  %v2273_v0 = vadd.f32 %v2263_v46, %v2248_v7  ;;  %v2249_v35 = vadd.f32 %v2241_v34, %v2224_v31  ;;  %v5571_v62 = vadd.f32 %v2120_v54, %v2102_v43  ;;  %v2267_v63 = vmul.f32 %v5494_v33, %v5346_v25  ;;  %v5578_v22 = vld [vmem:[#allocation3 + $0x81] sm:$0xff] }
  0xed   :  { %v2225_v40 = vadd.f32 %v2217_v30, %v2192_v23  ;;  %v2292_v42 = vmul.f32 %v5503_v48, %v5300_v18  ;;  %v2346_v53 = vadd.f32 %v5533_v37, %v2321_v17  ;;  %v2297_v41 = vadd.f32 %v2288_v16, %v2272_v51 }
  0xee   :  { %v2298_v11 = vadd.f32 %v2288_v16, %v2273_v0  ;;  %v2274_v39 = vadd.f32 %v2266_v13, %v2249_v35  ;;  %v2193_v31 = vmul.f32 %v5472_v8, %v5401_v6  ;;  %v2218_v43 = vmul.f32 %v5477_v19, %v5382_v58 }
  0xef   :  { %v2250_v52 = vadd.f32 %v2242_v4, %v2225_v40  ;;  %v2243_v54 = vmul.f32 %v5482_v50, %v5366_v27  ;;  %v2371_v7 = vadd.f32 %v5555_v36, %v2346_v53  ;;  %v2322_v46 = vadd.f32 %v5530_v55, %v2297_v41  ;;  %v5598_v40 = vld [vmem:[#allocation3 + $0x91] sm:$0xff] }
  0xf0   :  { %v2323_v34 = vadd.f32 %v5530_v55, %v2298_v11  ;;  %v2299_v15 = vadd.f32 %v2288_v16, %v2274_v39  ;;  %v2226_v23 = vadd.f32 %v2218_v43, %v2193_v31  ;;  %v2268_v30 = vmul.f32 %v5494_v33, %v5351_v20  ;;  %v5605_v39 = vld [vmem:[#allocation3 + $0xa1] sm:$0xff] }
  0xf1   :  { %v2275_v13 = vadd.f32 %v2267_v63, %v2250_v52  ;;  %v2293_v4 = vmul.f32 %v5503_v48, %v5346_v25  ;;  %2379 = vst [vmem:[#allocation3 + $0x88] sm:$0xff] %v2371_v7  ;;  %v2347_v17 = vadd.f32 %v5533_v37, %v2322_v46  ;;  %v2318_v35 = vmul.f32 %v5508_v1, %v5300_v18  ;;  %v5611_v7 = vld [vmem:[#allocation3 + $0xb1] sm:$0xff] }
  0xf2   :  { %v2348_v51 = vadd.f32 %v5533_v37, %v2323_v34  ;;  %v2324_v0 = vadd.f32 %v5530_v55, %v2299_v15  ;;  %v2251_v63 = vadd.f32 %v2243_v54, %v2226_v23  ;;  %v2194_v53 = vmul.f32 %v5472_v8, %v5427_v59 }
  0xf3   :  { %v2300_v16 = vadd.f32 %v2292_v42, %v2275_v13  ;;  %v2219_v41 = vmul.f32 %v5477_v19, %v5401_v6  ;;  %v2372_v11 = vadd.f32 %v5555_v36, %v2347_v17  ;;  %v2244_v43 = vmul.f32 %v5482_v50, %v5382_v58 }
  0xf4   :  { %v2373_v52 = vadd.f32 %v5555_v36, %v2348_v51  ;;  %v2349_v31 = vadd.f32 %v5533_v37, %v2324_v0  ;;  %v2276_v54 = vadd.f32 %v2268_v30, %v2251_v63  ;;  %v2269_v34 = vmul.f32 %v5494_v33, %v5366_v27 }
  0xf5   :  { %v2325_v42 = vadd.f32 %v5530_v55, %v2300_v16  ;;  %v2227_v46 = vadd.f32 %v2219_v41, %v2194_v53  ;;  %2380 = vst [vmem:[#allocation3 + $0x98] sm:$0xff] %v2372_v11  ;;  %v2294_v13 = vmul.f32 %v5503_v48, %v5351_v20  ;;  %v2319_v23 = vmul.f32 %v5508_v1, %v5346_v25  ;;  %v5626_v16 = vld [vmem:[#allocation3 + $0xc1] sm:$0xff] }
  0xf6   :  { %v2374_v15 = vadd.f32 %v5555_v36, %v2349_v31  ;;  %v2344_v17 = vmul.f32 %v5518_v56, %v5300_v18  ;;  %2381 = vst [vmem:[#allocation3 + $0xa8] sm:$0xff] %v2373_v52  ;;  %v2301_v30 = vadd.f32 %v2293_v4, %v2276_v54  ;;  %v2195_v0 = vmul.f32 %v5472_v8, %v5456_v29  ;;  %v5652_v54 = vld [vmem:[#allocation3 + $0xd1] sm:$0xff] }
  0xf7   :  { %v2350_v55 = vadd.f32 %v5533_v37, %v2325_v42  ;;  %v2252_v51 = vadd.f32 %v2244_v43, %v2227_v46  ;;  %v2220_v63 = vmul.f32 %v5477_v19, %v5427_v59  ;;  %v2245_v53 = vmul.f32 %v5482_v50, %v5401_v6 }
  0xf8   :  { %2382 = vst [vmem:[#allocation3 + $0xb8] sm:$0xff] %v2374_v15  ;;  %v2270_v41 = vmul.f32 %v5494_v33, %v5382_v58  ;;  %v2295_v11 = vmul.f32 %v5503_v48, %v5366_v27  ;;  %v2326_v52 = vadd.f32 %v2318_v35, %v2301_v30  ;;  %v2320_v8 = vmul.f32 %v5508_v1, %v5351_v20  ;;  %v1691_v15 = vld [vmem:[#allocation3 + $0x2] sm:$0xff]  ;;  %v6788_v30 = vld [vmem:[#allocation11_spill] sm:$0xff] }
  0xf9   :  { %v2375_v4 = vadd.f32 %v5555_v36, %v2350_v55  ;;  %v2277_v31 = vadd.f32 %v2269_v34, %v2252_v51  ;;  %v2228_v43 = vadd.f32 %v2220_v63, %v2195_v0  ;;  %v2345_v19 = vmul.f32 %v5518_v56, %v5346_v25  ;;  %v6789_v51 = vld [vmem:[#allocation12_spill] sm:$0xff]  ;;  %v1694_v0 = vld [vmem:[#allocation3 + $0x32] sm:$0xff] }
  0xfa   :  { %v5643_v50 = vmul.f32 %v5540_v10, %v5300_v18  ;;  %v1003_v33 = vadd.f32 %v4891_v5, %v4449_v14  ;;  %v2351_v48 = vadd.f32 %v5533_v37, %v2326_v52  ;;  %v1004_v35 = vadd.f32 %v4911_v26, %v4500_v47  ;;  %v1695_v63 = vld [vmem:[#allocation3 + $0x42] sm:$0xff] }
  0xfb   :  { %2383 = vst [vmem:[#allocation3 + $0xc8] sm:$0xff] %v2375_v4  ;;  %v2302_v42 = vadd.f32 %v2294_v13, %v2277_v31  ;;  %v1005_v1 = vadd.f32 %v4918_v61, %v4514_v9  ;;  %v2253_v56 = vadd.f32 %v2245_v53, %v2228_v43  ;;  %v1006_v10 = vadd.f32 %v4924_v49, %v4541_v45 }
  0xfc   :  { %v1235_v46 = vadd.f32 %v5057_v57, %v1003_v33  ;;  %v1007_v14 = vadd.f32 %v4949_v44, %v4555_v38  ;;  %v2376_v5 = vadd.f32 %v5555_v36, %v2351_v48  ;;  %v1236_v34 = vadd.f32 %v5071_v21, %v1004_v35  ;;  %v6787_v44 = vld [vmem:[#allocation5_spill] sm:$0xff]  ;;  %v1692_v21 = vld [vmem:[#allocation3 + $0x12] sm:$0xff] }
  0xfd   :  { %v2327_v37 = vadd.f32 %v2319_v23, %v2302_v42  ;;  %v1237_v47 = vadd.f32 %v5080_v2, %v1005_v1  ;;  %v2278_v26 = vadd.f32 %v2270_v41, %v2253_v56  ;;  %v1238_v61 = vadd.f32 %v5090_v3, %v1006_v10  ;;  %v1693_v23 = vld [vmem:[#allocation3 + $0x22] sm:$0xff]  ;;  %v6793_v35 = vld [vmem:[#allocation6_spill] sm:$0xff] }
  0xfe   :  { %v1467_v9 = vadd.f32 %v5214_v32, %v1235_v46  ;;  %v1239_v57 = vadd.f32 %v5115_v28, %v1007_v14  ;;  %2384 = vst [vmem:[#allocation3 + $0xd8] sm:$0xff] %v2376_v5  ;;  %v1468_v49 = vadd.f32 %v5232_v12, %v1236_v34  ;;  %v1008_v13 = vadd.f32 %v6787_v44, %v4572_v60  ;;  %v5669_v2 = vld [vmem:[#allocation3 + $0xe1] sm:$0xff]  ;;  %v1696_v56 = vld [vmem:[#allocation3 + $0x52] sm:$0xff] }
  0xff   :  { %v2352_v45 = vadd.f32 %v2344_v17, %v2327_v37  ;;  %v1469_v38 = vadd.f32 %v5239_v24, %v1237_v47  ;;  %v2303_v55 = vadd.f32 %v2295_v11, %v2278_v26  ;;  %v1470_v3 = vadd.f32 %v6788_v30, %v1238_v61  ;;  %v6790_v24 = vld [vmem:[#allocation8_spill] sm:$0xff]  ;;  %v6796_v5 = vld [vmem:[#allocation7_spill] sm:$0xff] }
 0x100   :  { %v1699_v32 = vadd.f32 %v1691_v15, %v1467_v9  ;;  %v1471_v28 = vadd.f32 %v6789_v51, %v1239_v57  ;;  %v1700_v12 = vadd.f32 %v1692_v21, %v1468_v49  ;;  %v1240_v41 = vadd.f32 %v6790_v24, %v1008_v13  ;;  %v5679_v11 = vld [vmem:[%s6763_s1 + $0x80] sm:$0xff]  ;;  %v5709_v47 = vld [vmem:[%s6763_s1 + $0x98] sm:$0xff]  ;;  %v6797_v9 = vld [vmem:[#allocation9_spill] sm:$0xff] }
 0x101   :  { %v2377_v17 = vadd.f32 %v5555_v36, %v2352_v45  ;;  %v1701_v53 = vadd.f32 %v1693_v23, %v1469_v38  ;;  %v2328_v4 = vadd.f32 %v2320_v8, %v2303_v55  ;;  %v1702_v52 = vadd.f32 %v1694_v0, %v1470_v3  ;;  %v6791_v36 = vld [vmem:[#allocation13_spill] sm:$0xff]  ;;  %v6792_v42 = vld [vmem:[#allocation4_spill] sm:$0xff]  ;;  %v5694_v8 = vld [vmem:[%s6763_s1 + $0x90] sm:$0xff] }
 0x102   :  { %v1931_v60 = vadd.f32 %v5578_v22, %v1699_v32  ;;  %v1703_v31 = vadd.f32 %v1695_v63, %v1471_v28  ;;  %v1932_v43 = vadd.f32 %v5598_v40, %v1700_v12  ;;  %v1472_v48 = vadd.f32 %v6791_v36, %v1240_v41  ;;  %v5689_v22 = vld [vmem:[%s6763_s1 + $0x88] sm:$0xff]  ;;  %v6794_v40 = vld [vmem:[#allocation22_spill] sm:$0xff]  ;;  %v6795_v14 = vld [vmem:[#allocation16_spill] sm:$0xff] }
 0x103   :  { %2385 = vst [vmem:[#allocation3 + $0xe8] sm:$0xff] %v2377_v17  ;;  %v1933_v33 = vadd.f32 %v5605_v39, %v1701_v53  ;;  %v1009_v1 = vadd.f32 %v6793_v35, %v6792_v42  ;;  %v5698_v46 = vadd.f32 %v6794_v40, %v5571_v62  ;;  %v2353_v39 = vadd.f32 %v2345_v19, %v2328_v4  ;;  %v2387_v34 = vld [vmem:[#allocation3 + $0x87] sm:$0xff]  ;;  %v1930_v26 = vld [vmem:[#allocation3 + $0xf1] sm:$0xff] }
 0x104   :  { %1939 = vst [vmem:[%s6764_s2] sm:$0xff] %v1931_v60  ;;  %v1934_v10 = vadd.f32 %v5611_v7, %v1702_v52  ;;  %v1010_v37 = vadd.f32 %v6796_v5, %v6795_v14  ;;  %v1935_v62 = vadd.f32 %v5626_v16, %v1703_v31  ;;  %v1704_v19 = vadd.f32 %v1696_v56, %v1472_v48  ;;  %v5721_v57 = vld [vmem:[%s6763_s1 + $0xa0] sm:$0xff]  ;;  %v5726_v15 = vld [vmem:[%s6763_s1 + $0xa8] sm:$0xff]  ;;  %v6798_v16 = vld [vmem:[#allocation10_spill] sm:$0xff] }
 0x105   :  { %1940 = vst [vmem:[%s6764_s2 + $0x8] sm:$0xff] %v1932_v43  ;;  %v1241_v61 = vadd.f32 %v6797_v9, %v1009_v1  ;;  %v2412_v7 = vmul.f32 %v5679_v11, %v5300_v18  ;;  %v2378_v45 = vadd.f32 %v5643_v50, %v2353_v39  ;;  %v2437_v38 = vmul.f32 0.0, %v5689_v22  ;;  %v5738_v13 = vld [vmem:[%s6763_s1 + $0xb0] sm:$0xff]  ;;  %v5743_v21 = vld [vmem:[%s6763_s1 + $0xb8] sm:$0xff]  ;;  %v6800_v32 = vld [vmem:[#allocation17_spill] sm:$0xff] }
 0x106   :  { %1941 = vst [vmem:[%s6764_s2 + $0x10] sm:$0xff] %v1933_v33  ;;  %v1242_v49 = vadd.f32 %v6798_v16, %v1010_v37  ;;  %v2462_v44 = vmul.f32 0.0, %v5694_v8  ;;  %v1936_v50 = vadd.f32 %v5652_v54, %v1704_v19  ;;  %v6799_v23 = vld [vmem:[#allocation14_spill] sm:$0xff]  ;;  %v5751_v30 = vadd.f32 %v2387_v34, %v6800_v32  ;;  %v1697_v28 = vld [vmem:[#allocation3 + $0x62] sm:$0xff]  ;;  %v6801_v0 = vld [vmem:[#allocation15_spill] sm:$0xff] }
 0x107   :  { %1942 = vst [vmem:[%s6764_s2 + $0x18] sm:$0xff] %v1934_v10  ;;  %v1473_v55 = vadd.f32 %v6799_v23, %v1241_v61  ;;  %v2487_v3 = vmul.f32 0.0, %v5709_v47  ;;  %v2388_v51 = vld [vmem:[#allocation3 + $0x97] sm:$0xff]  ;;  %v2445_v17 = vadd.f32 %v2437_v38, %v2412_v7  ;;  %v2512_v12 = vmul.f32 0.0, %v5721_v57  ;;  %v2389_v52 = vld [vmem:[#allocation3 + $0xa7] sm:$0xff] }
 0x108   :  { %2386 = vst [vmem:[#allocation3 + $0xf8] sm:$0xff] %v2378_v45  ;;  %v1474_v63 = vadd.f32 %v6801_v0, %v1242_v49  ;;  %v5757_v53 = vmul.f32 0.0, %v5726_v15  ;;  %v1698_v24 = vld [vmem:[#allocation3 + $0x72] sm:$0xff]  ;;  %v5763_v41 = vmul.f32 0.0, %v5738_v13  ;;  %v5766_v4 = vmul.f32 0.0, %v5743_v21  ;;  %v6804_v7 = vld [vmem:[#allocation20_spill] sm:$0xff] }
 0x109   :  { %1943 = vst [vmem:[%s6764_s2 + $0x20] sm:$0xff] %v1935_v62  ;;  %v1705_v54 = vadd.f32 %v1697_v28, %v1473_v55  ;;  %v2413_v60 = vmul.f32 %v5679_v11, %v5346_v25  ;;  %v2470_v43 = vadd.f32 %v2462_v44, %v2445_v17  ;;  %v6802_v33 = vld [vmem:[#allocation18_spill] sm:$0xff]  ;;  %v2438_v48 = vmul.f32 %v5689_v22, %v5300_v18  ;;  %v6803_v5 = vld [vmem:[#allocation19_spill] sm:$0xff] }
 0x10a   :  { %1944 = vst [vmem:[%s6764_s2 + $0x28] sm:$0xff] %v1936_v50  ;;  %v1706_v31 = vadd.f32 %v1698_v24, %v1474_v63  ;;  %v5774_v36 = vadd.f32 %v2388_v51, %v6802_v33  ;;  %v2414_v35 = vmul.f32 %v5679_v11, %v5351_v20  ;;  %v2439_v1 = vmul.f32 %v5689_v22, %v5346_v25  ;;  %v2390_v40 = vld [vmem:[#allocation3 + $0xb7] sm:$0xff]  ;;  %v6805_v51 = vld [vmem:[#allocation21_spill] sm:$0xff] }
 0x10b   :  { %v1937_v42 = vadd.f32 %v5669_v2, %v1705_v54  ;;  %v2464_v56 = vmul.f32 %v5694_v8, %v5300_v18  ;;  %v2495_v10 = vadd.f32 %v2487_v3, %v2470_v43  ;;  %v2446_v14 = vadd.f32 %v2438_v48, %v2413_v60 }
 0x10c   :  { %v1938_v39 = vadd.f32 %v1930_v26, %v1706_v31  ;;  %v5786_v37 = vadd.f32 %v2389_v52, %v6803_v5  ;;  %v2447_v2 = vadd.f32 %v2439_v1, %v2414_v35  ;;  %v2415_v34 = vmul.f32 %v5679_v11, %v5366_v27  ;;  %v2391_v26 = vld [vmem:[#allocation3 + $0xc7] sm:$0xff] }
 0x10d   :  { %1945 = vst [vmem:[%s6764_s2 + $0x30] sm:$0xff] %v1937_v42  ;;  %v2440_v62 = vmul.f32 %v5689_v22, %v5351_v20  ;;  %v2465_v19 = vmul.f32 %v5694_v8, %v5346_v25  ;;  %v2520_v9 = vadd.f32 %v2512_v12, %v2495_v10  ;;  %v2471_v61 = vadd.f32 %v2462_v44, %v2446_v14  ;;  %v2392_v42 = vld [vmem:[#allocation3 + $0xd7] sm:$0xff] }
 0x10e   :  { %1946 = vst [vmem:[%s6764_s2 + $0x38] sm:$0xff] %v1938_v39  ;;  %v5801_v45 = vadd.f32 %v2390_v40, %v6804_v7  ;;  %v2490_v16 = vmul.f32 %v5709_v47, %v5300_v18  ;;  %v2472_v49 = vadd.f32 %v2464_v56, %v2447_v2  ;;  %v2416_v50 = vmul.f32 %v5679_v11, %v5382_v58 }
 0x10f   :  { %v2448_v38 = vadd.f32 %v2440_v62, %v2415_v34  ;;  %v2441_v23 = vmul.f32 %v5689_v22, %v5366_v27  ;;  %v2545_v55 = vadd.f32 %v5757_v53, %v2520_v9  ;;  %v2496_v32 = vadd.f32 %v2487_v3, %v2471_v61  ;;  %v6806_v34 = vld [vmem:[#allocation23_spill] sm:$0xff] }
 0x110   :  { %v5811_v28 = vadd.f32 %v2391_v26, %v6805_v51  ;;  %v2466_v44 = vmul.f32 %v5694_v8, %v5351_v20  ;;  %v2497_v0 = vadd.f32 %v2487_v3, %v2472_v49  ;;  %v2491_v24 = vmul.f32 %v5709_v47, %v5346_v25 }
 0x111   :  { %v2473_v63 = vadd.f32 %v2465_v19, %v2448_v38  ;;  %v2449_v17 = vadd.f32 %v2441_v23, %v2416_v50  ;;  %v2570_v54 = vadd.f32 %v5763_v41, %v2545_v55  ;;  %v2521_v60 = vadd.f32 %v2512_v12, %v2496_v32 }
 0x112   :  { %v2516_v52 = vmul.f32 %v5721_v57, %v5300_v18  ;;  %v2417_v31 = vmul.f32 %v5679_v11, %v5401_v6  ;;  %v2522_v43 = vadd.f32 %v2512_v12, %v2497_v0  ;;  %v2442_v3 = vmul.f32 %v5689_v22, %v5382_v58  ;;  %v6807_v0 = vld [vmem:[#allocation24_spill] sm:$0xff] }
 0x113   :  { %v2498_v33 = vadd.f32 %v2490_v16, %v2473_v63  ;;  %v2474_v48 = vadd.f32 %v2466_v44, %v2449_v17  ;;  %v2595_v35 = vadd.f32 %v5766_v4, %v2570_v54  ;;  %v2546_v1 = vadd.f32 %v5757_v53, %v2521_v60  ;;  %v2393_v16 = vld [vmem:[#allocation3 + $0xe7] sm:$0xff] }
 0x114   :  { %v2467_v56 = vmul.f32 %v5694_v8, %v5366_v27  ;;  %v2492_v40 = vmul.f32 %v5709_v47, %v5351_v20  ;;  %v2547_v39 = vadd.f32 %v5757_v53, %v2522_v43  ;;  %v2450_v5 = vadd.f32 %v2442_v3, %v2417_v31  ;;  %v5871_v3 = vld [vmem:[%s6763_s1 + $0xc0] sm:$0xff] }
 0x115   :  { %v2523_v10 = vadd.f32 %v2512_v12, %v2498_v33  ;;  %v2499_v14 = vadd.f32 %v2491_v24, %v2474_v48  ;;  %2603 = vst [vmem:[#allocation3 + $0x8] sm:$0xff] %v2595_v35  ;;  %v2571_v2 = vadd.f32 %v5763_v41, %v2546_v1  ;;  %v5833_v62 = vadd.f32 %v2392_v42, %v6806_v34 }
 0x116   :  { %v2517_v19 = vmul.f32 %v5721_v57, %v5346_v25  ;;  %v2542_v26 = vmul.f32 %v5726_v15, %v5300_v18  ;;  %v2572_v9 = vadd.f32 %v5763_v41, %v2547_v39  ;;  %v2475_v12 = vadd.f32 %v2467_v56, %v2450_v5  ;;  %v5900_v5 = vld [vmem:[%s6763_s1 + $0xe0] sm:$0xff] }
 0x117   :  { %v2548_v61 = vadd.f32 %v5757_v53, %v2523_v10  ;;  %v2524_v7 = vadd.f32 %v2516_v52, %v2499_v14  ;;  %v2596_v49 = vadd.f32 %v5766_v4, %v2571_v2  ;;  %v2418_v38 = vmul.f32 %v5679_v11, %v5427_v59  ;;  %v5905_v2 = vld [vmem:[%s6763_s1 + $0xe8] sm:$0xff] }
 0x118   :  { %v2443_v50 = vmul.f32 %v5689_v22, %v5401_v6  ;;  %v2468_v23 = vmul.f32 %v5694_v8, %v5382_v58  ;;  %v2597_v55 = vadd.f32 %v5766_v4, %v2572_v9  ;;  %v2500_v44 = vadd.f32 %v2492_v40, %v2475_v12 }
 0x119   :  { %v2573_v32 = vadd.f32 %v5763_v41, %v2548_v61  ;;  %v2549_v51 = vadd.f32 %v5757_v53, %v2524_v7  ;;  %2604 = vst [vmem:[#allocation3 + $0x18] sm:$0xff] %v2596_v49  ;;  %v5852_v63 = vadd.f32 %v2393_v16, %v6807_v0  ;;  %v2493_v24 = vmul.f32 %v5709_v47, %v5366_v27 }
 0x11a   :  { %v2451_v17 = vadd.f32 %v2443_v50, %v2418_v38  ;;  %v2518_v54 = vmul.f32 %v5721_v57, %v5351_v20  ;;  %2605 = vst [vmem:[#allocation3 + $0x28] sm:$0xff] %v2597_v55  ;;  %v2525_v31 = vadd.f32 %v2517_v19, %v2500_v44  ;;  %v2543_v53 = vmul.f32 %v5726_v15, %v5346_v25 }
 0x11b   :  { %v2598_v60 = vadd.f32 %v5766_v4, %v2573_v32  ;;  %v2574_v52 = vadd.f32 %v5763_v41, %v2549_v51  ;;  %v2568_v33 = vmul.f32 %v5738_v13, %v5300_v18  ;;  %v2419_v48 = vmul.f32 %v5679_v11, %v5456_v29  ;;  %v5881_v11 = vld [vmem:[%s6763_s1 + $0xc8] sm:$0xff] }
 0x11c   :  { %v2476_v43 = vadd.f32 %v2468_v23, %v2451_v17  ;;  %v2444_v42 = vmul.f32 %v5689_v22, %v5427_v59  ;;  %v2550_v1 = vadd.f32 %v2542_v26, %v2525_v31  ;;  %v2469_v56 = vmul.f32 %v5694_v8, %v5401_v6  ;;  %v5886_v22 = vld [vmem:[%s6763_s1 + $0xd0] sm:$0xff] }
 0x11d   :  { %2606 = vst [vmem:[#allocation3 + $0x38] sm:$0xff] %v2598_v60  ;;  %v2599_v35 = vadd.f32 %v5766_v4, %v2574_v52  ;;  %v2494_v40 = vmul.f32 %v5709_v47, %v5382_v58  ;;  %v2519_v14 = vmul.f32 %v5721_v57, %v5366_v27  ;;  %v2544_v8 = vmul.f32 %v5726_v15, %v5351_v20  ;;  %v5895_v47 = vld [vmem:[%s6763_s1 + $0xd8] sm:$0xff]  ;;  %v5917_v26 = vld [vmem:[%s6763_s1 + $0xf0] sm:$0xff] }
 0x11e   :  { %v2501_v39 = vadd.f32 %v2493_v24, %v2476_v43  ;;  %v2452_v10 = vadd.f32 %v2444_v42, %v2419_v48  ;;  %v2575_v57 = vadd.f32 %v5763_v41, %v2550_v1  ;;  %v2569_v15 = vmul.f32 %v5738_v13, %v5346_v25  ;;  %v5924_v13 = vld [vmem:[%s6763_s1 + $0xf8] sm:$0xff] }
 0x11f   :  { %2607 = vst [vmem:[#allocation3 + $0x48] sm:$0xff] %v2599_v35  ;;  %v2594_v34 = vmul.f32 %v5743_v21, %v5300_v18  ;;  %v2636_v19 = vmul.f32 %v5871_v3, %v5300_v18  ;;  %v2661_v7 = vmul.f32 0.0, %v5881_v11  ;;  %v2686_v41 = vmul.f32 0.0, %v5886_v22 }
 0x120   :  { %v2526_v9 = vadd.f32 %v2518_v54, %v2501_v39  ;;  %v2477_v61 = vadd.f32 %v2469_v56, %v2452_v10  ;;  %v2600_v21 = vadd.f32 %v5766_v4, %v2575_v57  ;;  %v2711_v12 = vmul.f32 0.0, %v5895_v47 }
 0x121   :  { %v2736_v16 = vmul.f32 0.0, %v5900_v5  ;;  %v5930_v49 = vmul.f32 0.0, %v5905_v2  ;;  %v2669_v23 = vadd.f32 %v2661_v7, %v2636_v19  ;;  %v5933_v55 = vmul.f32 0.0, %v5917_v26 }
 0x122   :  { %v2551_v38 = vadd.f32 %v2543_v53, %v2526_v9  ;;  %v2502_v50 = vadd.f32 %v2494_v40, %v2477_v61  ;;  %2608 = vst [vmem:[#allocation3 + $0x58] sm:$0xff] %v2600_v21  ;;  %v5936_v32 = vmul.f32 0.0, %v5924_v13  ;;  %v2637_v51 = vmul.f32 %v5871_v3, %v5346_v25 }
 0x123   :  { %v2662_v44 = vmul.f32 %v5881_v11, %v5300_v18  ;;  %v2638_v0 = vmul.f32 %v5871_v3, %v5351_v20  ;;  %v2694_v54 = vadd.f32 %v2686_v41, %v2669_v23  ;;  %v2663_v60 = vmul.f32 %v5881_v11, %v5346_v25 }
 0x124   :  { %v2576_v17 = vadd.f32 %v2568_v33, %v2551_v38  ;;  %v2527_v24 = vadd.f32 %v2519_v14, %v2502_v50  ;;  %v2688_v31 = vmul.f32 %v5886_v22, %v5300_v18  ;;  %v2639_v53 = vmul.f32 %v5871_v3, %v5366_v27 }
 0x125   :  { %v2670_v52 = vadd.f32 %v2662_v44, %v2637_v51  ;;  %v2664_v43 = vmul.f32 %v5881_v11, %v5351_v20  ;;  %v2719_v35 = vadd.f32 %v2711_v12, %v2694_v54  ;;  %v2671_v33 = vadd.f32 %v2663_v60, %v2638_v0  ;;  %v2394_v44 = vld [vmem:[#allocation3 + $0xf7] sm:$0xff] }
 0x126   :  { %v2601_v48 = vadd.f32 %v5766_v4, %v2576_v17  ;;  %v2552_v42 = vadd.f32 %v2544_v8, %v2527_v24  ;;  %v2689_v40 = vmul.f32 %v5886_v22, %v5346_v25  ;;  %v2714_v39 = vmul.f32 %v5895_v47, %v5300_v18 }
 0x127   :  { %v2695_v1 = vadd.f32 %v2686_v41, %v2670_v52  ;;  %v2672_v56 = vadd.f32 %v2664_v43, %v2639_v53  ;;  %v2744_v14 = vadd.f32 %v2736_v16, %v2719_v35  ;;  %v2696_v57 = vadd.f32 %v2688_v31, %v2671_v33 }
 0x128   :  { %2609 = vst [vmem:[#allocation3 + $0x68] sm:$0xff] %v2601_v48  ;;  %v2577_v10 = vadd.f32 %v2569_v15, %v2552_v42  ;;  %v2640_v19 = vmul.f32 %v5871_v3, %v5382_v58  ;;  %v2665_v8 = vmul.f32 %v5881_v11, %v5366_v27  ;;  %v2690_v61 = vmul.f32 %v5886_v22, %v5351_v20 }
 0x129   :  { %v2720_v9 = vadd.f32 %v2711_v12, %v2695_v1  ;;  %v2697_v4 = vadd.f32 %v2689_v40, %v2672_v56  ;;  %v2769_v41 = vadd.f32 %v5930_v49, %v2744_v14  ;;  %v2721_v21 = vadd.f32 %v2711_v12, %v2696_v57 }
 0x12a   :  { %v2602_v7 = vadd.f32 %v2594_v34, %v2577_v10  ;;  %v2715_v15 = vmul.f32 %v5895_v47, %v5346_v25  ;;  %v2673_v23 = vadd.f32 %v2665_v8, %v2640_v19  ;;  %v2740_v51 = vmul.f32 %v5900_v5, %v5300_v18 }
 0x12b   :  { %v2745_v38 = vadd.f32 %v2736_v16, %v2720_v9  ;;  %v2722_v50 = vadd.f32 %v2714_v39, %v2697_v4  ;;  %v2794_v0 = vadd.f32 %v5933_v55, %v2769_v41  ;;  %v2746_v17 = vadd.f32 %v2736_v16, %v2721_v21  ;;  %v5998_v9 = vld [vmem:[%s6762_s0 + $0x40] sm:$0xff] }
 0x12c   :  { %2610 = vst [vmem:[#allocation3 + $0x78] sm:$0xff] %v2602_v7  ;;  %v2641_v34 = vmul.f32 %v5871_v3, %v5401_v6  ;;  %v2666_v12 = vmul.f32 %v5881_v11, %v5382_v58  ;;  %v2698_v60 = vadd.f32 %v2690_v61, %v2673_v23  ;;  %v2691_v52 = vmul.f32 %v5886_v22, %v5366_v27 }
 0x12d   :  { %v2770_v24 = vadd.f32 %v5930_v49, %v2745_v38  ;;  %v2747_v54 = vadd.f32 %v2736_v16, %v2722_v50  ;;  %v2819_v18 = vadd.f32 %v5936_v32, %v2794_v0  ;;  %v2771_v31 = vadd.f32 %v5930_v49, %v2746_v17 }
 0x12e   :  { %v2674_v53 = vadd.f32 %v2666_v12, %v2641_v34  ;;  %v2716_v43 = vmul.f32 %v5895_v47, %v5351_v20  ;;  %v5981_v48 = vadd.f32 %v2394_v44, %v5698_v46  ;;  %v2723_v16 = vadd.f32 %v2715_v15, %v2698_v60 }
 0x12f   :  { %v2795_v42 = vadd.f32 %v5933_v55, %v2770_v24  ;;  %v2772_v35 = vadd.f32 %v5930_v49, %v2747_v54  ;;  %2827 = vst [vmem:[#allocation3 + $0x88] sm:$0xff] %v2819_v18  ;;  %v2796_v33 = vadd.f32 %v5933_v55, %v2771_v31  ;;  %v2741_v56 = vmul.f32 %v5900_v5, %v5346_v25  ;;  %v6062_v24 = vld [vmem:[%s6762_s0 + $0x48] sm:$0xff] }
 0x130   :  { %v2699_v1 = vadd.f32 %v2691_v52, %v2674_v53  ;;  %v2642_v40 = vmul.f32 %v5871_v3, %v5427_v59  ;;  %v2748_v10 = vadd.f32 %v2740_v51, %v2723_v16  ;;  %v2667_v14 = vmul.f32 %v5881_v11, %v5401_v6  ;;  %v6073_v52 = vld [vmem:[%s6763_s1 + $0x128] sm:$0xff] }
 0x131   :  { %v2820_v39 = vadd.f32 %v5936_v32, %v2795_v42  ;;  %v2797_v46 = vadd.f32 %v5933_v55, %v2772_v35  ;;  %v2821_v57 = vadd.f32 %v5936_v32, %v2796_v33  ;;  %v2766_v4 = vmul.f32 %v5998_v9, %v5905_v2  ;;  %v2611_v31 = vld [vmem:[#allocation3 + $0x6] sm:$0xff] }
 0x132   :  { %v2724_v19 = vadd.f32 %v2716_v43, %v2699_v1  ;;  %v2692_v8 = vmul.f32 %v5886_v22, %v5382_v58  ;;  %v2773_v7 = vadd.f32 %v5930_v49, %v2748_v10  ;;  %v2675_v41 = vadd.f32 %v2667_v14, %v2642_v40 }
 0x133   :  { %2828 = vst [vmem:[#allocation3 + $0x98] sm:$0xff] %v2820_v39  ;;  %v2822_v61 = vadd.f32 %v5936_v32, %v2797_v46  ;;  %v2717_v21 = vmul.f32 %v5895_v47, %v5366_v27  ;;  %v2742_v38 = vmul.f32 %v5900_v5, %v5351_v20  ;;  %v2767_v50 = vmul.f32 %v5905_v2, %v5346_v25  ;;  %v6022_v20 = vld [vmem:[%s6763_s1 + $0x100] sm:$0xff] }
 0x134   :  { %2829 = vst [vmem:[#allocation3 + $0xa8] sm:$0xff] %v2821_v57  ;;  %v2749_v15 = vadd.f32 %v2741_v56, %v2724_v19  ;;  %v2643_v23 = vmul.f32 %v5871_v3, %v5456_v29  ;;  %v2798_v51 = vadd.f32 %v5933_v55, %v2773_v7  ;;  %v2700_v44 = vadd.f32 %v2692_v8, %v2675_v41  ;;  %v2613_v41 = vld [vmem:[#allocation3 + $0x26] sm:$0xff] }
 0x135   :  { %2830 = vst [vmem:[#allocation3 + $0xb8] sm:$0xff] %v2822_v61  ;;  %v2668_v49 = vmul.f32 %v5881_v11, %v5427_v59  ;;  %v2693_v0 = vmul.f32 %v5886_v22, %v5401_v6  ;;  %v2792_v25 = vmul.f32 %v5998_v9, %v5917_v26  ;;  %v2718_v29 = vmul.f32 %v5895_v47, %v5382_v58  ;;  %v6033_v59 = vld [vmem:[%s6763_s1 + $0x108] sm:$0xff]  ;;  %v6038_v6 = vld [vmem:[%s6763_s1 + $0x110] sm:$0xff]  ;;  %v6051_v47 = vld [vmem:[%s6763_s1 + $0x118] sm:$0xff] }
 0x136   :  { %v2774_v17 = vadd.f32 %v2766_v4, %v2749_v15  ;;  %v2743_v3 = vmul.f32 %v5900_v5, %v5366_v27  ;;  %v2823_v11 = vadd.f32 %v5936_v32, %v2798_v51  ;;  %v2725_v22 = vadd.f32 %v2717_v21, %v2700_v44  ;;  %v6044_v58 = vld [vmem:[%s6762_s0 + $0x50] sm:$0xff]  ;;  %v6056_v5 = vld [vmem:[%s6763_s1 + $0x120] sm:$0xff] }
 0x137   :  { %v2676_v34 = vadd.f32 %v2668_v49, %v2643_v23  ;;  %v2768_v27 = vmul.f32 %v6044_v58, %v5905_v2  ;;  %v2793_v2 = vmul.f32 %v6062_v24, %v5917_v26  ;;  %v2818_v54 = vmul.f32 %v5998_v9, %v5924_v13  ;;  %v6080_v26 = vld [vmem:[%s6763_s1 + $0x130] sm:$0xff]  ;;  %v6085_v13 = vld [vmem:[%s6763_s1 + $0x138] sm:$0xff] }
 0x138   :  { %v2799_v12 = vadd.f32 %v5933_v55, %v2774_v17  ;;  %v2860_v60 = vmul.f32 %v5998_v9, %v6022_v20  ;;  %2831 = vst [vmem:[#allocation3 + $0xc8] sm:$0xff] %v2823_v11  ;;  %v2750_v55 = vadd.f32 %v2742_v38, %v2725_v22  ;;  %v2885_v53 = vmul.f32 0.0, %v6033_v59  ;;  %v6124_v17 = vld [vmem:[%s6762_s0 + $0x58] sm:$0xff] }
 0x139   :  { %v2701_v18 = vadd.f32 %v2693_v0, %v2676_v34  ;;  %v2910_v43 = vmul.f32 0.0, %v6038_v6  ;;  %v6089_v35 = vadd.f32 %v2611_v31, %v5751_v30  ;;  %v2935_v16 = vmul.f32 0.0, %v6051_v47  ;;  %v2612_v30 = vld [vmem:[#allocation3 + $0x16] sm:$0xff] }
 0x13a   :  { %v2824_v42 = vadd.f32 %v5936_v32, %v2799_v12  ;;  %v6093_v33 = vmul.f32 0.0, %v6056_v5  ;;  %v2775_v1 = vadd.f32 %v2767_v50, %v2750_v55  ;;  %v2893_v40 = vadd.f32 %v2885_v53, %v2860_v60  ;;  %v2614_v0 = vld [vmem:[#allocation3 + $0x36] sm:$0xff] }
 0x13b   :  { %v2726_v56 = vadd.f32 %v2718_v29, %v2701_v18  ;;  %v6096_v39 = vmul.f32 0.0, %v6073_v52  ;;  %v6099_v46 = vmul.f32 0.0, %v6080_v26  ;;  %v6102_v10 = vmul.f32 0.0, %v6085_v13 }
 0x13c   :  { %2832 = vst [vmem:[#allocation3 + $0xd8] sm:$0xff] %v2824_v42  ;;  %v2861_v14 = vmul.f32 %v6062_v24, %v6022_v20  ;;  %v2886_v57 = vmul.f32 %v5998_v9, %v6033_v59  ;;  %v2800_v19 = vadd.f32 %v2792_v25, %v2775_v1  ;;  %v2918_v8 = vadd.f32 %v2910_v43, %v2893_v40  ;;  %v2615_v42 = vld [vmem:[#allocation3 + $0x46] sm:$0xff] }
 0x13d   :  { %v2751_v4 = vadd.f32 %v2743_v3, %v2726_v56  ;;  %v6109_v61 = vadd.f32 %v2612_v30, %v5774_v36  ;;  %v2862_v21 = vmul.f32 %v6044_v58, %v6022_v20  ;;  %v2887_v15 = vmul.f32 %v6062_v24, %v6033_v59 }
 0x13e   :  { %v2894_v7 = vadd.f32 %v2886_v57, %v2861_v14  ;;  %v2912_v38 = vmul.f32 %v5998_v9, %v6038_v6  ;;  %v2825_v50 = vadd.f32 %v5936_v32, %v2800_v19  ;;  %v2943_v51 = vadd.f32 %v2935_v16, %v2918_v8 }
 0x13f   :  { %v2776_v23 = vadd.f32 %v2768_v27, %v2751_v4  ;;  %v6119_v44 = vadd.f32 %v2613_v41, %v5786_v37  ;;  %v2895_v49 = vadd.f32 %v2887_v15, %v2862_v21  ;;  %v2863_v25 = vmul.f32 %v6124_v17, %v6022_v20 }
 0x140   :  { %v2919_v36 = vadd.f32 %v2910_v43, %v2894_v7  ;;  %v2888_v29 = vmul.f32 %v6044_v58, %v6033_v59  ;;  %2833 = vst [vmem:[#allocation3 + $0xe8] sm:$0xff] %v2825_v50  ;;  %v2968_v3 = vadd.f32 %v6093_v33, %v2943_v51  ;;  %v6132_v37 = vadd.f32 %v2614_v0, %v5801_v45  ;;  %v2616_v50 = vld [vmem:[#allocation3 + $0x56] sm:$0xff] }
 0x141   :  { %v2801_v32 = vadd.f32 %v2793_v2, %v2776_v23  ;;  %v2913_v11 = vmul.f32 %v6062_v24, %v6038_v6  ;;  %v2920_v34 = vadd.f32 %v2912_v38, %v2895_v49  ;;  %v2938_v12 = vmul.f32 %v5998_v9, %v6051_v47  ;;  %v6142_v2 = vld [vmem:[%s6762_s0 + $0x60] sm:$0xff] }
 0x142   :  { %v2944_v22 = vadd.f32 %v2935_v16, %v2919_v36  ;;  %v2896_v27 = vadd.f32 %v2888_v29, %v2863_v25  ;;  %v2993_v55 = vadd.f32 %v6096_v39, %v2968_v3  ;;  %v2864_v45 = vmul.f32 %v6142_v2, %v6022_v20 }
 0x143   :  { %v2826_v60 = vadd.f32 %v2818_v54, %v2801_v32  ;;  %v2889_v18 = vmul.f32 %v6124_v17, %v6033_v59  ;;  %v2945_v53 = vadd.f32 %v2935_v16, %v2920_v34  ;;  %v2914_v54 = vmul.f32 %v6044_v58, %v6038_v6 }
 0x144   :  { %v2969_v31 = vadd.f32 %v6093_v33, %v2944_v22  ;;  %v2921_v43 = vadd.f32 %v2913_v11, %v2896_v27  ;;  %v3018_v1 = vadd.f32 %v6099_v46, %v2993_v55  ;;  %v6153_v56 = vadd.f32 %v2615_v42, %v5811_v28  ;;  %v6165_v28 = vld [vmem:[%s6762_s0 + $0x68] sm:$0xff] }
 0x145   :  { %2834 = vst [vmem:[#allocation3 + $0xf8] sm:$0xff] %v2826_v60  ;;  %v2897_v40 = vadd.f32 %v2889_v18, %v2864_v45  ;;  %v2939_v30 = vmul.f32 %v6062_v24, %v6051_v47  ;;  %v2970_v57 = vadd.f32 %v6093_v33, %v2945_v53  ;;  %v2964_v19 = vmul.f32 %v5998_v9, %v6056_v5  ;;  %v2617_v60 = vld [vmem:[#allocation3 + $0x66] sm:$0xff] }
 0x146   :  { %v2994_v14 = vadd.f32 %v6096_v39, %v2969_v31  ;;  %v2946_v16 = vadd.f32 %v2938_v12, %v2921_v43  ;;  %v3043_v4 = vadd.f32 %v6102_v10, %v3018_v1  ;;  %v2865_v7 = vmul.f32 %v6165_v28, %v6022_v20 }
 0x147   :  { %v2922_v8 = vadd.f32 %v2914_v54, %v2897_v40  ;;  %v2890_v41 = vmul.f32 %v6142_v2, %v6033_v59  ;;  %v2995_v15 = vadd.f32 %v6096_v39, %v2970_v57  ;;  %v2915_v23 = vmul.f32 %v6124_v17, %v6038_v6 }
 0x148   :  { %v3019_v21 = vadd.f32 %v6099_v46, %v2994_v14  ;;  %v2971_v38 = vadd.f32 %v6093_v33, %v2946_v16  ;;  %3051 = vst [vmem:[#allocation3 + $0x8] sm:$0xff] %v3043_v4  ;;  %v6177_v36 = vadd.f32 %v2616_v50, %v5833_v62  ;;  %v2940_v0 = vmul.f32 %v6044_v58, %v6051_v47  ;;  %v6191_v62 = vld [vmem:[%s6762_s0 + $0x70] sm:$0xff]  ;;  %v6218_v14 = vld [vmem:[%s6762_s0 + $0x78] sm:$0xff] }
 0x149   :  { %v2947_v51 = vadd.f32 %v2939_v30, %v2922_v8  ;;  %v2898_v49 = vadd.f32 %v2890_v41, %v2865_v7  ;;  %v3020_v29 = vadd.f32 %v6099_v46, %v2995_v15  ;;  %v2965_v33 = vmul.f32 %v6062_v24, %v6056_v5  ;;  %v6231_v7 = vld [vmem:[%s6763_s1 + $0x140] sm:$0xff]  ;;  %v6251_v15 = vld [vmem:[%s6763_s1 + $0x158] sm:$0xff] }
 0x14a   :  { %v3044_v25 = vadd.f32 %v6102_v10, %v3019_v21  ;;  %v2996_v32 = vadd.f32 %v6096_v39, %v2971_v38  ;;  %v2990_v22 = vmul.f32 %v5998_v9, %v6073_v52  ;;  %v2866_v34 = vmul.f32 %v6191_v62, %v6022_v20  ;;  %v6256_v38 = vld [vmem:[%s6763_s1 + $0x160] sm:$0xff] }
 0x14b   :  { %v2972_v3 = vadd.f32 %v2964_v19, %v2947_v51  ;;  %v2923_v11 = vadd.f32 %v2915_v23, %v2898_v49  ;;  %v3045_v27 = vadd.f32 %v6102_v10, %v3020_v29  ;;  %v2891_v55 = vmul.f32 %v6165_v28, %v6033_v59  ;;  %v6270_v49 = vld [vmem:[%s6763_s1 + $0x170] sm:$0xff]  ;;  %v6280_v29 = vld [vmem:[%s6763_s1 + $0x178] sm:$0xff] }
 0x14c   :  { %3052 = vst [vmem:[#allocation3 + $0x18] sm:$0xff] %v3044_v25  ;;  %v3021_v12 = vadd.f32 %v6099_v46, %v2996_v32  ;;  %v2916_v45 = vmul.f32 %v6142_v2, %v6038_v6  ;;  %v6203_v53 = vadd.f32 %v2617_v60, %v5852_v63  ;;  %v2941_v43 = vmul.f32 %v6124_v17, %v6051_v47 }
 0x14d   :  { %v2997_v18 = vadd.f32 %v6096_v39, %v2972_v3  ;;  %v2948_v31 = vadd.f32 %v2940_v0, %v2923_v11  ;;  %3053 = vst [vmem:[#allocation3 + $0x28] sm:$0xff] %v3045_v27  ;;  %v2899_v54 = vadd.f32 %v2891_v55, %v2866_v34  ;;  %v2966_v1 = vmul.f32 %v6044_v58, %v6056_v5 }
 0x14e   :  { %6808 = vst [vmem:[#allocation5_spill] sm:$0xff] %v6203_v53  ;;  %v3046_v42 = vadd.f32 %v6102_v10, %v3021_v12  ;;  %v2991_v40 = vmul.f32 %v6062_v24, %v6073_v52  ;;  %v3016_v63 = vmul.f32 %v5998_v9, %v6080_v26  ;;  %v2867_v57 = vmul.f32 %v6218_v14, %v6022_v20  ;;  %v6236_v20 = vld [vmem:[%s6763_s1 + $0x148] sm:$0xff] }
 0x14f   :  { %v3022_v30 = vadd.f32 %v6099_v46, %v2997_v18  ;;  %v2973_v39 = vadd.f32 %v2965_v33, %v2948_v31  ;;  %v2924_v16 = vadd.f32 %v2916_v45, %v2899_v54  ;;  %v2892_v19 = vmul.f32 %v6191_v62, %v6033_v59  ;;  %v6241_v59 = vld [vmem:[%s6763_s1 + $0x150] sm:$0xff] }
 0x150   :  { %3054 = vst [vmem:[#allocation3 + $0x38] sm:$0xff] %v3046_v42  ;;  %v2917_v4 = vmul.f32 %v6165_v28, %v6038_v6  ;;  %v2942_v8 = vmul.f32 %v6142_v2, %v6051_v47  ;;  %v2967_v47 = vmul.f32 %v6124_v17, %v6056_v5  ;;  %v2992_v21 = vmul.f32 %v6044_v58, %v6073_v52  ;;  %v6265_v52 = vld [vmem:[%s6763_s1 + $0x168] sm:$0xff] }
 0x151   :  { %v3047_v6 = vadd.f32 %v6102_v10, %v3022_v30  ;;  %v2998_v41 = vadd.f32 %v2990_v22, %v2973_v39  ;;  %v2949_v50 = vadd.f32 %v2941_v43, %v2924_v16  ;;  %v2900_v23 = vadd.f32 %v2892_v19, %v2867_v57 }
 0x152   :  { %v3017_v51 = vmul.f32 %v6062_v24, %v6080_v26  ;;  %v3042_v5 = vmul.f32 %v5998_v9, %v6085_v13  ;;  %v3084_v25 = vmul.f32 %v5998_v9, %v6231_v7  ;;  %v3109_v26 = vmul.f32 0.0, %v6236_v20 }
 0x153   :  { %3055 = vst [vmem:[#allocation3 + $0x48] sm:$0xff] %v3047_v6  ;;  %v3023_v0 = vadd.f32 %v6099_v46, %v2998_v41  ;;  %v3134_v13 = vmul.f32 0.0, %v6241_v59  ;;  %v2974_v32 = vadd.f32 %v2966_v1, %v2949_v50  ;;  %v2925_v33 = vadd.f32 %v2917_v4, %v2900_v23 }
 0x154   :  { %v3159_v3 = vmul.f32 0.0, %v6251_v15  ;;  %v3184_v11 = vmul.f32 0.0, %v6256_v38  ;;  %v3117_v22 = vadd.f32 %v3109_v26, %v3084_v25  ;;  %v6286_v34 = vmul.f32 0.0, %v6265_v52 }
 0x155   :  { %v3048_v46 = vadd.f32 %v6102_v10, %v3023_v0  ;;  %v6289_v27 = vmul.f32 0.0, %v6270_v49  ;;  %v2999_v12 = vadd.f32 %v2991_v40, %v2974_v32  ;;  %v2950_v60 = vadd.f32 %v2942_v8, %v2925_v33 }
 0x156   :  { %v6292_v55 = vmul.f32 0.0, %v6280_v29  ;;  %v3085_v45 = vmul.f32 %v6062_v24, %v6231_v7  ;;  %v3142_v18 = vadd.f32 %v3134_v13, %v3117_v22  ;;  %v3110_v31 = vmul.f32 %v5998_v9, %v6236_v20 }
 0x157   :  { %3056 = vst [vmem:[#allocation3 + $0x58] sm:$0xff] %v3048_v46  ;;  %v3086_v43 = vmul.f32 %v6044_v58, %v6231_v7  ;;  %v3111_v42 = vmul.f32 %v6062_v24, %v6236_v20  ;;  %v3024_v54 = vadd.f32 %v3016_v63, %v2999_v12  ;;  %v2975_v1 = vadd.f32 %v2967_v47, %v2950_v60 }
 0x158   :  { %v3136_v40 = vmul.f32 %v5998_v9, %v6241_v59  ;;  %v3087_v30 = vmul.f32 %v6124_v17, %v6231_v7  ;;  %v3167_v39 = vadd.f32 %v3159_v3, %v3142_v18  ;;  %v3118_v57 = vadd.f32 %v3110_v31, %v3085_v45 }
 0x159   :  { %v3119_v16 = vadd.f32 %v3111_v42, %v3086_v43  ;;  %v3112_v19 = vmul.f32 %v6044_v58, %v6236_v20  ;;  %v3049_v4 = vadd.f32 %v6102_v10, %v3024_v54  ;;  %v3000_v8 = vadd.f32 %v2992_v21, %v2975_v1  ;;  %v6319_v21 = vld [vmem:[#allocation3 + $0x76] sm:$0xff]  ;;  %v6327_v42 = vld [vmem:[#allocation3 + $0x85] sm:$0xff] }
 0x15a   :  { %v3137_v6 = vmul.f32 %v6062_v24, %v6241_v59  ;;  %v3162_v63 = vmul.f32 %v5998_v9, %v6251_v15  ;;  %v3192_v41 = vadd.f32 %v3184_v11, %v3167_v39  ;;  %v3143_v47 = vadd.f32 %v3134_v13, %v3118_v57 }
 0x15b   :  { %v3144_v50 = vadd.f32 %v3136_v40, %v3119_v16  ;;  %v3120_v23 = vadd.f32 %v3112_v19, %v3087_v30  ;;  %3057 = vst [vmem:[#allocation3 + $0x68] sm:$0xff] %v3049_v4  ;;  %v3025_v0 = vadd.f32 %v3017_v51, %v3000_v8  ;;  %v3088_v25 = vmul.f32 %v6142_v2, %v6231_v7 }
 0x15c   :  { %v3113_v26 = vmul.f32 %v6124_v17, %v6236_v20  ;;  %v3138_v10 = vmul.f32 %v6044_v58, %v6241_v59  ;;  %v3217_v32 = vadd.f32 %v6286_v34, %v3192_v41  ;;  %v3168_v33 = vadd.f32 %v3159_v3, %v3143_v47 }
 0x15d   :  { %v3169_v46 = vadd.f32 %v3159_v3, %v3144_v50  ;;  %v3145_v13 = vadd.f32 %v3137_v6, %v3120_v23  ;;  %v3050_v22 = vadd.f32 %v3042_v5, %v3025_v0  ;;  %v3163_v51 = vmul.f32 %v6062_v24, %v6251_v15  ;;  %v6347_v50 = vld [vmem:[#allocation3 + $0x95] sm:$0xff] }
 0x15e   :  { %v3121_v12 = vadd.f32 %v3113_v26, %v3088_v25  ;;  %v3188_v60 = vmul.f32 %v5998_v9, %v6256_v38  ;;  %v3242_v45 = vadd.f32 %v6289_v27, %v3217_v32  ;;  %v3193_v18 = vadd.f32 %v3184_v11, %v3168_v33 }
 0x15f   :  { %v3194_v31 = vadd.f32 %v3184_v11, %v3169_v46  ;;  %v3170_v43 = vadd.f32 %v3162_v63, %v3145_v13  ;;  %3058 = vst [vmem:[#allocation3 + $0x78] sm:$0xff] %v3050_v22  ;;  %v3089_v3 = vmul.f32 %v6165_v28, %v6231_v7  ;;  %v3114_v5 = vmul.f32 %v6142_v2, %v6236_v20  ;;  %v6360_v13 = vld [vmem:[#allocation3 + $0xb5] sm:$0xff] }
 0x160   :  { %v3146_v54 = vadd.f32 %v3138_v10, %v3121_v12  ;;  %v3139_v1 = vmul.f32 %v6124_v17, %v6241_v59  ;;  %v3267_v40 = vadd.f32 %v6292_v55, %v3242_v45  ;;  %v3218_v30 = vadd.f32 %v6286_v34, %v3193_v18  ;;  %v6354_v10 = vld [vmem:[#allocation3 + $0xa5] sm:$0xff] }
 0x161   :  { %v3219_v39 = vadd.f32 %v6286_v34, %v3194_v31  ;;  %v3195_v57 = vadd.f32 %v3184_v11, %v3170_v43  ;;  %v3122_v19 = vadd.f32 %v3114_v5, %v3089_v3  ;;  %v3164_v4 = vmul.f32 %v6044_v58, %v6251_v15 }
 0x162   :  { %v3171_v16 = vadd.f32 %v3163_v51, %v3146_v54  ;;  %v3189_v8 = vmul.f32 %v6062_v24, %v6256_v38  ;;  %3275 = vst [vmem:[#allocation3 + $0x88] sm:$0xff] %v3267_v40  ;;  %v3243_v6 = vadd.f32 %v6289_v27, %v3218_v30  ;;  %v3214_v47 = vmul.f32 %v5998_v9, %v6265_v52  ;;  %v6380_v40 = vld [vmem:[#allocation3 + $0xc5] sm:$0xff] }
 0x163   :  { %v3244_v63 = vadd.f32 %v6289_v27, %v3219_v39  ;;  %v3220_v41 = vadd.f32 %v6286_v34, %v3195_v57  ;;  %v3147_v23 = vadd.f32 %v3139_v1, %v3122_v19  ;;  %v3090_v0 = vmul.f32 %v6191_v62, %v6231_v7  ;;  %v6378_v1 = vld [vmem:[%s6763_s1 + $0x180] sm:$0xff]  ;;  %v6398_v19 = vld [vmem:[%s6763_s1 + $0x190] sm:$0xff] }
 0x164   :  { %v3196_v11 = vadd.f32 %v3188_v60, %v3171_v16  ;;  %v3115_v25 = vmul.f32 %v6165_v28, %v6236_v20  ;;  %v3268_v26 = vadd.f32 %v6292_v55, %v3243_v6  ;;  %v3140_v46 = vmul.f32 %v6142_v2, %v6241_v59  ;;  %v6393_v16 = vld [vmem:[%s6763_s1 + $0x188] sm:$0xff] }
 0x165   :  { %v3269_v32 = vadd.f32 %v6292_v55, %v3244_v63  ;;  %v3245_v33 = vadd.f32 %v6289_v27, %v3220_v41  ;;  %v3172_v12 = vadd.f32 %v3164_v4, %v3147_v23  ;;  %v3165_v60 = vmul.f32 %v6124_v17, %v6251_v15  ;;  %v6416_v6 = vld [vmem:[%s6763_s1 + $0x1a8] sm:$0xff] }
 0x166   :  { %v3221_v22 = vadd.f32 %v6286_v34, %v3196_v11  ;;  %v3123_v51 = vadd.f32 %v3115_v25, %v3090_v0  ;;  %3276 = vst [vmem:[#allocation3 + $0x98] sm:$0xff] %v3268_v26  ;;  %v3190_v18 = vmul.f32 %v6044_v58, %v6256_v38  ;;  %v3215_v31 = vmul.f32 %v6062_v24, %v6265_v52  ;;  %v6427_v11 = vld [vmem:[%s6763_s1 + $0x1b0] sm:$0xff] }
 0x167   :  { %v3270_v45 = vadd.f32 %v6292_v55, %v3245_v33  ;;  %v3240_v43 = vmul.f32 %v5998_v9, %v6270_v49  ;;  %3277 = vst [vmem:[#allocation3 + $0xa8] sm:$0xff] %v3269_v32  ;;  %v3197_v54 = vadd.f32 %v3189_v8, %v3172_v12  ;;  %v3091_v5 = vmul.f32 %v6218_v14, %v6231_v7  ;;  %v6411_v8 = vld [vmem:[%s6763_s1 + $0x1a0] sm:$0xff] }
 0x168   :  { %v3246_v34 = vadd.f32 %v6289_v27, %v3221_v22  ;;  %v3148_v3 = vadd.f32 %v3140_v46, %v3123_v51  ;;  %v3116_v30 = vmul.f32 %v6191_v62, %v6236_v20  ;;  %v3141_v39 = vmul.f32 %v6165_v28, %v6241_v59 }
 0x169   :  { %3278 = vst [vmem:[#allocation3 + $0xb8] sm:$0xff] %v3270_v45  ;;  %v3166_v57 = vmul.f32 %v6142_v2, %v6251_v15  ;;  %v3191_v7 = vmul.f32 %v6124_v17, %v6256_v38  ;;  %v3222_v4 = vadd.f32 %v3214_v47, %v3197_v54  ;;  %v3216_v15 = vmul.f32 %v6044_v58, %v6265_v52  ;;  %v6406_v38 = vld [vmem:[%s6763_s1 + $0x198] sm:$0xff] }
 0x16a   :  { %v3271_v20 = vadd.f32 %v6292_v55, %v3246_v34  ;;  %v3173_v59 = vadd.f32 %v3165_v60, %v3148_v3  ;;  %v3124_v63 = vadd.f32 %v3116_v30, %v3091_v5  ;;  %v3241_v41 = vmul.f32 %v6062_v24, %v6270_v49  ;;  %v6435_v49 = vld [vmem:[%s6763_s1 + $0x1b8] sm:$0xff] }
 0x16b   :  { %v3266_v52 = vmul.f32 %v5998_v9, %v6280_v29  ;;  %v3308_v47 = vmul.f32 %v5998_v9, %v6378_v1  ;;  %v3247_v23 = vadd.f32 %v6289_v27, %v3222_v4  ;;  %v3333_v25 = vmul.f32 0.0, %v6393_v16  ;;  %v6437_v29 = vld [vmem:[#allocation3 + $0xd5] sm:$0xff] }
 0x16c   :  { %3279 = vst [vmem:[#allocation3 + $0xc8] sm:$0xff] %v3271_v20  ;;  %v3198_v0 = vadd.f32 %v3190_v18, %v3173_v59  ;;  %v3358_v26 = vmul.f32 0.0, %v6398_v19  ;;  %v3149_v32 = vadd.f32 %v3141_v39, %v3124_v63  ;;  %v3383_v33 = vmul.f32 0.0, %v6406_v38  ;;  %v6459_v39 = vld [vmem:[#allocation3 + $0xe5] sm:$0xff] }
 0x16d   :  { %v3408_v46 = vmul.f32 0.0, %v6411_v8  ;;  %v6442_v22 = vmul.f32 0.0, %v6416_v6  ;;  %v3272_v27 = vadd.f32 %v6292_v55, %v3247_v23  ;;  %v3341_v51 = vadd.f32 %v3333_v25, %v3308_v47  ;;  %6809 = vst [vmem:[#allocation11_spill] sm:$0xff] %v6459_v39 }
 0x16e   :  { %v3223_v12 = vadd.f32 %v3215_v31, %v3198_v0  ;;  %v6446_v60 = vmul.f32 0.0, %v6427_v11  ;;  %v3174_v45 = vadd.f32 %v3166_v57, %v3149_v32  ;;  %v6449_v18 = vmul.f32 0.0, %v6435_v49 }
 0x16f   :  { %v3309_v34 = vmul.f32 %v6062_v24, %v6378_v1  ;;  %v3334_v54 = vmul.f32 %v5998_v9, %v6393_v16  ;;  %3280 = vst [vmem:[#allocation3 + $0xd8] sm:$0xff] %v3272_v27  ;;  %v3366_v5 = vadd.f32 %v3358_v26, %v3341_v51  ;;  %v3310_v31 = vmul.f32 %v6044_v58, %v6378_v1 }
 0x170   :  { %v3248_v3 = vadd.f32 %v3240_v43, %v3223_v12  ;;  %v3335_v30 = vmul.f32 %v6062_v24, %v6393_v16  ;;  %v3199_v57 = vadd.f32 %v3191_v7, %v3174_v45  ;;  %v3360_v4 = vmul.f32 %v5998_v9, %v6398_v19 }
 0x171   :  { %v3342_v20 = vadd.f32 %v3334_v54, %v3309_v34  ;;  %v3311_v59 = vmul.f32 %v6124_v17, %v6378_v1  ;;  %v3391_v43 = vadd.f32 %v3383_v33, %v3366_v5  ;;  %v3336_v23 = vmul.f32 %v6044_v58, %v6393_v16 }
 0x172   :  { %v3273_v63 = vadd.f32 %v6292_v55, %v3248_v3  ;;  %v3343_v47 = vadd.f32 %v3335_v30, %v3310_v31  ;;  %v3224_v0 = vadd.f32 %v3216_v15, %v3199_v57  ;;  %v3361_v32 = vmul.f32 %v6062_v24, %v6398_v19 }
 0x173   :  { %v3367_v25 = vadd.f32 %v3358_v26, %v3342_v20  ;;  %v3386_v7 = vmul.f32 %v5998_v9, %v6406_v38  ;;  %v3416_v27 = vadd.f32 %v3408_v46, %v3391_v43  ;;  %v3344_v51 = vadd.f32 %v3336_v23, %v3311_v59  ;;  %v6478_v26 = vld [vmem:[#allocation3 + $0xf5] sm:$0xff]  ;;  %v6488_v23 = vld [vmem:[#allocation3 + $0x4] sm:$0xff] }
 0x174   :  { %3281 = vst [vmem:[#allocation3 + $0xe8] sm:$0xff] %v3273_v63  ;;  %v3368_v12 = vadd.f32 %v3360_v4, %v3343_v47  ;;  %v3312_v55 = vmul.f32 %v6142_v2, %v6378_v1  ;;  %v3249_v45 = vadd.f32 %v3241_v41, %v3224_v0  ;;  %v3337_v54 = vmul.f32 %v6124_v17, %v6393_v16 }
 0x175   :  { %v3392_v34 = vadd.f32 %v3383_v33, %v3367_v25  ;;  %v3362_v15 = vmul.f32 %v6044_v58, %v6398_v19  ;;  %6810 = vst [vmem:[#allocation12_spill] sm:$0xff] %v6478_v26  ;;  %v3441_v3 = vadd.f32 %v6442_v22, %v3416_v27  ;;  %v3369_v31 = vadd.f32 %v3361_v32, %v3344_v51 }
 0x176   :  { %v3393_v5 = vadd.f32 %v3383_v33, %v3368_v12  ;;  %v3387_v30 = vmul.f32 %v6062_v24, %v6406_v38  ;;  %v3274_v57 = vadd.f32 %v3266_v52, %v3249_v45  ;;  %v3345_v4 = vadd.f32 %v3337_v54, %v3312_v55  ;;  %v6502_v54 = vld [vmem:[#allocation3 + $0x14] sm:$0xff] }
 0x177   :  { %v3417_v20 = vadd.f32 %v3408_v46, %v3392_v34  ;;  %v3412_v41 = vmul.f32 %v5998_v9, %v6411_v8  ;;  %v3466_v59 = vadd.f32 %v6446_v60, %v3441_v3  ;;  %v3394_v43 = vadd.f32 %v3386_v7, %v3369_v31 }
 0x178   :  { %v3418_v63 = vadd.f32 %v3408_v46, %v3393_v5  ;;  %v3313_v47 = vmul.f32 %v6165_v28, %v6378_v1  ;;  %3282 = vst [vmem:[#allocation3 + $0xf8] sm:$0xff] %v3274_v57  ;;  %v3370_v0 = vadd.f32 %v3362_v15, %v3345_v4  ;;  %v3338_v52 = vmul.f32 %v6142_v2, %v6393_v16 }
 0x179   :  { %v3442_v33 = vadd.f32 %v6442_v22, %v3417_v20  ;;  %v3363_v25 = vmul.f32 %v6124_v17, %v6398_v19  ;;  %v3491_v32 = vadd.f32 %v6449_v18, %v3466_v59  ;;  %v3419_v7 = vadd.f32 %v3408_v46, %v3394_v43 }
 0x17a   :  { %v3443_v27 = vadd.f32 %v6442_v22, %v3418_v63  ;;  %v3388_v12 = vmul.f32 %v6044_v58, %v6406_v38  ;;  %v3395_v55 = vadd.f32 %v3387_v30, %v3370_v0  ;;  %v3346_v45 = vadd.f32 %v3338_v52, %v3313_v47  ;;  %v6511_v30 = vld [vmem:[#allocation3 + $0x24] sm:$0xff] }
 0x17b   :  { %v3467_v51 = vadd.f32 %v6446_v60, %v3442_v33  ;;  %v3413_v34 = vmul.f32 %v6062_v24, %v6411_v8  ;;  %3499 = vst [vmem:[#allocation3 + $0x8] sm:$0xff] %v3491_v32  ;;  %v3444_v3 = vadd.f32 %v6442_v22, %v3419_v7  ;;  %v3438_v46 = vmul.f32 %v5998_v9, %v6416_v6  ;;  %v6521_v33 = vld [vmem:[#allocation3 + $0x34] sm:$0xff] }
 0x17c   :  { %v3468_v15 = vadd.f32 %v6446_v60, %v3443_v27  ;;  %v3314_v5 = vmul.f32 %v6191_v62, %v6378_v1  ;;  %v3420_v57 = vadd.f32 %v3412_v41, %v3395_v55  ;;  %v3371_v20 = vadd.f32 %v3363_v25, %v3346_v45 }
 0x17d   :  { %v3492_v31 = vadd.f32 %v6449_v18, %v3467_v51  ;;  %v3339_v4 = vmul.f32 %v6165_v28, %v6393_v16  ;;  %v3469_v63 = vadd.f32 %v6446_v60, %v3444_v3  ;;  %v3364_v43 = vmul.f32 %v6142_v2, %v6398_v19  ;;  %v6544_v3 = vld [vmem:[%s6763_s1 + $0x1c8] sm:$0xff] }
 0x17e   :  { %v3493_v59 = vadd.f32 %v6449_v18, %v3468_v15  ;;  %v3389_v47 = vmul.f32 %v6124_v17, %v6406_v38  ;;  %v3445_v0 = vadd.f32 %v6442_v22, %v3420_v57  ;;  %v3396_v41 = vadd.f32 %v3388_v12, %v3371_v20  ;;  %v6539_v15 = vld [vmem:[%s6763_s1 + $0x1c0] sm:$0xff]  ;;  %v6559_v57 = vld [vmem:[%s6763_s1 + $0x1d0] sm:$0xff] }
 0x17f   :  { %3500 = vst [vmem:[#allocation3 + $0x18] sm:$0xff] %v3492_v31  ;;  %v3347_v52 = vadd.f32 %v3339_v4, %v3314_v5  ;;  %v3414_v25 = vmul.f32 %v6044_v58, %v6411_v8  ;;  %v3494_v32 = vadd.f32 %v6449_v18, %v3469_v63  ;;  %v3439_v27 = vmul.f32 %v6062_v24, %v6416_v6  ;;  %v6546_v5 = vld [vmem:[#allocation3 + $0x44] sm:$0xff] }
 0x180   :  { %3501 = vst [vmem:[#allocation3 + $0x28] sm:$0xff] %v3493_v59  ;;  %v3464_v7 = vmul.f32 %v5998_v9, %v6427_v11  ;;  %v3315_v51 = vmul.f32 %v6218_v14, %v6378_v1  ;;  %v3470_v55 = vadd.f32 %v6446_v60, %v3445_v0  ;;  %v3421_v22 = vadd.f32 %v3413_v34, %v3396_v41  ;;  %v6587_v0 = vld [vmem:[%s6763_s1 + $0x1f0] sm:$0xff] }
 0x181   :  { %v3372_v12 = vadd.f32 %v3364_v43, %v3347_v52  ;;  %v3340_v45 = vmul.f32 %v6191_v62, %v6393_v16  ;;  %3502 = vst [vmem:[#allocation3 + $0x38] sm:$0xff] %v3494_v32  ;;  %v3365_v1 = vmul.f32 %v6165_v28, %v6398_v19  ;;  %v3390_v34 = vmul.f32 %v6142_v2, %v6406_v38  ;;  %v6565_v19 = vld [vmem:[%s6763_s1 + $0x1d8] sm:$0xff]  ;;  %v6570_v38 = vld [vmem:[%s6763_s1 + $0x1e0] sm:$0xff] }
 0x182   :  { %v3415_v16 = vmul.f32 %v6124_v17, %v6411_v8  ;;  %v3440_v31 = vmul.f32 %v6044_v58, %v6416_v6  ;;  %v3495_v20 = vadd.f32 %v6449_v18, %v3470_v55  ;;  %v3446_v4 = vadd.f32 %v3438_v46, %v3421_v22  ;;  %v6575_v8 = vld [vmem:[%s6763_s1 + $0x1e8] sm:$0xff] }
 0x183   :  { %v3397_v59 = vadd.f32 %v3389_v47, %v3372_v12  ;;  %v3348_v63 = vadd.f32 %v3340_v45, %v3315_v51  ;;  %v3465_v6 = vmul.f32 %v6062_v24, %v6427_v11  ;;  %v3490_v46 = vmul.f32 %v5998_v9, %v6435_v49  ;;  %v6594_v49 = vld [vmem:[%s6763_s1 + $0x1f8] sm:$0xff] }
 0x184   :  { %v3532_v43 = vmul.f32 %v5998_v9, %v6539_v15  ;;  %v3557_v47 = vmul.f32 0.0, %v6544_v3  ;;  %3503 = vst [vmem:[#allocation3 + $0x48] sm:$0xff] %v3495_v20  ;;  %v3471_v41 = vadd.f32 %v6446_v60, %v3446_v4  ;;  %v3582_v11 = vmul.f32 0.0, %v6559_v57  ;;  %v6596_v51 = vld [vmem:[#allocation3 + $0x54] sm:$0xff] }
 0x185   :  { %v3422_v52 = vadd.f32 %v3414_v25, %v3397_v59  ;;  %v3373_v32 = vadd.f32 %v3365_v1, %v3348_v63  ;;  %6811 = vst [vmem:[#allocation8_spill] sm:$0xff] %v6594_v49  ;;  %v3607_v22 = vmul.f32 0.0, %v6565_v19  ;;  %v3632_v12 = vmul.f32 0.0, %v6570_v38 }
 0x186   :  { %v3565_v55 = vadd.f32 %v3557_v47, %v3532_v43  ;;  %v6601_v45 = vmul.f32 0.0, %v6575_v8  ;;  %v3496_v60 = vadd.f32 %v6449_v18, %v3471_v41  ;;  %v6605_v20 = vmul.f32 0.0, %v6587_v0  ;;  %v6618_v41 = vld [vmem:[#allocation3 + $0x64] sm:$0xff] }
 0x187   :  { %v3447_v25 = vadd.f32 %v3439_v27, %v3422_v52  ;;  %v3398_v1 = vadd.f32 %v3390_v34, %v3373_v32  ;;  %v6608_v59 = vmul.f32 0.0, %v6594_v49  ;;  %v3533_v63 = vmul.f32 %v6062_v24, %v6539_v15  ;;  %6812 = vst [vmem:[#allocation13_spill] sm:$0xff] %v6618_v41 }
 0x188   :  { %v3590_v4 = vadd.f32 %v3582_v11, %v3565_v55  ;;  %v3558_v43 = vmul.f32 %v5998_v9, %v6544_v3  ;;  %3504 = vst [vmem:[#allocation3 + $0x58] sm:$0xff] %v3496_v60  ;;  %v3534_v27 = vmul.f32 %v6044_v58, %v6539_v15  ;;  %v3559_v34 = vmul.f32 %v6062_v24, %v6544_v3 }
 0x189   :  { %v3472_v47 = vadd.f32 %v3464_v7, %v3447_v25  ;;  %v3423_v26 = vadd.f32 %v3415_v16, %v3398_v1  ;;  %v3584_v55 = vmul.f32 %v5998_v9, %v6559_v57  ;;  %v3535_v39 = vmul.f32 %v6124_v17, %v6539_v15 }
 0x18a   :  { %v3615_v52 = vadd.f32 %v3607_v22, %v3590_v4  ;;  %v3566_v32 = vadd.f32 %v3558_v43, %v3533_v63  ;;  %v3567_v16 = vadd.f32 %v3559_v34, %v3534_v27  ;;  %v3560_v25 = vmul.f32 %v6044_v58, %v6544_v3 }
 0x18b   :  { %v3497_v60 = vadd.f32 %v6449_v18, %v3472_v47  ;;  %v3448_v7 = vadd.f32 %v3440_v31, %v3423_v26  ;;  %v3585_v41 = vmul.f32 %v6062_v24, %v6559_v57  ;;  %v3610_v4 = vmul.f32 %v5998_v9, %v6565_v19  ;;  %v6633_v26 = vld [vmem:[#allocation3 + $0x74] sm:$0xff] }
 0x18c   :  { %v3640_v1 = vadd.f32 %v3632_v12, %v3615_v52  ;;  %v3591_v53 = vadd.f32 %v3582_v11, %v3566_v32  ;;  %v3592_v43 = vadd.f32 %v3584_v55, %v3567_v16  ;;  %v3568_v49 = vadd.f32 %v3560_v25, %v3535_v39 }
 0x18d   :  { %3505 = vst [vmem:[#allocation3 + $0x68] sm:$0xff] %v3497_v60  ;;  %v3473_v63 = vadd.f32 %v3465_v6, %v3448_v7  ;;  %v3536_v18 = vmul.f32 %v6142_v2, %v6539_v15  ;;  %v3561_v11 = vmul.f32 %v6124_v17, %v6544_v3  ;;  %v3586_v27 = vmul.f32 %v6044_v58, %v6559_v57 }
 0x18e   :  { %v3665_v31 = vadd.f32 %v6601_v45, %v3640_v1  ;;  %v3616_v47 = vadd.f32 %v3607_v22, %v3591_v53  ;;  %v3617_v52 = vadd.f32 %v3607_v22, %v3592_v43  ;;  %v3593_v32 = vadd.f32 %v3585_v41, %v3568_v49  ;;  %v6645_v53 = vld [vmem:[#allocation3 + $0x83] sm:$0xff] }
 0x18f   :  { %v3498_v34 = vadd.f32 %v3490_v46, %v3473_v63  ;;  %v3611_v39 = vmul.f32 %v6062_v24, %v6565_v19  ;;  %v3569_v60 = vadd.f32 %v3561_v11, %v3536_v18  ;;  %v3636_v7 = vmul.f32 %v5998_v9, %v6570_v38 }
 0x190   :  { %v3690_v6 = vadd.f32 %v6605_v20, %v3665_v31  ;;  %v3641_v55 = vadd.f32 %v3632_v12, %v3616_v47  ;;  %v3642_v16 = vadd.f32 %v3632_v12, %v3617_v52  ;;  %v3618_v25 = vadd.f32 %v3610_v4, %v3593_v32  ;;  %v3284_v52 = vld [vmem:[#allocation3 + $0x93] sm:$0xff] }
 0x191   :  { %3506 = vst [vmem:[#allocation3 + $0x78] sm:$0xff] %v3498_v34  ;;  %v3537_v46 = vmul.f32 %v6165_v28, %v6539_v15  ;;  %v3562_v49 = vmul.f32 %v6142_v2, %v6544_v3  ;;  %v3594_v1 = vadd.f32 %v3586_v27, %v3569_v60  ;;  %v3587_v63 = vmul.f32 %v6124_v17, %v6559_v57 }
 0x192   :  { %v3715_v22 = vadd.f32 %v6608_v59, %v3690_v6  ;;  %v3666_v41 = vadd.f32 %v6601_v45, %v3641_v55  ;;  %v3667_v43 = vadd.f32 %v6601_v45, %v3642_v16  ;;  %v3643_v18 = vadd.f32 %v3632_v12, %v3618_v25 }
 0x193   :  { %v3570_v31 = vadd.f32 %v3562_v49, %v3537_v46  ;;  %v3612_v4 = vmul.f32 %v6044_v58, %v6565_v19  ;;  %v6660_v47 = vadd.f32 %v6319_v21, %v5981_v48  ;;  %v3619_v34 = vadd.f32 %v3611_v39, %v3594_v1  ;;  %v6670_v48 = vld [vmem:[#allocation3 + $0xa3] sm:$0xff] }
 0x194   :  { %3723 = vst [vmem:[#allocation3 + $0x88] sm:$0xff] %v3715_v22  ;;  %v3691_v11 = vadd.f32 %v6605_v20, %v3666_v41  ;;  %v3637_v27 = vmul.f32 %v6062_v24, %v6570_v38  ;;  %v3692_v32 = vadd.f32 %v6605_v20, %v3667_v43  ;;  %v3668_v12 = vadd.f32 %v6601_v45, %v3643_v18  ;;  %v3286_v41 = vld [vmem:[#allocation3 + $0xb3] sm:$0xff] }
 0x195   :  { %v3595_v6 = vadd.f32 %v3587_v63, %v3570_v31  ;;  %v3538_v55 = vmul.f32 %v6191_v62, %v6539_v15  ;;  %v3644_v21 = vadd.f32 %v3636_v7, %v3619_v34  ;;  %v3563_v39 = vmul.f32 %v6165_v28, %v6544_v3 }
 0x196   :  { %v3716_v60 = vadd.f32 %v6608_v59, %v3691_v11  ;;  %v3588_v16 = vmul.f32 %v6142_v2, %v6559_v57  ;;  %v3717_v25 = vadd.f32 %v6608_v59, %v3692_v32  ;;  %v3693_v46 = vadd.f32 %v6605_v20, %v3668_v12  ;;  %v3287_v12 = vld [vmem:[#allocation3 + $0xc3] sm:$0xff] }
 0x197   :  { %v3620_v49 = vadd.f32 %v3612_v4, %v3595_v6  ;;  %v3662_v22 = vmul.f32 %v5998_v9, %v6575_v8  ;;  %v3669_v1 = vadd.f32 %v6601_v45, %v3644_v21  ;;  %v3571_v63 = vadd.f32 %v3563_v39, %v3538_v55 }
 0x198   :  { %3724 = vst [vmem:[#allocation3 + $0x98] sm:$0xff] %v3716_v60  ;;  %v3613_v7 = vmul.f32 %v6124_v17, %v6565_v19  ;;  %v3638_v43 = vmul.f32 %v6044_v58, %v6570_v38  ;;  %v3718_v18 = vadd.f32 %v6608_v59, %v3693_v46  ;;  %v3663_v4 = vmul.f32 %v6062_v24, %v6575_v8 }
 0x199   :  { %3725 = vst [vmem:[#allocation3 + $0xa8] sm:$0xff] %v3717_v25  ;;  %v3645_v31 = vadd.f32 %v3637_v27, %v3620_v49  ;;  %v3539_v9 = vmul.f32 %v6218_v14, %v6539_v15  ;;  %v3694_v11 = vadd.f32 %v6605_v20, %v3669_v1  ;;  %v3596_v45 = vadd.f32 %v3588_v16, %v3571_v63  ;;  %v3911_v27 = vld [vmem:[%s6762_s0 + $0x40] sm:$0xff] }
 0x19a   :  { %v3564_v34 = vmul.f32 %v6191_v62, %v6544_v3  ;;  %v3589_v32 = vmul.f32 %v6165_v28, %v6559_v57  ;;  %3726 = vst [vmem:[#allocation3 + $0xb8] sm:$0xff] %v3718_v18  ;;  %v3688_v55 = vmul.f32 %v3911_v27, %v6587_v0  ;;  %v3614_v14 = vmul.f32 %v6142_v2, %v6565_v19  ;;  %v3509_v63 = vld [vmem:[#allocation3 + $0x22] sm:$0xff] }
 0x19b   :  { %v3670_v6 = vadd.f32 %v3662_v22, %v3645_v31  ;;  %v3639_v15 = vmul.f32 %v6124_v17, %v6570_v38  ;;  %v3719_v62 = vadd.f32 %v6608_v59, %v3694_v11  ;;  %v3621_v3 = vadd.f32 %v3613_v7, %v3596_v45  ;;  %v3288_v17 = vld [vmem:[#allocation3 + $0xd3] sm:$0xff]  ;;  %v3731_v46 = vld [vmem:[#allocation3 + $0x81] sm:$0xff] }
 0x19c   :  { %v3572_v60 = vadd.f32 %v3564_v34, %v3539_v9  ;;  %v3664_v28 = vmul.f32 %v6044_v58, %v6575_v8  ;;  %v3689_v21 = vmul.f32 %v6062_v24, %v6587_v0  ;;  %v2843_v39 = vadd.f32 %v6327_v42, %v6089_v35  ;;  %v3289_v22 = vld [vmem:[#allocation3 + $0xe3] sm:$0xff]  ;;  %v3510_v31 = vld [vmem:[#allocation3 + $0x32] sm:$0xff] }
 0x19d   :  { %v3695_v57 = vadd.f32 %v6605_v20, %v3670_v6  ;;  %v2844_v2 = vadd.f32 %v6347_v50, %v6109_v61  ;;  %3727 = vst [vmem:[#allocation3 + $0xc8] sm:$0xff] %v3719_v62  ;;  %v3646_v19 = vadd.f32 %v3638_v43, %v3621_v3  ;;  %v2845_v16 = vadd.f32 %v6354_v10, %v6119_v44  ;;  %v3507_v10 = vld [vmem:[#allocation3 + $0x2] sm:$0xff] }
 0x19e   :  { %v3597_v38 = vadd.f32 %v3589_v32, %v3572_v60  ;;  %v2846_v58 = vadd.f32 %v6360_v13, %v6132_v37  ;;  %v3067_v24 = vadd.f32 %v6488_v23, %v2843_v39  ;;  %v2847_v35 = vadd.f32 %v6380_v40, %v6153_v56  ;;  %v3508_v56 = vld [vmem:[#allocation3 + $0x12] sm:$0xff]  ;;  %v6816_v3 = vld [vmem:[#allocation12_spill] sm:$0xff]  ;;  %v6817_v39 = vld [vmem:[#allocation13_spill] sm:$0xff] }
 0x19f   :  { %v3720_v8 = vadd.f32 %v6608_v59, %v3695_v57  ;;  %v3068_v0 = vadd.f32 %v6502_v54, %v2844_v2  ;;  %v3671_v61 = vadd.f32 %v3663_v4, %v3646_v19  ;;  %v3069_v50 = vadd.f32 %v6511_v30, %v2845_v16  ;;  %v3732_v40 = vld [vmem:[#allocation3 + $0x91] sm:$0xff] }
 0x1a0   :  { %v3622_v42 = vadd.f32 %v3614_v14, %v3597_v38  ;;  %v3070_v20 = vadd.f32 %v6521_v33, %v2846_v58  ;;  %v3291_v44 = vadd.f32 %v6645_v53, %v3067_v24  ;;  %v3071_v13 = vadd.f32 %v6546_v5, %v2847_v35  ;;  %v3733_v53 = vld [vmem:[#allocation3 + $0xa1] sm:$0xff]  ;;  %v6815_v14 = vld [vmem:[#allocation11_spill] sm:$0xff] }
 0x1a1   :  { %3728 = vst [vmem:[#allocation3 + $0xd8] sm:$0xff] %v3720_v8  ;;  %v3292_v37 = vadd.f32 %v3284_v52, %v3068_v0  ;;  %v2848_v23 = vadd.f32 %v6437_v29, %v6177_v36  ;;  %v3696_v54 = vadd.f32 %v3688_v55, %v3671_v61  ;;  %v3293_v49 = vadd.f32 %v6670_v48, %v3069_v50  ;;  %v6813_v36 = vld [vmem:[#allocation8_spill] sm:$0xff]  ;;  %v3734_v4 = vld [vmem:[#allocation3 + $0xb1] sm:$0xff] }
 0x1a2   :  { %v3647_v25 = vadd.f32 %v3639_v15, %v3622_v42  ;;  %v3294_v30 = vadd.f32 %v3286_v41, %v3070_v20  ;;  %v3515_v33 = vadd.f32 %v3507_v10, %v3291_v44  ;;  %v3295_v7 = vadd.f32 %v3287_v12, %v3071_v13  ;;  %v3511_v41 = vld [vmem:[#allocation3 + $0x42] sm:$0xff]  ;;  %v3512_v55 = vld [vmem:[#allocation3 + $0x52] sm:$0xff] }
 0x1a3   :  { %v3516_v1 = vadd.f32 %v3508_v56, %v3292_v37  ;;  %v3072_v52 = vadd.f32 %v6596_v51, %v2848_v23  ;;  %v3721_v5 = vadd.f32 %v6608_v59, %v3696_v54  ;;  %v3714_v29 = vmul.f32 %v3911_v27, %v6813_v36  ;;  %v6814_v51 = vld [vmem:[#allocation5_spill] sm:$0xff]  ;;  %v3290_v15 = vld [vmem:[#allocation3 + $0xf3] sm:$0xff] }
 0x1a4   :  { %v3672_v43 = vadd.f32 %v3664_v28, %v3647_v25  ;;  %v3517_v18 = vadd.f32 %v3509_v63, %v3293_v49  ;;  %v3739_v9 = vadd.f32 %v3731_v46, %v3515_v33  ;;  %v3518_v48 = vadd.f32 %v3510_v31, %v3294_v30  ;;  %v3735_v45 = vld [vmem:[#allocation3 + $0xc1] sm:$0xff]  ;;  %v3514_v0 = vld [vmem:[#allocation3 + $0x72] sm:$0xff] }
 0x1a5   :  { %v3740_v11 = vadd.f32 %v3732_v40, %v3516_v1  ;;  %v3296_v34 = vadd.f32 %v3288_v17, %v3072_v52  ;;  %3729 = vst [vmem:[#allocation3 + $0xe8] sm:$0xff] %v3721_v5  ;;  %v3519_v12 = vadd.f32 %v3511_v41, %v3295_v7  ;;  %v2849_v59 = vadd.f32 %v6815_v14, %v6814_v51 }
 0x1a6   :  { %v3697_v32 = vadd.f32 %v3689_v21, %v3672_v43  ;;  %v3741_v6 = vadd.f32 %v3733_v53, %v3517_v18  ;;  %3886 = vst [vmem:[%s6764_s2 + $0x40] sm:$0xff] %v3739_v9  ;;  %v3742_v27 = vadd.f32 %v3734_v4, %v3518_v48  ;;  %v2850_v60 = vadd.f32 %v6816_v3, %v6660_v47  ;;  %v3513_v47 = vld [vmem:[#allocation3 + $0x62] sm:$0xff] }
 0x1a7   :  { %v3520_v62 = vadd.f32 %v3512_v55, %v3296_v34  ;;  %3887 = vst [vmem:[%s6764_s2 + $0x48] sm:$0xff] %v3740_v11  ;;  %v3743_v57 = vadd.f32 %v3735_v45, %v3519_v12  ;;  %v3073_v2 = vadd.f32 %v6817_v39, %v2849_v59 }
 0x1a8   :  { %v3722_v28 = vadd.f32 %v3714_v29, %v3697_v32  ;;  %v3736_v21 = vld [vmem:[#allocation3 + $0xd1] sm:$0xff]  ;;  %3888 = vst [vmem:[%s6764_s2 + $0x50] sm:$0xff] %v3741_v6  ;;  %v3074_v38 = vadd.f32 %v6633_v26, %v2850_v60 }
 0x1a9   :  { %v3744_v17 = vadd.f32 %v3736_v21, %v3520_v62  ;;  %v3297_v19 = vadd.f32 %v3289_v22, %v3073_v2  ;;  %3889 = vst [vmem:[%s6764_s2 + $0x58] sm:$0xff] %v3742_v27 }
 0x1aa   :  { %3730 = vst [vmem:[#allocation3 + $0xf8] sm:$0xff] %v3722_v28  ;;  %v3298_v58 = vadd.f32 %v3290_v15, %v3074_v38 }
 0x1ab   :  { %3890 = vst [vmem:[%s6764_s2 + $0x60] sm:$0xff] %v3743_v57  ;;  %v3521_v16 = vadd.f32 %v3513_v47, %v3297_v19 }
 0x1ac   :  { %3891 = vst [vmem:[%s6764_s2 + $0x68] sm:$0xff] %v3744_v17  ;;  %v3737_v8 = vld [vmem:[#allocation3 + $0xe1] sm:$0xff]  ;;  %v3522_v26 = vadd.f32 %v3514_v0, %v3298_v58 }
 0x1ad   :  { %v3745_v24 = vadd.f32 %v3737_v8, %v3521_v16 }
 0x1af   :  { %3892 = vst [vmem:[%s6764_s2 + $0x70] sm:$0xff] %v3745_v24 }
 0x1b1   :  { %v3738_v35 = vld [vmem:[#allocation3 + $0xf1] sm:$0xff] }
 0x1b2   :  { %v3746_v61 = vadd.f32 %v3738_v35, %v3522_v26 }
 0x1b4   :  { %3893 = vst [vmem:[%s6764_s2 + $0x78] sm:$0xff] %v3746_v61 }

</bundles_post_ra>
